<compile_context>
chip_gen: v7x
topology: tpu7x:2x2x1
jax: 0.10.0
libtpu: 0.0.40
codegen_flags: <defaults>
</compile_context>

<pallas_src>
import functools

import numpy as np
import jax
import jax.numpy as jnp
from jax.experimental import pallas as pl
from jax.experimental.pallas import tpu as pltpu


_VMEM_LIMIT = 32 * 1024 * 1024   # safe scoped-VMEM budget on v5e/v6e/v7x
_ROW_TILE = 1024                 # row tile for the pointwise matmul kernel


def _cparams():
    # every kernel below uses a rank-1 ("parallel") grid
    # TODO(synk): on v7x with B==1 / odd B, add a second parallel row-tile axis
    # so both TensorCores stay busy.
    return pltpu.CompilerParams(
        dimension_semantics=("parallel",),
        vmem_limit_bytes=_VMEM_LIMIT,
    )


# ----------------------------------------------------------------------------
# Host-side helpers: bilinear interpolation matrices (align_corners=False)
# ----------------------------------------------------------------------------
def bilinear_matrix(out_size, in_size):
    # Matches torch.nn.functional.interpolate(mode='bilinear', align_corners=False)
    A = np.zeros((out_size, in_size), np.float32)
    scale = in_size / out_size
    for i in range(out_size):
        src = max(scale * (i + 0.5) - 0.5, 0.0)
        i0 = min(int(np.floor(src)), in_size - 1)
        i1 = min(i0 + 1, in_size - 1)
        w1 = src - i0
        A[i, i0] += 1.0 - w1
        A[i, i1] += w1
    return A


def bilinear_matrix_2d(H, W, h, w):
    # Full (HW, hw) interpolation operator = kron(row-interp, col-interp); the
    # 2x/4x bilinear weights are exactly representable in bf16, so the upsample
    # becomes one bf16 MXU matmul inside the kernels (no rank-4 temporaries).
    return np.kron(bilinear_matrix(H, h), bilinear_matrix(W, w)).astype(np.float32)


# ----------------------------------------------------------------------------
# Kernel 1: row-tiled pointwise Conv1x1 + BN (+ ReLU), cast fused in-kernel
# ----------------------------------------------------------------------------
def _pointwise_kernel(x_ref, w_ref, s_ref, b_ref, o_ref, *, act):
    x = x_ref[...].astype(jnp.bfloat16)          # fused activation cast
    y = jnp.dot(x, w_ref[...], preferred_element_type=jnp.float32)
    y = y * s_ref[...] + b_ref[...]              # folded BN, f32 epilogue
    if act == "relu":
        y = jnp.maximum(y, 0.0)
    o_ref[...] = y.astype(o_ref.dtype)


def pointwise(x2d, w, scale, bias, act="none", out_dtype=jnp.bfloat16):
    M, K = x2d.shape
    N = w.shape[1]
    TM = M if M <= _ROW_TILE else _ROW_TILE      # _ROW_TILE is a multiple of 8
    grid = (pl.cdiv(M, TM),)
    return pl.pallas_call(
        functools.partial(_pointwise_kernel, act=act),
        out_shape=jax.ShapeDtypeStruct((M, N), out_dtype),
        grid=grid,
        in_specs=[
            pl.BlockSpec((TM, K), lambda i: (i, 0)),   # activations: row tiles
            pl.BlockSpec((K, N), lambda i: (0, 0)),    # weights stay resident
            pl.BlockSpec((1, N), lambda i: (0, 0)),
            pl.BlockSpec((1, N), lambda i: (0, 0)),
        ],
        out_specs=pl.BlockSpec((TM, N), lambda i: (i, 0)),
        compiler_params=_cparams(),
    )(
        x2d,                                     # native dtype; cast inside kernel
        w.astype(jnp.bfloat16),
        scale.reshape(1, N).astype(jnp.float32),
        bias.reshape(1, N).astype(jnp.float32),
    )


# ----------------------------------------------------------------------------
# Kernel 2: fused FPN decoder level (flat (HW, C) layout end-to-end)
#   out = ReLU(BN(Conv3x3( bilinear_up(x) + ReLU(BN(Conv1x1(lateral))) )))
# ----------------------------------------------------------------------------
def _fpn_level_kernel(x_ref, a_ref, l_ref, wl_ref, sl_ref, bl_ref,
                      w3_ref, s3_ref, b3_ref, o_ref, *, C, H, W):
    HW = H * W

    # lateral 1x1 conv + BN + ReLU (bf16 MXU, f32 epilogue) -> (HW, C)
    lat = jnp.dot(l_ref[0], wl_ref[...], preferred_element_type=jnp.float32)
    lat = jnp.maximum(lat * sl_ref[...] + bl_ref[...], 0.0)

    # bilinear upsample of the coarse map as ONE matmul with the precomputed
    # (HW, hw) kron interpolation matrix, fused residual add      -> (HW, C)
    up = jnp.dot(a_ref[...], x_ref[0], preferred_element_type=jnp.float32)
    s = up + lat                                                   # f32

    # 3x3 conv as a single K=9C im2col matmul; the 9 taps are built with XLU
    # rolls over the flat row axis + boundary masks (no halo scratch, no
    # sublane-unaligned slices, single bf16 cast of the deep operand).
    colc = jax.lax.broadcasted_iota(jnp.int32, (HW, C), 0) % W
    left = jnp.where(colc == 0, 0.0, pltpu.roll(s, 1, axis=0))           # x-1
    right = jnp.where(colc == W - 1, 0.0, pltpu.roll(s, HW - 1, axis=0))  # x+1
    scat = jnp.concatenate([left, s, right], axis=-1)              # (HW, 3C) f32

    row3 = jax.lax.broadcasted_iota(jnp.int32, (HW, 3 * C), 0)
    up_blk = jnp.where(row3 < W, 0.0, pltpu.roll(scat, W, axis=0))            # y-1
    dn_blk = jnp.where(row3 >= HW - W, 0.0, pltpu.roll(scat, HW - W, axis=0))  # y+1
    im2col = jnp.concatenate([up_blk, scat, dn_blk],
                             axis=-1).astype(jnp.bfloat16)         # (HW, 9C)

    acc = jnp.dot(im2col, w3_ref[...], preferred_element_type=jnp.float32)
    out = jnp.maximum(acc * s3_ref[...] + b3_ref[...], 0.0)        # (HW, C)
    o_ref[0] = out.astype(o_ref.dtype)                             # lane-dense store


def fpn_decode_level(x_coarse, lateral, lat_params, smooth_params):
    B, h, w, C = x_coarse.shape
    _, H, W, Cl = lateral.shape
    HW, hw = H * W, h * w
    a2d = jnp.asarray(bilinear_matrix_2d(H, W, h, w))
    wl, sl, bl = lat_params
    w3, s3, b3 = smooth_params
    kernel = functools.partial(_fpn_level_kernel, C=C, H=H, W=W)
    out = pl.pallas_call(
        kernel,
        out_shape=jax.ShapeDtypeStruct((B, HW, C), jnp.bfloat16),
        grid=(B,),
        in_specs=[
            pl.BlockSpec((1, hw, C), lambda b: (b, 0, 0)),
            pl.BlockSpec((HW, hw), lambda b: (0, 0)),
            pl.BlockSpec((1, HW, Cl), lambda b: (b, 0, 0)),
            pl.BlockSpec((Cl, C), lambda b: (0, 0)),
            pl.BlockSpec((1, C), lambda b: (0, 0)),
            pl.BlockSpec((1, C), lambda b: (0, 0)),
            pl.BlockSpec((9 * C, C), lambda b: (0, 0)),
            pl.BlockSpec((1, C), lambda b: (0, 0)),
            pl.BlockSpec((1, C), lambda b: (0, 0)),
        ],
        out_specs=pl.BlockSpec((1, HW, C), lambda b: (b, 0, 0)),
        compiler_params=_cparams(),
    )(
        x_coarse.reshape(B, hw, C).astype(jnp.bfloat16),
        a2d.astype(jnp.bfloat16),          # 2x-bilinear weights exact in bf16
        lateral.reshape(B, HW, Cl).astype(jnp.bfloat16),
        wl.astype(jnp.bfloat16),
        sl.reshape(1, C).astype(jnp.float32),
        bl.reshape(1, C).astype(jnp.float32),
        w3.astype(jnp.bfloat16),
        s3.reshape(1, C).astype(jnp.float32),
        b3.reshape(1, C).astype(jnp.float32),
    )
    return out.reshape(B, H, W, C)         # free metadata reshape in the wrapper


# ----------------------------------------------------------------------------
# Kernel 3: fused head
#   p = concat([p2, up(p3), up(p4)]) (never materialized in HBM)
#   feat = BN(Conv1x1(p)); att = sigmoid(Conv1x1(ReLU(BN(Conv1x1(p)))))
#   feat = l2norm(sum_hw(feat * att))
# ----------------------------------------------------------------------------
def _head_kernel(p2_ref, p3_ref, p4_ref, a3_ref, a4_ref,
                 wpk_ref, spk_ref, bpk_ref, wa2_ref, ba2_ref,
                 feat_ref, att_ref, *, C, HW, threshold):
    # in-VMEM matmul-based upsampling of p3 / p4 to p2's resolution
    p3u = jnp.dot(a3_ref[...], p3_ref[0],
                  preferred_element_type=jnp.float32).astype(jnp.bfloat16)
    p4u = jnp.dot(a4_ref[...], p4_ref[0],
                  preferred_element_type=jnp.float32).astype(jnp.bfloat16)

    # single (HW, 3C) operand, single K=3C matmul into the packed lane-dense
    # [feat | att-hidden] 2C-wide projection
    pcat = jnp.concatenate([p2_ref[0], p3u, p4u], axis=-1)          # (HW, 3C) bf16
    y = jnp.dot(pcat, wpk_ref[...], preferred_element_type=jnp.float32)
    y = y * spk_ref[...] + bpk_ref[...]                             # folded BN, f32

    # ReLU only on the attention-hidden lanes (packed, lane-masked epilogue)
    lane = jax.lax.broadcasted_iota(jnp.int32, (HW, 2 * C), 1)
    y = jnp.where(lane >= C, jnp.maximum(y, 0.0), y)

    # attention logits as a lane-dense (1, HW) row (trans-B matmul; the packed
    # feat lanes multiply a zero weight), then sigmoid
    logits = jax.lax.dot_general(wa2_ref[...], y, (((1,), (1,)), ((), ())),
                                 preferred_element_type=jnp.float32)
    logits = logits + ba2_ref[...]
    att = 1.0 / (1.0 + jnp.exp(-logits))                            # (1, HW)
    if threshold is not None:
        att = (att >= threshold).astype(jnp.float32)

    # attention-weighted spatial sum as a (1,HW)x(HW,2C) matvec, then l2norm on
    # the feat half (single lane split on a (1, 2C) row)
    sp = jnp.dot(att, y, preferred_element_type=jnp.float32)        # (1, 2C)
    f = sp[:, :C]
    inv = jax.lax.rsqrt(jnp.sum(f * f, axis=1, keepdims=True) + 1e-10)
    feat_ref[...] = (f * inv).reshape(1, 1, C).astype(feat_ref.dtype)
    att_ref[...] = att.reshape(1, 1, HW).astype(att_ref.dtype)      # lane-dense


def head(p2, p3, p4, conv_p, att1_p, att2_p, threshold=None):
    B, H2, W2, C = p2.shape
    _, h3, w3s, _ = p3.shape
    _, h4, w4s, _ = p4.shape
    HW = H2 * W2
    wf, sf, bf = conv_p
    wa1, sa1, ba1 = att1_p
    w2, b2 = att2_p
    # pack feat + attention-hidden weights into one 128-lane-wide projection
    wpk = jnp.concatenate([wf, wa1], axis=1).astype(jnp.bfloat16)   # (3C, 2C)
    spk = jnp.concatenate([sf, sa1]).reshape(1, 2 * C).astype(jnp.float32)
    bpk = jnp.concatenate([bf, ba1]).reshape(1, 2 * C).astype(jnp.float32)
    wa2p = jnp.concatenate([jnp.zeros((C,), jnp.float32),
                            w2.astype(jnp.float32)]).reshape(1, 2 * C)
    a3 = jnp.asarray(bilinear_matrix_2d(H2, W2, h3, w3s))
    a4 = jnp.asarray(bilinear_matrix_2d(H2, W2, h4, w4s))
    kernel = functools.partial(_head_kernel, C=C, HW=HW, threshold=threshold)
    feat, att = pl.pallas_call(
        kernel,
        out_shape=(jax.ShapeDtypeStruct((B, 1, C), jnp.float32),
                   jax.ShapeDtypeStruct((B, 1, HW), jnp.float32)),
        grid=(B,),
        in_specs=[
            pl.BlockSpec((1, HW, C), lambda b: (b, 0, 0)),
            pl.BlockSpec((1, h3 * w3s, C), lambda b: (b, 0, 0)),
            pl.BlockSpec((1, h4 * w4s, C), lambda b: (b, 0, 0)),
            pl.BlockSpec((HW, h3 * w3s), lambda b: (0, 0)),
            pl.BlockSpec((HW, h4 * w4s), lambda b: (0, 0)),
            pl.BlockSpec((3 * C, 2 * C), lambda b: (0, 0)),
            pl.BlockSpec((1, 2 * C), lambda b: (0, 0)),
            pl.BlockSpec((1, 2 * C), lambda b: (0, 0)),
            pl.BlockSpec((1, 2 * C), lambda b: (0, 0)),
            pl.BlockSpec((1, 1), lambda b: (0, 0)),
        ],
        out_specs=(pl.BlockSpec((1, 1, C), lambda b: (b, 0, 0)),
                   pl.BlockSpec((1, 1, HW), lambda b: (b, 0, 0))),
        compiler_params=_cparams(),
    )(
        p2.reshape(B, HW, C).astype(jnp.bfloat16),
        p3.reshape(B, h3 * w3s, C).astype(jnp.bfloat16),
        p4.reshape(B, h4 * w4s, C).astype(jnp.bfloat16),
        a3.astype(jnp.bfloat16), a4.astype(jnp.bfloat16),
        wpk, spk, bpk, wa2p,
        jnp.asarray(b2, jnp.float32).reshape(1, 1),
    )
    return feat.reshape(B, C), att


# ----------------------------------------------------------------------------
# Glue: parameter folding and the stand-in backbone
# ----------------------------------------------------------------------------
def avgpool(x, s):
    B, H, W, C = x.shape
    return x.reshape(B, H // s, s, W // s, s, C).mean(axis=(2, 4))


def space_to_depth(x, s):
    B, H, W, C = x.shape
    x = x.reshape(B, H // s, s, W // s, s, C)
    x = x.transpose(0, 1, 3, 2, 4, 5)
    return x.reshape(B, H // s, W // s, s * s * C)


def make_conv_bn(key, cin, cout, k=1):
    # Conv(k x k) followed by BatchNorm2d, folded into (weight(bf16), scale, bias).
    k1, k2, k3, k4, k5, k6 = jax.random.split(key, 6)
    w = jax.random.normal(k1, (k, k, cin, cout), jnp.float32) / np.sqrt(k * k * cin)
    b = 0.01 * jax.random.normal(k2, (cout,), jnp.float32)
    gamma = 1.0 + 0.1 * jax.random.normal(k3, (cout,), jnp.float32)
    beta = 0.1 * jax.random.normal(k4, (cout,), jnp.float32)
    mean = 0.1 * jax.random.normal(k5, (cout,), jnp.float32)
    var = jnp.abs(jax.random.normal(k6, (cout,), jnp.float32)) + 0.5
    scale = gamma / jnp.sqrt(var + 1e-5)
    bias = beta + scale * (b - mean)
    return w.reshape(k * k * cin, cout).astype(jnp.bfloat16), scale, bias


def init_params(key, feat_dim=64):
    ks = jax.random.split(key, 14)
    p = {}
    p["bb0"] = make_conv_bn(ks[0], 3, 256, 1)
    p["bb1"] = make_conv_bn(ks[1], 256, 512, 1)
    p["bb2"] = make_conv_bn(ks[2], 512, 1024, 1)
    p["bb3"] = make_conv_bn(ks[3], 1024, 1024, 1)
    p["back_conv4"] = make_conv_bn(ks[4], 1024, feat_dim, 1)
    p["back_conv3"] = make_conv_bn(ks[5], 1024, feat_dim, 1)
    p["back_conv2"] = make_conv_bn(ks[6], 512, feat_dim, 1)
    p["smooth_conv3"] = make_conv_bn(ks[7], feat_dim, feat_dim, 3)
    p["smooth_conv2"] = make_conv_bn(ks[8], feat_dim, feat_dim, 3)
    p["conv"] = make_conv_bn(ks[9], 3 * feat_dim, feat_dim, 1)
    p["att1"] = make_conv_bn(ks[10], 3 * feat_dim, feat_dim, 1)
    w2 = jax.random.normal(ks[11], (feat_dim,), jnp.float32) / np.sqrt(feat_dim)
    b2 = 0.01 * jax.random.normal(ks[12], (), jnp.float32)
    p["att2"] = (w2, b2)
    return p


# ----------------------------------------------------------------------------
# Forward pass (mirrors MultiScaleDense121.forward, eval path)
# ----------------------------------------------------------------------------
def multi_scale_dense121_forward(params, x_nchw, threshold=None):
    x = jnp.transpose(x_nchw, (0, 2, 3, 1)).astype(jnp.float32)  # NCHW -> NHWC
    B = x.shape[0]

    def conv1x1(t, pr, act):
        Bt, Ht, Wt, Ct = t.shape
        w, s, b = pr
        return pointwise(t.reshape(-1, Ct), w, s, b, act=act).reshape(Bt, Ht, Wt, -1)

    # ---- stand-in backbone (see TODO(synk) at top) -------------------------
    # Stage 0: the 4x4 average pool is folded into the 1x1 conv as a strided
    # 4x4 conv (space-to-depth + K=48 matmul): no separate pooling pass over
    # the largest tensor and a sane MXU contraction depth.
    w0, s0, b0 = params["bb0"]
    x0 = space_to_depth(x, 4)                                     # (B,H/4,W/4,48)
    w0f = jnp.tile(w0.astype(jnp.float32), (16, 1)) / 16.0        # (48, 256)
    l1 = conv1x1(x0, (w0f, s0, b0), "relu")                       # (B,H/4,W/4,256)
    # Stages 1-3: XLA 2x2 avg-pool + fused conv/BN/ReLU (bf16 cast is in-kernel).
    # TODO(synk): fold these 2x2 pools into the kernel as well at real sizes.
    l2 = conv1x1(avgpool(l1, 2), params["bb1"], "relu")           # (B,H/8, W/8, 512)
    l3 = conv1x1(avgpool(l2, 2), params["bb2"], "relu")           # (B,H/16,W/16,1024)
    l4 = conv1x1(avgpool(l3, 2), params["bb3"], "relu")           # (B,H/32,W/32,1024)

    # ---- FPN decoder (fused: lateral conv + upsample-add + 3x3 smooth) -----
    p4 = conv1x1(l4, params["back_conv4"], "relu")
    p3 = fpn_decode_level(p4, l3, params["back_conv3"], params["smooth_conv3"])
    p2 = fpn_decode_level(p3, l2, params["back_conv2"], params["smooth_conv2"])

    # ---- fused head ---------------------------------------------------------
    feat, att = head(p2, p3, p4, params["conv"], params["att1"], params["att2"],
                     threshold=threshold)
    H2, W2 = p2.shape[1], p2.shape[2]
    att = att.reshape(B, 1, H2, W2)       # (B, 1, H2, W2) like torch
    return feat, att


# ----------------------------------------------------------------------------
if __name__ == "__main__":
    feat_dim = 64
    key = jax.random.PRNGKey(0)
    params = init_params(key, feat_dim=feat_dim)
    x = jax.random.normal(jax.random.fold_in(key, 123), (2, 3, 64, 64), jnp.float32)

    fwd = jax.jit(multi_scale_dense121_forward)
    feat, att = fwd(params, x)
    feat, att = jax.block_until_ready((feat, att))

    feat_np = np.asarray(feat)
    att_np = np.asarray(att)
    assert feat_np.shape == (2, feat_dim), feat_np.shape
    assert att_np.shape == (2, 1, 8, 8), att_np.shape
    assert np.all(np.isfinite(feat_np)) and np.all(np.isfinite(att_np))
    assert np.all(att_np >= 0.0) and np.all(att_np <= 1.0)
    # l2norm check: each output feature row should have unit norm
    assert np.allclose(np.linalg.norm(feat_np, axis=1), 1.0, atol=1e-4)
    print("KERNEL_OK")
</pallas_src>

<mosaic_0001>
module attributes {stable_mosaic.version = 11 : i64} {
  func.func @_pointwise_kernel(%arg0: i32, %arg1: memref<512x48xf32, #tpu.memory_space<vmem>>, %arg2: memref<48x256xbf16, #tpu.memory_space<vmem>>, %arg3: memref<1x256xf32, #tpu.memory_space<vmem>>, %arg4: memref<1x256xf32, #tpu.memory_space<vmem>>, %arg5: memref<512x256xbf16, #tpu.memory_space<vmem>>) attributes {dimension_semantics = [#tpu.dimension_semantics<parallel>], iteration_bounds = array<i64: 1>, scalar_prefetch = 0 : i64, scratch_operands = 0 : i64, tpu.core_type = #tpu.core_type<tc>, window_params = [{transform_indices = @transform_0, window_bounds = array<i64: 512, 48>}, {pipeline_mode = #tpu.pipeline_mode<synchronous>, transform_indices = @transform_1, window_bounds = array<i64: 48, 256>}, {pipeline_mode = #tpu.pipeline_mode<synchronous>, transform_indices = @transform_2, window_bounds = array<i64: 1, 256>}, {pipeline_mode = #tpu.pipeline_mode<synchronous>, transform_indices = @transform_3, window_bounds = array<i64: 1, 256>}, {transform_indices = @transform_4, window_bounds = array<i64: 512, 256>}]} {
    %c0 = arith.constant 0 : index
    %c0_0 = arith.constant 0 : index
    %0 = vector.load %arg1[%c0, %c0_0] : memref<512x48xf32, #tpu.memory_space<vmem>>, vector<512x48xf32>
    %1 = arith.truncf %0 : vector<512x48xf32> to vector<512x48xbf16>
    %c0_1 = arith.constant 0 : index
    %c0_2 = arith.constant 0 : index
    %2 = vector.load %arg2[%c0_1, %c0_2] : memref<48x256xbf16, #tpu.memory_space<vmem>>, vector<48x256xbf16>
    %cst = arith.constant dense<0.000000e+00> : vector<512x256xf32>
    %3 = tpu.matmul %1, %2, %cst {dimension_numbers = #tpu.dot_dimension_numbers<[1], [0], [0], [1], [0, 0, 1, 1], [], []>} : vector<512x48xbf16>, vector<48x256xbf16>, vector<512x256xf32> -> vector<512x256xf32>
    %c0_3 = arith.constant 0 : index
    %c0_4 = arith.constant 0 : index
    %4 = vector.load %arg3[%c0_3, %c0_4] : memref<1x256xf32, #tpu.memory_space<vmem>>, vector<1x256xf32>
    %5 = vector.broadcast %4 : vector<1x256xf32> to vector<512x256xf32>
    %6 = arith.mulf %3, %5 : vector<512x256xf32>
    %c0_5 = arith.constant 0 : index
    %c0_6 = arith.constant 0 : index
    %7 = vector.load %arg4[%c0_5, %c0_6] : memref<1x256xf32, #tpu.memory_space<vmem>>, vector<1x256xf32>
    %8 = vector.broadcast %7 : vector<1x256xf32> to vector<512x256xf32>
    %9 = arith.addf %6, %8 : vector<512x256xf32>
    %cst_7 = arith.constant 0.000000e+00 : f32
    %10 = vector.broadcast %cst_7 : f32 to vector<512x256xf32>
    %11 = arith.maximumf %9, %10 : vector<512x256xf32>
    %12 = arith.truncf %11 : vector<512x256xf32> to vector<512x256xbf16>
    %c0_8 = arith.constant 0 : index
    %c0_9 = arith.constant 0 : index
    %13 = vector.load %arg5[%c0_8, %c0_9] : memref<512x256xbf16, #tpu.memory_space<vmem>>, vector<512x256xbf16>
    tpu.vector_store %arg5[%c0_8, %c0_9], %12 {strides = array<i32>} : memref<512x256xbf16, #tpu.memory_space<vmem>>, vector<512x256xbf16>,
    return
  }
  func.func @transform_0(%arg0: i32) -> (i32, i32) {
    %c0_i32 = arith.constant 0 : i32
    %c0_i32_0 = arith.constant 0 : i32
    return %arg0, %c0_i32 : i32, i32
  }
  func.func @transform_1(%arg0: i32) -> (i32, i32) {
    %c0_i32 = arith.constant 0 : i32
    %c0_i32_0 = arith.constant 0 : i32
    %c0_i32_1 = arith.constant 0 : i32
    return %c0_i32, %c0_i32_0 : i32, i32
  }
  func.func @transform_2(%arg0: i32) -> (i32, i32) {
    %c0_i32 = arith.constant 0 : i32
    %c0_i32_0 = arith.constant 0 : i32
    %c0_i32_1 = arith.constant 0 : i32
    return %c0_i32, %c0_i32_0 : i32, i32
  }
  func.func @transform_3(%arg0: i32) -> (i32, i32) {
    %c0_i32 = arith.constant 0 : i32
    %c0_i32_0 = arith.constant 0 : i32
    %c0_i32_1 = arith.constant 0 : i32
    return %c0_i32, %c0_i32_0 : i32, i32
  }
  func.func @transform_4(%arg0: i32) -> (i32, i32) {
    %c0_i32 = arith.constant 0 : i32
    %c0_i32_0 = arith.constant 0 : i32
    return %arg0, %c0_i32 : i32, i32
  }
}

module attributes {stable_mosaic.version = 11 : i64} {
  func.func @_pointwise_kernel(%arg0: i32, %arg1: memref<128x256xbf16, #tpu.memory_space<vmem>>, %arg2: memref<256x512xbf16, #tpu.memory_space<vmem>>, %arg3: memref<1x512xf32, #tpu.memory_space<vmem>>, %arg4: memref<1x512xf32, #tpu.memory_space<vmem>>, %arg5: memref<128x512xbf16, #tpu.memory_space<vmem>>) attributes {dimension_semantics = [#tpu.dimension_semantics<parallel>], iteration_bounds = array<i64: 1>, scalar_prefetch = 0 : i64, scratch_operands = 0 : i64, tpu.core_type = #tpu.core_type<tc>, window_params = [{transform_indices = @transform_0, window_bounds = array<i64: 128, 256>}, {pipeline_mode = #tpu.pipeline_mode<synchronous>, transform_indices = @transform_1, window_bounds = array<i64: 256, 512>}, {pipeline_mode = #tpu.pipeline_mode<synchronous>, transform_indices = @transform_2, window_bounds = array<i64: 1, 512>}, {pipeline_mode = #tpu.pipeline_mode<synchronous>, transform_indices = @transform_3, window_bounds = array<i64: 1, 512>}, {transform_indices = @transform_4, window_bounds = array<i64: 128, 512>}]} {
    %c0 = arith.constant 0 : index
    %c0_0 = arith.constant 0 : index
    %0 = vector.load %arg1[%c0, %c0_0] : memref<128x256xbf16, #tpu.memory_space<vmem>>, vector<128x256xbf16>
    %c0_1 = arith.constant 0 : index
    %c0_2 = arith.constant 0 : index
    %1 = vector.load %arg2[%c0_1, %c0_2] : memref<256x512xbf16, #tpu.memory_space<vmem>>, vector<256x512xbf16>
    %cst = arith.constant dense<0.000000e+00> : vector<128x512xf32>
    %2 = tpu.matmul %0, %1, %cst {dimension_numbers = #tpu.dot_dimension_numbers<[1], [0], [0], [1], [0, 0, 1, 1], [], []>} : vector<128x256xbf16>, vector<256x512xbf16>, vector<128x512xf32> -> vector<128x512xf32>
    %c0_3 = arith.constant 0 : index
    %c0_4 = arith.constant 0 : index
    %3 = vector.load %arg3[%c0_3, %c0_4] : memref<1x512xf32, #tpu.memory_space<vmem>>, vector<1x512xf32>
    %4 = vector.broadcast %3 : vector<1x512xf32> to vector<128x512xf32>
    %5 = arith.mulf %2, %4 : vector<128x512xf32>
    %c0_5 = arith.constant 0 : index
    %c0_6 = arith.constant 0 : index
    %6 = vector.load %arg4[%c0_5, %c0_6] : memref<1x512xf32, #tpu.memory_space<vmem>>, vector<1x512xf32>
    %7 = vector.broadcast %6 : vector<1x512xf32> to vector<128x512xf32>
    %8 = arith.addf %5, %7 : vector<128x512xf32>
    %cst_7 = arith.constant 0.000000e+00 : f32
    %9 = vector.broadcast %cst_7 : f32 to vector<128x512xf32>
    %10 = arith.maximumf %8, %9 : vector<128x512xf32>
    %11 = arith.truncf %10 : vector<128x512xf32> to vector<128x512xbf16>
    %c0_8 = arith.constant 0 : index
    %c0_9 = arith.constant 0 : index
    %12 = vector.load %arg5[%c0_8, %c0_9] : memref<128x512xbf16, #tpu.memory_space<vmem>>, vector<128x512xbf16>
    tpu.vector_store %arg5[%c0_8, %c0_9], %11 {strides = array<i32>} : memref<128x512xbf16, #tpu.memory_space<vmem>>, vector<128x512xbf16>,
    return
  }
  func.func @transform_0(%arg0: i32) -> (i32, i32) {
    %c0_i32 = arith.constant 0 : i32
    %c0_i32_0 = arith.constant 0 : i32
    return %arg0, %c0_i32 : i32, i32
  }
  func.func @transform_1(%arg0: i32) -> (i32, i32) {
    %c0_i32 = arith.constant 0 : i32
    %c0_i32_0 = arith.constant 0 : i32
    %c0_i32_1 = arith.constant 0 : i32
    return %c0_i32, %c0_i32_0 : i32, i32
  }
  func.func @transform_2(%arg0: i32) -> (i32, i32) {
    %c0_i32 = arith.constant 0 : i32
    %c0_i32_0 = arith.constant 0 : i32
    %c0_i32_1 = arith.constant 0 : i32
    return %c0_i32, %c0_i32_0 : i32, i32
  }
  func.func @transform_3(%arg0: i32) -> (i32, i32) {
    %c0_i32 = arith.constant 0 : i32
    %c0_i32_0 = arith.constant 0 : i32
    %c0_i32_1 = arith.constant 0 : i32
    return %c0_i32, %c0_i32_0 : i32, i32
  }
  func.func @transform_4(%arg0: i32) -> (i32, i32) {
    %c0_i32 = arith.constant 0 : i32
    %c0_i32_0 = arith.constant 0 : i32
    return %arg0, %c0_i32 : i32, i32
  }
}

module attributes {stable_mosaic.version = 11 : i64} {
  func.func @_pointwise_kernel(%arg0: i32, %arg1: memref<32x512xbf16, #tpu.memory_space<vmem>>, %arg2: memref<512x1024xbf16, #tpu.memory_space<vmem>>, %arg3: memref<1x1024xf32, #tpu.memory_space<vmem>>, %arg4: memref<1x1024xf32, #tpu.memory_space<vmem>>, %arg5: memref<32x1024xbf16, #tpu.memory_space<vmem>>) attributes {dimension_semantics = [#tpu.dimension_semantics<parallel>], iteration_bounds = array<i64: 1>, scalar_prefetch = 0 : i64, scratch_operands = 0 : i64, tpu.core_type = #tpu.core_type<tc>, window_params = [{transform_indices = @transform_0, window_bounds = array<i64: 32, 512>}, {pipeline_mode = #tpu.pipeline_mode<synchronous>, transform_indices = @transform_1, window_bounds = array<i64: 512, 1024>}, {pipeline_mode = #tpu.pipeline_mode<synchronous>, transform_indices = @transform_2, window_bounds = array<i64: 1, 1024>}, {pipeline_mode = #tpu.pipeline_mode<synchronous>, transform_indices = @transform_3, window_bounds = array<i64: 1, 1024>}, {transform_indices = @transform_4, window_bounds = array<i64: 32, 1024>}]} {
    %c0 = arith.constant 0 : index
    %c0_0 = arith.constant 0 : index
    %0 = vector.load %arg1[%c0, %c0_0] : memref<32x512xbf16, #tpu.memory_space<vmem>>, vector<32x512xbf16>
    %c0_1 = arith.constant 0 : index
    %c0_2 = arith.constant 0 : index
    %1 = vector.load %arg2[%c0_1, %c0_2] : memref<512x1024xbf16, #tpu.memory_space<vmem>>, vector<512x1024xbf16>
    %cst = arith.constant dense<0.000000e+00> : vector<32x1024xf32>
    %2 = tpu.matmul %0, %1, %cst {dimension_numbers = #tpu.dot_dimension_numbers<[1], [0], [0], [1], [0, 0, 1, 1], [], []>} : vector<32x512xbf16>, vector<512x1024xbf16>, vector<32x1024xf32> -> vector<32x1024xf32>
    %c0_3 = arith.constant 0 : index
    %c0_4 = arith.constant 0 : index
    %3 = vector.load %arg3[%c0_3, %c0_4] : memref<1x1024xf32, #tpu.memory_space<vmem>>, vector<1x1024xf32>
    %4 = vector.broadcast %3 : vector<1x1024xf32> to vector<32x1024xf32>
    %5 = arith.mulf %2, %4 : vector<32x1024xf32>
    %c0_5 = arith.constant 0 : index
    %c0_6 = arith.constant 0 : index
    %6 = vector.load %arg4[%c0_5, %c0_6] : memref<1x1024xf32, #tpu.memory_space<vmem>>, vector<1x1024xf32>
    %7 = vector.broadcast %6 : vector<1x1024xf32> to vector<32x1024xf32>
    %8 = arith.addf %5, %7 : vector<32x1024xf32>
    %cst_7 = arith.constant 0.000000e+00 : f32
    %9 = vector.broadcast %cst_7 : f32 to vector<32x1024xf32>
    %10 = arith.maximumf %8, %9 : vector<32x1024xf32>
    %11 = arith.truncf %10 : vector<32x1024xf32> to vector<32x1024xbf16>
    %c0_8 = arith.constant 0 : index
    %c0_9 = arith.constant 0 : index
    %12 = vector.load %arg5[%c0_8, %c0_9] : memref<32x1024xbf16, #tpu.memory_space<vmem>>, vector<32x1024xbf16>
    tpu.vector_store %arg5[%c0_8, %c0_9], %11 {strides = array<i32>} : memref<32x1024xbf16, #tpu.memory_space<vmem>>, vector<32x1024xbf16>,
    return
  }
  func.func @transform_0(%arg0: i32) -> (i32, i32) {
    %c0_i32 = arith.constant 0 : i32
    %c0_i32_0 = arith.constant 0 : i32
    return %arg0, %c0_i32 : i32, i32
  }
  func.func @transform_1(%arg0: i32) -> (i32, i32) {
    %c0_i32 = arith.constant 0 : i32
    %c0_i32_0 = arith.constant 0 : i32
    %c0_i32_1 = arith.constant 0 : i32
    return %c0_i32, %c0_i32_0 : i32, i32
  }
  func.func @transform_2(%arg0: i32) -> (i32, i32) {
    %c0_i32 = arith.constant 0 : i32
    %c0_i32_0 = arith.constant 0 : i32
    %c0_i32_1 = arith.constant 0 : i32
    return %c0_i32, %c0_i32_0 : i32, i32
  }
  func.func @transform_3(%arg0: i32) -> (i32, i32) {
    %c0_i32 = arith.constant 0 : i32
    %c0_i32_0 = arith.constant 0 : i32
    %c0_i32_1 = arith.constant 0 : i32
    return %c0_i32, %c0_i32_0 : i32, i32
  }
  func.func @transform_4(%arg0: i32) -> (i32, i32) {
    %c0_i32 = arith.constant 0 : i32
    %c0_i32_0 = arith.constant 0 : i32
    return %arg0, %c0_i32 : i32, i32
  }
}

module attributes {stable_mosaic.version = 11 : i64} {
  func.func @_pointwise_kernel(%arg0: i32, %arg1: memref<8x1024xbf16, #tpu.memory_space<vmem>>, %arg2: memref<1024x1024xbf16, #tpu.memory_space<vmem>>, %arg3: memref<1x1024xf32, #tpu.memory_space<vmem>>, %arg4: memref<1x1024xf32, #tpu.memory_space<vmem>>, %arg5: memref<8x1024xbf16, #tpu.memory_space<vmem>>) attributes {dimension_semantics = [#tpu.dimension_semantics<parallel>], iteration_bounds = array<i64: 1>, scalar_prefetch = 0 : i64, scratch_operands = 0 : i64, tpu.core_type = #tpu.core_type<tc>, window_params = [{transform_indices = @transform_0, window_bounds = array<i64: 8, 1024>}, {pipeline_mode = #tpu.pipeline_mode<synchronous>, transform_indices = @transform_1, window_bounds = array<i64: 1024, 1024>}, {pipeline_mode = #tpu.pipeline_mode<synchronous>, transform_indices = @transform_2, window_bounds = array<i64: 1, 1024>}, {pipeline_mode = #tpu.pipeline_mode<synchronous>, transform_indices = @transform_3, window_bounds = array<i64: 1, 1024>}, {transform_indices = @transform_4, window_bounds = array<i64: 8, 1024>}]} {
    %c0 = arith.constant 0 : index
    %c0_0 = arith.constant 0 : index
    %0 = vector.load %arg1[%c0, %c0_0] : memref<8x1024xbf16, #tpu.memory_space<vmem>>, vector<8x1024xbf16>
    %c0_1 = arith.constant 0 : index
    %c0_2 = arith.constant 0 : index
    %1 = vector.load %arg2[%c0_1, %c0_2] : memref<1024x1024xbf16, #tpu.memory_space<vmem>>, vector<1024x1024xbf16>
    %cst = arith.constant dense<0.000000e+00> : vector<8x1024xf32>
    %2 = tpu.matmul %0, %1, %cst {dimension_numbers = #tpu.dot_dimension_numbers<[1], [0], [0], [1], [0, 0, 1, 1], [], []>} : vector<8x1024xbf16>, vector<1024x1024xbf16>, vector<8x1024xf32> -> vector<8x1024xf32>
    %c0_3 = arith.constant 0 : index
    %c0_4 = arith.constant 0 : index
    %3 = vector.load %arg3[%c0_3, %c0_4] : memref<1x1024xf32, #tpu.memory_space<vmem>>, vector<1x1024xf32>
    %4 = vector.broadcast %3 : vector<1x1024xf32> to vector<8x1024xf32>
    %5 = arith.mulf %2, %4 : vector<8x1024xf32>
    %c0_5 = arith.constant 0 : index
    %c0_6 = arith.constant 0 : index
    %6 = vector.load %arg4[%c0_5, %c0_6] : memref<1x1024xf32, #tpu.memory_space<vmem>>, vector<1x1024xf32>
    %7 = vector.broadcast %6 : vector<1x1024xf32> to vector<8x1024xf32>
    %8 = arith.addf %5, %7 : vector<8x1024xf32>
    %cst_7 = arith.constant 0.000000e+00 : f32
    %9 = vector.broadcast %cst_7 : f32 to vector<8x1024xf32>
    %10 = arith.maximumf %8, %9 : vector<8x1024xf32>
    %11 = arith.truncf %10 : vector<8x1024xf32> to vector<8x1024xbf16>
    %c0_8 = arith.constant 0 : index
    %c0_9 = arith.constant 0 : index
    %12 = vector.load %arg5[%c0_8, %c0_9] : memref<8x1024xbf16, #tpu.memory_space<vmem>>, vector<8x1024xbf16>
    tpu.vector_store %arg5[%c0_8, %c0_9], %11 {strides = array<i32>} : memref<8x1024xbf16, #tpu.memory_space<vmem>>, vector<8x1024xbf16>,
    return
  }
  func.func @transform_0(%arg0: i32) -> (i32, i32) {
    %c0_i32 = arith.constant 0 : i32
    %c0_i32_0 = arith.constant 0 : i32
    return %arg0, %c0_i32 : i32, i32
  }
  func.func @transform_1(%arg0: i32) -> (i32, i32) {
    %c0_i32 = arith.constant 0 : i32
    %c0_i32_0 = arith.constant 0 : i32
    %c0_i32_1 = arith.constant 0 : i32
    return %c0_i32, %c0_i32_0 : i32, i32
  }
  func.func @transform_2(%arg0: i32) -> (i32, i32) {
    %c0_i32 = arith.constant 0 : i32
    %c0_i32_0 = arith.constant 0 : i32
    %c0_i32_1 = arith.constant 0 : i32
    return %c0_i32, %c0_i32_0 : i32, i32
  }
  func.func @transform_3(%arg0: i32) -> (i32, i32) {
    %c0_i32 = arith.constant 0 : i32
    %c0_i32_0 = arith.constant 0 : i32
    %c0_i32_1 = arith.constant 0 : i32
    return %c0_i32, %c0_i32_0 : i32, i32
  }
  func.func @transform_4(%arg0: i32) -> (i32, i32) {
    %c0_i32 = arith.constant 0 : i32
    %c0_i32_0 = arith.constant 0 : i32
    return %arg0, %c0_i32 : i32, i32
  }
}

module attributes {stable_mosaic.version = 11 : i64} {
  func.func @_pointwise_kernel(%arg0: i32, %arg1: memref<8x1024xbf16, #tpu.memory_space<vmem>>, %arg2: memref<1024x64xbf16, #tpu.memory_space<vmem>>, %arg3: memref<1x64xf32, #tpu.memory_space<vmem>>, %arg4: memref<1x64xf32, #tpu.memory_space<vmem>>, %arg5: memref<8x64xbf16, #tpu.memory_space<vmem>>) attributes {dimension_semantics = [#tpu.dimension_semantics<parallel>], iteration_bounds = array<i64: 1>, scalar_prefetch = 0 : i64, scratch_operands = 0 : i64, tpu.core_type = #tpu.core_type<tc>, window_params = [{transform_indices = @transform_0, window_bounds = array<i64: 8, 1024>}, {pipeline_mode = #tpu.pipeline_mode<synchronous>, transform_indices = @transform_1, window_bounds = array<i64: 1024, 64>}, {pipeline_mode = #tpu.pipeline_mode<synchronous>, transform_indices = @transform_2, window_bounds = array<i64: 1, 64>}, {pipeline_mode = #tpu.pipeline_mode<synchronous>, transform_indices = @transform_3, window_bounds = array<i64: 1, 64>}, {transform_indices = @transform_4, window_bounds = array<i64: 8, 64>}]} {
    %c0 = arith.constant 0 : index
    %c0_0 = arith.constant 0 : index
    %0 = vector.load %arg1[%c0, %c0_0] : memref<8x1024xbf16, #tpu.memory_space<vmem>>, vector<8x1024xbf16>
    %c0_1 = arith.constant 0 : index
    %c0_2 = arith.constant 0 : index
    %1 = vector.load %arg2[%c0_1, %c0_2] : memref<1024x64xbf16, #tpu.memory_space<vmem>>, vector<1024x64xbf16>
    %cst = arith.constant dense<0.000000e+00> : vector<8x64xf32>
    %2 = tpu.matmul %0, %1, %cst {dimension_numbers = #tpu.dot_dimension_numbers<[1], [0], [0], [1], [0, 0, 1, 1], [], []>} : vector<8x1024xbf16>, vector<1024x64xbf16>, vector<8x64xf32> -> vector<8x64xf32>
    %c0_3 = arith.constant 0 : index
    %c0_4 = arith.constant 0 : index
    %3 = vector.load %arg3[%c0_3, %c0_4] : memref<1x64xf32, #tpu.memory_space<vmem>>, vector<1x64xf32>
    %4 = vector.broadcast %3 : vector<1x64xf32> to vector<8x64xf32>
    %5 = arith.mulf %2, %4 : vector<8x64xf32>
    %c0_5 = arith.constant 0 : index
    %c0_6 = arith.constant 0 : index
    %6 = vector.load %arg4[%c0_5, %c0_6] : memref<1x64xf32, #tpu.memory_space<vmem>>, vector<1x64xf32>
    %7 = vector.broadcast %6 : vector<1x64xf32> to vector<8x64xf32>
    %8 = arith.addf %5, %7 : vector<8x64xf32>
    %cst_7 = arith.constant 0.000000e+00 : f32
    %9 = vector.broadcast %cst_7 : f32 to vector<8x64xf32>
    %10 = arith.maximumf %8, %9 : vector<8x64xf32>
    %11 = arith.truncf %10 : vector<8x64xf32> to vector<8x64xbf16>
    %c0_8 = arith.constant 0 : index
    %c0_9 = arith.constant 0 : index
    %12 = vector.load %arg5[%c0_8, %c0_9] : memref<8x64xbf16, #tpu.memory_space<vmem>>, vector<8x64xbf16>
    tpu.vector_store %arg5[%c0_8, %c0_9], %11 {strides = array<i32>} : memref<8x64xbf16, #tpu.memory_space<vmem>>, vector<8x64xbf16>,
    return
  }
  func.func @transform_0(%arg0: i32) -> (i32, i32) {
    %c0_i32 = arith.constant 0 : i32
    %c0_i32_0 = arith.constant 0 : i32
    return %arg0, %c0_i32 : i32, i32
  }
  func.func @transform_1(%arg0: i32) -> (i32, i32) {
    %c0_i32 = arith.constant 0 : i32
    %c0_i32_0 = arith.constant 0 : i32
    %c0_i32_1 = arith.constant 0 : i32
    return %c0_i32, %c0_i32_0 : i32, i32
  }
  func.func @transform_2(%arg0: i32) -> (i32, i32) {
    %c0_i32 = arith.constant 0 : i32
    %c0_i32_0 = arith.constant 0 : i32
    %c0_i32_1 = arith.constant 0 : i32
    return %c0_i32, %c0_i32_0 : i32, i32
  }
  func.func @transform_3(%arg0: i32) -> (i32, i32) {
    %c0_i32 = arith.constant 0 : i32
    %c0_i32_0 = arith.constant 0 : i32
    %c0_i32_1 = arith.constant 0 : i32
    return %c0_i32, %c0_i32_0 : i32, i32
  }
  func.func @transform_4(%arg0: i32) -> (i32, i32) {
    %c0_i32 = arith.constant 0 : i32
    %c0_i32_0 = arith.constant 0 : i32
    return %arg0, %c0_i32 : i32, i32
  }
}

module attributes {stable_mosaic.version = 11 : i64} {
  func.func @_fpn_level_kernel(%arg0: i32, %arg1: memref<1x4x64xbf16, #tpu.memory_space<vmem>>, %arg2: memref<16x4xbf16, #tpu.memory_space<vmem>>, %arg3: memref<1x16x1024xbf16, #tpu.memory_space<vmem>>, %arg4: memref<1024x64xbf16, #tpu.memory_space<vmem>>, %arg5: memref<1x64xf32, #tpu.memory_space<vmem>>, %arg6: memref<1x64xf32, #tpu.memory_space<vmem>>, %arg7: memref<576x64xbf16, #tpu.memory_space<vmem>>, %arg8: memref<1x64xf32, #tpu.memory_space<vmem>>, %arg9: memref<1x64xf32, #tpu.memory_space<vmem>>, %arg10: memref<1x16x64xbf16, #tpu.memory_space<vmem>>) attributes {dimension_semantics = [#tpu.dimension_semantics<parallel>], iteration_bounds = array<i64: 2>, scalar_prefetch = 0 : i64, scratch_operands = 0 : i64, tpu.core_type = #tpu.core_type<tc>, window_params = [{transform_indices = @transform_0, window_bounds = array<i64: 1, 4, 64>}, {pipeline_mode = #tpu.pipeline_mode<synchronous>, transform_indices = @transform_1, window_bounds = array<i64: 16, 4>}, {transform_indices = @transform_2, window_bounds = array<i64: 1, 16, 1024>}, {pipeline_mode = #tpu.pipeline_mode<synchronous>, transform_indices = @transform_3, window_bounds = array<i64: 1024, 64>}, {pipeline_mode = #tpu.pipeline_mode<synchronous>, transform_indices = @transform_4, window_bounds = array<i64: 1, 64>}, {pipeline_mode = #tpu.pipeline_mode<synchronous>, transform_indices = @transform_5, window_bounds = array<i64: 1, 64>}, {pipeline_mode = #tpu.pipeline_mode<synchronous>, transform_indices = @transform_6, window_bounds = array<i64: 576, 64>}, {pipeline_mode = #tpu.pipeline_mode<synchronous>, transform_indices = @transform_7, window_bounds = array<i64: 1, 64>}, {pipeline_mode = #tpu.pipeline_mode<synchronous>, transform_indices = @transform_8, window_bounds = array<i64: 1, 64>}, {transform_indices = @transform_9, window_bounds = array<i64: 1, 16, 64>}]} {
    %c0 = arith.constant 0 : index
    %c0_0 = arith.constant 0 : index
    %c0_1 = arith.constant 0 : index
    %0 = vector.load %arg3[%c0, %c0_0, %c0_1] : memref<1x16x1024xbf16, #tpu.memory_space<vmem>>, vector<1x16x1024xbf16>
    %1 = vector.shape_cast %0 : vector<1x16x1024xbf16> to vector<16x1024xbf16>
    %c0_2 = arith.constant 0 : index
    %c0_3 = arith.constant 0 : index
    %2 = vector.load %arg4[%c0_2, %c0_3] : memref<1024x64xbf16, #tpu.memory_space<vmem>>, vector<1024x64xbf16>
    %cst = arith.constant dense<0.000000e+00> : vector<16x64xf32>
    %3 = tpu.matmul %1, %2, %cst {dimension_numbers = #tpu.dot_dimension_numbers<[1], [0], [0], [1], [0, 0, 1, 1], [], []>} : vector<16x1024xbf16>, vector<1024x64xbf16>, vector<16x64xf32> -> vector<16x64xf32>
    %c0_4 = arith.constant 0 : index
    %c0_5 = arith.constant 0 : index
    %4 = vector.load %arg5[%c0_4, %c0_5] : memref<1x64xf32, #tpu.memory_space<vmem>>, vector<1x64xf32>
    %5 = vector.broadcast %4 : vector<1x64xf32> to vector<16x64xf32>
    %6 = arith.mulf %3, %5 : vector<16x64xf32>
    %c0_6 = arith.constant 0 : index
    %c0_7 = arith.constant 0 : index
    %7 = vector.load %arg6[%c0_6, %c0_7] : memref<1x64xf32, #tpu.memory_space<vmem>>, vector<1x64xf32>
    %8 = vector.broadcast %7 : vector<1x64xf32> to vector<16x64xf32>
    %9 = arith.addf %6, %8 : vector<16x64xf32>
    %cst_8 = arith.constant 0.000000e+00 : f32
    %10 = vector.broadcast %cst_8 : f32 to vector<16x64xf32>
    %11 = arith.maximumf %9, %10 : vector<16x64xf32>
    %c0_9 = arith.constant 0 : index
    %c0_10 = arith.constant 0 : index
    %12 = vector.load %arg2[%c0_9, %c0_10] : memref<16x4xbf16, #tpu.memory_space<vmem>>, vector<16x4xbf16>
    %c0_11 = arith.constant 0 : index
    %c0_12 = arith.constant 0 : index
    %c0_13 = arith.constant 0 : index
    %13 = vector.load %arg1[%c0_11, %c0_12, %c0_13] : memref<1x4x64xbf16, #tpu.memory_space<vmem>>, vector<1x4x64xbf16>
    %14 = vector.shape_cast %13 : vector<1x4x64xbf16> to vector<4x64xbf16>
    %cst_14 = arith.constant dense<0.000000e+00> : vector<16x64xf32>
    %15 = tpu.matmul %12, %14, %cst_14 {dimension_numbers = #tpu.dot_dimension_numbers<[1], [0], [0], [1], [0, 0, 1, 1], [], []>} : vector<16x4xbf16>, vector<4x64xbf16>, vector<16x64xf32> -> vector<16x64xf32>
    %16 = arith.addf %15, %11 : vector<16x64xf32>
    %17 = tpu.iota {dimensions = array<i32: 0>} : vector<16x64xi32>
    %c4_i32 = arith.constant 4 : i32
    %c0_i32 = arith.constant 0 : i32
    %18 = arith.cmpi eq, %c4_i32, %c0_i32 : i32
    %c1_i32 = arith.constant 1 : i32
    %19 = arith.select %18, %c1_i32, %c4_i32 : i32
    %20 = vector.broadcast %19 : i32 to vector<16x64xi32>
    %21 = arith.remsi %17, %20 : vector<16x64xi32>
    %c0_i32_15 = arith.constant 0 : i32
    %22 = vector.broadcast %c0_i32_15 : i32 to vector<16x64xi32>
    %23 = arith.cmpi ne, %21, %22 : vector<16x64xi32>
    %c0_i32_16 = arith.constant 0 : i32
    %24 = vector.broadcast %c0_i32_16 : i32 to vector<16x64xi32>
    %25 = arith.cmpi slt, %21, %24 : vector<16x64xi32>
    %c0_i32_17 = arith.constant 0 : i32
    %26 = arith.cmpi slt, %19, %c0_i32_17 : i32
    %27 = vector.broadcast %26 : i1 to vector<16x64xi1>
    %28 = vector.broadcast %27 : vector<16x64xi1> to vector<16x64xi1>
    %29 = arith.xori %25, %28 : vector<16x64xi1>
    %30 = arith.andi %29, %23 : vector<16x64xi1>
    %31 = vector.broadcast %19 : i32 to vector<16x64xi32>
    %32 = arith.addi %21, %31 : vector<16x64xi32>
    %33 = arith.select %30, %32, %21 : vector<16x64xi1>, vector<16x64xi32>
    %c0_i32_18 = arith.constant 0 : i32
    %34 = vector.broadcast %c0_i32_18 : i32 to vector<16x64xi32>
    %35 = arith.cmpi eq, %33, %34 : vector<16x64xi32>
    %c1_i32_19 = arith.constant 1 : i32
    %36 = tpu.dynamic_rotate %16 by %c1_i32_19 dim 0 : vector<16x64xf32>, i32 -> vector<16x64xf32>
    %cst_20 = arith.constant 0.000000e+00 : f32
    %37 = vector.broadcast %cst_20 : f32 to vector<16x64xf32>
    %38 = arith.select %35, %37, %36 : vector<16x64xi1>, vector<16x64xf32>
    %c3_i32 = arith.constant 3 : i32
    %39 = vector.broadcast %c3_i32 : i32 to vector<16x64xi32>
    %40 = arith.cmpi eq, %33, %39 : vector<16x64xi32>
    %c15_i32 = arith.constant 15 : i32
    %41 = tpu.dynamic_rotate %16 by %c15_i32 dim 0 : vector<16x64xf32>, i32 -> vector<16x64xf32>
    %cst_21 = arith.constant 0.000000e+00 : f32
    %42 = vector.broadcast %cst_21 : f32 to vector<16x64xf32>
    %43 = arith.select %40, %42, %41 : vector<16x64xi1>, vector<16x64xf32>
    %44 = tpu.concatenate %38, %16, %43 in 1 : vector<16x64xf32>, vector<16x64xf32>, vector<16x64xf32> -> vector<16x192xf32>
    %45 = tpu.iota {dimensions = array<i32: 0>} : vector<16x192xi32>
    %c4_i32_22 = arith.constant 4 : i32
    %46 = vector.broadcast %c4_i32_22 : i32 to vector<16x192xi32>
    %47 = arith.cmpi slt, %45, %46 : vector<16x192xi32>
    %c4_i32_23 = arith.constant 4 : i32
    %48 = tpu.dynamic_rotate %44 by %c4_i32_23 dim 0 : vector<16x192xf32>, i32 -> vector<16x192xf32>
    %cst_24 = arith.constant 0.000000e+00 : f32
    %49 = vector.broadcast %cst_24 : f32 to vector<16x192xf32>
    %50 = arith.select %47, %49, %48 : vector<16x192xi1>, vector<16x192xf32>
    %c12_i32 = arith.constant 12 : i32
    %51 = vector.broadcast %c12_i32 : i32 to vector<16x192xi32>
    %52 = arith.cmpi sge, %45, %51 : vector<16x192xi32>
    %c12_i32_25 = arith.constant 12 : i32
    %53 = tpu.dynamic_rotate %44 by %c12_i32_25 dim 0 : vector<16x192xf32>, i32 -> vector<16x192xf32>
    %cst_26 = arith.constant 0.000000e+00 : f32
    %54 = vector.broadcast %cst_26 : f32 to vector<16x192xf32>
    %55 = arith.select %52, %54, %53 : vector<16x192xi1>, vector<16x192xf32>
    %56 = tpu.concatenate %50, %44, %55 in 1 : vector<16x192xf32>, vector<16x192xf32>, vector<16x192xf32> -> vector<16x576xf32>
    %57 = arith.truncf %56 : vector<16x576xf32> to vector<16x576xbf16>
    %c0_27 = arith.constant 0 : index
    %c0_28 = arith.constant 0 : index
    %58 = vector.load %arg7[%c0_27, %c0_28] : memref<576x64xbf16, #tpu.memory_space<vmem>>, vector<576x64xbf16>
    %cst_29 = arith.constant dense<0.000000e+00> : vector<16x64xf32>
    %59 = tpu.matmul %57, %58, %cst_29 {dimension_numbers = #tpu.dot_dimension_numbers<[1], [0], [0], [1], [0, 0, 1, 1], [], []>} : vector<16x576xbf16>, vector<576x64xbf16>, vector<16x64xf32> -> vector<16x64xf32>
    %c0_30 = arith.constant 0 : index
    %c0_31 = arith.constant 0 : index
    %60 = vector.load %arg8[%c0_30, %c0_31] : memref<1x64xf32, #tpu.memory_space<vmem>>, vector<1x64xf32>
    %61 = vector.broadcast %60 : vector<1x64xf32> to vector<16x64xf32>
    %62 = arith.mulf %59, %61 : vector<16x64xf32>
    %c0_32 = arith.constant 0 : index
    %c0_33 = arith.constant 0 : index
    %63 = vector.load %arg9[%c0_32, %c0_33] : memref<1x64xf32, #tpu.memory_space<vmem>>, vector<1x64xf32>
    %64 = vector.broadcast %63 : vector<1x64xf32> to vector<16x64xf32>
    %65 = arith.addf %62, %64 : vector<16x64xf32>
    %cst_34 = arith.constant 0.000000e+00 : f32
    %66 = vector.broadcast %cst_34 : f32 to vector<16x64xf32>
    %67 = arith.maximumf %65, %66 : vector<16x64xf32>
    %68 = arith.truncf %67 : vector<16x64xf32> to vector<16x64xbf16>
    %c0_35 = arith.constant 0 : index
    %c0_36 = arith.constant 0 : index
    %c0_37 = arith.constant 0 : index
    %69 = vector.load %arg10[%c0_35, %c0_36, %c0_37] : memref<1x16x64xbf16, #tpu.memory_space<vmem>>, vector<1x16x64xbf16>
    %70 = vector.shape_cast %69 : vector<1x16x64xbf16> to vector<16x64xbf16>
    %71 = vector.shape_cast %68 : vector<16x64xbf16> to vector<1x16x64xbf16>
    tpu.vector_store %arg10[%c0_35, %c0_36, %c0_37], %71 {strides = array<i32>} : memref<1x16x64xbf16, #tpu.memory_space<vmem>>, vector<1x16x64xbf16>,
    return
  }
  func.func @transform_0(%arg0: i32) -> (i32, i32, i32) {
    %c0_i32 = arith.constant 0 : i32
    %c0_i32_0 = arith.constant 0 : i32
    %c0_i32_1 = arith.constant 0 : i32
    return %arg0, %c0_i32, %c0_i32_0 : i32, i32, i32
  }
  func.func @transform_1(%arg0: i32) -> (i32, i32) {
    %c0_i32 = arith.constant 0 : i32
    %c0_i32_0 = arith.constant 0 : i32
    %c0_i32_1 = arith.constant 0 : i32
    return %c0_i32, %c0_i32_0 : i32, i32
  }
  func.func @transform_2(%arg0: i32) -> (i32, i32, i32) {
    %c0_i32 = arith.constant 0 : i32
    %c0_i32_0 = arith.constant 0 : i32
    %c0_i32_1 = arith.constant 0 : i32
    return %arg0, %c0_i32, %c0_i32_0 : i32, i32, i32
  }
  func.func @transform_3(%arg0: i32) -> (i32, i32) {
    %c0_i32 = arith.constant 0 : i32
    %c0_i32_0 = arith.constant 0 : i32
    %c0_i32_1 = arith.constant 0 : i32
    return %c0_i32, %c0_i32_0 : i32, i32
  }
  func.func @transform_4(%arg0: i32) -> (i32, i32) {
    %c0_i32 = arith.constant 0 : i32
    %c0_i32_0 = arith.constant 0 : i32
    %c0_i32_1 = arith.constant 0 : i32
    return %c0_i32, %c0_i32_0 : i32, i32
  }
  func.func @transform_5(%arg0: i32) -> (i32, i32) {
    %c0_i32 = arith.constant 0 : i32
    %c0_i32_0 = arith.constant 0 : i32
    %c0_i32_1 = arith.constant 0 : i32
    return %c0_i32, %c0_i32_0 : i32, i32
  }
  func.func @transform_6(%arg0: i32) -> (i32, i32) {
    %c0_i32 = arith.constant 0 : i32
    %c0_i32_0 = arith.constant 0 : i32
    %c0_i32_1 = arith.constant 0 : i32
    return %c0_i32, %c0_i32_0 : i32, i32
  }
  func.func @transform_7(%arg0: i32) -> (i32, i32) {
    %c0_i32 = arith.constant 0 : i32
    %c0_i32_0 = arith.constant 0 : i32
    %c0_i32_1 = arith.constant 0 : i32
    return %c0_i32, %c0_i32_0 : i32, i32
  }
  func.func @transform_8(%arg0: i32) -> (i32, i32) {
    %c0_i32 = arith.constant 0 : i32
    %c0_i32_0 = arith.constant 0 : i32
    %c0_i32_1 = arith.constant 0 : i32
    return %c0_i32, %c0_i32_0 : i32, i32
  }
  func.func @transform_9(%arg0: i32) -> (i32, i32, i32) {
    %c0_i32 = arith.constant 0 : i32
    %c0_i32_0 = arith.constant 0 : i32
    %c0_i32_1 = arith.constant 0 : i32
    return %arg0, %c0_i32, %c0_i32_0 : i32, i32, i32
  }
}

module attributes {stable_mosaic.version = 11 : i64} {
  func.func @_fpn_level_kernel(%arg0: i32, %arg1: memref<1x16x64xbf16, #tpu.memory_space<vmem>>, %arg2: memref<64x16xbf16, #tpu.memory_space<vmem>>, %arg3: memref<1x64x512xbf16, #tpu.memory_space<vmem>>, %arg4: memref<512x64xbf16, #tpu.memory_space<vmem>>, %arg5: memref<1x64xf32, #tpu.memory_space<vmem>>, %arg6: memref<1x64xf32, #tpu.memory_space<vmem>>, %arg7: memref<576x64xbf16, #tpu.memory_space<vmem>>, %arg8: memref<1x64xf32, #tpu.memory_space<vmem>>, %arg9: memref<1x64xf32, #tpu.memory_space<vmem>>, %arg10: memref<1x64x64xbf16, #tpu.memory_space<vmem>>) attributes {dimension_semantics = [#tpu.dimension_semantics<parallel>], iteration_bounds = array<i64: 2>, scalar_prefetch = 0 : i64, scratch_operands = 0 : i64, tpu.core_type = #tpu.core_type<tc>, window_params = [{transform_indices = @transform_0, window_bounds = array<i64: 1, 16, 64>}, {pipeline_mode = #tpu.pipeline_mode<synchronous>, transform_indices = @transform_1, window_bounds = array<i64: 64, 16>}, {transform_indices = @transform_2, window_bounds = array<i64: 1, 64, 512>}, {pipeline_mode = #tpu.pipeline_mode<synchronous>, transform_indices = @transform_3, window_bounds = array<i64: 512, 64>}, {pipeline_mode = #tpu.pipeline_mode<synchronous>, transform_indices = @transform_4, window_bounds = array<i64: 1, 64>}, {pipeline_mode = #tpu.pipeline_mode<synchronous>, transform_indices = @transform_5, window_bounds = array<i64: 1, 64>}, {pipeline_mode = #tpu.pipeline_mode<synchronous>, transform_indices = @transform_6, window_bounds = array<i64: 576, 64>}, {pipeline_mode = #tpu.pipeline_mode<synchronous>, transform_indices = @transform_7, window_bounds = array<i64: 1, 64>}, {pipeline_mode = #tpu.pipeline_mode<synchronous>, transform_indices = @transform_8, window_bounds = array<i64: 1, 64>}, {transform_indices = @transform_9, window_bounds = array<i64: 1, 64, 64>}]} {
    %c0 = arith.constant 0 : index
    %c0_0 = arith.constant 0 : index
    %c0_1 = arith.constant 0 : index
    %0 = vector.load %arg3[%c0, %c0_0, %c0_1] : memref<1x64x512xbf16, #tpu.memory_space<vmem>>, vector<1x64x512xbf16>
    %1 = vector.shape_cast %0 : vector<1x64x512xbf16> to vector<64x512xbf16>
    %c0_2 = arith.constant 0 : index
    %c0_3 = arith.constant 0 : index
    %2 = vector.load %arg4[%c0_2, %c0_3] : memref<512x64xbf16, #tpu.memory_space<vmem>>, vector<512x64xbf16>
    %cst = arith.constant dense<0.000000e+00> : vector<64x64xf32>
    %3 = tpu.matmul %1, %2, %cst {dimension_numbers = #tpu.dot_dimension_numbers<[1], [0], [0], [1], [0, 0, 1, 1], [], []>} : vector<64x512xbf16>, vector<512x64xbf16>, vector<64x64xf32> -> vector<64x64xf32>
    %c0_4 = arith.constant 0 : index
    %c0_5 = arith.constant 0 : index
    %4 = vector.load %arg5[%c0_4, %c0_5] : memref<1x64xf32, #tpu.memory_space<vmem>>, vector<1x64xf32>
    %5 = vector.broadcast %4 : vector<1x64xf32> to vector<64x64xf32>
    %6 = arith.mulf %3, %5 : vector<64x64xf32>
    %c0_6 = arith.constant 0 : index
    %c0_7 = arith.constant 0 : index
    %7 = vector.load %arg6[%c0_6, %c0_7] : memref<1x64xf32, #tpu.memory_space<vmem>>, vector<1x64xf32>
    %8 = vector.broadcast %7 : vector<1x64xf32> to vector<64x64xf32>
    %9 = arith.addf %6, %8 : vector<64x64xf32>
    %cst_8 = arith.constant 0.000000e+00 : f32
    %10 = vector.broadcast %cst_8 : f32 to vector<64x64xf32>
    %11 = arith.maximumf %9, %10 : vector<64x64xf32>
    %c0_9 = arith.constant 0 : index
    %c0_10 = arith.constant 0 : index
    %12 = vector.load %arg2[%c0_9, %c0_10] : memref<64x16xbf16, #tpu.memory_space<vmem>>, vector<64x16xbf16>
    %c0_11 = arith.constant 0 : index
    %c0_12 = arith.constant 0 : index
    %c0_13 = arith.constant 0 : index
    %13 = vector.load %arg1[%c0_11, %c0_12, %c0_13] : memref<1x16x64xbf16, #tpu.memory_space<vmem>>, vector<1x16x64xbf16>
    %14 = vector.shape_cast %13 : vector<1x16x64xbf16> to vector<16x64xbf16>
    %cst_14 = arith.constant dense<0.000000e+00> : vector<64x64xf32>
    %15 = tpu.matmul %12, %14, %cst_14 {dimension_numbers = #tpu.dot_dimension_numbers<[1], [0], [0], [1], [0, 0, 1, 1], [], []>} : vector<64x16xbf16>, vector<16x64xbf16>, vector<64x64xf32> -> vector<64x64xf32>
    %16 = arith.addf %15, %11 : vector<64x64xf32>
    %17 = tpu.iota {dimensions = array<i32: 0>} : vector<64x64xi32>
    %c8_i32 = arith.constant 8 : i32
    %c0_i32 = arith.constant 0 : i32
    %18 = arith.cmpi eq, %c8_i32, %c0_i32 : i32
    %c1_i32 = arith.constant 1 : i32
    %19 = arith.select %18, %c1_i32, %c8_i32 : i32
    %20 = vector.broadcast %19 : i32 to vector<64x64xi32>
    %21 = arith.remsi %17, %20 : vector<64x64xi32>
    %c0_i32_15 = arith.constant 0 : i32
    %22 = vector.broadcast %c0_i32_15 : i32 to vector<64x64xi32>
    %23 = arith.cmpi ne, %21, %22 : vector<64x64xi32>
    %c0_i32_16 = arith.constant 0 : i32
    %24 = vector.broadcast %c0_i32_16 : i32 to vector<64x64xi32>
    %25 = arith.cmpi slt, %21, %24 : vector<64x64xi32>
    %c0_i32_17 = arith.constant 0 : i32
    %26 = arith.cmpi slt, %19, %c0_i32_17 : i32
    %27 = vector.broadcast %26 : i1 to vector<64x64xi1>
    %28 = vector.broadcast %27 : vector<64x64xi1> to vector<64x64xi1>
    %29 = arith.xori %25, %28 : vector<64x64xi1>
    %30 = arith.andi %29, %23 : vector<64x64xi1>
    %31 = vector.broadcast %19 : i32 to vector<64x64xi32>
    %32 = arith.addi %21, %31 : vector<64x64xi32>
    %33 = arith.select %30, %32, %21 : vector<64x64xi1>, vector<64x64xi32>
    %c0_i32_18 = arith.constant 0 : i32
    %34 = vector.broadcast %c0_i32_18 : i32 to vector<64x64xi32>
    %35 = arith.cmpi eq, %33, %34 : vector<64x64xi32>
    %c1_i32_19 = arith.constant 1 : i32
    %36 = tpu.dynamic_rotate %16 by %c1_i32_19 dim 0 : vector<64x64xf32>, i32 -> vector<64x64xf32>
    %cst_20 = arith.constant 0.000000e+00 : f32
    %37 = vector.broadcast %cst_20 : f32 to vector<64x64xf32>
    %38 = arith.select %35, %37, %36 : vector<64x64xi1>, vector<64x64xf32>
    %c7_i32 = arith.constant 7 : i32
    %39 = vector.broadcast %c7_i32 : i32 to vector<64x64xi32>
    %40 = arith.cmpi eq, %33, %39 : vector<64x64xi32>
    %c63_i32 = arith.constant 63 : i32
    %41 = tpu.dynamic_rotate %16 by %c63_i32 dim 0 : vector<64x64xf32>, i32 -> vector<64x64xf32>
    %cst_21 = arith.constant 0.000000e+00 : f32
    %42 = vector.broadcast %cst_21 : f32 to vector<64x64xf32>
    %43 = arith.select %40, %42, %41 : vector<64x64xi1>, vector<64x64xf32>
    %44 = tpu.concatenate %38, %16, %43 in 1 : vector<64x64xf32>, vector<64x64xf32>, vector<64x64xf32> -> vector<64x192xf32>
    %45 = tpu.iota {dimensions = array<i32: 0>} : vector<64x192xi32>
    %c8_i32_22 = arith.constant 8 : i32
    %46 = vector.broadcast %c8_i32_22 : i32 to vector<64x192xi32>
    %47 = arith.cmpi slt, %45, %46 : vector<64x192xi32>
    %c8_i32_23 = arith.constant 8 : i32
    %48 = tpu.dynamic_rotate %44 by %c8_i32_23 dim 0 : vector<64x192xf32>, i32 -> vector<64x192xf32>
    %cst_24 = arith.constant 0.000000e+00 : f32
    %49 = vector.broadcast %cst_24 : f32 to vector<64x192xf32>
    %50 = arith.select %47, %49, %48 : vector<64x192xi1>, vector<64x192xf32>
    %c56_i32 = arith.constant 56 : i32
    %51 = vector.broadcast %c56_i32 : i32 to vector<64x192xi32>
    %52 = arith.cmpi sge, %45, %51 : vector<64x192xi32>
    %c56_i32_25 = arith.constant 56 : i32
    %53 = tpu.dynamic_rotate %44 by %c56_i32_25 dim 0 : vector<64x192xf32>, i32 -> vector<64x192xf32>
    %cst_26 = arith.constant 0.000000e+00 : f32
    %54 = vector.broadcast %cst_26 : f32 to vector<64x192xf32>
    %55 = arith.select %52, %54, %53 : vector<64x192xi1>, vector<64x192xf32>
    %56 = tpu.concatenate %50, %44, %55 in 1 : vector<64x192xf32>, vector<64x192xf32>, vector<64x192xf32> -> vector<64x576xf32>
    %57 = arith.truncf %56 : vector<64x576xf32> to vector<64x576xbf16>
    %c0_27 = arith.constant 0 : index
    %c0_28 = arith.constant 0 : index
    %58 = vector.load %arg7[%c0_27, %c0_28] : memref<576x64xbf16, #tpu.memory_space<vmem>>, vector<576x64xbf16>
    %cst_29 = arith.constant dense<0.000000e+00> : vector<64x64xf32>
    %59 = tpu.matmul %57, %58, %cst_29 {dimension_numbers = #tpu.dot_dimension_numbers<[1], [0], [0], [1], [0, 0, 1, 1], [], []>} : vector<64x576xbf16>, vector<576x64xbf16>, vector<64x64xf32> -> vector<64x64xf32>
    %c0_30 = arith.constant 0 : index
    %c0_31 = arith.constant 0 : index
    %60 = vector.load %arg8[%c0_30, %c0_31] : memref<1x64xf32, #tpu.memory_space<vmem>>, vector<1x64xf32>
    %61 = vector.broadcast %60 : vector<1x64xf32> to vector<64x64xf32>
    %62 = arith.mulf %59, %61 : vector<64x64xf32>
    %c0_32 = arith.constant 0 : index
    %c0_33 = arith.constant 0 : index
    %63 = vector.load %arg9[%c0_32, %c0_33] : memref<1x64xf32, #tpu.memory_space<vmem>>, vector<1x64xf32>
    %64 = vector.broadcast %63 : vector<1x64xf32> to vector<64x64xf32>
    %65 = arith.addf %62, %64 : vector<64x64xf32>
    %cst_34 = arith.constant 0.000000e+00 : f32
    %66 = vector.broadcast %cst_34 : f32 to vector<64x64xf32>
    %67 = arith.maximumf %65, %66 : vector<64x64xf32>
    %68 = arith.truncf %67 : vector<64x64xf32> to vector<64x64xbf16>
    %c0_35 = arith.constant 0 : index
    %c0_36 = arith.constant 0 : index
    %c0_37 = arith.constant 0 : index
    %69 = vector.load %arg10[%c0_35, %c0_36, %c0_37] : memref<1x64x64xbf16, #tpu.memory_space<vmem>>, vector<1x64x64xbf16>
    %70 = vector.shape_cast %69 : vector<1x64x64xbf16> to vector<64x64xbf16>
    %71 = vector.shape_cast %68 : vector<64x64xbf16> to vector<1x64x64xbf16>
    tpu.vector_store %arg10[%c0_35, %c0_36, %c0_37], %71 {strides = array<i32>} : memref<1x64x64xbf16, #tpu.memory_space<vmem>>, vector<1x64x64xbf16>,
    return
  }
  func.func @transform_0(%arg0: i32) -> (i32, i32, i32) {
    %c0_i32 = arith.constant 0 : i32
    %c0_i32_0 = arith.constant 0 : i32
    %c0_i32_1 = arith.constant 0 : i32
    return %arg0, %c0_i32, %c0_i32_0 : i32, i32, i32
  }
  func.func @transform_1(%arg0: i32) -> (i32, i32) {
    %c0_i32 = arith.constant 0 : i32
    %c0_i32_0 = arith.constant 0 : i32
    %c0_i32_1 = arith.constant 0 : i32
    return %c0_i32, %c0_i32_0 : i32, i32
  }
  func.func @transform_2(%arg0: i32) -> (i32, i32, i32) {
    %c0_i32 = arith.constant 0 : i32
    %c0_i32_0 = arith.constant 0 : i32
    %c0_i32_1 = arith.constant 0 : i32
    return %arg0, %c0_i32, %c0_i32_0 : i32, i32, i32
  }
  func.func @transform_3(%arg0: i32) -> (i32, i32) {
    %c0_i32 = arith.constant 0 : i32
    %c0_i32_0 = arith.constant 0 : i32
    %c0_i32_1 = arith.constant 0 : i32
    return %c0_i32, %c0_i32_0 : i32, i32
  }
  func.func @transform_4(%arg0: i32) -> (i32, i32) {
    %c0_i32 = arith.constant 0 : i32
    %c0_i32_0 = arith.constant 0 : i32
    %c0_i32_1 = arith.constant 0 : i32
    return %c0_i32, %c0_i32_0 : i32, i32
  }
  func.func @transform_5(%arg0: i32) -> (i32, i32) {
    %c0_i32 = arith.constant 0 : i32
    %c0_i32_0 = arith.constant 0 : i32
    %c0_i32_1 = arith.constant 0 : i32
    return %c0_i32, %c0_i32_0 : i32, i32
  }
  func.func @transform_6(%arg0: i32) -> (i32, i32) {
    %c0_i32 = arith.constant 0 : i32
    %c0_i32_0 = arith.constant 0 : i32
    %c0_i32_1 = arith.constant 0 : i32
    return %c0_i32, %c0_i32_0 : i32, i32
  }
  func.func @transform_7(%arg0: i32) -> (i32, i32) {
    %c0_i32 = arith.constant 0 : i32
    %c0_i32_0 = arith.constant 0 : i32
    %c0_i32_1 = arith.constant 0 : i32
    return %c0_i32, %c0_i32_0 : i32, i32
  }
  func.func @transform_8(%arg0: i32) -> (i32, i32) {
    %c0_i32 = arith.constant 0 : i32
    %c0_i32_0 = arith.constant 0 : i32
    %c0_i32_1 = arith.constant 0 : i32
    return %c0_i32, %c0_i32_0 : i32, i32
  }
  func.func @transform_9(%arg0: i32) -> (i32, i32, i32) {
    %c0_i32 = arith.constant 0 : i32
    %c0_i32_0 = arith.constant 0 : i32
    %c0_i32_1 = arith.constant 0 : i32
    return %arg0, %c0_i32, %c0_i32_0 : i32, i32, i32
  }
}

module attributes {stable_mosaic.version = 11 : i64} {
  func.func @_head_kernel(%arg0: i32, %arg1: memref<1x64x64xbf16, #tpu.memory_space<vmem>>, %arg2: memref<1x16x64xbf16, #tpu.memory_space<vmem>>, %arg3: memref<1x4x64xbf16, #tpu.memory_space<vmem>>, %arg4: memref<64x16xbf16, #tpu.memory_space<vmem>>, %arg5: memref<64x4xbf16, #tpu.memory_space<vmem>>, %arg6: memref<192x128xbf16, #tpu.memory_space<vmem>>, %arg7: memref<1x128xf32, #tpu.memory_space<vmem>>, %arg8: memref<1x128xf32, #tpu.memory_space<vmem>>, %arg9: memref<1x128xf32, #tpu.memory_space<vmem>>, %arg10: memref<1x1xf32, #tpu.memory_space<vmem>>, %arg11: memref<1x1x64xf32, #tpu.memory_space<vmem>>, %arg12: memref<1x1x64xf32, #tpu.memory_space<vmem>>) attributes {dimension_semantics = [#tpu.dimension_semantics<parallel>], iteration_bounds = array<i64: 2>, scalar_prefetch = 0 : i64, scratch_operands = 0 : i64, tpu.core_type = #tpu.core_type<tc>, window_params = [{transform_indices = @transform_0, window_bounds = array<i64: 1, 64, 64>}, {transform_indices = @transform_1, window_bounds = array<i64: 1, 16, 64>}, {transform_indices = @transform_2, window_bounds = array<i64: 1, 4, 64>}, {pipeline_mode = #tpu.pipeline_mode<synchronous>, transform_indices = @transform_3, window_bounds = array<i64: 64, 16>}, {pipeline_mode = #tpu.pipeline_mode<synchronous>, transform_indices = @transform_4, window_bounds = array<i64: 64, 4>}, {pipeline_mode = #tpu.pipeline_mode<synchronous>, transform_indices = @transform_5, window_bounds = array<i64: 192, 128>}, {pipeline_mode = #tpu.pipeline_mode<synchronous>, transform_indices = @transform_6, window_bounds = array<i64: 1, 128>}, {pipeline_mode = #tpu.pipeline_mode<synchronous>, transform_indices = @transform_7, window_bounds = array<i64: 1, 128>}, {pipeline_mode = #tpu.pipeline_mode<synchronous>, transform_indices = @transform_8, window_bounds = array<i64: 1, 128>}, {pipeline_mode = #tpu.pipeline_mode<synchronous>, transform_indices = @transform_9, window_bounds = array<i64: 1, 1>}, {transform_indices = @transform_10, window_bounds = array<i64: 1, 1, 64>}, {transform_indices = @transform_11, window_bounds = array<i64: 1, 1, 64>}]} {
    %c0 = arith.constant 0 : index
    %c0_0 = arith.constant 0 : index
    %0 = vector.load %arg4[%c0, %c0_0] : memref<64x16xbf16, #tpu.memory_space<vmem>>, vector<64x16xbf16>
    %c0_1 = arith.constant 0 : index
    %c0_2 = arith.constant 0 : index
    %c0_3 = arith.constant 0 : index
    %1 = vector.load %arg2[%c0_1, %c0_2, %c0_3] : memref<1x16x64xbf16, #tpu.memory_space<vmem>>, vector<1x16x64xbf16>
    %2 = vector.shape_cast %1 : vector<1x16x64xbf16> to vector<16x64xbf16>
    %cst = arith.constant dense<0.000000e+00> : vector<64x64xf32>
    %3 = tpu.matmul %0, %2, %cst {dimension_numbers = #tpu.dot_dimension_numbers<[1], [0], [0], [1], [0, 0, 1, 1], [], []>} : vector<64x16xbf16>, vector<16x64xbf16>, vector<64x64xf32> -> vector<64x64xf32>
    %4 = arith.truncf %3 : vector<64x64xf32> to vector<64x64xbf16>
    %c0_4 = arith.constant 0 : index
    %c0_5 = arith.constant 0 : index
    %5 = vector.load %arg5[%c0_4, %c0_5] : memref<64x4xbf16, #tpu.memory_space<vmem>>, vector<64x4xbf16>
    %c0_6 = arith.constant 0 : index
    %c0_7 = arith.constant 0 : index
    %c0_8 = arith.constant 0 : index
    %6 = vector.load %arg3[%c0_6, %c0_7, %c0_8] : memref<1x4x64xbf16, #tpu.memory_space<vmem>>, vector<1x4x64xbf16>
    %7 = vector.shape_cast %6 : vector<1x4x64xbf16> to vector<4x64xbf16>
    %cst_9 = arith.constant dense<0.000000e+00> : vector<64x64xf32>
    %8 = tpu.matmul %5, %7, %cst_9 {dimension_numbers = #tpu.dot_dimension_numbers<[1], [0], [0], [1], [0, 0, 1, 1], [], []>} : vector<64x4xbf16>, vector<4x64xbf16>, vector<64x64xf32> -> vector<64x64xf32>
    %9 = arith.truncf %8 : vector<64x64xf32> to vector<64x64xbf16>
    %c0_10 = arith.constant 0 : index
    %c0_11 = arith.constant 0 : index
    %c0_12 = arith.constant 0 : index
    %10 = vector.load %arg1[%c0_10, %c0_11, %c0_12] : memref<1x64x64xbf16, #tpu.memory_space<vmem>>, vector<1x64x64xbf16>
    %11 = vector.shape_cast %10 : vector<1x64x64xbf16> to vector<64x64xbf16>
    %12 = tpu.concatenate %11, %4, %9 in 1 : vector<64x64xbf16>, vector<64x64xbf16>, vector<64x64xbf16> -> vector<64x192xbf16>
    %c0_13 = arith.constant 0 : index
    %c0_14 = arith.constant 0 : index
    %13 = vector.load %arg6[%c0_13, %c0_14] : memref<192x128xbf16, #tpu.memory_space<vmem>>, vector<192x128xbf16>
    %cst_15 = arith.constant dense<0.000000e+00> : vector<64x128xf32>
    %14 = tpu.matmul %12, %13, %cst_15 {dimension_numbers = #tpu.dot_dimension_numbers<[1], [0], [0], [1], [0, 0, 1, 1], [], []>} : vector<64x192xbf16>, vector<192x128xbf16>, vector<64x128xf32> -> vector<64x128xf32>
    %c0_16 = arith.constant 0 : index
    %c0_17 = arith.constant 0 : index
    %15 = vector.load %arg7[%c0_16, %c0_17] : memref<1x128xf32, #tpu.memory_space<vmem>>, vector<1x128xf32>
    %16 = vector.broadcast %15 : vector<1x128xf32> to vector<64x128xf32>
    %17 = arith.mulf %14, %16 : vector<64x128xf32>
    %c0_18 = arith.constant 0 : index
    %c0_19 = arith.constant 0 : index
    %18 = vector.load %arg8[%c0_18, %c0_19] : memref<1x128xf32, #tpu.memory_space<vmem>>, vector<1x128xf32>
    %19 = vector.broadcast %18 : vector<1x128xf32> to vector<64x128xf32>
    %20 = arith.addf %17, %19 : vector<64x128xf32>
    %21 = tpu.iota {dimensions = array<i32: 1>} : vector<64x128xi32>
    %c64_i32 = arith.constant 64 : i32
    %22 = vector.broadcast %c64_i32 : i32 to vector<64x128xi32>
    %23 = arith.cmpi sge, %21, %22 : vector<64x128xi32>
    %cst_20 = arith.constant 0.000000e+00 : f32
    %24 = vector.broadcast %cst_20 : f32 to vector<64x128xf32>
    %25 = arith.maximumf %20, %24 : vector<64x128xf32>
    %26 = arith.select %23, %25, %20 : vector<64x128xi1>, vector<64x128xf32>
    %c0_21 = arith.constant 0 : index
    %c0_22 = arith.constant 0 : index
    %27 = vector.load %arg9[%c0_21, %c0_22] : memref<1x128xf32, #tpu.memory_space<vmem>>, vector<1x128xf32>
    %cst_23 = arith.constant dense<0.000000e+00> : vector<1x64xf32>
    %28 = tpu.matmul %27, %26, %cst_23 {dimension_numbers = #tpu.dot_dimension_numbers<[1], [1], [0], [0], [0, 0, 1, 0], [], []>} : vector<1x128xf32>, vector<64x128xf32>, vector<1x64xf32> -> vector<1x64xf32>
    %c0_24 = arith.constant 0 : index
    %c0_25 = arith.constant 0 : index
    %29 = vector.load %arg10[%c0_24, %c0_25] : memref<1x1xf32, #tpu.memory_space<vmem>>, vector<1x1xf32>
    %30 = vector.broadcast %29 : vector<1x1xf32> to vector<1x64xf32>
    %31 = arith.addf %28, %30 : vector<1x64xf32>
    %cst_26 = arith.constant 0.000000e+00 : f32
    %32 = vector.broadcast %cst_26 : f32 to vector<1x64xf32>
    %33 = arith.subf %32, %31 : vector<1x64xf32>
    %34 = math.exp %33 : vector<1x64xf32>
    %cst_27 = arith.constant 1.000000e+00 : f32
    %35 = vector.broadcast %cst_27 : f32 to vector<1x64xf32>
    %36 = arith.addf %35, %34 : vector<1x64xf32>
    %cst_28 = arith.constant 1.000000e+00 : f32
    %37 = vector.broadcast %cst_28 : f32 to vector<1x64xf32>
    %38 = arith.divf %37, %36 : vector<1x64xf32>
    %cst_29 = arith.constant dense<0.000000e+00> : vector<1x128xf32>
    %39 = tpu.matmul %38, %26, %cst_29 {dimension_numbers = #tpu.dot_dimension_numbers<[1], [0], [0], [1], [0, 0, 1, 1], [], []>} : vector<1x64xf32>, vector<64x128xf32>, vector<1x128xf32> -> vector<1x128xf32>
    %40 = vector.extract_strided_slice %39 {offsets = [0, 0], sizes = [1, 64], strides = [1, 1]} : vector<1x128xf32> to vector<1x64xf32>
    %41 = arith.mulf %40, %40 : vector<1x64xf32>
    %cst_30 = arith.constant dense<0.000000e+00> : vector<1xf32>
    %42 = vector.multi_reduction <add>, %41, %cst_30 [1] : vector<1x64xf32> to vector<1xf32>
    %43 = vector.shape_cast %42 : vector<1xf32> to vector<1x1xf32>
    %cst_31 = arith.constant 1.000000e-10 : f32
    %44 = vector.broadcast %cst_31 : f32 to vector<1x1xf32>
    %45 = arith.addf %43, %44 : vector<1x1xf32>
    %46 = math.rsqrt %45 : vector<1x1xf32>
    %47 = vector.broadcast %46 : vector<1x1xf32> to vector<1x64xf32>
    %48 = arith.mulf %40, %47 : vector<1x64xf32>
    %49 = vector.shape_cast %48 : vector<1x64xf32> to vector<1x1x64xf32>
    %c0_32 = arith.constant 0 : index
    %c0_33 = arith.constant 0 : index
    %c0_34 = arith.constant 0 : index
    %50 = vector.load %arg11[%c0_32, %c0_33, %c0_34] : memref<1x1x64xf32, #tpu.memory_space<vmem>>, vector<1x1x64xf32>
    tpu.vector_store %arg11[%c0_32, %c0_33, %c0_34], %49 {strides = array<i32>} : memref<1x1x64xf32, #tpu.memory_space<vmem>>, vector<1x1x64xf32>,
    %51 = vector.shape_cast %38 : vector<1x64xf32> to vector<1x1x64xf32>
    %c0_35 = arith.constant 0 : index
    %c0_36 = arith.constant 0 : index
    %c0_37 = arith.constant 0 : index
    %52 = vector.load %arg12[%c0_35, %c0_36, %c0_37] : memref<1x1x64xf32, #tpu.memory_space<vmem>>, vector<1x1x64xf32>
    tpu.vector_store %arg12[%c0_35, %c0_36, %c0_37], %51 {strides = array<i32>} : memref<1x1x64xf32, #tpu.memory_space<vmem>>, vector<1x1x64xf32>,
    return
  }
  func.func @transform_0(%arg0: i32) -> (i32, i32, i32) {
    %c0_i32 = arith.constant 0 : i32
    %c0_i32_0 = arith.constant 0 : i32
    %c0_i32_1 = arith.constant 0 : i32
    return %arg0, %c0_i32, %c0_i32_0 : i32, i32, i32
  }
  func.func @transform_1(%arg0: i32) -> (i32, i32, i32) {
    %c0_i32 = arith.constant 0 : i32
    %c0_i32_0 = arith.constant 0 : i32
    %c0_i32_1 = arith.constant 0 : i32
    return %arg0, %c0_i32, %c0_i32_0 : i32, i32, i32
  }
  func.func @transform_2(%arg0: i32) -> (i32, i32, i32) {
    %c0_i32 = arith.constant 0 : i32
    %c0_i32_0 = arith.constant 0 : i32
    %c0_i32_1 = arith.constant 0 : i32
    return %arg0, %c0_i32, %c0_i32_0 : i32, i32, i32
  }
  func.func @transform_3(%arg0: i32) -> (i32, i32) {
    %c0_i32 = arith.constant 0 : i32
    %c0_i32_0 = arith.constant 0 : i32
    %c0_i32_1 = arith.constant 0 : i32
    return %c0_i32, %c0_i32_0 : i32, i32
  }
  func.func @transform_4(%arg0: i32) -> (i32, i32) {
    %c0_i32 = arith.constant 0 : i32
    %c0_i32_0 = arith.constant 0 : i32
    %c0_i32_1 = arith.constant 0 : i32
    return %c0_i32, %c0_i32_0 : i32, i32
  }
  func.func @transform_5(%arg0: i32) -> (i32, i32) {
    %c0_i32 = arith.constant 0 : i32
    %c0_i32_0 = arith.constant 0 : i32
    %c0_i32_1 = arith.constant 0 : i32
    return %c0_i32, %c0_i32_0 : i32, i32
  }
  func.func @transform_6(%arg0: i32) -> (i32, i32) {
    %c0_i32 = arith.constant 0 : i32
    %c0_i32_0 = arith.constant 0 : i32
    %c0_i32_1 = arith.constant 0 : i32
    return %c0_i32, %c0_i32_0 : i32, i32
  }
  func.func @transform_7(%arg0: i32) -> (i32, i32) {
    %c0_i32 = arith.constant 0 : i32
    %c0_i32_0 = arith.constant 0 : i32
    %c0_i32_1 = arith.constant 0 : i32
    return %c0_i32, %c0_i32_0 : i32, i32
  }
  func.func @transform_8(%arg0: i32) -> (i32, i32) {
    %c0_i32 = arith.constant 0 : i32
    %c0_i32_0 = arith.constant 0 : i32
    %c0_i32_1 = arith.constant 0 : i32
    return %c0_i32, %c0_i32_0 : i32, i32
  }
  func.func @transform_9(%arg0: i32) -> (i32, i32) {
    %c0_i32 = arith.constant 0 : i32
    %c0_i32_0 = arith.constant 0 : i32
    %c0_i32_1 = arith.constant 0 : i32
    return %c0_i32, %c0_i32_0 : i32, i32
  }
  func.func @transform_10(%arg0: i32) -> (i32, i32, i32) {
    %c0_i32 = arith.constant 0 : i32
    %c0_i32_0 = arith.constant 0 : i32
    %c0_i32_1 = arith.constant 0 : i32
    return %arg0, %c0_i32, %c0_i32_0 : i32, i32, i32
  }
  func.func @transform_11(%arg0: i32) -> (i32, i32, i32) {
    %c0_i32 = arith.constant 0 : i32
    %c0_i32_0 = arith.constant 0 : i32
    %c0_i32_1 = arith.constant 0 : i32
    return %arg0, %c0_i32, %c0_i32_0 : i32, i32, i32
  }
}

</mosaic_0001>

<bundles_post_ra>
// kernel: multi_scale_dense121_forward.8
= control target key start
LH: loop header
LB: loop body
LE: loop exit
PB: predicated region body
PF: predicated region fallthrough
CT: control target
= control target key end

     0   :  { %v1642_v1 = vmov 0   ;;  %vm150_vm0 = vcmask 392192   ;;  %s2404_s1 = inlined_call_operand.vmem [shape: bf16[48,256], index: 1, kind: input, shape index: {}]   ;;  %s2405_s0 = inlined_call_operand.vmem [shape: f32[512,48], index: 0, kind: input, shape index: {}]   ;;  %s2406_s2 = inlined_call_operand.vmem [shape: f32[1,256], index: 2, kind: input, shape index: {}]   ;;  %s2407_s3 = inlined_call_operand.vmem [shape: f32[1,256], index: 3, kind: input, shape index: {}]   ;;  %s2408_s4 = inlined_call_operand.vmem [shape: bf16[512,256], index: 4, kind: output, shape index: {}]  }
   0x1   :  { %v1633_v0 = vld [vmem:[%s2404_s1 + $0x4] ss:$8 sps:$4 sm:$0xff]   ;;  %279 = vmatprep.mubr.bf16.mxu0 %v1642_v1  ;;  %439 = vmatprep.mubr.bf16.mxu1 %v1642_v1  ;;  %v1635_v2 = vld [vmem:[%s2404_s1] ss:$8 sps:$4 sm:$0xff]   ;;  %v1636_v3 = vld [vmem:[%s2404_s1 + $0x14] ss:$8 sps:$4 sm:$0xff]  }
   0x2   :  { %247 = vmatprep.subr.bf16.mxu0 %v1633_v0  ;;  %1626 = vmatprep.subr.bf16.mxu1 %v1633_v0  ;;  %v1638_v4 = vld [vmem:[%s2404_s1 + $0x10] ss:$8 sps:$4 sm:$0xff]   ;;  %v1639_v5 = vld [vmem:[%s2404_s1 + $0x24] ss:$8 sps:$4 sm:$0xff]   ;;  %v1641_v6 = vld [vmem:[%s2404_s1 + $0x20] ss:$8 sps:$4 sm:$0xff]  }
   0x3   :  { %248 = vmatpush1.bf16.msra.mxu0 %v1635_v2  ;;  %1629 = vmatpush1.bf16.msra.mxu1 %v1635_v2  ;;  %v18_v7 = vld [vmem:[%s2405_s0] sm:$0xff]  ;;  %v19_v8 = vld [vmem:[%s2405_s0 + $0x8] sm:$0xff]  ;;  %v20_v13 = vld [vmem:[%s2405_s0 + $0x10] sm:$0xff] }
   0x4   :  { %249 = vmatprep.subr.bf16.mxu0 %v1636_v3  ;;  %1627 = vmatprep.subr.bf16.mxu1 %v1636_v3  ;;  %v50_v9 = vld [vmem:[%s2405_s0 + $0x100] sm:$0xff]  ;;  %v51_v10 = vld [vmem:[%s2405_s0 + $0x108] sm:$0xff]  ;;  %v82_v11 = vpack.c.bf16 %v19_v8, %v18_v7  ;;  %v21_v14 = vld [vmem:[%s2405_s0 + $0x18] sm:$0xff] }
   0x5   :  { %v98_v12 = vpack.c.bf16 %v51_v10, %v50_v9  ;;  %v52_v15 = vld [vmem:[%s2405_s0 + $0x110] sm:$0xff]  ;;  %v53_v16 = vld [vmem:[%s2405_s0 + $0x118] sm:$0xff]  ;;  %v83_v17 = vpack.c.bf16 %v21_v14, %v20_v13  ;;  %v22_v19 = vld [vmem:[%s2405_s0 + $0x20] sm:$0xff] }
   0x6   :  { %v99_v18 = vpack.c.bf16 %v53_v16, %v52_v15  ;;  %v23_v20 = vld [vmem:[%s2405_s0 + $0x28] sm:$0xff]  ;;  %v54_v21 = vld [vmem:[%s2405_s0 + $0x120] sm:$0xff]  ;;  %v24_v25 = vld [vmem:[%s2405_s0 + $0x30] sm:$0xff] }
   0x7   :  { %250 = vmatpush1.bf16.msra.mxu0 %v1638_v4  ;;  %1630 = vmatpush1.bf16.msra.mxu1 %v1638_v4  ;;  %v55_v22 = vld [vmem:[%s2405_s0 + $0x128] sm:$0xff]  ;;  %v84_v23 = vpack.c.bf16 %v23_v20, %v22_v19  ;;  %v25_v26 = vld [vmem:[%s2405_s0 + $0x38] sm:$0xff]  ;;  %v56_v27 = vld [vmem:[%s2405_s0 + $0x130] sm:$0xff] }
   0x8   :  { %251 = vmatprep.subr.bf16.mxu0 %v1639_v5  ;;  %1628 = vmatprep.subr.bf16.mxu1 %v1639_v5  ;;  %v100_v24 = vpack.c.bf16 %v55_v22, %v54_v21  ;;  %v57_v28 = vld [vmem:[%s2405_s0 + $0x138] sm:$0xff]  ;;  %v85_v29 = vpack.c.bf16 %v25_v26, %v24_v25  ;;  %v26_v31 = vld [vmem:[%s2405_s0 + $0x40] sm:$0xff]  ;;  %v27_v32 = vld [vmem:[%s2405_s0 + $0x48] sm:$0xff] }
   0x9   :  { %v101_v30 = vpack.c.bf16 %v57_v28, %v56_v27  ;;  %v58_v33 = vld [vmem:[%s2405_s0 + $0x140] sm:$0xff]  ;;  %v59_v34 = vld [vmem:[%s2405_s0 + $0x148] sm:$0xff]  ;;  %v86_v35 = vpack.c.bf16 %v27_v32, %v26_v31  ;;  %v28_v37 = vld [vmem:[%s2405_s0 + $0x50] sm:$0xff] }
   0xa   :  { %v102_v36 = vpack.c.bf16 %v59_v34, %v58_v33  ;;  %v29_v38 = vld [vmem:[%s2405_s0 + $0x58] sm:$0xff]  ;;  %v60_v39 = vld [vmem:[%s2405_s0 + $0x150] sm:$0xff]  ;;  %v30_v43 = vld [vmem:[%s2405_s0 + $0x60] sm:$0xff] }
   0xb   :  { %252 = vmatpush1.bf16.msra.mxu0 %v1641_v6  ;;  %1631 = vmatpush1.bf16.msra.mxu1 %v1641_v6  ;;  %v61_v40 = vld [vmem:[%s2405_s0 + $0x158] sm:$0xff]  ;;  %v87_v41 = vpack.c.bf16 %v29_v38, %v28_v37  ;;  %v31_v44 = vld [vmem:[%s2405_s0 + $0x68] sm:$0xff]  ;;  %v62_v45 = vld [vmem:[%s2405_s0 + $0x160] sm:$0xff] }
   0xc   :  { %v103_v42 = vpack.c.bf16 %v61_v40, %v60_v39  ;;  %v63_v46 = vld [vmem:[%s2405_s0 + $0x168] sm:$0xff]  ;;  %v88_v47 = vpack.c.bf16 %v31_v44, %v30_v43  ;;  %v32_v49 = vld [vmem:[%s2405_s0 + $0x70] sm:$0xff]  ;;  %v33_v50 = vld [vmem:[%s2405_s0 + $0x78] sm:$0xff]  ;;  %v602_v40 = vlaneseq }
   0xd   :  { %v104_v48 = vpack.c.bf16 %v63_v46, %v62_v45  ;;  %v64_v51 = vld [vmem:[%s2405_s0 + $0x170] sm:$0xff]  ;;  %v65_v52 = vld [vmem:[%s2405_s0 + $0x178] sm:$0xff]  ;;  %v89_v53 = vpack.c.bf16 %v33_v50, %v32_v49  ;;  %v34_v55 = vld [vmem:[%s2405_s0 + $0x80] sm:$0xff] }
   0xe   :  { %1466 = vmatmul.mubr.msk.bf16.vlgmr.msra.gmra.mrb[0].mxu0 %vm150_vm0, %v82_v11  ;;  %1482 = vmatmul.mubr.msk.bf16.vlgmr.msra.gmra.mrb[0].mxu1 %vm150_vm0, %v98_v12  ;;  %v105_v54 = vpack.c.bf16 %v65_v52, %v64_v51  ;;  %v35_v56 = vld [vmem:[%s2405_s0 + $0x88] sm:$0xff]  ;;  %v66_v57 = vld [vmem:[%s2405_s0 + $0x180] sm:$0xff]  ;;  %v36_v61 = vld [vmem:[%s2405_s0 + $0x90] sm:$0xff] }
   0xf   :  { %289 = vmatprep.mubr.bf16.mxu0 %v1642_v1  ;;  %449 = vmatprep.mubr.bf16.mxu1 %v1642_v1  ;;  %v67_v58 = vld [vmem:[%s2405_s0 + $0x188] sm:$0xff]  ;;  %v90_v59 = vpack.c.bf16 %v35_v56, %v34_v55  ;;  %v37_v62 = vld [vmem:[%s2405_s0 + $0x98] sm:$0xff]  ;;  %v68_v63 = vld [vmem:[%s2405_s0 + $0x190] sm:$0xff] }
  0x10   :  { %v106_v60 = vpack.c.bf16 %v67_v58, %v66_v57  ;;  %v69_v0 = vld [vmem:[%s2405_s0 + $0x198] sm:$0xff]  ;;  %v91_v2 = vpack.c.bf16 %v37_v62, %v36_v61  ;;  %v38_v4 = vld [vmem:[%s2405_s0 + $0xa0] sm:$0xff]  ;;  %v39_v5 = vld [vmem:[%s2405_s0 + $0xa8] sm:$0xff] }
  0x11   :  { %v107_v3 = vpack.c.bf16 %v69_v0, %v68_v63  ;;  %v70_v6 = vld [vmem:[%s2405_s0 + $0x1a0] sm:$0xff]  ;;  %v71_v7 = vld [vmem:[%s2405_s0 + $0x1a8] sm:$0xff]  ;;  %v92_v8 = vpack.c.bf16 %v39_v5, %v38_v4  ;;  %v40_v10 = vld [vmem:[%s2405_s0 + $0xb0] sm:$0xff] }
  0x12   :  { %v108_v9 = vpack.c.bf16 %v71_v7, %v70_v6  ;;  %v41_v11 = vld [vmem:[%s2405_s0 + $0xb8] sm:$0xff]  ;;  %v72_v12 = vld [vmem:[%s2405_s0 + $0x1b0] sm:$0xff]  ;;  %v42_v16 = vld [vmem:[%s2405_s0 + $0xc0] sm:$0xff] }
  0x13   :  { %v73_v13 = vld [vmem:[%s2405_s0 + $0x1b8] sm:$0xff]  ;;  %v93_v14 = vpack.c.bf16 %v41_v11, %v40_v10  ;;  %v75_v19 = vld [vmem:[%s2405_s0 + $0x1c8] sm:$0xff]  ;;  %v44_v22 = vld [vmem:[%s2405_s0 + $0xd0] sm:$0xff] }
  0x14   :  { %v109_v15 = vpack.c.bf16 %v73_v13, %v72_v12  ;;  %v77_v25 = vld [vmem:[%s2405_s0 + $0x1d8] sm:$0xff]  ;;  %v46_v28 = vld [vmem:[%s2405_s0 + $0xe0] sm:$0xff]  ;;  %v79_v31 = vld [vmem:[%s2405_s0 + $0x1e8] sm:$0xff] }
  0x15   :  { %v48_v34 = vld [vmem:[%s2405_s0 + $0xf0] sm:$0xff]  ;;  %v81_v37 = vld [vmem:[%s2405_s0 + $0x1f8] sm:$0xff]  ;;  %v740_v44 = vld [vmem:[%s2407_s3] sm:$0x3] }
  0x16   :  { %1467 = vmatmul.mubr.msk.bf16.gmra.mrb[4].mxu0 %vm150_vm0, %v83_v17  ;;  %1483 = vmatmul.mubr.msk.bf16.gmra.mrb[4].mxu1 %vm150_vm0, %v99_v18  ;;  %v43_v17 = vld [vmem:[%s2405_s0 + $0xc8] sm:$0xff]  ;;  %v74_v18 = vld [vmem:[%s2405_s0 + $0x1c0] sm:$0xff] }
  0x17   :  { %299 = vmatprep.mubr.bf16.mxu0 %v1642_v1  ;;  %459 = vmatprep.mubr.bf16.mxu1 %v1642_v1  ;;  %v94_v20 = vpack.c.bf16 %v43_v17, %v42_v16  ;;  %v110_v21 = vpack.c.bf16 %v75_v19, %v74_v18 }
  0x1e   :  { %1468 = vmatmul.mubr.msk.bf16.gmra.mrb[8].mxu0 %vm150_vm0, %v84_v23  ;;  %1484 = vmatmul.mubr.msk.bf16.gmra.mrb[8].mxu1 %vm150_vm0, %v100_v24  ;;  %v45_v23 = vld [vmem:[%s2405_s0 + $0xd8] sm:$0xff]  ;;  %v76_v24 = vld [vmem:[%s2405_s0 + $0x1d0] sm:$0xff] }
  0x1f   :  { %309 = vmatprep.mubr.bf16.mxu0 %v1642_v1  ;;  %469 = vmatprep.mubr.bf16.mxu1 %v1642_v1  ;;  %v95_v26 = vpack.c.bf16 %v45_v23, %v44_v22  ;;  %v111_v27 = vpack.c.bf16 %v77_v25, %v76_v24 }
  0x26   :  { %1469 = vmatmul.mubr.msk.bf16.gmra.mrb[12].mxu0 %vm150_vm0, %v85_v29  ;;  %1485 = vmatmul.mubr.msk.bf16.gmra.mrb[12].mxu1 %vm150_vm0, %v101_v30  ;;  %v47_v29 = vld [vmem:[%s2405_s0 + $0xe8] sm:$0xff]  ;;  %v78_v30 = vld [vmem:[%s2405_s0 + $0x1e0] sm:$0xff] }
  0x27   :  { %319 = vmatprep.mubr.bf16.mxu0 %v1642_v1  ;;  %479 = vmatprep.mubr.bf16.mxu1 %v1642_v1  ;;  %v96_v32 = vpack.c.bf16 %v47_v29, %v46_v28  ;;  %v112_v33 = vpack.c.bf16 %v79_v31, %v78_v30 }
  0x2e   :  { %1470 = vmatmul.mubr.msk.bf16.gmra.mrb[16].mxu0 %vm150_vm0, %v86_v35  ;;  %1486 = vmatmul.mubr.msk.bf16.gmra.mrb[16].mxu1 %vm150_vm0, %v102_v36  ;;  %v49_v35 = vld [vmem:[%s2405_s0 + $0xf8] sm:$0xff]  ;;  %v80_v36 = vld [vmem:[%s2405_s0 + $0x1f0] sm:$0xff] }
  0x2f   :  { %329 = vmatprep.mubr.bf16.mxu0 %v1642_v1  ;;  %489 = vmatprep.mubr.bf16.mxu1 %v1642_v1  ;;  %v97_v38 = vpack.c.bf16 %v49_v35, %v48_v34  ;;  %v113_v39 = vpack.c.bf16 %v81_v37, %v80_v36 }
  0x36   :  { %1471 = vmatmul.mubr.msk.bf16.gmra.mrb[20].mxu0 %vm150_vm0, %v87_v41  ;;  %1487 = vmatmul.mubr.msk.bf16.gmra.mrb[20].mxu1 %vm150_vm0, %v103_v42  ;;  %v600_v42 = vld [vmem:[%s2406_s2] sm:$0x3] }
  0x37   :  { %339 = vmatprep.mubr.bf16.mxu0 %v1642_v1  ;;  %499 = vmatprep.mubr.bf16.mxu1 %v1642_v1 }
  0x3e   :  { %1472 = vmatmul.mubr.msk.bf16.gmra.mrb[24].mxu0 %vm150_vm0, %v88_v47  ;;  %1488 = vmatmul.mubr.msk.bf16.gmra.mrb[24].mxu1 %vm150_vm0, %v104_v48 }
  0x3f   :  { %349 = vmatprep.mubr.bf16.mxu0 %v1642_v1  ;;  %509 = vmatprep.mubr.bf16.mxu1 %v1642_v1 }
  0x46   :  { %1473 = vmatmul.mubr.msk.bf16.gmra.mrb[28].mxu0 %vm150_vm0, %v89_v53  ;;  %1489 = vmatmul.mubr.msk.bf16.gmra.mrb[28].mxu1 %vm150_vm0, %v105_v54 }
  0x47   :  { %359 = vmatprep.mubr.bf16.mxu0 %v1642_v1  ;;  %519 = vmatprep.mubr.bf16.mxu1 %v1642_v1 }
  0x4e   :  { %1474 = vmatmul.mubr.msk.bf16.gmra.mrb[32].mxu0 %vm150_vm0, %v90_v59  ;;  %1490 = vmatmul.mubr.msk.bf16.gmra.mrb[32].mxu1 %vm150_vm0, %v106_v60 }
  0x4f   :  { %369 = vmatprep.mubr.bf16.mxu0 %v1642_v1  ;;  %529 = vmatprep.mubr.bf16.mxu1 %v1642_v1 }
  0x56   :  { %1475 = vmatmul.mubr.msk.bf16.gmra.mrb[36].mxu0 %vm150_vm0, %v91_v2  ;;  %1491 = vmatmul.mubr.msk.bf16.gmra.mrb[36].mxu1 %vm150_vm0, %v107_v3 }
  0x57   :  { %379 = vmatprep.mubr.bf16.mxu0 %v1642_v1  ;;  %539 = vmatprep.mubr.bf16.mxu1 %v1642_v1 }
  0x5e   :  { %1476 = vmatmul.mubr.msk.bf16.gmra.mrb[40].mxu0 %vm150_vm0, %v92_v8  ;;  %1492 = vmatmul.mubr.msk.bf16.gmra.mrb[40].mxu1 %vm150_vm0, %v108_v9 }
  0x5f   :  { %389 = vmatprep.mubr.bf16.mxu0 %v1642_v1  ;;  %549 = vmatprep.mubr.bf16.mxu1 %v1642_v1 }
  0x66   :  { %1477 = vmatmul.mubr.msk.bf16.gmra.mrb[44].mxu0 %vm150_vm0, %v93_v14  ;;  %1493 = vmatmul.mubr.msk.bf16.gmra.mrb[44].mxu1 %vm150_vm0, %v109_v15 }
  0x67   :  { %399 = vmatprep.mubr.bf16.mxu0 %v1642_v1  ;;  %559 = vmatprep.mubr.bf16.mxu1 %v1642_v1 }
  0x6e   :  { %1478 = vmatmul.mubr.msk.bf16.gmra.mrb[48].mxu0 %vm150_vm0, %v94_v20  ;;  %1494 = vmatmul.mubr.msk.bf16.gmra.mrb[48].mxu1 %vm150_vm0, %v110_v21 }
  0x6f   :  { %409 = vmatprep.mubr.bf16.mxu0 %v1642_v1  ;;  %569 = vmatprep.mubr.bf16.mxu1 %v1642_v1 }
  0x76   :  { %1479 = vmatmul.mubr.msk.bf16.gmra.mrb[52].mxu0 %vm150_vm0, %v95_v26  ;;  %1495 = vmatmul.mubr.msk.bf16.gmra.mrb[52].mxu1 %vm150_vm0, %v111_v27 }
  0x77   :  { %419 = vmatprep.mubr.bf16.mxu0 %v1642_v1  ;;  %579 = vmatprep.mubr.bf16.mxu1 %v1642_v1 }
  0x7e   :  { %1480 = vmatmul.mubr.msk.bf16.gmra.mrb[56].mxu0 %vm150_vm0, %v96_v32  ;;  %1496 = vmatmul.mubr.msk.bf16.gmra.mrb[56].mxu1 %vm150_vm0, %v112_v33 }
  0x7f   :  { %429 = vmatprep.mubr.bf16.mxu0 %v1642_v1  ;;  %589 = vmatprep.mubr.bf16.mxu1 %v1642_v1  ;;  %v603_v1 = vshrl.u32 %v602_v40, 7 }
  0x81   :  { %v604_v41 = vsub.s32 0, %v603_v1  ;;  %v608_v43 = vsub.s32 1, %v603_v1 }
  0x83   :  { %v1948_v45 = vrot.slane %v600_v42, %v604_v41  ;;  %v1950_v46 = vrot.slane %v600_v42, %v608_v43  ;;  %v1952_v47 = vrot.slane %v740_v44, %v604_v41  ;;  %v1954_v50 = vrot.slane %v740_v44, %v608_v43 }
  0x86   :  { %1481 = vmatmul.mubr.msk.bf16.gmra.mrb[60].mxu0 %vm150_vm0, %v97_v38  ;;  %1497 = vmatmul.mubr.msk.bf16.gmra.mrb[60].mxu1 %vm150_vm0, %v113_v39 }
  0xe1   :  { %v281_v48 = vpop.f32.mrb[0].mxu0  ;;  %v441_v49 = vpop.f32.mrb[0].mxu1 }
  0xe2   :  { %v612_v51 = vmul.f32 %v1948_v45, %v281_v48  ;;  %v676_v52 = vmul.f32 %v1948_v45, %v441_v49  ;;  %v283_v53 = vpop.f32.mrb[1].mxu0  ;;  %v443_v54 = vpop.f32.mrb[1].mxu1 }
  0xe3   :  { %v613_v55 = vmul.f32 %v1950_v46, %v283_v53  ;;  %v677_v56 = vmul.f32 %v1950_v46, %v443_v54  ;;  %v285_v57 = vpop.f32.mrb[2].mxu0  ;;  %v445_v58 = vpop.f32.mrb[2].mxu1 }
  0xe4   :  { %v752_v59 = vadd.f32 %v1952_v47, %v612_v51  ;;  %v816_v60 = vadd.f32 %v1952_v47, %v676_v52  ;;  %v614_v61 = vmul.f32 %v1948_v45, %v285_v57  ;;  %v678_v62 = vmul.f32 %v1948_v45, %v445_v58  ;;  %v287_v63 = vpop.f32.mrb[3].mxu0  ;;  %v447_v0 = vpop.f32.mrb[3].mxu1 }
  0xe5   :  { %v753_v2 = vadd.f32 %v1954_v50, %v613_v55  ;;  %v817_v3 = vadd.f32 %v1954_v50, %v677_v56  ;;  %v615_v4 = vmul.f32 %v1950_v46, %v287_v63  ;;  %v679_v5 = vmul.f32 %v1950_v46, %v447_v0 }
  0xe6   :  { %v880_v6 = vmax.f32 %v752_v59, 0.0  ;;  %v944_v7 = vmax.f32 %v816_v60, 0.0  ;;  %v754_v8 = vadd.f32 %v1952_v47, %v614_v61  ;;  %v818_v9 = vadd.f32 %v1952_v47, %v678_v62 }
  0xe7   :  { %v881_v10 = vmax.f32 %v753_v2, 0.0  ;;  %v945_v11 = vmax.f32 %v817_v3, 0.0  ;;  %v755_v12 = vadd.f32 %v1954_v50, %v615_v4  ;;  %v819_v13 = vadd.f32 %v1954_v50, %v679_v5 }
  0xe8   :  { %v882_v14 = vmax.f32 %v754_v8, 0.0  ;;  %v946_v15 = vmax.f32 %v818_v9, 0.0 }
  0xe9   :  { %v1562_v16 = vpack.c.bf16 %v881_v10, %v880_v6  ;;  %v1594_v17 = vpack.c.bf16 %v945_v11, %v944_v7  ;;  %v883_v18 = vmax.f32 %v755_v12, 0.0  ;;  %v947_v19 = vmax.f32 %v819_v13, 0.0  ;;  %v291_v20 = vpop.f32.mrb[4].mxu0  ;;  %v451_v21 = vpop.f32.mrb[4].mxu1 }
  0xea   :  { %v616_v22 = vmul.f32 %v1948_v45, %v291_v20  ;;  %v680_v23 = vmul.f32 %v1948_v45, %v451_v21  ;;  %v293_v24 = vpop.f32.mrb[5].mxu0  ;;  %v453_v25 = vpop.f32.mrb[5].mxu1 }
  0xeb   :  { %1392 = vst [vmem:[%s2408_s4] sm:$0xff] %v1562_v16  ;;  %1424 = vst [vmem:[%s2408_s4 + $0x100] sm:$0xff] %v1594_v17  ;;  %v1563_v26 = vpack.c.bf16 %v883_v18, %v882_v14  ;;  %v1595_v27 = vpack.c.bf16 %v947_v19, %v946_v15  ;;  %v617_v28 = vmul.f32 %v1950_v46, %v293_v24  ;;  %v295_v30 = vpop.f32.mrb[6].mxu0  ;;  %v455_v31 = vpop.f32.mrb[6].mxu1 }
  0xec   :  { %v681_v29 = vmul.f32 %v1950_v46, %v453_v25  ;;  %v756_v32 = vadd.f32 %v1952_v47, %v616_v22  ;;  %v820_v33 = vadd.f32 %v1952_v47, %v680_v23  ;;  %v618_v34 = vmul.f32 %v1948_v45, %v295_v30  ;;  %v297_v36 = vpop.f32.mrb[7].mxu0  ;;  %v457_v37 = vpop.f32.mrb[7].mxu1 }
  0xed   :  { %v682_v35 = vmul.f32 %v1948_v45, %v455_v31  ;;  %1393 = vst [vmem:[%s2408_s4 + $0x8] sm:$0xff] %v1563_v26  ;;  %1425 = vst [vmem:[%s2408_s4 + $0x108] sm:$0xff] %v1595_v27  ;;  %v757_v38 = vadd.f32 %v1954_v50, %v617_v28  ;;  %v619_v40 = vmul.f32 %v1950_v46, %v297_v36 }
  0xee   :  { %v821_v39 = vadd.f32 %v1954_v50, %v681_v29  ;;  %v683_v1 = vmul.f32 %v1950_v46, %v457_v37  ;;  %v884_v41 = vmax.f32 %v756_v32, 0.0  ;;  %v948_v42 = vmax.f32 %v820_v33, 0.0 }
  0xef   :  { %v758_v43 = vadd.f32 %v1952_v47, %v618_v34  ;;  %v822_v44 = vadd.f32 %v1952_v47, %v682_v35  ;;  %v885_v48 = vmax.f32 %v757_v38, 0.0  ;;  %v759_v51 = vadd.f32 %v1954_v50, %v619_v40 }
  0xf0   :  { %v949_v49 = vmax.f32 %v821_v39, 0.0  ;;  %v823_v52 = vadd.f32 %v1954_v50, %v683_v1 }
  0xf1   :  { %v886_v53 = vmax.f32 %v758_v43, 0.0  ;;  %v950_v54 = vmax.f32 %v822_v44, 0.0  ;;  %v1564_v55 = vpack.c.bf16 %v885_v48, %v884_v41  ;;  %v887_v57 = vmax.f32 %v759_v51, 0.0  ;;  %v301_v59 = vpop.f32.mrb[8].mxu0  ;;  %v461_v60 = vpop.f32.mrb[8].mxu1 }
  0xf2   :  { %v1596_v56 = vpack.c.bf16 %v949_v49, %v948_v42  ;;  %v951_v58 = vmax.f32 %v823_v52, 0.0  ;;  %v620_v61 = vmul.f32 %v1948_v45, %v301_v59  ;;  %v684_v62 = vmul.f32 %v1948_v45, %v461_v60  ;;  %v303_v63 = vpop.f32.mrb[9].mxu0  ;;  %v463_v0 = vpop.f32.mrb[9].mxu1 }
  0xf3   :  { %1394 = vst [vmem:[%s2408_s4 + $0x10] sm:$0xff] %v1564_v55  ;;  %v1565_v2 = vpack.c.bf16 %v887_v57, %v886_v53  ;;  %v621_v4 = vmul.f32 %v1950_v46, %v303_v63  ;;  %v685_v5 = vmul.f32 %v1950_v46, %v463_v0  ;;  %v305_v6 = vpop.f32.mrb[10].mxu0  ;;  %v465_v7 = vpop.f32.mrb[10].mxu1 }
  0xf4   :  { %1426 = vst [vmem:[%s2408_s4 + $0x110] sm:$0xff] %v1596_v56  ;;  %v1597_v3 = vpack.c.bf16 %v951_v58, %v950_v54  ;;  %v760_v8 = vadd.f32 %v1952_v47, %v620_v61  ;;  %v824_v9 = vadd.f32 %v1952_v47, %v684_v62  ;;  %v622_v10 = vmul.f32 %v1948_v45, %v305_v6  ;;  %v307_v12 = vpop.f32.mrb[11].mxu0  ;;  %v467_v13 = vpop.f32.mrb[11].mxu1 }
  0xf5   :  { %v686_v11 = vmul.f32 %v1948_v45, %v465_v7  ;;  %1395 = vst [vmem:[%s2408_s4 + $0x18] sm:$0xff] %v1565_v2  ;;  %v761_v14 = vadd.f32 %v1954_v50, %v621_v4  ;;  %v825_v15 = vadd.f32 %v1954_v50, %v685_v5  ;;  %v623_v16 = vmul.f32 %v1950_v46, %v307_v12 }
  0xf6   :  { %1427 = vst [vmem:[%s2408_s4 + $0x118] sm:$0xff] %v1597_v3  ;;  %v687_v17 = vmul.f32 %v1950_v46, %v467_v13  ;;  %v888_v18 = vmax.f32 %v760_v8, 0.0  ;;  %v952_v19 = vmax.f32 %v824_v9, 0.0  ;;  %v762_v20 = vadd.f32 %v1952_v47, %v622_v10 }
  0xf7   :  { %v826_v21 = vadd.f32 %v1952_v47, %v686_v11  ;;  %v889_v22 = vmax.f32 %v761_v14, 0.0  ;;  %v953_v23 = vmax.f32 %v825_v15, 0.0  ;;  %v763_v24 = vadd.f32 %v1954_v50, %v623_v16 }
  0xf8   :  { %v827_v25 = vadd.f32 %v1954_v50, %v687_v17  ;;  %v890_v26 = vmax.f32 %v762_v20, 0.0 }
  0xf9   :  { %v954_v27 = vmax.f32 %v826_v21, 0.0  ;;  %v1566_v28 = vpack.c.bf16 %v889_v22, %v888_v18  ;;  %v1598_v29 = vpack.c.bf16 %v953_v23, %v952_v19  ;;  %v891_v30 = vmax.f32 %v763_v24, 0.0  ;;  %v311_v32 = vpop.f32.mrb[12].mxu0  ;;  %v471_v33 = vpop.f32.mrb[12].mxu1 }
  0xfa   :  { %v955_v31 = vmax.f32 %v827_v25, 0.0  ;;  %v624_v34 = vmul.f32 %v1948_v45, %v311_v32  ;;  %v688_v35 = vmul.f32 %v1948_v45, %v471_v33  ;;  %v313_v36 = vpop.f32.mrb[13].mxu0  ;;  %v473_v37 = vpop.f32.mrb[13].mxu1 }
  0xfb   :  { %1396 = vst [vmem:[%s2408_s4 + $0x20] sm:$0xff] %v1566_v28  ;;  %1428 = vst [vmem:[%s2408_s4 + $0x120] sm:$0xff] %v1598_v29  ;;  %v1567_v38 = vpack.c.bf16 %v891_v30, %v890_v26  ;;  %v625_v40 = vmul.f32 %v1950_v46, %v313_v36  ;;  %v689_v1 = vmul.f32 %v1950_v46, %v473_v37  ;;  %v315_v41 = vpop.f32.mrb[14].mxu0  ;;  %v475_v42 = vpop.f32.mrb[14].mxu1 }
  0xfc   :  { %v1599_v39 = vpack.c.bf16 %v955_v31, %v954_v27  ;;  %v764_v43 = vadd.f32 %v1952_v47, %v624_v34  ;;  %v828_v44 = vadd.f32 %v1952_v47, %v688_v35  ;;  %v626_v48 = vmul.f32 %v1948_v45, %v315_v41  ;;  %v317_v51 = vpop.f32.mrb[15].mxu0  ;;  %v477_v52 = vpop.f32.mrb[15].mxu1 }
  0xfd   :  { %v690_v49 = vmul.f32 %v1948_v45, %v475_v42  ;;  %1397 = vst [vmem:[%s2408_s4 + $0x28] sm:$0xff] %v1567_v38  ;;  %v765_v53 = vadd.f32 %v1954_v50, %v625_v40  ;;  %v829_v54 = vadd.f32 %v1954_v50, %v689_v1  ;;  %v627_v55 = vmul.f32 %v1950_v46, %v317_v51 }
  0xfe   :  { %1429 = vst [vmem:[%s2408_s4 + $0x128] sm:$0xff] %v1599_v39  ;;  %v691_v56 = vmul.f32 %v1950_v46, %v477_v52  ;;  %v892_v57 = vmax.f32 %v764_v43, 0.0  ;;  %v956_v58 = vmax.f32 %v828_v44, 0.0  ;;  %v766_v59 = vadd.f32 %v1952_v47, %v626_v48 }
  0xff   :  { %v830_v60 = vadd.f32 %v1952_v47, %v690_v49  ;;  %v893_v61 = vmax.f32 %v765_v53, 0.0  ;;  %v957_v62 = vmax.f32 %v829_v54, 0.0  ;;  %v767_v63 = vadd.f32 %v1954_v50, %v627_v55 }
 0x100   :  { %v831_v0 = vadd.f32 %v1954_v50, %v691_v56  ;;  %v894_v2 = vmax.f32 %v766_v59, 0.0 }
 0x101   :  { %v958_v3 = vmax.f32 %v830_v60, 0.0  ;;  %v1568_v4 = vpack.c.bf16 %v893_v61, %v892_v57  ;;  %v1600_v5 = vpack.c.bf16 %v957_v62, %v956_v58  ;;  %v895_v6 = vmax.f32 %v767_v63, 0.0  ;;  %v321_v8 = vpop.f32.mrb[16].mxu0  ;;  %v481_v9 = vpop.f32.mrb[16].mxu1 }
 0x102   :  { %v959_v7 = vmax.f32 %v831_v0, 0.0  ;;  %v628_v10 = vmul.f32 %v1948_v45, %v321_v8  ;;  %v692_v11 = vmul.f32 %v1948_v45, %v481_v9  ;;  %v323_v12 = vpop.f32.mrb[17].mxu0  ;;  %v483_v13 = vpop.f32.mrb[17].mxu1 }
 0x103   :  { %1398 = vst [vmem:[%s2408_s4 + $0x30] sm:$0xff] %v1568_v4  ;;  %1430 = vst [vmem:[%s2408_s4 + $0x130] sm:$0xff] %v1600_v5  ;;  %v1569_v14 = vpack.c.bf16 %v895_v6, %v894_v2  ;;  %v629_v16 = vmul.f32 %v1950_v46, %v323_v12  ;;  %v693_v17 = vmul.f32 %v1950_v46, %v483_v13  ;;  %v325_v18 = vpop.f32.mrb[18].mxu0  ;;  %v485_v19 = vpop.f32.mrb[18].mxu1 }
 0x104   :  { %v1601_v15 = vpack.c.bf16 %v959_v7, %v958_v3  ;;  %v768_v20 = vadd.f32 %v1952_v47, %v628_v10  ;;  %v832_v21 = vadd.f32 %v1952_v47, %v692_v11  ;;  %v630_v22 = vmul.f32 %v1948_v45, %v325_v18  ;;  %v327_v24 = vpop.f32.mrb[19].mxu0  ;;  %v487_v25 = vpop.f32.mrb[19].mxu1 }
 0x105   :  { %v694_v23 = vmul.f32 %v1948_v45, %v485_v19  ;;  %1399 = vst [vmem:[%s2408_s4 + $0x38] sm:$0xff] %v1569_v14  ;;  %v769_v26 = vadd.f32 %v1954_v50, %v629_v16  ;;  %v833_v27 = vadd.f32 %v1954_v50, %v693_v17  ;;  %v631_v28 = vmul.f32 %v1950_v46, %v327_v24 }
 0x106   :  { %1431 = vst [vmem:[%s2408_s4 + $0x138] sm:$0xff] %v1601_v15  ;;  %v695_v29 = vmul.f32 %v1950_v46, %v487_v25  ;;  %v896_v30 = vmax.f32 %v768_v20, 0.0  ;;  %v960_v31 = vmax.f32 %v832_v21, 0.0  ;;  %v770_v32 = vadd.f32 %v1952_v47, %v630_v22 }
 0x107   :  { %v834_v33 = vadd.f32 %v1952_v47, %v694_v23  ;;  %v897_v34 = vmax.f32 %v769_v26, 0.0  ;;  %v961_v35 = vmax.f32 %v833_v27, 0.0  ;;  %v771_v36 = vadd.f32 %v1954_v50, %v631_v28 }
 0x108   :  { %v835_v37 = vadd.f32 %v1954_v50, %v695_v29  ;;  %v898_v38 = vmax.f32 %v770_v32, 0.0 }
 0x109   :  { %v962_v39 = vmax.f32 %v834_v33, 0.0  ;;  %v1570_v40 = vpack.c.bf16 %v897_v34, %v896_v30  ;;  %v1602_v1 = vpack.c.bf16 %v961_v35, %v960_v31  ;;  %v899_v41 = vmax.f32 %v771_v36, 0.0  ;;  %v331_v43 = vpop.f32.mrb[20].mxu0  ;;  %v491_v44 = vpop.f32.mrb[20].mxu1 }
 0x10a   :  { %v963_v42 = vmax.f32 %v835_v37, 0.0  ;;  %v632_v48 = vmul.f32 %v1948_v45, %v331_v43  ;;  %v696_v49 = vmul.f32 %v1948_v45, %v491_v44  ;;  %v333_v51 = vpop.f32.mrb[21].mxu0  ;;  %v493_v52 = vpop.f32.mrb[21].mxu1 }
 0x10b   :  { %1400 = vst [vmem:[%s2408_s4 + $0x40] sm:$0xff] %v1570_v40  ;;  %1432 = vst [vmem:[%s2408_s4 + $0x140] sm:$0xff] %v1602_v1  ;;  %v1571_v53 = vpack.c.bf16 %v899_v41, %v898_v38  ;;  %v633_v55 = vmul.f32 %v1950_v46, %v333_v51  ;;  %v697_v56 = vmul.f32 %v1950_v46, %v493_v52  ;;  %v335_v57 = vpop.f32.mrb[22].mxu0  ;;  %v495_v58 = vpop.f32.mrb[22].mxu1 }
 0x10c   :  { %v1603_v54 = vpack.c.bf16 %v963_v42, %v962_v39  ;;  %v772_v59 = vadd.f32 %v1952_v47, %v632_v48  ;;  %v836_v60 = vadd.f32 %v1952_v47, %v696_v49  ;;  %v634_v61 = vmul.f32 %v1948_v45, %v335_v57  ;;  %v337_v63 = vpop.f32.mrb[23].mxu0  ;;  %v497_v0 = vpop.f32.mrb[23].mxu1 }
 0x10d   :  { %v698_v62 = vmul.f32 %v1948_v45, %v495_v58  ;;  %1401 = vst [vmem:[%s2408_s4 + $0x48] sm:$0xff] %v1571_v53  ;;  %v773_v2 = vadd.f32 %v1954_v50, %v633_v55  ;;  %v837_v3 = vadd.f32 %v1954_v50, %v697_v56  ;;  %v635_v4 = vmul.f32 %v1950_v46, %v337_v63 }
 0x10e   :  { %1433 = vst [vmem:[%s2408_s4 + $0x148] sm:$0xff] %v1603_v54  ;;  %v699_v5 = vmul.f32 %v1950_v46, %v497_v0  ;;  %v900_v6 = vmax.f32 %v772_v59, 0.0  ;;  %v964_v7 = vmax.f32 %v836_v60, 0.0  ;;  %v774_v8 = vadd.f32 %v1952_v47, %v634_v61 }
 0x10f   :  { %v838_v9 = vadd.f32 %v1952_v47, %v698_v62  ;;  %v901_v10 = vmax.f32 %v773_v2, 0.0  ;;  %v965_v11 = vmax.f32 %v837_v3, 0.0  ;;  %v775_v12 = vadd.f32 %v1954_v50, %v635_v4 }
 0x110   :  { %v839_v13 = vadd.f32 %v1954_v50, %v699_v5  ;;  %v902_v14 = vmax.f32 %v774_v8, 0.0 }
 0x111   :  { %v966_v15 = vmax.f32 %v838_v9, 0.0  ;;  %v1572_v16 = vpack.c.bf16 %v901_v10, %v900_v6  ;;  %v1604_v17 = vpack.c.bf16 %v965_v11, %v964_v7  ;;  %v903_v18 = vmax.f32 %v775_v12, 0.0  ;;  %v341_v20 = vpop.f32.mrb[24].mxu0  ;;  %v501_v21 = vpop.f32.mrb[24].mxu1 }
 0x112   :  { %v967_v19 = vmax.f32 %v839_v13, 0.0  ;;  %v636_v22 = vmul.f32 %v1948_v45, %v341_v20  ;;  %v700_v23 = vmul.f32 %v1948_v45, %v501_v21  ;;  %v343_v24 = vpop.f32.mrb[25].mxu0  ;;  %v503_v25 = vpop.f32.mrb[25].mxu1 }
 0x113   :  { %1402 = vst [vmem:[%s2408_s4 + $0x50] sm:$0xff] %v1572_v16  ;;  %1434 = vst [vmem:[%s2408_s4 + $0x150] sm:$0xff] %v1604_v17  ;;  %v1573_v26 = vpack.c.bf16 %v903_v18, %v902_v14  ;;  %v637_v28 = vmul.f32 %v1950_v46, %v343_v24  ;;  %v701_v29 = vmul.f32 %v1950_v46, %v503_v25  ;;  %v345_v30 = vpop.f32.mrb[26].mxu0  ;;  %v505_v31 = vpop.f32.mrb[26].mxu1 }
 0x114   :  { %v1605_v27 = vpack.c.bf16 %v967_v19, %v966_v15  ;;  %v776_v32 = vadd.f32 %v1952_v47, %v636_v22  ;;  %v840_v33 = vadd.f32 %v1952_v47, %v700_v23  ;;  %v638_v34 = vmul.f32 %v1948_v45, %v345_v30  ;;  %v347_v36 = vpop.f32.mrb[27].mxu0  ;;  %v507_v37 = vpop.f32.mrb[27].mxu1 }
 0x115   :  { %v702_v35 = vmul.f32 %v1948_v45, %v505_v31  ;;  %1403 = vst [vmem:[%s2408_s4 + $0x58] sm:$0xff] %v1573_v26  ;;  %v777_v38 = vadd.f32 %v1954_v50, %v637_v28  ;;  %v841_v39 = vadd.f32 %v1954_v50, %v701_v29  ;;  %v639_v40 = vmul.f32 %v1950_v46, %v347_v36 }
 0x116   :  { %1435 = vst [vmem:[%s2408_s4 + $0x158] sm:$0xff] %v1605_v27  ;;  %v703_v1 = vmul.f32 %v1950_v46, %v507_v37  ;;  %v904_v41 = vmax.f32 %v776_v32, 0.0  ;;  %v968_v42 = vmax.f32 %v840_v33, 0.0  ;;  %v778_v43 = vadd.f32 %v1952_v47, %v638_v34 }
 0x117   :  { %v842_v44 = vadd.f32 %v1952_v47, %v702_v35  ;;  %v905_v48 = vmax.f32 %v777_v38, 0.0  ;;  %v969_v49 = vmax.f32 %v841_v39, 0.0  ;;  %v779_v51 = vadd.f32 %v1954_v50, %v639_v40 }
 0x118   :  { %v843_v52 = vadd.f32 %v1954_v50, %v703_v1  ;;  %v906_v53 = vmax.f32 %v778_v43, 0.0 }
 0x119   :  { %v970_v54 = vmax.f32 %v842_v44, 0.0  ;;  %v1574_v55 = vpack.c.bf16 %v905_v48, %v904_v41  ;;  %v1606_v56 = vpack.c.bf16 %v969_v49, %v968_v42  ;;  %v907_v57 = vmax.f32 %v779_v51, 0.0  ;;  %v351_v59 = vpop.f32.mrb[28].mxu0  ;;  %v511_v60 = vpop.f32.mrb[28].mxu1 }
 0x11a   :  { %v971_v58 = vmax.f32 %v843_v52, 0.0  ;;  %v640_v61 = vmul.f32 %v1948_v45, %v351_v59  ;;  %v704_v62 = vmul.f32 %v1948_v45, %v511_v60  ;;  %v353_v63 = vpop.f32.mrb[29].mxu0  ;;  %v513_v0 = vpop.f32.mrb[29].mxu1 }
 0x11b   :  { %1404 = vst [vmem:[%s2408_s4 + $0x60] sm:$0xff] %v1574_v55  ;;  %1436 = vst [vmem:[%s2408_s4 + $0x160] sm:$0xff] %v1606_v56  ;;  %v1575_v2 = vpack.c.bf16 %v907_v57, %v906_v53  ;;  %v641_v4 = vmul.f32 %v1950_v46, %v353_v63  ;;  %v705_v5 = vmul.f32 %v1950_v46, %v513_v0  ;;  %v355_v6 = vpop.f32.mrb[30].mxu0  ;;  %v515_v7 = vpop.f32.mrb[30].mxu1 }
 0x11c   :  { %v1607_v3 = vpack.c.bf16 %v971_v58, %v970_v54  ;;  %v780_v8 = vadd.f32 %v1952_v47, %v640_v61  ;;  %v844_v9 = vadd.f32 %v1952_v47, %v704_v62  ;;  %v642_v10 = vmul.f32 %v1948_v45, %v355_v6  ;;  %v357_v12 = vpop.f32.mrb[31].mxu0  ;;  %v517_v13 = vpop.f32.mrb[31].mxu1 }
 0x11d   :  { %v706_v11 = vmul.f32 %v1948_v45, %v515_v7  ;;  %1405 = vst [vmem:[%s2408_s4 + $0x68] sm:$0xff] %v1575_v2  ;;  %v781_v14 = vadd.f32 %v1954_v50, %v641_v4  ;;  %v845_v15 = vadd.f32 %v1954_v50, %v705_v5  ;;  %v643_v16 = vmul.f32 %v1950_v46, %v357_v12 }
 0x11e   :  { %1437 = vst [vmem:[%s2408_s4 + $0x168] sm:$0xff] %v1607_v3  ;;  %v707_v17 = vmul.f32 %v1950_v46, %v517_v13  ;;  %v908_v18 = vmax.f32 %v780_v8, 0.0  ;;  %v972_v19 = vmax.f32 %v844_v9, 0.0  ;;  %v782_v20 = vadd.f32 %v1952_v47, %v642_v10 }
 0x11f   :  { %v846_v21 = vadd.f32 %v1952_v47, %v706_v11  ;;  %v909_v22 = vmax.f32 %v781_v14, 0.0  ;;  %v973_v23 = vmax.f32 %v845_v15, 0.0  ;;  %v783_v24 = vadd.f32 %v1954_v50, %v643_v16 }
 0x120   :  { %v847_v25 = vadd.f32 %v1954_v50, %v707_v17  ;;  %v910_v26 = vmax.f32 %v782_v20, 0.0 }
 0x121   :  { %v974_v27 = vmax.f32 %v846_v21, 0.0  ;;  %v1576_v28 = vpack.c.bf16 %v909_v22, %v908_v18  ;;  %v1608_v29 = vpack.c.bf16 %v973_v23, %v972_v19  ;;  %v911_v30 = vmax.f32 %v783_v24, 0.0  ;;  %v361_v32 = vpop.f32.mrb[32].mxu0  ;;  %v521_v33 = vpop.f32.mrb[32].mxu1 }
 0x122   :  { %v975_v31 = vmax.f32 %v847_v25, 0.0  ;;  %v644_v34 = vmul.f32 %v1948_v45, %v361_v32  ;;  %v708_v35 = vmul.f32 %v1948_v45, %v521_v33  ;;  %v363_v36 = vpop.f32.mrb[33].mxu0  ;;  %v523_v37 = vpop.f32.mrb[33].mxu1 }
 0x123   :  { %1406 = vst [vmem:[%s2408_s4 + $0x70] sm:$0xff] %v1576_v28  ;;  %1438 = vst [vmem:[%s2408_s4 + $0x170] sm:$0xff] %v1608_v29  ;;  %v1577_v38 = vpack.c.bf16 %v911_v30, %v910_v26  ;;  %v645_v40 = vmul.f32 %v1950_v46, %v363_v36  ;;  %v709_v1 = vmul.f32 %v1950_v46, %v523_v37  ;;  %v365_v41 = vpop.f32.mrb[34].mxu0  ;;  %v525_v42 = vpop.f32.mrb[34].mxu1 }
 0x124   :  { %v1609_v39 = vpack.c.bf16 %v975_v31, %v974_v27  ;;  %v784_v43 = vadd.f32 %v1952_v47, %v644_v34  ;;  %v848_v44 = vadd.f32 %v1952_v47, %v708_v35  ;;  %v646_v48 = vmul.f32 %v1948_v45, %v365_v41  ;;  %v367_v51 = vpop.f32.mrb[35].mxu0  ;;  %v527_v52 = vpop.f32.mrb[35].mxu1 }
 0x125   :  { %v710_v49 = vmul.f32 %v1948_v45, %v525_v42  ;;  %1407 = vst [vmem:[%s2408_s4 + $0x78] sm:$0xff] %v1577_v38  ;;  %v785_v53 = vadd.f32 %v1954_v50, %v645_v40  ;;  %v849_v54 = vadd.f32 %v1954_v50, %v709_v1  ;;  %v647_v55 = vmul.f32 %v1950_v46, %v367_v51 }
 0x126   :  { %1439 = vst [vmem:[%s2408_s4 + $0x178] sm:$0xff] %v1609_v39  ;;  %v711_v56 = vmul.f32 %v1950_v46, %v527_v52  ;;  %v912_v57 = vmax.f32 %v784_v43, 0.0  ;;  %v976_v58 = vmax.f32 %v848_v44, 0.0  ;;  %v786_v59 = vadd.f32 %v1952_v47, %v646_v48 }
 0x127   :  { %v850_v60 = vadd.f32 %v1952_v47, %v710_v49  ;;  %v913_v61 = vmax.f32 %v785_v53, 0.0  ;;  %v977_v62 = vmax.f32 %v849_v54, 0.0  ;;  %v787_v63 = vadd.f32 %v1954_v50, %v647_v55 }
 0x128   :  { %v851_v0 = vadd.f32 %v1954_v50, %v711_v56  ;;  %v914_v2 = vmax.f32 %v786_v59, 0.0 }
 0x129   :  { %v978_v3 = vmax.f32 %v850_v60, 0.0  ;;  %v1578_v4 = vpack.c.bf16 %v913_v61, %v912_v57  ;;  %v1610_v5 = vpack.c.bf16 %v977_v62, %v976_v58  ;;  %v915_v6 = vmax.f32 %v787_v63, 0.0  ;;  %v371_v8 = vpop.f32.mrb[36].mxu0  ;;  %v531_v9 = vpop.f32.mrb[36].mxu1 }
 0x12a   :  { %v979_v7 = vmax.f32 %v851_v0, 0.0  ;;  %v648_v10 = vmul.f32 %v1948_v45, %v371_v8  ;;  %v712_v11 = vmul.f32 %v1948_v45, %v531_v9  ;;  %v373_v12 = vpop.f32.mrb[37].mxu0  ;;  %v533_v13 = vpop.f32.mrb[37].mxu1 }
 0x12b   :  { %1408 = vst [vmem:[%s2408_s4 + $0x80] sm:$0xff] %v1578_v4  ;;  %1440 = vst [vmem:[%s2408_s4 + $0x180] sm:$0xff] %v1610_v5  ;;  %v1579_v14 = vpack.c.bf16 %v915_v6, %v914_v2  ;;  %v649_v16 = vmul.f32 %v1950_v46, %v373_v12  ;;  %v713_v17 = vmul.f32 %v1950_v46, %v533_v13  ;;  %v375_v18 = vpop.f32.mrb[38].mxu0  ;;  %v535_v19 = vpop.f32.mrb[38].mxu1 }
 0x12c   :  { %v1611_v15 = vpack.c.bf16 %v979_v7, %v978_v3  ;;  %v788_v20 = vadd.f32 %v1952_v47, %v648_v10  ;;  %v852_v21 = vadd.f32 %v1952_v47, %v712_v11  ;;  %v650_v22 = vmul.f32 %v1948_v45, %v375_v18  ;;  %v377_v24 = vpop.f32.mrb[39].mxu0  ;;  %v537_v25 = vpop.f32.mrb[39].mxu1 }
 0x12d   :  { %v714_v23 = vmul.f32 %v1948_v45, %v535_v19  ;;  %1409 = vst [vmem:[%s2408_s4 + $0x88] sm:$0xff] %v1579_v14  ;;  %v789_v26 = vadd.f32 %v1954_v50, %v649_v16  ;;  %v853_v27 = vadd.f32 %v1954_v50, %v713_v17  ;;  %v651_v28 = vmul.f32 %v1950_v46, %v377_v24 }
 0x12e   :  { %1441 = vst [vmem:[%s2408_s4 + $0x188] sm:$0xff] %v1611_v15  ;;  %v715_v29 = vmul.f32 %v1950_v46, %v537_v25  ;;  %v916_v30 = vmax.f32 %v788_v20, 0.0  ;;  %v980_v31 = vmax.f32 %v852_v21, 0.0  ;;  %v790_v32 = vadd.f32 %v1952_v47, %v650_v22 }
 0x12f   :  { %v854_v33 = vadd.f32 %v1952_v47, %v714_v23  ;;  %v917_v34 = vmax.f32 %v789_v26, 0.0  ;;  %v981_v35 = vmax.f32 %v853_v27, 0.0  ;;  %v791_v36 = vadd.f32 %v1954_v50, %v651_v28 }
 0x130   :  { %v855_v37 = vadd.f32 %v1954_v50, %v715_v29  ;;  %v918_v38 = vmax.f32 %v790_v32, 0.0 }
 0x131   :  { %v982_v39 = vmax.f32 %v854_v33, 0.0  ;;  %v1580_v40 = vpack.c.bf16 %v917_v34, %v916_v30  ;;  %v1612_v1 = vpack.c.bf16 %v981_v35, %v980_v31  ;;  %v919_v41 = vmax.f32 %v791_v36, 0.0  ;;  %v381_v43 = vpop.f32.mrb[40].mxu0  ;;  %v541_v44 = vpop.f32.mrb[40].mxu1 }
 0x132   :  { %v983_v42 = vmax.f32 %v855_v37, 0.0  ;;  %v652_v48 = vmul.f32 %v1948_v45, %v381_v43  ;;  %v716_v49 = vmul.f32 %v1948_v45, %v541_v44  ;;  %v383_v51 = vpop.f32.mrb[41].mxu0  ;;  %v543_v52 = vpop.f32.mrb[41].mxu1 }
 0x133   :  { %1410 = vst [vmem:[%s2408_s4 + $0x90] sm:$0xff] %v1580_v40  ;;  %1442 = vst [vmem:[%s2408_s4 + $0x190] sm:$0xff] %v1612_v1  ;;  %v1581_v53 = vpack.c.bf16 %v919_v41, %v918_v38  ;;  %v653_v55 = vmul.f32 %v1950_v46, %v383_v51  ;;  %v717_v56 = vmul.f32 %v1950_v46, %v543_v52  ;;  %v385_v57 = vpop.f32.mrb[42].mxu0  ;;  %v545_v58 = vpop.f32.mrb[42].mxu1 }
 0x134   :  { %v1613_v54 = vpack.c.bf16 %v983_v42, %v982_v39  ;;  %v792_v59 = vadd.f32 %v1952_v47, %v652_v48  ;;  %v856_v60 = vadd.f32 %v1952_v47, %v716_v49  ;;  %v654_v61 = vmul.f32 %v1948_v45, %v385_v57  ;;  %v387_v63 = vpop.f32.mrb[43].mxu0  ;;  %v547_v0 = vpop.f32.mrb[43].mxu1 }
 0x135   :  { %v718_v62 = vmul.f32 %v1948_v45, %v545_v58  ;;  %1411 = vst [vmem:[%s2408_s4 + $0x98] sm:$0xff] %v1581_v53  ;;  %v793_v2 = vadd.f32 %v1954_v50, %v653_v55  ;;  %v857_v3 = vadd.f32 %v1954_v50, %v717_v56  ;;  %v655_v4 = vmul.f32 %v1950_v46, %v387_v63 }
 0x136   :  { %1443 = vst [vmem:[%s2408_s4 + $0x198] sm:$0xff] %v1613_v54  ;;  %v719_v5 = vmul.f32 %v1950_v46, %v547_v0  ;;  %v920_v6 = vmax.f32 %v792_v59, 0.0  ;;  %v984_v7 = vmax.f32 %v856_v60, 0.0  ;;  %v794_v8 = vadd.f32 %v1952_v47, %v654_v61 }
 0x137   :  { %v858_v9 = vadd.f32 %v1952_v47, %v718_v62  ;;  %v921_v10 = vmax.f32 %v793_v2, 0.0  ;;  %v985_v11 = vmax.f32 %v857_v3, 0.0  ;;  %v795_v12 = vadd.f32 %v1954_v50, %v655_v4 }
 0x138   :  { %v859_v13 = vadd.f32 %v1954_v50, %v719_v5  ;;  %v922_v14 = vmax.f32 %v794_v8, 0.0 }
 0x139   :  { %v986_v15 = vmax.f32 %v858_v9, 0.0  ;;  %v1582_v16 = vpack.c.bf16 %v921_v10, %v920_v6  ;;  %v1614_v17 = vpack.c.bf16 %v985_v11, %v984_v7  ;;  %v923_v18 = vmax.f32 %v795_v12, 0.0  ;;  %v391_v20 = vpop.f32.mrb[44].mxu0  ;;  %v551_v21 = vpop.f32.mrb[44].mxu1 }
 0x13a   :  { %v987_v19 = vmax.f32 %v859_v13, 0.0  ;;  %v656_v22 = vmul.f32 %v1948_v45, %v391_v20  ;;  %v720_v23 = vmul.f32 %v1948_v45, %v551_v21  ;;  %v393_v24 = vpop.f32.mrb[45].mxu0  ;;  %v553_v25 = vpop.f32.mrb[45].mxu1 }
 0x13b   :  { %1412 = vst [vmem:[%s2408_s4 + $0xa0] sm:$0xff] %v1582_v16  ;;  %1444 = vst [vmem:[%s2408_s4 + $0x1a0] sm:$0xff] %v1614_v17  ;;  %v1583_v26 = vpack.c.bf16 %v923_v18, %v922_v14  ;;  %v657_v28 = vmul.f32 %v1950_v46, %v393_v24  ;;  %v721_v29 = vmul.f32 %v1950_v46, %v553_v25  ;;  %v395_v30 = vpop.f32.mrb[46].mxu0  ;;  %v555_v31 = vpop.f32.mrb[46].mxu1 }
 0x13c   :  { %v1615_v27 = vpack.c.bf16 %v987_v19, %v986_v15  ;;  %v796_v32 = vadd.f32 %v1952_v47, %v656_v22  ;;  %v860_v33 = vadd.f32 %v1952_v47, %v720_v23  ;;  %v658_v34 = vmul.f32 %v1948_v45, %v395_v30  ;;  %v397_v36 = vpop.f32.mrb[47].mxu0  ;;  %v557_v37 = vpop.f32.mrb[47].mxu1 }
 0x13d   :  { %v722_v35 = vmul.f32 %v1948_v45, %v555_v31  ;;  %1413 = vst [vmem:[%s2408_s4 + $0xa8] sm:$0xff] %v1583_v26  ;;  %v797_v38 = vadd.f32 %v1954_v50, %v657_v28  ;;  %v861_v39 = vadd.f32 %v1954_v50, %v721_v29  ;;  %v659_v40 = vmul.f32 %v1950_v46, %v397_v36 }
 0x13e   :  { %1445 = vst [vmem:[%s2408_s4 + $0x1a8] sm:$0xff] %v1615_v27  ;;  %v723_v1 = vmul.f32 %v1950_v46, %v557_v37  ;;  %v924_v41 = vmax.f32 %v796_v32, 0.0  ;;  %v988_v42 = vmax.f32 %v860_v33, 0.0  ;;  %v798_v43 = vadd.f32 %v1952_v47, %v658_v34 }
 0x13f   :  { %v862_v44 = vadd.f32 %v1952_v47, %v722_v35  ;;  %v925_v48 = vmax.f32 %v797_v38, 0.0  ;;  %v989_v49 = vmax.f32 %v861_v39, 0.0  ;;  %v799_v51 = vadd.f32 %v1954_v50, %v659_v40 }
 0x140   :  { %v863_v52 = vadd.f32 %v1954_v50, %v723_v1  ;;  %v926_v53 = vmax.f32 %v798_v43, 0.0 }
 0x141   :  { %v990_v54 = vmax.f32 %v862_v44, 0.0  ;;  %v1584_v55 = vpack.c.bf16 %v925_v48, %v924_v41  ;;  %v1616_v56 = vpack.c.bf16 %v989_v49, %v988_v42  ;;  %v927_v57 = vmax.f32 %v799_v51, 0.0  ;;  %v401_v59 = vpop.f32.mrb[48].mxu0  ;;  %v561_v60 = vpop.f32.mrb[48].mxu1 }
 0x142   :  { %v991_v58 = vmax.f32 %v863_v52, 0.0  ;;  %v660_v61 = vmul.f32 %v1948_v45, %v401_v59  ;;  %v724_v62 = vmul.f32 %v1948_v45, %v561_v60  ;;  %v403_v63 = vpop.f32.mrb[49].mxu0  ;;  %v563_v0 = vpop.f32.mrb[49].mxu1 }
 0x143   :  { %1414 = vst [vmem:[%s2408_s4 + $0xb0] sm:$0xff] %v1584_v55  ;;  %1446 = vst [vmem:[%s2408_s4 + $0x1b0] sm:$0xff] %v1616_v56  ;;  %v1585_v2 = vpack.c.bf16 %v927_v57, %v926_v53  ;;  %v661_v4 = vmul.f32 %v1950_v46, %v403_v63  ;;  %v725_v5 = vmul.f32 %v1950_v46, %v563_v0  ;;  %v405_v6 = vpop.f32.mrb[50].mxu0  ;;  %v565_v7 = vpop.f32.mrb[50].mxu1 }
 0x144   :  { %v1617_v3 = vpack.c.bf16 %v991_v58, %v990_v54  ;;  %v800_v8 = vadd.f32 %v1952_v47, %v660_v61  ;;  %v864_v9 = vadd.f32 %v1952_v47, %v724_v62  ;;  %v662_v10 = vmul.f32 %v1948_v45, %v405_v6  ;;  %v407_v12 = vpop.f32.mrb[51].mxu0  ;;  %v567_v13 = vpop.f32.mrb[51].mxu1 }
 0x145   :  { %v726_v11 = vmul.f32 %v1948_v45, %v565_v7  ;;  %1415 = vst [vmem:[%s2408_s4 + $0xb8] sm:$0xff] %v1585_v2  ;;  %v801_v14 = vadd.f32 %v1954_v50, %v661_v4  ;;  %v865_v15 = vadd.f32 %v1954_v50, %v725_v5  ;;  %v663_v16 = vmul.f32 %v1950_v46, %v407_v12 }
 0x146   :  { %1447 = vst [vmem:[%s2408_s4 + $0x1b8] sm:$0xff] %v1617_v3  ;;  %v727_v17 = vmul.f32 %v1950_v46, %v567_v13  ;;  %v928_v18 = vmax.f32 %v800_v8, 0.0  ;;  %v992_v19 = vmax.f32 %v864_v9, 0.0  ;;  %v802_v20 = vadd.f32 %v1952_v47, %v662_v10 }
 0x147   :  { %v866_v21 = vadd.f32 %v1952_v47, %v726_v11  ;;  %v929_v22 = vmax.f32 %v801_v14, 0.0  ;;  %v993_v23 = vmax.f32 %v865_v15, 0.0  ;;  %v803_v24 = vadd.f32 %v1954_v50, %v663_v16 }
 0x148   :  { %v867_v25 = vadd.f32 %v1954_v50, %v727_v17  ;;  %v930_v26 = vmax.f32 %v802_v20, 0.0 }
 0x149   :  { %v994_v27 = vmax.f32 %v866_v21, 0.0  ;;  %v1586_v28 = vpack.c.bf16 %v929_v22, %v928_v18  ;;  %v1618_v29 = vpack.c.bf16 %v993_v23, %v992_v19  ;;  %v931_v30 = vmax.f32 %v803_v24, 0.0  ;;  %v411_v32 = vpop.f32.mrb[52].mxu0  ;;  %v571_v33 = vpop.f32.mrb[52].mxu1 }
 0x14a   :  { %v995_v31 = vmax.f32 %v867_v25, 0.0  ;;  %v664_v34 = vmul.f32 %v1948_v45, %v411_v32  ;;  %v728_v35 = vmul.f32 %v1948_v45, %v571_v33  ;;  %v413_v36 = vpop.f32.mrb[53].mxu0  ;;  %v573_v37 = vpop.f32.mrb[53].mxu1 }
 0x14b   :  { %1416 = vst [vmem:[%s2408_s4 + $0xc0] sm:$0xff] %v1586_v28  ;;  %1448 = vst [vmem:[%s2408_s4 + $0x1c0] sm:$0xff] %v1618_v29  ;;  %v1587_v38 = vpack.c.bf16 %v931_v30, %v930_v26  ;;  %v665_v40 = vmul.f32 %v1950_v46, %v413_v36  ;;  %v729_v1 = vmul.f32 %v1950_v46, %v573_v37  ;;  %v415_v41 = vpop.f32.mrb[54].mxu0  ;;  %v575_v42 = vpop.f32.mrb[54].mxu1 }
 0x14c   :  { %v1619_v39 = vpack.c.bf16 %v995_v31, %v994_v27  ;;  %v804_v43 = vadd.f32 %v1952_v47, %v664_v34  ;;  %v868_v44 = vadd.f32 %v1952_v47, %v728_v35  ;;  %v666_v48 = vmul.f32 %v1948_v45, %v415_v41  ;;  %v417_v51 = vpop.f32.mrb[55].mxu0  ;;  %v577_v52 = vpop.f32.mrb[55].mxu1 }
 0x14d   :  { %v730_v49 = vmul.f32 %v1948_v45, %v575_v42  ;;  %1417 = vst [vmem:[%s2408_s4 + $0xc8] sm:$0xff] %v1587_v38  ;;  %v805_v53 = vadd.f32 %v1954_v50, %v665_v40  ;;  %v869_v54 = vadd.f32 %v1954_v50, %v729_v1  ;;  %v667_v55 = vmul.f32 %v1950_v46, %v417_v51 }
 0x14e   :  { %1449 = vst [vmem:[%s2408_s4 + $0x1c8] sm:$0xff] %v1619_v39  ;;  %v731_v56 = vmul.f32 %v1950_v46, %v577_v52  ;;  %v932_v57 = vmax.f32 %v804_v43, 0.0  ;;  %v996_v58 = vmax.f32 %v868_v44, 0.0  ;;  %v806_v59 = vadd.f32 %v1952_v47, %v666_v48 }
 0x14f   :  { %v870_v60 = vadd.f32 %v1952_v47, %v730_v49  ;;  %v933_v61 = vmax.f32 %v805_v53, 0.0  ;;  %v997_v62 = vmax.f32 %v869_v54, 0.0  ;;  %v807_v63 = vadd.f32 %v1954_v50, %v667_v55 }
 0x150   :  { %v871_v0 = vadd.f32 %v1954_v50, %v731_v56  ;;  %v934_v2 = vmax.f32 %v806_v59, 0.0 }
 0x151   :  { %v998_v3 = vmax.f32 %v870_v60, 0.0  ;;  %v1588_v4 = vpack.c.bf16 %v933_v61, %v932_v57  ;;  %v1620_v5 = vpack.c.bf16 %v997_v62, %v996_v58  ;;  %v935_v6 = vmax.f32 %v807_v63, 0.0  ;;  %v421_v8 = vpop.f32.mrb[56].mxu0  ;;  %v581_v9 = vpop.f32.mrb[56].mxu1 }
 0x152   :  { %v999_v7 = vmax.f32 %v871_v0, 0.0  ;;  %v668_v10 = vmul.f32 %v1948_v45, %v421_v8  ;;  %v732_v11 = vmul.f32 %v1948_v45, %v581_v9  ;;  %v423_v12 = vpop.f32.mrb[57].mxu0  ;;  %v583_v13 = vpop.f32.mrb[57].mxu1 }
 0x153   :  { %1418 = vst [vmem:[%s2408_s4 + $0xd0] sm:$0xff] %v1588_v4  ;;  %1450 = vst [vmem:[%s2408_s4 + $0x1d0] sm:$0xff] %v1620_v5  ;;  %v1589_v14 = vpack.c.bf16 %v935_v6, %v934_v2  ;;  %v669_v16 = vmul.f32 %v1950_v46, %v423_v12  ;;  %v733_v17 = vmul.f32 %v1950_v46, %v583_v13  ;;  %v425_v18 = vpop.f32.mrb[58].mxu0  ;;  %v585_v19 = vpop.f32.mrb[58].mxu1 }
 0x154   :  { %v1621_v15 = vpack.c.bf16 %v999_v7, %v998_v3  ;;  %v808_v20 = vadd.f32 %v1952_v47, %v668_v10  ;;  %v872_v21 = vadd.f32 %v1952_v47, %v732_v11  ;;  %v670_v22 = vmul.f32 %v1948_v45, %v425_v18  ;;  %v427_v24 = vpop.f32.mrb[59].mxu0  ;;  %v587_v25 = vpop.f32.mrb[59].mxu1 }
 0x155   :  { %v734_v23 = vmul.f32 %v1948_v45, %v585_v19  ;;  %1419 = vst [vmem:[%s2408_s4 + $0xd8] sm:$0xff] %v1589_v14  ;;  %v809_v26 = vadd.f32 %v1954_v50, %v669_v16  ;;  %v873_v27 = vadd.f32 %v1954_v50, %v733_v17  ;;  %v671_v28 = vmul.f32 %v1950_v46, %v427_v24 }
 0x156   :  { %1451 = vst [vmem:[%s2408_s4 + $0x1d8] sm:$0xff] %v1621_v15  ;;  %v735_v29 = vmul.f32 %v1950_v46, %v587_v25  ;;  %v936_v30 = vmax.f32 %v808_v20, 0.0  ;;  %v1000_v31 = vmax.f32 %v872_v21, 0.0  ;;  %v810_v32 = vadd.f32 %v1952_v47, %v670_v22 }
 0x157   :  { %v874_v33 = vadd.f32 %v1952_v47, %v734_v23  ;;  %v937_v34 = vmax.f32 %v809_v26, 0.0  ;;  %v1001_v35 = vmax.f32 %v873_v27, 0.0  ;;  %v811_v36 = vadd.f32 %v1954_v50, %v671_v28 }
 0x158   :  { %v875_v37 = vadd.f32 %v1954_v50, %v735_v29  ;;  %v938_v38 = vmax.f32 %v810_v32, 0.0 }
 0x159   :  { %v1002_v39 = vmax.f32 %v874_v33, 0.0  ;;  %v1590_v40 = vpack.c.bf16 %v937_v34, %v936_v30  ;;  %v1622_v1 = vpack.c.bf16 %v1001_v35, %v1000_v31  ;;  %v939_v41 = vmax.f32 %v811_v36, 0.0  ;;  %v431_v43 = vpop.f32.mrb[60].mxu0  ;;  %v591_v44 = vpop.f32.mrb[60].mxu1 }
 0x15a   :  { %v1003_v42 = vmax.f32 %v875_v37, 0.0  ;;  %v672_v48 = vmul.f32 %v1948_v45, %v431_v43  ;;  %v736_v49 = vmul.f32 %v1948_v45, %v591_v44  ;;  %v433_v51 = vpop.f32.mrb[61].mxu0  ;;  %v593_v52 = vpop.f32.mrb[61].mxu1 }
 0x15b   :  { %1420 = vst [vmem:[%s2408_s4 + $0xe0] sm:$0xff] %v1590_v40  ;;  %1452 = vst [vmem:[%s2408_s4 + $0x1e0] sm:$0xff] %v1622_v1  ;;  %v1591_v53 = vpack.c.bf16 %v939_v41, %v938_v38  ;;  %v673_v55 = vmul.f32 %v1950_v46, %v433_v51  ;;  %v737_v56 = vmul.f32 %v1950_v46, %v593_v52  ;;  %v435_v57 = vpop.f32.mrb[62].mxu0  ;;  %v595_v58 = vpop.f32.mrb[62].mxu1 }
 0x15c   :  { %v1623_v54 = vpack.c.bf16 %v1003_v42, %v1002_v39  ;;  %v812_v59 = vadd.f32 %v1952_v47, %v672_v48  ;;  %v876_v60 = vadd.f32 %v1952_v47, %v736_v49  ;;  %v674_v61 = vmul.f32 %v1948_v45, %v435_v57  ;;  %v437_v63 = vpop.f32.mrb[63].mxu0  ;;  %v597_v0 = vpop.f32.mrb[63].mxu1 }
 0x15d   :  { %v738_v62 = vmul.f32 %v1948_v45, %v595_v58  ;;  %1421 = vst [vmem:[%s2408_s4 + $0xe8] sm:$0xff] %v1591_v53  ;;  %v813_v2 = vadd.f32 %v1954_v50, %v673_v55  ;;  %v877_v3 = vadd.f32 %v1954_v50, %v737_v56  ;;  %v675_v4 = vmul.f32 %v1950_v46, %v437_v63 }
 0x15e   :  { %1453 = vst [vmem:[%s2408_s4 + $0x1e8] sm:$0xff] %v1623_v54  ;;  %v739_v5 = vmul.f32 %v1950_v46, %v597_v0  ;;  %v940_v6 = vmax.f32 %v812_v59, 0.0  ;;  %v1004_v45 = vmax.f32 %v876_v60, 0.0  ;;  %v814_v7 = vadd.f32 %v1952_v47, %v674_v61 }
 0x15f   :  { %v878_v8 = vadd.f32 %v1952_v47, %v738_v62  ;;  %v941_v9 = vmax.f32 %v813_v2, 0.0  ;;  %v1005_v10 = vmax.f32 %v877_v3, 0.0  ;;  %v815_v11 = vadd.f32 %v1954_v50, %v675_v4 }
 0x160   :  { %v879_v12 = vadd.f32 %v1954_v50, %v739_v5  ;;  %v942_v13 = vmax.f32 %v814_v7, 0.0 }
 0x161   :  { %v1006_v14 = vmax.f32 %v878_v8, 0.0  ;;  %v1592_v15 = vpack.c.bf16 %v941_v9, %v940_v6  ;;  %v1624_v16 = vpack.c.bf16 %v1005_v10, %v1004_v45  ;;  %v943_v17 = vmax.f32 %v815_v11, 0.0 }
 0x162   :  { %v1007_v18 = vmax.f32 %v879_v12, 0.0 }
 0x163   :  { %1422 = vst [vmem:[%s2408_s4 + $0xf0] sm:$0xff] %v1592_v15  ;;  %1454 = vst [vmem:[%s2408_s4 + $0x1f0] sm:$0xff] %v1624_v16  ;;  %v1593_v46 = vpack.c.bf16 %v943_v17, %v942_v13 }
 0x164   :  { %v1625_v47 = vpack.c.bf16 %v1007_v18, %v1006_v14 }
 0x165   :  { %1423 = vst [vmem:[%s2408_s4 + $0xf8] sm:$0xff] %v1593_v46 }
 0x166   :  { %1455 = vst [vmem:[%s2408_s4 + $0x1f8] sm:$0xff] %v1625_v47 }

// kernel: multi_scale_dense121_forward.9
= control target key start
LH: loop header
LB: loop body
LE: loop exit
PB: predicated region body
PF: predicated region fallthrough
CT: control target
= control target key end

     0   :  { %s1962_s1 = inlined_call_operand.vmem [shape: bf16[256,512], index: 1, kind: input, shape index: {}]   ;;  %s1963_s0 = inlined_call_operand.vmem [shape: bf16[128,256], index: 0, kind: input, shape index: {}]   ;;  %s1964_s2 = inlined_call_operand.vmem [shape: f32[1,512], index: 2, kind: input, shape index: {}]   ;;  %s1965_s3 = inlined_call_operand.vmem [shape: f32[1,512], index: 3, kind: input, shape index: {}]   ;;  %s1966_s4 = inlined_call_operand.vmem [shape: bf16[128,512], index: 4, kind: output, shape index: {}]  }
   0x1   :  { %v1331_v0 = vld [vmem:[%s1962_s1 + $0x4] ss:$16 sps:$4 sm:$0xff]   ;;  %v1333_v1 = vld [vmem:[%s1962_s1 + $0xc] ss:$16 sps:$4 sm:$0xff]   ;;  %v1335_v2 = vld [vmem:[%s1962_s1] ss:$16 sps:$4 sm:$0xff]  }
   0x2   :  { %497 = vmatprep.subr.bf16.mxu0 %v1331_v0  ;;  %v1336_v3 = vld [vmem:[%s1962_s1 + $0x8] ss:$16 sps:$4 sm:$0xff]   ;;  %610 = vmatprep.subr.bf16.mxu1 %v1333_v1  ;;  %v1337_v4 = vld [vmem:[%s1962_s1 + $0x24] ss:$16 sps:$4 sm:$0xff]   ;;  %v1339_v5 = vld [vmem:[%s1962_s1 + $0x2c] ss:$16 sps:$4 sm:$0xff]  }
   0x3   :  { %498 = vmatpush1.bf16.msra.mxu0 %v1335_v2  ;;  %611 = vmatpush1.bf16.msra.mxu1 %v1336_v3  ;;  %v1341_v6 = vld [vmem:[%s1962_s1 + $0x20] ss:$16 sps:$4 sm:$0xff]   ;;  %v1342_v7 = vld [vmem:[%s1962_s1 + $0x28] ss:$16 sps:$4 sm:$0xff]   ;;  %v1343_v8 = vld [vmem:[%s1962_s1 + $0x44] ss:$16 sps:$4 sm:$0xff]  }
   0x4   :  { %499 = vmatprep.subr.bf16.mxu0 %v1337_v4  ;;  %612 = vmatprep.subr.bf16.mxu1 %v1339_v5  ;;  %v1345_v9 = vld [vmem:[%s1962_s1 + $0x4c] ss:$16 sps:$4 sm:$0xff]   ;;  %v1347_v10 = vld [vmem:[%s1962_s1 + $0x40] ss:$16 sps:$4 sm:$0xff]   ;;  %v1348_v11 = vld [vmem:[%s1962_s1 + $0x48] ss:$16 sps:$4 sm:$0xff]  }
   0x5   :  { %v1349_v12 = vld [vmem:[%s1962_s1 + $0x64] ss:$16 sps:$4 sm:$0xff]   ;;  %v1351_v13 = vld [vmem:[%s1962_s1 + $0x6c] ss:$16 sps:$4 sm:$0xff]   ;;  %v1353_v14 = vld [vmem:[%s1962_s1 + $0x60] ss:$16 sps:$4 sm:$0xff]  }
   0x6   :  { %v1354_v15 = vld [vmem:[%s1962_s1 + $0x68] ss:$16 sps:$4 sm:$0xff]   ;;  %v1355_v16 = vld [vmem:[%s1962_s1 + $0x84] ss:$16 sps:$4 sm:$0xff]   ;;  %v1357_v17 = vld [vmem:[%s1962_s1 + $0x8c] ss:$16 sps:$4 sm:$0xff]  }
   0x7   :  { %500 = vmatpush1.bf16.msra.mxu0 %v1341_v6  ;;  %613 = vmatpush1.bf16.msra.mxu1 %v1342_v7  ;;  %v1359_v18 = vld [vmem:[%s1962_s1 + $0x80] ss:$16 sps:$4 sm:$0xff]   ;;  %v1360_v19 = vld [vmem:[%s1962_s1 + $0x88] ss:$16 sps:$4 sm:$0xff]   ;;  %v1361_v20 = vld [vmem:[%s1962_s1 + $0xa4] ss:$16 sps:$4 sm:$0xff]  }
   0x8   :  { %501 = vmatprep.subr.bf16.mxu0 %v1343_v8  ;;  %614 = vmatprep.subr.bf16.mxu1 %v1345_v9  ;;  %v1363_v21 = vld [vmem:[%s1962_s1 + $0xac] ss:$16 sps:$4 sm:$0xff]   ;;  %v1365_v22 = vld [vmem:[%s1962_s1 + $0xa0] ss:$16 sps:$4 sm:$0xff]   ;;  %v1366_v23 = vld [vmem:[%s1962_s1 + $0xa8] ss:$16 sps:$4 sm:$0xff]  }
   0x9   :  { %v1367_v24 = vld [vmem:[%s1962_s1 + $0xc4] ss:$16 sps:$4 sm:$0xff]   ;;  %v1369_v25 = vld [vmem:[%s1962_s1 + $0xcc] ss:$16 sps:$4 sm:$0xff]   ;;  %v1371_v26 = vld [vmem:[%s1962_s1 + $0xc0] ss:$16 sps:$4 sm:$0xff]  }
   0xa   :  { %v1372_v27 = vld [vmem:[%s1962_s1 + $0xc8] ss:$16 sps:$4 sm:$0xff]   ;;  %v1373_v28 = vld [vmem:[%s1962_s1 + $0xe4] ss:$16 sps:$4 sm:$0xff]   ;;  %v1375_v29 = vld [vmem:[%s1962_s1 + $0xec] ss:$16 sps:$4 sm:$0xff]  }
   0xb   :  { %502 = vmatpush1.bf16.msra.mxu0 %v1347_v10  ;;  %615 = vmatpush1.bf16.msra.mxu1 %v1348_v11  ;;  %v1377_v30 = vld [vmem:[%s1962_s1 + $0xe0] ss:$16 sps:$4 sm:$0xff]   ;;  %v1378_v31 = vld [vmem:[%s1962_s1 + $0xe8] ss:$16 sps:$4 sm:$0xff]   ;;  %v1379_v32 = vld [vmem:[%s1962_s1 + $0x104] ss:$16 sps:$4 sm:$0xff]  }
   0xc   :  { %503 = vmatprep.subr.bf16.mxu0 %v1349_v12  ;;  %616 = vmatprep.subr.bf16.mxu1 %v1351_v13  ;;  %v1381_v33 = vld [vmem:[%s1962_s1 + $0x10c] ss:$16 sps:$4 sm:$0xff]   ;;  %v1383_v34 = vld [vmem:[%s1962_s1 + $0x100] ss:$16 sps:$4 sm:$0xff]   ;;  %v1384_v35 = vld [vmem:[%s1962_s1 + $0x108] ss:$16 sps:$4 sm:$0xff]  }
   0xd   :  { %v1385_v36 = vld [vmem:[%s1962_s1 + $0x124] ss:$16 sps:$4 sm:$0xff]   ;;  %v1387_v37 = vld [vmem:[%s1962_s1 + $0x12c] ss:$16 sps:$4 sm:$0xff]   ;;  %v1389_v38 = vld [vmem:[%s1962_s1 + $0x120] ss:$16 sps:$4 sm:$0xff]  }
   0xe   :  { %v1390_v39 = vld [vmem:[%s1962_s1 + $0x128] ss:$16 sps:$4 sm:$0xff]   ;;  %v1391_v40 = vld [vmem:[%s1962_s1 + $0x144] ss:$16 sps:$4 sm:$0xff]   ;;  %v1393_v41 = vld [vmem:[%s1962_s1 + $0x14c] ss:$16 sps:$4 sm:$0xff]  }
   0xf   :  { %504 = vmatpush1.bf16.msra.mxu0 %v1353_v14  ;;  %617 = vmatpush1.bf16.msra.mxu1 %v1354_v15  ;;  %v1395_v42 = vld [vmem:[%s1962_s1 + $0x140] ss:$16 sps:$4 sm:$0xff]   ;;  %v1396_v43 = vld [vmem:[%s1962_s1 + $0x148] ss:$16 sps:$4 sm:$0xff]   ;;  %v1397_v44 = vld [vmem:[%s1962_s1 + $0x164] ss:$16 sps:$4 sm:$0xff]  }
  0x10   :  { %505 = vmatprep.subr.bf16.mxu0 %v1355_v16  ;;  %618 = vmatprep.subr.bf16.mxu1 %v1357_v17  ;;  %v1399_v45 = vld [vmem:[%s1962_s1 + $0x16c] ss:$16 sps:$4 sm:$0xff]   ;;  %v1401_v46 = vld [vmem:[%s1962_s1 + $0x160] ss:$16 sps:$4 sm:$0xff]   ;;  %v1402_v47 = vld [vmem:[%s1962_s1 + $0x168] ss:$16 sps:$4 sm:$0xff]   ;;  %v725_v16 = vlaneseq }
  0x11   :  { %v1429_v48 = vld [vmem:[%s1963_s0 + $0x4] ss:$8 sps:$4 sm:$0xff]   ;;  %v1407_v51 = vld [vmem:[%s1962_s1 + $0x180] ss:$16 sps:$4 sm:$0xff]   ;;  %v1408_v52 = vld [vmem:[%s1962_s1 + $0x188] ss:$16 sps:$4 sm:$0xff]  }
  0x12   :  { %v1403_v49 = vld [vmem:[%s1962_s1 + $0x184] ss:$16 sps:$4 sm:$0xff]   ;;  %v1405_v50 = vld [vmem:[%s1962_s1 + $0x18c] ss:$16 sps:$4 sm:$0xff]   ;;  %529 = vmatprep.mubr.bf16.mxu0 %v1429_v48  ;;  %642 = vmatprep.mubr.bf16.mxu1 %v1429_v48  ;;  %v1413_v55 = vld [vmem:[%s1962_s1 + $0x1a0] ss:$16 sps:$4 sm:$0xff]  }
  0x13   :  { %506 = vmatpush1.bf16.msra.mxu0 %v1359_v18  ;;  %619 = vmatpush1.bf16.msra.mxu1 %v1360_v19  ;;  %v1409_v53 = vld [vmem:[%s1962_s1 + $0x1a4] ss:$16 sps:$4 sm:$0xff]   ;;  %v1411_v54 = vld [vmem:[%s1962_s1 + $0x1ac] ss:$16 sps:$4 sm:$0xff]   ;;  %v1414_v56 = vld [vmem:[%s1962_s1 + $0x1a8] ss:$16 sps:$4 sm:$0xff]  }
  0x14   :  { %507 = vmatprep.subr.bf16.mxu0 %v1361_v20  ;;  %620 = vmatprep.subr.bf16.mxu1 %v1363_v21  ;;  %v1415_v57 = vld [vmem:[%s1962_s1 + $0x1c4] ss:$16 sps:$4 sm:$0xff]   ;;  %v1417_v58 = vld [vmem:[%s1962_s1 + $0x1cc] ss:$16 sps:$4 sm:$0xff]   ;;  %v1419_v59 = vld [vmem:[%s1962_s1 + $0x1c0] ss:$16 sps:$4 sm:$0xff]  }
  0x15   :  { %v1420_v60 = vld [vmem:[%s1962_s1 + $0x1c8] ss:$16 sps:$4 sm:$0xff]   ;;  %v1421_v61 = vld [vmem:[%s1962_s1 + $0x1e4] ss:$16 sps:$4 sm:$0xff]   ;;  %v1423_v62 = vld [vmem:[%s1962_s1 + $0x1ec] ss:$16 sps:$4 sm:$0xff]  }
  0x16   :  { %v1425_v63 = vld [vmem:[%s1962_s1 + $0x1e0] ss:$16 sps:$4 sm:$0xff]   ;;  %v1426_v0 = vld [vmem:[%s1962_s1 + $0x1e8] ss:$16 sps:$4 sm:$0xff]   ;;  %v1430_v2 = vld [vmem:[%s1963_s0 + $0x14] ss:$8 sps:$4 sm:$0xff]  }
  0x17   :  { %508 = vmatpush1.bf16.msra.mxu0 %v1365_v22  ;;  %621 = vmatpush1.bf16.msra.mxu1 %v1366_v23  ;;  %v1427_v1 = vld [vmem:[%s1963_s0] ss:$8 sps:$4 sm:$0xff]   ;;  %v1432_v3 = vld [vmem:[%s1963_s0 + $0x10] ss:$8 sps:$4 sm:$0xff]   ;;  %v1433_v4 = vld [vmem:[%s1963_s0 + $0x24] ss:$8 sps:$4 sm:$0xff]  }
  0x18   :  { %509 = vmatprep.subr.bf16.mxu0 %v1367_v24  ;;  %622 = vmatprep.subr.bf16.mxu1 %v1369_v25  ;;  %v1435_v5 = vld [vmem:[%s1963_s0 + $0x20] ss:$8 sps:$4 sm:$0xff]   ;;  %v1436_v6 = vld [vmem:[%s1963_s0 + $0x34] ss:$8 sps:$4 sm:$0xff]   ;;  %v1438_v7 = vld [vmem:[%s1963_s0 + $0x30] ss:$8 sps:$4 sm:$0xff]  }
  0x19   :  { %v1439_v8 = vld [vmem:[%s1963_s0 + $0x44] ss:$8 sps:$4 sm:$0xff]   ;;  %v1441_v9 = vld [vmem:[%s1963_s0 + $0x40] ss:$8 sps:$4 sm:$0xff]   ;;  %v1442_v10 = vld [vmem:[%s1963_s0 + $0x54] ss:$8 sps:$4 sm:$0xff]  }
  0x1a   :  { %v1444_v11 = vld [vmem:[%s1963_s0 + $0x50] ss:$8 sps:$4 sm:$0xff]   ;;  %v1445_v12 = vld [vmem:[%s1963_s0 + $0x64] ss:$8 sps:$4 sm:$0xff]   ;;  %v1447_v13 = vld [vmem:[%s1963_s0 + $0x60] ss:$8 sps:$4 sm:$0xff]  }
  0x1b   :  { %510 = vmatpush1.bf16.msra.mxu0 %v1371_v26  ;;  %623 = vmatpush1.bf16.msra.mxu1 %v1372_v27  ;;  %v1448_v14 = vld [vmem:[%s1963_s0 + $0x74] ss:$8 sps:$4 sm:$0xff]   ;;  %v1450_v15 = vld [vmem:[%s1963_s0 + $0x70] ss:$8 sps:$4 sm:$0xff]   ;;  %v726_v17 = vshrl.u32 %v725_v16, 7 }
  0x1c   :  { %511 = vmatprep.subr.bf16.mxu0 %v1373_v28  ;;  %624 = vmatprep.subr.bf16.mxu1 %v1375_v29  ;;  %v723_v20 = vld [vmem:[%s1964_s2] sm:$0xf] }
  0x1d   :  { %v727_v18 = vsub.s32 0, %v726_v17  ;;  %v735_v19 = vsub.s32 2, %v726_v17  ;;  %v731_v21 = vsub.s32 1, %v726_v17  ;;  %v739_v22 = vsub.s32 3, %v726_v17  ;;  %v809_v23 = vld [vmem:[%s1965_s3] sm:$0xf] }
  0x1f   :  { %512 = vmatpush1.bf16.msra.mxu0 %v1377_v30  ;;  %625 = vmatpush1.bf16.msra.mxu1 %v1378_v31  ;;  %v1722_v24 = vrot.slane %v723_v20, %v727_v18  ;;  %v1724_v25 = vrot.slane %v723_v20, %v735_v19  ;;  %v1726_v26 = vrot.slane %v723_v20, %v731_v21 }
  0x20   :  { %513 = vmatprep.subr.bf16.mxu0 %v1379_v32  ;;  %626 = vmatprep.subr.bf16.mxu1 %v1381_v33  ;;  %v1728_v27 = vrot.slane %v723_v20, %v739_v22  ;;  %v1730_v28 = vrot.slane %v809_v23, %v727_v18  ;;  %v1732_v29 = vrot.slane %v809_v23, %v735_v19 }
  0x21   :  { %v1734_v32 = vrot.slane %v809_v23, %v731_v21  ;;  %v1736_v33 = vrot.slane %v809_v23, %v739_v22 }
  0x23   :  { %514 = vmatpush1.bf16.msra.mxu0 %v1383_v34  ;;  %627 = vmatpush1.bf16.msra.mxu1 %v1384_v35 }
  0x24   :  { %515 = vmatprep.subr.bf16.mxu0 %v1385_v36  ;;  %628 = vmatprep.subr.bf16.mxu1 %v1387_v37 }
  0x27   :  { %516 = vmatpush1.bf16.msra.mxu0 %v1389_v38  ;;  %629 = vmatpush1.bf16.msra.mxu1 %v1390_v39 }
  0x28   :  { %517 = vmatprep.subr.bf16.mxu0 %v1391_v40  ;;  %630 = vmatprep.subr.bf16.mxu1 %v1393_v41 }
  0x2b   :  { %518 = vmatpush1.bf16.msra.mxu0 %v1395_v42  ;;  %631 = vmatpush1.bf16.msra.mxu1 %v1396_v43 }
  0x2c   :  { %519 = vmatprep.subr.bf16.mxu0 %v1397_v44  ;;  %632 = vmatprep.subr.bf16.mxu1 %v1399_v45 }
  0x2f   :  { %520 = vmatpush1.bf16.msra.mxu0 %v1401_v46  ;;  %633 = vmatpush1.bf16.msra.mxu1 %v1402_v47 }
  0x30   :  { %521 = vmatprep.subr.bf16.mxu0 %v1403_v49  ;;  %634 = vmatprep.subr.bf16.mxu1 %v1405_v50 }
  0x33   :  { %522 = vmatpush1.bf16.msra.mxu0 %v1407_v51  ;;  %635 = vmatpush1.bf16.msra.mxu1 %v1408_v52 }
  0x34   :  { %523 = vmatprep.subr.bf16.mxu0 %v1409_v53  ;;  %636 = vmatprep.subr.bf16.mxu1 %v1411_v54 }
  0x37   :  { %524 = vmatpush1.bf16.msra.mxu0 %v1413_v55  ;;  %637 = vmatpush1.bf16.msra.mxu1 %v1414_v56 }
  0x38   :  { %525 = vmatprep.subr.bf16.mxu0 %v1415_v57  ;;  %638 = vmatprep.subr.bf16.mxu1 %v1417_v58 }
  0x3b   :  { %526 = vmatpush1.bf16.msra.mxu0 %v1419_v59  ;;  %639 = vmatpush1.bf16.msra.mxu1 %v1420_v60 }
  0x3c   :  { %527 = vmatprep.subr.bf16.mxu0 %v1421_v61  ;;  %640 = vmatprep.subr.bf16.mxu1 %v1423_v62 }
  0x3f   :  { %528 = vmatpush1.bf16.msra.mxu0 %v1425_v63  ;;  %641 = vmatpush1.bf16.msra.mxu1 %v1426_v0 }
  0x42   :  { %530 = vmatmul.mubr.bf16.vlgmr.msra.gmra.mrb[0].mxu0 %v1427_v1  ;;  %643 = vmatmul.mubr.bf16.vlgmr.msra.gmra.mrb[0].mxu1 %v1427_v1 }
  0x43   :  { %539 = vmatprep.mubr.bf16.mxu0 %v1430_v2  ;;  %652 = vmatprep.mubr.bf16.mxu1 %v1430_v2 }
  0x4a   :  { %540 = vmatmul.mubr.bf16.gmra.mrb[4].mxu0 %v1432_v3  ;;  %653 = vmatmul.mubr.bf16.gmra.mrb[4].mxu1 %v1432_v3 }
  0x4b   :  { %549 = vmatprep.mubr.bf16.mxu0 %v1433_v4  ;;  %662 = vmatprep.mubr.bf16.mxu1 %v1433_v4 }
  0x52   :  { %550 = vmatmul.mubr.bf16.gmra.mrb[8].mxu0 %v1435_v5  ;;  %663 = vmatmul.mubr.bf16.gmra.mrb[8].mxu1 %v1435_v5 }
  0x53   :  { %559 = vmatprep.mubr.bf16.mxu0 %v1436_v6  ;;  %672 = vmatprep.mubr.bf16.mxu1 %v1436_v6 }
  0x5a   :  { %560 = vmatmul.mubr.bf16.gmra.mrb[12].mxu0 %v1438_v7  ;;  %673 = vmatmul.mubr.bf16.gmra.mrb[12].mxu1 %v1438_v7 }
  0x5b   :  { %569 = vmatprep.mubr.bf16.mxu0 %v1439_v8  ;;  %682 = vmatprep.mubr.bf16.mxu1 %v1439_v8 }
  0x62   :  { %570 = vmatmul.mubr.bf16.gmra.mrb[16].mxu0 %v1441_v9  ;;  %683 = vmatmul.mubr.bf16.gmra.mrb[16].mxu1 %v1441_v9 }
  0x63   :  { %579 = vmatprep.mubr.bf16.mxu0 %v1442_v10  ;;  %692 = vmatprep.mubr.bf16.mxu1 %v1442_v10 }
  0x6a   :  { %580 = vmatmul.mubr.bf16.gmra.mrb[20].mxu0 %v1444_v11  ;;  %693 = vmatmul.mubr.bf16.gmra.mrb[20].mxu1 %v1444_v11 }
  0x6b   :  { %589 = vmatprep.mubr.bf16.mxu0 %v1445_v12  ;;  %702 = vmatprep.mubr.bf16.mxu1 %v1445_v12 }
  0x72   :  { %590 = vmatmul.mubr.bf16.gmra.mrb[24].mxu0 %v1447_v13  ;;  %703 = vmatmul.mubr.bf16.gmra.mrb[24].mxu1 %v1447_v13 }
  0x73   :  { %599 = vmatprep.mubr.bf16.mxu0 %v1448_v14  ;;  %712 = vmatprep.mubr.bf16.mxu1 %v1448_v14 }
  0x7a   :  { %600 = vmatmul.mubr.bf16.gmra.mrb[28].mxu0 %v1450_v15  ;;  %713 = vmatmul.mubr.bf16.gmra.mrb[28].mxu1 %v1450_v15 }
 0x115   :  { %v531_v30 = vpop.f32.mrb[0].mxu0  ;;  %v644_v31 = vpop.f32.mrb[0].mxu1 }
 0x116   :  { %v745_v34 = vmul.f32 %v1722_v24, %v531_v30  ;;  %v747_v35 = vmul.f32 %v1724_v25, %v644_v31  ;;  %v533_v36 = vpop.f32.mrb[1].mxu0  ;;  %v646_v37 = vpop.f32.mrb[1].mxu1 }
 0x117   :  { %v746_v38 = vmul.f32 %v1726_v26, %v533_v36  ;;  %v748_v39 = vmul.f32 %v1728_v27, %v646_v37  ;;  %v535_v40 = vpop.f32.mrb[2].mxu0  ;;  %v648_v41 = vpop.f32.mrb[2].mxu1 }
 0x118   :  { %v831_v42 = vadd.f32 %v1730_v28, %v745_v34  ;;  %v833_v43 = vadd.f32 %v1732_v29, %v747_v35  ;;  %v749_v44 = vmul.f32 %v1722_v24, %v535_v40  ;;  %v751_v45 = vmul.f32 %v1724_v25, %v648_v41  ;;  %v537_v46 = vpop.f32.mrb[3].mxu0  ;;  %v650_v47 = vpop.f32.mrb[3].mxu1 }
 0x119   :  { %v832_v48 = vadd.f32 %v1734_v32, %v746_v38  ;;  %v834_v49 = vadd.f32 %v1736_v33, %v748_v39  ;;  %v750_v50 = vmul.f32 %v1726_v26, %v537_v46  ;;  %v752_v51 = vmul.f32 %v1728_v27, %v650_v47 }
 0x11a   :  { %v895_v52 = vmax.f32 %v831_v42, 0.0  ;;  %v897_v53 = vmax.f32 %v833_v43, 0.0  ;;  %v835_v54 = vadd.f32 %v1730_v28, %v749_v44  ;;  %v837_v55 = vadd.f32 %v1732_v29, %v751_v45 }
 0x11b   :  { %v896_v56 = vmax.f32 %v832_v48, 0.0  ;;  %v898_v57 = vmax.f32 %v834_v49, 0.0  ;;  %v836_v58 = vadd.f32 %v1734_v32, %v750_v50  ;;  %v838_v59 = vadd.f32 %v1736_v33, %v752_v51 }
 0x11c   :  { %v899_v60 = vmax.f32 %v835_v54, 0.0  ;;  %v901_v61 = vmax.f32 %v837_v55, 0.0 }
 0x11d   :  { %v1299_v62 = vpack.c.bf16 %v896_v56, %v895_v52  ;;  %v1300_v63 = vpack.c.bf16 %v898_v57, %v897_v53  ;;  %v900_v0 = vmax.f32 %v836_v58, 0.0  ;;  %v902_v1 = vmax.f32 %v838_v59, 0.0  ;;  %v541_v2 = vpop.f32.mrb[4].mxu0  ;;  %v654_v3 = vpop.f32.mrb[4].mxu1 }
 0x11e   :  { %v753_v4 = vmul.f32 %v1722_v24, %v541_v2  ;;  %v755_v5 = vmul.f32 %v1724_v25, %v654_v3  ;;  %v543_v6 = vpop.f32.mrb[5].mxu0  ;;  %v656_v7 = vpop.f32.mrb[5].mxu1 }
 0x11f   :  { %1151 = vst [vmem:[%s1966_s4] sm:$0xff] %v1299_v62  ;;  %1152 = vst [vmem:[%s1966_s4 + $0x8] sm:$0xff] %v1300_v63  ;;  %v1301_v8 = vpack.c.bf16 %v900_v0, %v899_v60  ;;  %v1302_v9 = vpack.c.bf16 %v902_v1, %v901_v61  ;;  %v754_v10 = vmul.f32 %v1726_v26, %v543_v6  ;;  %v545_v12 = vpop.f32.mrb[6].mxu0  ;;  %v658_v13 = vpop.f32.mrb[6].mxu1 }
 0x120   :  { %v756_v11 = vmul.f32 %v1728_v27, %v656_v7  ;;  %v839_v14 = vadd.f32 %v1730_v28, %v753_v4  ;;  %v841_v15 = vadd.f32 %v1732_v29, %v755_v5  ;;  %v757_v16 = vmul.f32 %v1722_v24, %v545_v12  ;;  %v547_v18 = vpop.f32.mrb[7].mxu0  ;;  %v660_v19 = vpop.f32.mrb[7].mxu1 }
 0x121   :  { %v759_v17 = vmul.f32 %v1724_v25, %v658_v13  ;;  %1153 = vst [vmem:[%s1966_s4 + $0x10] sm:$0xff] %v1301_v8  ;;  %1154 = vst [vmem:[%s1966_s4 + $0x18] sm:$0xff] %v1302_v9  ;;  %v840_v20 = vadd.f32 %v1734_v32, %v754_v10  ;;  %v758_v22 = vmul.f32 %v1726_v26, %v547_v18 }
 0x122   :  { %v842_v21 = vadd.f32 %v1736_v33, %v756_v11  ;;  %v760_v23 = vmul.f32 %v1728_v27, %v660_v19  ;;  %v903_v30 = vmax.f32 %v839_v14, 0.0  ;;  %v905_v31 = vmax.f32 %v841_v15, 0.0 }
 0x123   :  { %v843_v34 = vadd.f32 %v1730_v28, %v757_v16  ;;  %v845_v35 = vadd.f32 %v1732_v29, %v759_v17  ;;  %v904_v36 = vmax.f32 %v840_v20, 0.0  ;;  %v844_v38 = vadd.f32 %v1734_v32, %v758_v22 }
 0x124   :  { %v906_v37 = vmax.f32 %v842_v21, 0.0  ;;  %v846_v39 = vadd.f32 %v1736_v33, %v760_v23 }
 0x125   :  { %v907_v40 = vmax.f32 %v843_v34, 0.0  ;;  %v909_v41 = vmax.f32 %v845_v35, 0.0  ;;  %v1303_v42 = vpack.c.bf16 %v904_v36, %v903_v30  ;;  %v908_v44 = vmax.f32 %v844_v38, 0.0  ;;  %v551_v46 = vpop.f32.mrb[8].mxu0  ;;  %v664_v47 = vpop.f32.mrb[8].mxu1 }
 0x126   :  { %v1304_v43 = vpack.c.bf16 %v906_v37, %v905_v31  ;;  %v910_v45 = vmax.f32 %v846_v39, 0.0  ;;  %v761_v48 = vmul.f32 %v1722_v24, %v551_v46  ;;  %v763_v49 = vmul.f32 %v1724_v25, %v664_v47  ;;  %v553_v50 = vpop.f32.mrb[9].mxu0  ;;  %v666_v51 = vpop.f32.mrb[9].mxu1 }
 0x127   :  { %1155 = vst [vmem:[%s1966_s4 + $0x20] sm:$0xff] %v1303_v42  ;;  %v1305_v52 = vpack.c.bf16 %v908_v44, %v907_v40  ;;  %v762_v54 = vmul.f32 %v1726_v26, %v553_v50  ;;  %v764_v55 = vmul.f32 %v1728_v27, %v666_v51  ;;  %v555_v56 = vpop.f32.mrb[10].mxu0  ;;  %v668_v57 = vpop.f32.mrb[10].mxu1 }
 0x128   :  { %1156 = vst [vmem:[%s1966_s4 + $0x28] sm:$0xff] %v1304_v43  ;;  %v1306_v53 = vpack.c.bf16 %v910_v45, %v909_v41  ;;  %v847_v58 = vadd.f32 %v1730_v28, %v761_v48  ;;  %v849_v59 = vadd.f32 %v1732_v29, %v763_v49  ;;  %v765_v60 = vmul.f32 %v1722_v24, %v555_v56  ;;  %v557_v62 = vpop.f32.mrb[11].mxu0  ;;  %v670_v63 = vpop.f32.mrb[11].mxu1 }
 0x129   :  { %v767_v61 = vmul.f32 %v1724_v25, %v668_v57  ;;  %1157 = vst [vmem:[%s1966_s4 + $0x30] sm:$0xff] %v1305_v52  ;;  %v848_v0 = vadd.f32 %v1734_v32, %v762_v54  ;;  %v850_v1 = vadd.f32 %v1736_v33, %v764_v55  ;;  %v766_v2 = vmul.f32 %v1726_v26, %v557_v62 }
 0x12a   :  { %1158 = vst [vmem:[%s1966_s4 + $0x38] sm:$0xff] %v1306_v53  ;;  %v768_v3 = vmul.f32 %v1728_v27, %v670_v63  ;;  %v911_v4 = vmax.f32 %v847_v58, 0.0  ;;  %v913_v5 = vmax.f32 %v849_v59, 0.0  ;;  %v851_v6 = vadd.f32 %v1730_v28, %v765_v60 }
 0x12b   :  { %v853_v7 = vadd.f32 %v1732_v29, %v767_v61  ;;  %v912_v8 = vmax.f32 %v848_v0, 0.0  ;;  %v914_v9 = vmax.f32 %v850_v1, 0.0  ;;  %v852_v10 = vadd.f32 %v1734_v32, %v766_v2 }
 0x12c   :  { %v854_v11 = vadd.f32 %v1736_v33, %v768_v3  ;;  %v915_v12 = vmax.f32 %v851_v6, 0.0 }
 0x12d   :  { %v917_v13 = vmax.f32 %v853_v7, 0.0  ;;  %v1307_v14 = vpack.c.bf16 %v912_v8, %v911_v4  ;;  %v1308_v15 = vpack.c.bf16 %v914_v9, %v913_v5  ;;  %v916_v16 = vmax.f32 %v852_v10, 0.0  ;;  %v561_v18 = vpop.f32.mrb[12].mxu0  ;;  %v674_v19 = vpop.f32.mrb[12].mxu1 }
 0x12e   :  { %v918_v17 = vmax.f32 %v854_v11, 0.0  ;;  %v769_v20 = vmul.f32 %v1722_v24, %v561_v18  ;;  %v771_v21 = vmul.f32 %v1724_v25, %v674_v19  ;;  %v563_v22 = vpop.f32.mrb[13].mxu0  ;;  %v676_v23 = vpop.f32.mrb[13].mxu1 }
 0x12f   :  { %1159 = vst [vmem:[%s1966_s4 + $0x40] sm:$0xff] %v1307_v14  ;;  %1160 = vst [vmem:[%s1966_s4 + $0x48] sm:$0xff] %v1308_v15  ;;  %v1309_v30 = vpack.c.bf16 %v916_v16, %v915_v12  ;;  %v770_v34 = vmul.f32 %v1726_v26, %v563_v22  ;;  %v772_v35 = vmul.f32 %v1728_v27, %v676_v23  ;;  %v565_v36 = vpop.f32.mrb[14].mxu0  ;;  %v678_v37 = vpop.f32.mrb[14].mxu1 }
 0x130   :  { %v1310_v31 = vpack.c.bf16 %v918_v17, %v917_v13  ;;  %v855_v38 = vadd.f32 %v1730_v28, %v769_v20  ;;  %v857_v39 = vadd.f32 %v1732_v29, %v771_v21  ;;  %v773_v40 = vmul.f32 %v1722_v24, %v565_v36  ;;  %v567_v42 = vpop.f32.mrb[15].mxu0  ;;  %v680_v43 = vpop.f32.mrb[15].mxu1 }
 0x131   :  { %v775_v41 = vmul.f32 %v1724_v25, %v678_v37  ;;  %1161 = vst [vmem:[%s1966_s4 + $0x50] sm:$0xff] %v1309_v30  ;;  %v856_v44 = vadd.f32 %v1734_v32, %v770_v34  ;;  %v858_v45 = vadd.f32 %v1736_v33, %v772_v35  ;;  %v774_v46 = vmul.f32 %v1726_v26, %v567_v42 }
 0x132   :  { %1162 = vst [vmem:[%s1966_s4 + $0x58] sm:$0xff] %v1310_v31  ;;  %v776_v47 = vmul.f32 %v1728_v27, %v680_v43  ;;  %v919_v48 = vmax.f32 %v855_v38, 0.0  ;;  %v921_v49 = vmax.f32 %v857_v39, 0.0  ;;  %v859_v50 = vadd.f32 %v1730_v28, %v773_v40 }
 0x133   :  { %v861_v51 = vadd.f32 %v1732_v29, %v775_v41  ;;  %v920_v52 = vmax.f32 %v856_v44, 0.0  ;;  %v922_v53 = vmax.f32 %v858_v45, 0.0  ;;  %v860_v54 = vadd.f32 %v1734_v32, %v774_v46 }
 0x134   :  { %v862_v55 = vadd.f32 %v1736_v33, %v776_v47  ;;  %v923_v56 = vmax.f32 %v859_v50, 0.0 }
 0x135   :  { %v925_v57 = vmax.f32 %v861_v51, 0.0  ;;  %v1311_v58 = vpack.c.bf16 %v920_v52, %v919_v48  ;;  %v1312_v59 = vpack.c.bf16 %v922_v53, %v921_v49  ;;  %v924_v60 = vmax.f32 %v860_v54, 0.0  ;;  %v571_v62 = vpop.f32.mrb[16].mxu0  ;;  %v684_v63 = vpop.f32.mrb[16].mxu1 }
 0x136   :  { %v926_v61 = vmax.f32 %v862_v55, 0.0  ;;  %v777_v0 = vmul.f32 %v1722_v24, %v571_v62  ;;  %v779_v1 = vmul.f32 %v1724_v25, %v684_v63  ;;  %v573_v2 = vpop.f32.mrb[17].mxu0  ;;  %v686_v3 = vpop.f32.mrb[17].mxu1 }
 0x137   :  { %1163 = vst [vmem:[%s1966_s4 + $0x60] sm:$0xff] %v1311_v58  ;;  %1164 = vst [vmem:[%s1966_s4 + $0x68] sm:$0xff] %v1312_v59  ;;  %v1313_v4 = vpack.c.bf16 %v924_v60, %v923_v56  ;;  %v778_v6 = vmul.f32 %v1726_v26, %v573_v2  ;;  %v780_v7 = vmul.f32 %v1728_v27, %v686_v3  ;;  %v575_v8 = vpop.f32.mrb[18].mxu0  ;;  %v688_v9 = vpop.f32.mrb[18].mxu1 }
 0x138   :  { %v1314_v5 = vpack.c.bf16 %v926_v61, %v925_v57  ;;  %v863_v10 = vadd.f32 %v1730_v28, %v777_v0  ;;  %v865_v11 = vadd.f32 %v1732_v29, %v779_v1  ;;  %v781_v12 = vmul.f32 %v1722_v24, %v575_v8  ;;  %v577_v14 = vpop.f32.mrb[19].mxu0  ;;  %v690_v15 = vpop.f32.mrb[19].mxu1 }
 0x139   :  { %v783_v13 = vmul.f32 %v1724_v25, %v688_v9  ;;  %1165 = vst [vmem:[%s1966_s4 + $0x70] sm:$0xff] %v1313_v4  ;;  %v864_v16 = vadd.f32 %v1734_v32, %v778_v6  ;;  %v866_v17 = vadd.f32 %v1736_v33, %v780_v7  ;;  %v782_v18 = vmul.f32 %v1726_v26, %v577_v14 }
 0x13a   :  { %1166 = vst [vmem:[%s1966_s4 + $0x78] sm:$0xff] %v1314_v5  ;;  %v784_v19 = vmul.f32 %v1728_v27, %v690_v15  ;;  %v927_v20 = vmax.f32 %v863_v10, 0.0  ;;  %v929_v21 = vmax.f32 %v865_v11, 0.0  ;;  %v867_v22 = vadd.f32 %v1730_v28, %v781_v12 }
 0x13b   :  { %v869_v23 = vadd.f32 %v1732_v29, %v783_v13  ;;  %v928_v30 = vmax.f32 %v864_v16, 0.0  ;;  %v930_v31 = vmax.f32 %v866_v17, 0.0  ;;  %v868_v34 = vadd.f32 %v1734_v32, %v782_v18 }
 0x13c   :  { %v870_v35 = vadd.f32 %v1736_v33, %v784_v19  ;;  %v931_v36 = vmax.f32 %v867_v22, 0.0 }
 0x13d   :  { %v933_v37 = vmax.f32 %v869_v23, 0.0  ;;  %v1315_v38 = vpack.c.bf16 %v928_v30, %v927_v20  ;;  %v1316_v39 = vpack.c.bf16 %v930_v31, %v929_v21  ;;  %v932_v40 = vmax.f32 %v868_v34, 0.0  ;;  %v581_v42 = vpop.f32.mrb[20].mxu0  ;;  %v694_v43 = vpop.f32.mrb[20].mxu1 }
 0x13e   :  { %v934_v41 = vmax.f32 %v870_v35, 0.0  ;;  %v785_v44 = vmul.f32 %v1722_v24, %v581_v42  ;;  %v787_v45 = vmul.f32 %v1724_v25, %v694_v43  ;;  %v583_v46 = vpop.f32.mrb[21].mxu0  ;;  %v696_v47 = vpop.f32.mrb[21].mxu1 }
 0x13f   :  { %1167 = vst [vmem:[%s1966_s4 + $0x80] sm:$0xff] %v1315_v38  ;;  %1168 = vst [vmem:[%s1966_s4 + $0x88] sm:$0xff] %v1316_v39  ;;  %v1317_v48 = vpack.c.bf16 %v932_v40, %v931_v36  ;;  %v786_v50 = vmul.f32 %v1726_v26, %v583_v46  ;;  %v788_v51 = vmul.f32 %v1728_v27, %v696_v47  ;;  %v585_v52 = vpop.f32.mrb[22].mxu0  ;;  %v698_v53 = vpop.f32.mrb[22].mxu1 }
 0x140   :  { %v1318_v49 = vpack.c.bf16 %v934_v41, %v933_v37  ;;  %v871_v54 = vadd.f32 %v1730_v28, %v785_v44  ;;  %v873_v55 = vadd.f32 %v1732_v29, %v787_v45  ;;  %v789_v56 = vmul.f32 %v1722_v24, %v585_v52  ;;  %v587_v58 = vpop.f32.mrb[23].mxu0  ;;  %v700_v59 = vpop.f32.mrb[23].mxu1 }
 0x141   :  { %v791_v57 = vmul.f32 %v1724_v25, %v698_v53  ;;  %1169 = vst [vmem:[%s1966_s4 + $0x90] sm:$0xff] %v1317_v48  ;;  %v872_v60 = vadd.f32 %v1734_v32, %v786_v50  ;;  %v874_v61 = vadd.f32 %v1736_v33, %v788_v51  ;;  %v790_v62 = vmul.f32 %v1726_v26, %v587_v58 }
 0x142   :  { %1170 = vst [vmem:[%s1966_s4 + $0x98] sm:$0xff] %v1318_v49  ;;  %v792_v63 = vmul.f32 %v1728_v27, %v700_v59  ;;  %v935_v0 = vmax.f32 %v871_v54, 0.0  ;;  %v937_v1 = vmax.f32 %v873_v55, 0.0  ;;  %v875_v2 = vadd.f32 %v1730_v28, %v789_v56 }
 0x143   :  { %v877_v3 = vadd.f32 %v1732_v29, %v791_v57  ;;  %v936_v4 = vmax.f32 %v872_v60, 0.0  ;;  %v938_v5 = vmax.f32 %v874_v61, 0.0  ;;  %v876_v6 = vadd.f32 %v1734_v32, %v790_v62 }
 0x144   :  { %v878_v7 = vadd.f32 %v1736_v33, %v792_v63  ;;  %v939_v8 = vmax.f32 %v875_v2, 0.0 }
 0x145   :  { %v941_v9 = vmax.f32 %v877_v3, 0.0  ;;  %v1319_v10 = vpack.c.bf16 %v936_v4, %v935_v0  ;;  %v1320_v11 = vpack.c.bf16 %v938_v5, %v937_v1  ;;  %v940_v12 = vmax.f32 %v876_v6, 0.0  ;;  %v591_v14 = vpop.f32.mrb[24].mxu0  ;;  %v704_v15 = vpop.f32.mrb[24].mxu1 }
 0x146   :  { %v942_v13 = vmax.f32 %v878_v7, 0.0  ;;  %v793_v16 = vmul.f32 %v1722_v24, %v591_v14  ;;  %v795_v17 = vmul.f32 %v1724_v25, %v704_v15  ;;  %v593_v18 = vpop.f32.mrb[25].mxu0  ;;  %v706_v19 = vpop.f32.mrb[25].mxu1 }
 0x147   :  { %1171 = vst [vmem:[%s1966_s4 + $0xa0] sm:$0xff] %v1319_v10  ;;  %1172 = vst [vmem:[%s1966_s4 + $0xa8] sm:$0xff] %v1320_v11  ;;  %v1321_v20 = vpack.c.bf16 %v940_v12, %v939_v8  ;;  %v794_v22 = vmul.f32 %v1726_v26, %v593_v18  ;;  %v796_v23 = vmul.f32 %v1728_v27, %v706_v19  ;;  %v595_v30 = vpop.f32.mrb[26].mxu0  ;;  %v708_v31 = vpop.f32.mrb[26].mxu1 }
 0x148   :  { %v1322_v21 = vpack.c.bf16 %v942_v13, %v941_v9  ;;  %v879_v34 = vadd.f32 %v1730_v28, %v793_v16  ;;  %v881_v35 = vadd.f32 %v1732_v29, %v795_v17  ;;  %v797_v36 = vmul.f32 %v1722_v24, %v595_v30  ;;  %v597_v38 = vpop.f32.mrb[27].mxu0  ;;  %v710_v39 = vpop.f32.mrb[27].mxu1 }
 0x149   :  { %v799_v37 = vmul.f32 %v1724_v25, %v708_v31  ;;  %1173 = vst [vmem:[%s1966_s4 + $0xb0] sm:$0xff] %v1321_v20  ;;  %v880_v40 = vadd.f32 %v1734_v32, %v794_v22  ;;  %v882_v41 = vadd.f32 %v1736_v33, %v796_v23  ;;  %v798_v42 = vmul.f32 %v1726_v26, %v597_v38 }
 0x14a   :  { %1174 = vst [vmem:[%s1966_s4 + $0xb8] sm:$0xff] %v1322_v21  ;;  %v800_v43 = vmul.f32 %v1728_v27, %v710_v39  ;;  %v943_v44 = vmax.f32 %v879_v34, 0.0  ;;  %v945_v45 = vmax.f32 %v881_v35, 0.0  ;;  %v883_v46 = vadd.f32 %v1730_v28, %v797_v36 }
 0x14b   :  { %v885_v47 = vadd.f32 %v1732_v29, %v799_v37  ;;  %v944_v48 = vmax.f32 %v880_v40, 0.0  ;;  %v946_v49 = vmax.f32 %v882_v41, 0.0  ;;  %v884_v50 = vadd.f32 %v1734_v32, %v798_v42 }
 0x14c   :  { %v886_v51 = vadd.f32 %v1736_v33, %v800_v43  ;;  %v947_v52 = vmax.f32 %v883_v46, 0.0 }
 0x14d   :  { %v949_v53 = vmax.f32 %v885_v47, 0.0  ;;  %v1323_v54 = vpack.c.bf16 %v944_v48, %v943_v44  ;;  %v1324_v55 = vpack.c.bf16 %v946_v49, %v945_v45  ;;  %v948_v56 = vmax.f32 %v884_v50, 0.0  ;;  %v601_v58 = vpop.f32.mrb[28].mxu0  ;;  %v714_v59 = vpop.f32.mrb[28].mxu1 }
 0x14e   :  { %v950_v57 = vmax.f32 %v886_v51, 0.0  ;;  %v801_v60 = vmul.f32 %v1722_v24, %v601_v58  ;;  %v803_v61 = vmul.f32 %v1724_v25, %v714_v59  ;;  %v603_v62 = vpop.f32.mrb[29].mxu0  ;;  %v716_v63 = vpop.f32.mrb[29].mxu1 }
 0x14f   :  { %1175 = vst [vmem:[%s1966_s4 + $0xc0] sm:$0xff] %v1323_v54  ;;  %1176 = vst [vmem:[%s1966_s4 + $0xc8] sm:$0xff] %v1324_v55  ;;  %v1325_v0 = vpack.c.bf16 %v948_v56, %v947_v52  ;;  %v802_v2 = vmul.f32 %v1726_v26, %v603_v62  ;;  %v804_v3 = vmul.f32 %v1728_v27, %v716_v63  ;;  %v605_v4 = vpop.f32.mrb[30].mxu0  ;;  %v718_v5 = vpop.f32.mrb[30].mxu1 }
 0x150   :  { %v1326_v1 = vpack.c.bf16 %v950_v57, %v949_v53  ;;  %v887_v6 = vadd.f32 %v1730_v28, %v801_v60  ;;  %v889_v7 = vadd.f32 %v1732_v29, %v803_v61  ;;  %v805_v8 = vmul.f32 %v1722_v24, %v605_v4  ;;  %v607_v10 = vpop.f32.mrb[31].mxu0  ;;  %v720_v11 = vpop.f32.mrb[31].mxu1 }
 0x151   :  { %v807_v9 = vmul.f32 %v1724_v25, %v718_v5  ;;  %1177 = vst [vmem:[%s1966_s4 + $0xd0] sm:$0xff] %v1325_v0  ;;  %v888_v12 = vadd.f32 %v1734_v32, %v802_v2  ;;  %v890_v13 = vadd.f32 %v1736_v33, %v804_v3  ;;  %v806_v14 = vmul.f32 %v1726_v26, %v607_v10 }
 0x152   :  { %1178 = vst [vmem:[%s1966_s4 + $0xd8] sm:$0xff] %v1326_v1  ;;  %v808_v24 = vmul.f32 %v1728_v27, %v720_v11  ;;  %v951_v15 = vmax.f32 %v887_v6, 0.0  ;;  %v953_v25 = vmax.f32 %v889_v7, 0.0  ;;  %v891_v16 = vadd.f32 %v1730_v28, %v805_v8 }
 0x153   :  { %v893_v17 = vadd.f32 %v1732_v29, %v807_v9  ;;  %v952_v18 = vmax.f32 %v888_v12, 0.0  ;;  %v954_v19 = vmax.f32 %v890_v13, 0.0  ;;  %v892_v20 = vadd.f32 %v1734_v32, %v806_v14 }
 0x154   :  { %v894_v21 = vadd.f32 %v1736_v33, %v808_v24  ;;  %v955_v22 = vmax.f32 %v891_v16, 0.0 }
 0x155   :  { %v957_v23 = vmax.f32 %v893_v17, 0.0  ;;  %v1327_v30 = vpack.c.bf16 %v952_v18, %v951_v15  ;;  %v1328_v31 = vpack.c.bf16 %v954_v19, %v953_v25  ;;  %v956_v34 = vmax.f32 %v892_v20, 0.0 }
 0x156   :  { %v958_v26 = vmax.f32 %v894_v21, 0.0 }
 0x157   :  { %1179 = vst [vmem:[%s1966_s4 + $0xe0] sm:$0xff] %v1327_v30  ;;  %1180 = vst [vmem:[%s1966_s4 + $0xe8] sm:$0xff] %v1328_v31  ;;  %v1329_v27 = vpack.c.bf16 %v956_v34, %v955_v22 }
 0x158   :  { %v1330_v28 = vpack.c.bf16 %v958_v26, %v957_v23 }
 0x159   :  { %1181 = vst [vmem:[%s1966_s4 + $0xf0] sm:$0xff] %v1329_v27 }
 0x15a   :  { %1182 = vst [vmem:[%s1966_s4 + $0xf8] sm:$0xff] %v1330_v28 }

// kernel: multi_scale_dense121_forward.10
= control target key start
LH: loop header
LB: loop body
LE: loop exit
PB: predicated region body
PF: predicated region fallthrough
CT: control target
= control target key end

     0   :  { %s3670_s1 = inlined_call_operand.vmem [shape: bf16[512,1024], index: 1, kind: input, shape index: {}]   ;;  %s3671_s0 = inlined_call_operand.vmem [shape: bf16[32,512], index: 0, kind: input, shape index: {}]   ;;  %s3672_s2 = inlined_call_operand.vmem [shape: f32[1,1024], index: 2, kind: input, shape index: {}]   ;;  %s3673_s3 = inlined_call_operand.vmem [shape: f32[1,1024], index: 3, kind: input, shape index: {}]   ;;  %s3674_s4 = inlined_call_operand.vmem [shape: bf16[32,1024], index: 4, kind: output, shape index: {}]  }
   0x1   :  { %v25_v0 = vld [vmem:[%s3670_s1] sm:$0xff]  ;;  %v26_v2 = vld [vmem:[%s3670_s1 + $0x8] sm:$0xff] }
   0x2   :  { %v29_v1 = vld [vmem:[%s3670_s1 + $0x20] sm:$0xff]  ;;  %v30_v4 = vld [vmem:[%s3670_s1 + $0x28] sm:$0xff] }
   0x3   :  { %v2330_v3 = vcombine.high %v25_v0, %v29_v1  ;;  %v2329_v5 = vcombine.low %v25_v0, %v29_v1  ;;  %v33_v6 = vld [vmem:[%s3670_s1 + $0x40] sm:$0xff]  ;;  %v2332_v8 = vcombine.high %v26_v2, %v30_v4  ;;  %v2331_v9 = vcombine.low %v26_v2, %v30_v4  ;;  %v34_v11 = vld [vmem:[%s3670_s1 + $0x48] sm:$0xff] }
   0x4   :  { %v37_v7 = vld [vmem:[%s3670_s1 + $0x60] sm:$0xff]  ;;  %v38_v12 = vld [vmem:[%s3670_s1 + $0x68] sm:$0xff] }
   0x5   :  { %v2338_v10 = vcombine.high %v33_v6, %v37_v7  ;;  %v41_v13 = vld [vmem:[%s3670_s1 + $0x80] sm:$0xff]  ;;  %1601 = vmatprep.subr.bf16.mxu0 %v2330_v3  ;;  %v2340_v14 = vcombine.high %v34_v11, %v38_v12  ;;  %v42_v16 = vld [vmem:[%s3670_s1 + $0x88] sm:$0xff]  ;;  %1707 = vmatprep.subr.bf16.mxu1 %v2332_v8  ;;  %v2337_v18 = vcombine.low %v33_v6, %v37_v7 }
   0x6   :  { %v45_v15 = vld [vmem:[%s3670_s1 + $0xa0] sm:$0xff]  ;;  %v46_v17 = vld [vmem:[%s3670_s1 + $0xa8] sm:$0xff]  ;;  %1602 = vmatpush1.bf16.msra.mxu0 %v2329_v5  ;;  %1708 = vmatpush1.bf16.msra.mxu1 %v2331_v9  ;;  %v2339_v19 = vcombine.low %v34_v11, %v38_v12 }
   0x7   :  { %1603 = vmatprep.subr.bf16.mxu0 %v2338_v10  ;;  %v2346_v20 = vcombine.high %v41_v13, %v45_v15  ;;  %1709 = vmatprep.subr.bf16.mxu1 %v2340_v14  ;;  %v2348_v21 = vcombine.high %v42_v16, %v46_v17  ;;  %v49_v22 = vld [vmem:[%s3670_s1 + $0xc0] sm:$0xff]  ;;  %v50_v24 = vld [vmem:[%s3670_s1 + $0xc8] sm:$0xff]  ;;  %v2345_v26 = vcombine.low %v41_v13, %v45_v15 }
   0x8   :  { %v53_v23 = vld [vmem:[%s3670_s1 + $0xe0] sm:$0xff]  ;;  %v54_v25 = vld [vmem:[%s3670_s1 + $0xe8] sm:$0xff]  ;;  %v2347_v27 = vcombine.low %v42_v16, %v46_v17 }
   0x9   :  { %v2354_v28 = vcombine.high %v49_v22, %v53_v23  ;;  %v2356_v29 = vcombine.high %v50_v24, %v54_v25  ;;  %v57_v30 = vld [vmem:[%s3670_s1 + $0x100] sm:$0xff]  ;;  %v58_v32 = vld [vmem:[%s3670_s1 + $0x108] sm:$0xff]  ;;  %v2353_v34 = vcombine.low %v49_v22, %v53_v23  ;;  %v2355_v35 = vcombine.low %v50_v24, %v54_v25 }
   0xa   :  { %1604 = vmatpush1.bf16.msra.mxu0 %v2337_v18  ;;  %1710 = vmatpush1.bf16.msra.mxu1 %v2339_v19  ;;  %v61_v31 = vld [vmem:[%s3670_s1 + $0x120] sm:$0xff]  ;;  %v62_v33 = vld [vmem:[%s3670_s1 + $0x128] sm:$0xff] }
   0xb   :  { %1605 = vmatprep.subr.bf16.mxu0 %v2346_v20  ;;  %1711 = vmatprep.subr.bf16.mxu1 %v2348_v21  ;;  %v2362_v36 = vcombine.high %v57_v30, %v61_v31  ;;  %v2364_v37 = vcombine.high %v58_v32, %v62_v33  ;;  %v65_v38 = vld [vmem:[%s3670_s1 + $0x140] sm:$0xff]  ;;  %v66_v40 = vld [vmem:[%s3670_s1 + $0x148] sm:$0xff]  ;;  %v2361_v42 = vcombine.low %v57_v30, %v61_v31 }
   0xc   :  { %v69_v39 = vld [vmem:[%s3670_s1 + $0x160] sm:$0xff]  ;;  %v70_v41 = vld [vmem:[%s3670_s1 + $0x168] sm:$0xff]  ;;  %v2363_v43 = vcombine.low %v58_v32, %v62_v33 }
   0xd   :  { %v2370_v44 = vcombine.high %v65_v38, %v69_v39  ;;  %v2372_v45 = vcombine.high %v66_v40, %v70_v41  ;;  %v73_v46 = vld [vmem:[%s3670_s1 + $0x180] sm:$0xff]  ;;  %v74_v48 = vld [vmem:[%s3670_s1 + $0x188] sm:$0xff]  ;;  %v2369_v50 = vcombine.low %v65_v38, %v69_v39  ;;  %v2371_v51 = vcombine.low %v66_v40, %v70_v41 }
   0xe   :  { %1606 = vmatpush1.bf16.msra.mxu0 %v2345_v26  ;;  %1712 = vmatpush1.bf16.msra.mxu1 %v2347_v27  ;;  %v77_v47 = vld [vmem:[%s3670_s1 + $0x1a0] sm:$0xff]  ;;  %v78_v49 = vld [vmem:[%s3670_s1 + $0x1a8] sm:$0xff] }
   0xf   :  { %1607 = vmatprep.subr.bf16.mxu0 %v2354_v28  ;;  %1713 = vmatprep.subr.bf16.mxu1 %v2356_v29  ;;  %v2378_v52 = vcombine.high %v73_v46, %v77_v47  ;;  %v2380_v53 = vcombine.high %v74_v48, %v78_v49  ;;  %v81_v54 = vld [vmem:[%s3670_s1 + $0x1c0] sm:$0xff]  ;;  %v82_v57 = vld [vmem:[%s3670_s1 + $0x1c8] sm:$0xff]  ;;  %v2377_v59 = vcombine.low %v73_v46, %v77_v47 }
  0x10   :  { %v85_v55 = vld [vmem:[%s3670_s1 + $0x1e0] sm:$0xff]  ;;  %v86_v58 = vld [vmem:[%s3670_s1 + $0x1e8] sm:$0xff]  ;;  %v2379_v60 = vcombine.low %v74_v48, %v78_v49 }
  0x11   :  { %v2779_v56 = vld [vmem:[%s3671_s0 + $0x4] ss:$16 sps:$4 sm:$0xff]   ;;  %v2386_v61 = vcombine.high %v81_v54, %v85_v55  ;;  %v2388_v62 = vcombine.high %v82_v57, %v86_v58  ;;  %v90_v1 = vld [vmem:[%s3670_s1 + $0x208] sm:$0xff]  ;;  %v2385_v3 = vcombine.low %v81_v54, %v85_v55  ;;  %v2387_v4 = vcombine.low %v82_v57, %v86_v58 }
  0x12   :  { %1608 = vmatpush1.bf16.msra.mxu0 %v2353_v34  ;;  %1714 = vmatpush1.bf16.msra.mxu1 %v2355_v35  ;;  %v89_v63 = vld [vmem:[%s3670_s1 + $0x200] sm:$0xff]  ;;  %v94_v2 = vld [vmem:[%s3670_s1 + $0x228] sm:$0xff] }
  0x13   :  { %1609 = vmatprep.subr.bf16.mxu0 %v2362_v36  ;;  %1715 = vmatprep.subr.bf16.mxu1 %v2364_v37  ;;  %v93_v0 = vld [vmem:[%s3670_s1 + $0x220] sm:$0xff]  ;;  %v2396_v6 = vcombine.high %v90_v1, %v94_v2  ;;  %v98_v9 = vld [vmem:[%s3670_s1 + $0x248] sm:$0xff]  ;;  %v2395_v12 = vcombine.low %v90_v1, %v94_v2 }
  0x14   :  { %1633 = vmatprep.mubr.bf16.mxu0 %v2779_v56  ;;  %1739 = vmatprep.mubr.bf16.mxu1 %v2779_v56  ;;  %v2394_v5 = vcombine.high %v89_v63, %v93_v0  ;;  %v97_v7 = vld [vmem:[%s3670_s1 + $0x240] sm:$0xff]  ;;  %v102_v10 = vld [vmem:[%s3670_s1 + $0x268] sm:$0xff]  ;;  %v2393_v11 = vcombine.low %v89_v63, %v93_v0 }
  0x15   :  { %v101_v8 = vld [vmem:[%s3670_s1 + $0x260] sm:$0xff]  ;;  %v2404_v14 = vcombine.high %v98_v9, %v102_v10  ;;  %v106_v17 = vld [vmem:[%s3670_s1 + $0x288] sm:$0xff]  ;;  %v2403_v20 = vcombine.low %v98_v9, %v102_v10 }
  0x16   :  { %1610 = vmatpush1.bf16.msra.mxu0 %v2361_v42  ;;  %1716 = vmatpush1.bf16.msra.mxu1 %v2363_v43  ;;  %v2402_v13 = vcombine.high %v97_v7, %v101_v8  ;;  %v105_v15 = vld [vmem:[%s3670_s1 + $0x280] sm:$0xff]  ;;  %v110_v18 = vld [vmem:[%s3670_s1 + $0x2a8] sm:$0xff]  ;;  %v2401_v19 = vcombine.low %v97_v7, %v101_v8 }
  0x17   :  { %1611 = vmatprep.subr.bf16.mxu0 %v2370_v44  ;;  %1717 = vmatprep.subr.bf16.mxu1 %v2372_v45  ;;  %v109_v16 = vld [vmem:[%s3670_s1 + $0x2a0] sm:$0xff]  ;;  %v2412_v22 = vcombine.high %v106_v17, %v110_v18  ;;  %v114_v25 = vld [vmem:[%s3670_s1 + $0x2c8] sm:$0xff]  ;;  %v2411_v28 = vcombine.low %v106_v17, %v110_v18 }
  0x18   :  { %v2410_v21 = vcombine.high %v105_v15, %v109_v16  ;;  %v113_v23 = vld [vmem:[%s3670_s1 + $0x2c0] sm:$0xff]  ;;  %v118_v26 = vld [vmem:[%s3670_s1 + $0x2e8] sm:$0xff]  ;;  %v2409_v27 = vcombine.low %v105_v15, %v109_v16 }
  0x19   :  { %v117_v24 = vld [vmem:[%s3670_s1 + $0x2e0] sm:$0xff]  ;;  %v2420_v30 = vcombine.high %v114_v25, %v118_v26  ;;  %v122_v33 = vld [vmem:[%s3670_s1 + $0x308] sm:$0xff]  ;;  %v2419_v36 = vcombine.low %v114_v25, %v118_v26 }
  0x1a   :  { %1612 = vmatpush1.bf16.msra.mxu0 %v2369_v50  ;;  %1718 = vmatpush1.bf16.msra.mxu1 %v2371_v51  ;;  %v2418_v29 = vcombine.high %v113_v23, %v117_v24  ;;  %v121_v31 = vld [vmem:[%s3670_s1 + $0x300] sm:$0xff]  ;;  %v126_v34 = vld [vmem:[%s3670_s1 + $0x328] sm:$0xff]  ;;  %v2417_v35 = vcombine.low %v113_v23, %v117_v24 }
  0x1b   :  { %1613 = vmatprep.subr.bf16.mxu0 %v2378_v52  ;;  %1719 = vmatprep.subr.bf16.mxu1 %v2380_v53  ;;  %v125_v32 = vld [vmem:[%s3670_s1 + $0x320] sm:$0xff]  ;;  %v2428_v38 = vcombine.high %v122_v33, %v126_v34  ;;  %v130_v41 = vld [vmem:[%s3670_s1 + $0x348] sm:$0xff]  ;;  %v2427_v44 = vcombine.low %v122_v33, %v126_v34 }
  0x1c   :  { %v2426_v37 = vcombine.high %v121_v31, %v125_v32  ;;  %v129_v39 = vld [vmem:[%s3670_s1 + $0x340] sm:$0xff]  ;;  %v134_v42 = vld [vmem:[%s3670_s1 + $0x368] sm:$0xff]  ;;  %v2425_v43 = vcombine.low %v121_v31, %v125_v32 }
  0x1d   :  { %v133_v40 = vld [vmem:[%s3670_s1 + $0x360] sm:$0xff]  ;;  %v2436_v46 = vcombine.high %v130_v41, %v134_v42  ;;  %v138_v49 = vld [vmem:[%s3670_s1 + $0x388] sm:$0xff]  ;;  %v2435_v52 = vcombine.low %v130_v41, %v134_v42 }
  0x1e   :  { %1614 = vmatpush1.bf16.msra.mxu0 %v2377_v59  ;;  %1720 = vmatpush1.bf16.msra.mxu1 %v2379_v60  ;;  %v2434_v45 = vcombine.high %v129_v39, %v133_v40  ;;  %v137_v47 = vld [vmem:[%s3670_s1 + $0x380] sm:$0xff]  ;;  %v142_v50 = vld [vmem:[%s3670_s1 + $0x3a8] sm:$0xff]  ;;  %v2433_v51 = vcombine.low %v129_v39, %v133_v40 }
  0x1f   :  { %1615 = vmatprep.subr.bf16.mxu0 %v2386_v61  ;;  %1721 = vmatprep.subr.bf16.mxu1 %v2388_v62  ;;  %v141_v48 = vld [vmem:[%s3670_s1 + $0x3a0] sm:$0xff]  ;;  %v2444_v54 = vcombine.high %v138_v49, %v142_v50  ;;  %v146_v58 = vld [vmem:[%s3670_s1 + $0x3c8] sm:$0xff]  ;;  %v2443_v61 = vcombine.low %v138_v49, %v142_v50 }
  0x20   :  { %v2442_v53 = vcombine.high %v137_v47, %v141_v48  ;;  %v145_v55 = vld [vmem:[%s3670_s1 + $0x3c0] sm:$0xff]  ;;  %v150_v59 = vld [vmem:[%s3670_s1 + $0x3e8] sm:$0xff]  ;;  %v2441_v60 = vcombine.low %v137_v47, %v141_v48 }
  0x21   :  { %v149_v57 = vld [vmem:[%s3670_s1 + $0x3e0] sm:$0xff]  ;;  %v2452_v63 = vcombine.high %v146_v58, %v150_v59  ;;  %v154_v2 = vld [vmem:[%s3670_s1 + $0x408] sm:$0xff] }
  0x22   :  { %1616 = vmatpush1.bf16.msra.mxu0 %v2385_v3  ;;  %1722 = vmatpush1.bf16.msra.mxu1 %v2387_v4  ;;  %v2450_v62 = vcombine.high %v145_v55, %v149_v57  ;;  %v153_v0 = vld [vmem:[%s3670_s1 + $0x400] sm:$0xff]  ;;  %v158_v3 = vld [vmem:[%s3670_s1 + $0x428] sm:$0xff]  ;;  %v2449_v4 = vcombine.low %v145_v55, %v149_v57 }
  0x23   :  { %1617 = vmatprep.subr.bf16.mxu0 %v2394_v5  ;;  %1723 = vmatprep.subr.bf16.mxu1 %v2396_v6  ;;  %v157_v1 = vld [vmem:[%s3670_s1 + $0x420] sm:$0xff]  ;;  %v2451_v5 = vcombine.low %v146_v58, %v150_v59  ;;  %v2460_v7 = vcombine.high %v154_v2, %v158_v3  ;;  %v190_v39 = vld [vmem:[%s3670_s1 + $0x528] sm:$0xff] }
  0x24   :  { %v2458_v6 = vcombine.high %v153_v0, %v157_v1  ;;  %v161_v8 = vld [vmem:[%s3670_s1 + $0x440] sm:$0xff]  ;;  %v198_v47 = vld [vmem:[%s3670_s1 + $0x568] sm:$0xff] }
  0x25   :  { %v165_v9 = vld [vmem:[%s3670_s1 + $0x460] sm:$0xff]  ;;  %v206_v55 = vld [vmem:[%s3670_s1 + $0x5a8] sm:$0xff] }
  0x26   :  { %1618 = vmatpush1.bf16.msra.mxu0 %v2393_v11  ;;  %1724 = vmatpush1.bf16.msra.mxu1 %v2395_v12  ;;  %v2906_v10 = vld [vmem:[%s3671_s0] ss:$16 sps:$4 sm:$0xff]   ;;  %v162_v11 = vld [vmem:[%s3670_s1 + $0x448] sm:$0xff]  ;;  %v2466_v15 = vcombine.high %v161_v8, %v165_v9 }
  0x27   :  { %1619 = vmatprep.subr.bf16.mxu0 %v2402_v13  ;;  %1725 = vmatprep.subr.bf16.mxu1 %v2404_v14  ;;  %v166_v12 = vld [vmem:[%s3670_s1 + $0x468] sm:$0xff]  ;;  %v2457_v13 = vcombine.low %v153_v0, %v157_v1  ;;  %v2459_v14 = vcombine.low %v154_v2, %v158_v3  ;;  %v169_v17 = vld [vmem:[%s3670_s1 + $0x480] sm:$0xff] }
  0x28   :  { %v2468_v16 = vcombine.high %v162_v11, %v166_v12  ;;  %v173_v18 = vld [vmem:[%s3670_s1 + $0x4a0] sm:$0xff]  ;;  %v2467_v23 = vcombine.low %v162_v11, %v166_v12  ;;  %v214_v0 = vld [vmem:[%s3670_s1 + $0x5e8] sm:$0xff] }
  0x29   :  { %v2474_v24 = vcombine.high %v169_v17, %v173_v18  ;;  %v177_v26 = vld [vmem:[%s3670_s1 + $0x4c0] sm:$0xff]  ;;  %v2473_v31 = vcombine.low %v169_v17, %v173_v18  ;;  %v230_v17 = vld [vmem:[%s3670_s1 + $0x668] sm:$0xff] }
  0x2a   :  { %1620 = vmatpush1.bf16.msra.mxu0 %v2401_v19  ;;  %1726 = vmatpush1.bf16.msra.mxu1 %v2403_v20  ;;  %v2923_v19 = vld [vmem:[%s3671_s0 + $0x24] ss:$16 sps:$4 sm:$0xff]   ;;  %v170_v20 = vld [vmem:[%s3670_s1 + $0x488] sm:$0xff] }
  0x2b   :  { %1621 = vmatprep.subr.bf16.mxu0 %v2410_v21  ;;  %1727 = vmatprep.subr.bf16.mxu1 %v2412_v22  ;;  %v174_v21 = vld [vmem:[%s3670_s1 + $0x4a8] sm:$0xff]  ;;  %v2465_v22 = vcombine.low %v161_v8, %v165_v9 }
  0x2c   :  { %v2476_v25 = vcombine.high %v170_v20, %v174_v21  ;;  %v2475_v32 = vcombine.low %v170_v20, %v174_v21  ;;  %v222_v8 = vld [vmem:[%s3670_s1 + $0x628] sm:$0xff] }
  0x2e   :  { %1622 = vmatpush1.bf16.msra.mxu0 %v2409_v27  ;;  %1728 = vmatpush1.bf16.msra.mxu1 %v2411_v28  ;;  %v181_v27 = vld [vmem:[%s3670_s1 + $0x4e0] sm:$0xff]  ;;  %v178_v28 = vld [vmem:[%s3670_s1 + $0x4c8] sm:$0xff] }
  0x2f   :  { %1623 = vmatprep.subr.bf16.mxu0 %v2418_v29  ;;  %1729 = vmatprep.subr.bf16.mxu1 %v2420_v30  ;;  %v182_v29 = vld [vmem:[%s3670_s1 + $0x4e8] sm:$0xff]  ;;  %v2950_v30 = vld [vmem:[%s3671_s0 + $0x20] ss:$16 sps:$4 sm:$0xff]   ;;  %v2482_v33 = vcombine.high %v177_v26, %v181_v27  ;;  %v2481_v40 = vcombine.low %v177_v26, %v181_v27 }
  0x30   :  { %v2484_v34 = vcombine.high %v178_v28, %v182_v29  ;;  %v2483_v41 = vcombine.low %v178_v28, %v182_v29  ;;  %v238_v26 = vld [vmem:[%s3670_s1 + $0x6a8] sm:$0xff] }
  0x32   :  { %1624 = vmatpush1.bf16.msra.mxu0 %v2417_v35  ;;  %1730 = vmatpush1.bf16.msra.mxu1 %v2419_v36  ;;  %v185_v35 = vld [vmem:[%s3670_s1 + $0x500] sm:$0xff] }
  0x33   :  { %1625 = vmatprep.subr.bf16.mxu0 %v2426_v37  ;;  %1731 = vmatprep.subr.bf16.mxu1 %v2428_v38  ;;  %v189_v36 = vld [vmem:[%s3670_s1 + $0x520] sm:$0xff]  ;;  %v2961_v37 = vld [vmem:[%s3671_s0 + $0xc] ss:$16 sps:$4 sm:$0xff]  }
  0x34   :  { %v186_v38 = vld [vmem:[%s3670_s1 + $0x508] sm:$0xff]  ;;  %v2490_v42 = vcombine.high %v185_v35, %v189_v36  ;;  %v2489_v48 = vcombine.low %v185_v35, %v189_v36 }
  0x35   :  { %v2491_v49 = vcombine.low %v186_v38, %v190_v39  ;;  %v246_v35 = vld [vmem:[%s3670_s1 + $0x6e8] sm:$0xff] }
  0x36   :  { %1626 = vmatpush1.bf16.msra.mxu0 %v2425_v43  ;;  %1732 = vmatpush1.bf16.msra.mxu1 %v2427_v44  ;;  %v2492_v43 = vcombine.high %v186_v38, %v190_v39  ;;  %v193_v44 = vld [vmem:[%s3670_s1 + $0x540] sm:$0xff] }
  0x37   :  { %1627 = vmatprep.subr.bf16.mxu0 %v2434_v45  ;;  %1733 = vmatprep.subr.bf16.mxu1 %v2436_v46  ;;  %v197_v45 = vld [vmem:[%s3670_s1 + $0x560] sm:$0xff]  ;;  %v194_v46 = vld [vmem:[%s3670_s1 + $0x548] sm:$0xff] }
  0x38   :  { %v2498_v50 = vcombine.high %v193_v44, %v197_v45  ;;  %v2497_v57 = vcombine.low %v193_v44, %v197_v45  ;;  %v2499_v58 = vcombine.low %v194_v46, %v198_v47  ;;  %v254_v44 = vld [vmem:[%s3670_s1 + $0x728] sm:$0xff] }
  0x3a   :  { %1628 = vmatpush1.bf16.msra.mxu0 %v2433_v51  ;;  %1734 = vmatpush1.bf16.msra.mxu1 %v2435_v52  ;;  %v2500_v51 = vcombine.high %v194_v46, %v198_v47  ;;  %v201_v52 = vld [vmem:[%s3670_s1 + $0x580] sm:$0xff] }
  0x3b   :  { %1629 = vmatprep.subr.bf16.mxu0 %v2442_v53  ;;  %1735 = vmatprep.subr.bf16.mxu1 %v2444_v54  ;;  %v205_v53 = vld [vmem:[%s3670_s1 + $0x5a0] sm:$0xff]  ;;  %v202_v54 = vld [vmem:[%s3670_s1 + $0x588] sm:$0xff] }
  0x3c   :  { %v2506_v59 = vcombine.high %v201_v52, %v205_v53  ;;  %v2505_v1 = vcombine.low %v201_v52, %v205_v53  ;;  %v2507_v2 = vcombine.low %v202_v54, %v206_v55  ;;  %v262_v52 = vld [vmem:[%s3670_s1 + $0x768] sm:$0xff] }
  0x3e   :  { %1630 = vmatpush1.bf16.msra.mxu0 %v2441_v60  ;;  %1736 = vmatpush1.bf16.msra.mxu1 %v2443_v61  ;;  %v2508_v60 = vcombine.high %v202_v54, %v206_v55  ;;  %v209_v61 = vld [vmem:[%s3670_s1 + $0x5c0] sm:$0xff] }
  0x3f   :  { %1631 = vmatprep.subr.bf16.mxu0 %v2450_v62  ;;  %1737 = vmatprep.subr.bf16.mxu1 %v2452_v63  ;;  %v213_v62 = vld [vmem:[%s3670_s1 + $0x5e0] sm:$0xff]  ;;  %v210_v63 = vld [vmem:[%s3670_s1 + $0x5c8] sm:$0xff] }
  0x40   :  { %v2514_v3 = vcombine.high %v209_v61, %v213_v62  ;;  %v2513_v9 = vcombine.low %v209_v61, %v213_v62  ;;  %v2515_v11 = vcombine.low %v210_v63, %v214_v0  ;;  %v270_v61 = vld [vmem:[%s3670_s1 + $0x7a8] sm:$0xff] }
  0x42   :  { %1632 = vmatpush1.bf16.msra.mxu0 %v2449_v4  ;;  %1738 = vmatpush1.bf16.msra.mxu1 %v2451_v5  ;;  %v2516_v4 = vcombine.high %v210_v63, %v214_v0  ;;  %v217_v5 = vld [vmem:[%s3670_s1 + $0x600] sm:$0xff] }
  0x43   :  { %1654 = vmatprep.subr.bf16.mxu0 %v2458_v6  ;;  %1760 = vmatprep.subr.bf16.mxu1 %v2460_v7  ;;  %v221_v6 = vld [vmem:[%s3670_s1 + $0x620] sm:$0xff]  ;;  %v218_v7 = vld [vmem:[%s3670_s1 + $0x608] sm:$0xff] }
  0x44   :  { %v2522_v12 = vcombine.high %v217_v5, %v221_v6  ;;  %v2521_v18 = vcombine.low %v217_v5, %v221_v6  ;;  %v2523_v20 = vcombine.low %v218_v7, %v222_v8  ;;  %v278_v5 = vld [vmem:[%s3670_s1 + $0x7e8] sm:$0xff] }
  0x45   :  { %1634 = vmatmul.mubr.bf16.vlgmr.msra.gmra.mrb[0].mxu0 %v2906_v10  ;;  %1740 = vmatmul.mubr.bf16.vlgmr.msra.gmra.mrb[0].mxu1 %v2906_v10 }
  0x46   :  { %1655 = vmatpush1.bf16.msra.mxu0 %v2457_v13  ;;  %1761 = vmatpush1.bf16.msra.mxu1 %v2459_v14  ;;  %v2524_v13 = vcombine.high %v218_v7, %v222_v8  ;;  %v225_v14 = vld [vmem:[%s3670_s1 + $0x640] sm:$0xff] }
  0x47   :  { %1656 = vmatprep.subr.bf16.mxu0 %v2466_v15  ;;  %1762 = vmatprep.subr.bf16.mxu1 %v2468_v16  ;;  %v229_v15 = vld [vmem:[%s3670_s1 + $0x660] sm:$0xff]  ;;  %v226_v16 = vld [vmem:[%s3670_s1 + $0x648] sm:$0xff] }
  0x48   :  { %1643 = vmatprep.mubr.bf16.mxu0 %v2923_v19  ;;  %1749 = vmatprep.mubr.bf16.mxu1 %v2923_v19  ;;  %v2530_v21 = vcombine.high %v225_v14, %v229_v15  ;;  %v2529_v27 = vcombine.low %v225_v14, %v229_v15  ;;  %v2531_v28 = vcombine.low %v226_v16, %v230_v17  ;;  %v32_v14 = vld [vmem:[%s3670_s1 + $0x38] sm:$0xff] }
  0x4a   :  { %1657 = vmatpush1.bf16.msra.mxu0 %v2465_v22  ;;  %1763 = vmatpush1.bf16.msra.mxu1 %v2467_v23  ;;  %v2532_v22 = vcombine.high %v226_v16, %v230_v17  ;;  %v233_v23 = vld [vmem:[%s3670_s1 + $0x680] sm:$0xff] }
  0x4b   :  { %1658 = vmatprep.subr.bf16.mxu0 %v2474_v24  ;;  %1764 = vmatprep.subr.bf16.mxu1 %v2476_v25  ;;  %v237_v24 = vld [vmem:[%s3670_s1 + $0x6a0] sm:$0xff]  ;;  %v234_v25 = vld [vmem:[%s3670_s1 + $0x688] sm:$0xff] }
  0x4c   :  { %v2538_v29 = vcombine.high %v233_v23, %v237_v24  ;;  %v2537_v36 = vcombine.low %v233_v23, %v237_v24  ;;  %v2539_v38 = vcombine.low %v234_v25, %v238_v26  ;;  %v36_v23 = vld [vmem:[%s3670_s1 + $0x58] sm:$0xff] }
  0x4d   :  { %1644 = vmatmul.mubr.bf16.gmra.mrb[4].mxu0 %v2950_v30  ;;  %1750 = vmatmul.mubr.bf16.gmra.mrb[4].mxu1 %v2950_v30  ;;  %v40_v24 = vld [vmem:[%s3670_s1 + $0x78] sm:$0xff] }
  0x4e   :  { %1659 = vmatpush1.bf16.msra.mxu0 %v2473_v31  ;;  %1765 = vmatpush1.bf16.msra.mxu1 %v2475_v32  ;;  %v2540_v31 = vcombine.high %v234_v25, %v238_v26  ;;  %v241_v32 = vld [vmem:[%s3670_s1 + $0x6c0] sm:$0xff] }
  0x4f   :  { %1660 = vmatprep.subr.bf16.mxu0 %v2482_v33  ;;  %1766 = vmatprep.subr.bf16.mxu1 %v2484_v34  ;;  %v245_v33 = vld [vmem:[%s3670_s1 + $0x6e0] sm:$0xff]  ;;  %v242_v34 = vld [vmem:[%s3670_s1 + $0x6c8] sm:$0xff] }
  0x50   :  { %1686 = vmatprep.mubr.bf16.mxu0 %v2961_v37  ;;  %1792 = vmatprep.mubr.bf16.mxu1 %v2961_v37  ;;  %v2546_v39 = vcombine.high %v241_v32, %v245_v33  ;;  %v2545_v45 = vcombine.low %v241_v32, %v245_v33  ;;  %v2547_v46 = vcombine.low %v242_v34, %v246_v35  ;;  %v47_v32 = vld [vmem:[%s3670_s1 + $0xb0] sm:$0xff]  ;;  %v44_v33 = vld [vmem:[%s3670_s1 + $0x98] sm:$0xff] }
  0x52   :  { %1661 = vmatpush1.bf16.msra.mxu0 %v2481_v40  ;;  %1767 = vmatpush1.bf16.msra.mxu1 %v2483_v41  ;;  %v2548_v40 = vcombine.high %v242_v34, %v246_v35  ;;  %v249_v41 = vld [vmem:[%s3670_s1 + $0x700] sm:$0xff]  ;;  %v48_v34 = vld [vmem:[%s3670_s1 + $0xb8] sm:$0xff] }
  0x53   :  { %1662 = vmatprep.subr.bf16.mxu0 %v2490_v42  ;;  %1768 = vmatprep.subr.bf16.mxu1 %v2492_v43  ;;  %v253_v42 = vld [vmem:[%s3670_s1 + $0x720] sm:$0xff]  ;;  %v250_v43 = vld [vmem:[%s3670_s1 + $0x708] sm:$0xff] }
  0x54   :  { %v2554_v47 = vcombine.high %v249_v41, %v253_v42  ;;  %v2553_v53 = vcombine.low %v249_v41, %v253_v42  ;;  %v2555_v54 = vcombine.low %v250_v43, %v254_v44  ;;  %v55_v41 = vld [vmem:[%s3670_s1 + $0xf0] sm:$0xff]  ;;  %v3164_v42 = vld [vmem:[%s3671_s0 + $0x28] ss:$16 sps:$4 sm:$0xff]  }
  0x56   :  { %1663 = vmatpush1.bf16.msra.mxu0 %v2489_v48  ;;  %1769 = vmatpush1.bf16.msra.mxu1 %v2491_v49  ;;  %v2556_v48 = vcombine.high %v250_v43, %v254_v44  ;;  %v257_v49 = vld [vmem:[%s3670_s1 + $0x740] sm:$0xff]  ;;  %v52_v43 = vld [vmem:[%s3670_s1 + $0xd8] sm:$0xff] }
  0x57   :  { %1664 = vmatprep.subr.bf16.mxu0 %v2498_v50  ;;  %1770 = vmatprep.subr.bf16.mxu1 %v2500_v51  ;;  %v261_v50 = vld [vmem:[%s3670_s1 + $0x760] sm:$0xff]  ;;  %v258_v51 = vld [vmem:[%s3670_s1 + $0x748] sm:$0xff]  ;;  %v56_v44 = vld [vmem:[%s3670_s1 + $0xf8] sm:$0xff] }
  0x58   :  { %v2562_v55 = vcombine.high %v257_v49, %v261_v50  ;;  %v2561_v62 = vcombine.low %v257_v49, %v261_v50  ;;  %v2563_v63 = vcombine.low %v258_v51, %v262_v52  ;;  %v59_v49 = vld [vmem:[%s3670_s1 + $0x110] sm:$0xff] }
  0x59   :  { %v63_v50 = vld [vmem:[%s3670_s1 + $0x130] sm:$0xff] }
  0x5a   :  { %1665 = vmatpush1.bf16.msra.mxu0 %v2497_v57  ;;  %1771 = vmatpush1.bf16.msra.mxu1 %v2499_v58  ;;  %v2564_v57 = vcombine.high %v258_v51, %v262_v52  ;;  %v265_v58 = vld [vmem:[%s3670_s1 + $0x780] sm:$0xff]  ;;  %v60_v51 = vld [vmem:[%s3670_s1 + $0x118] sm:$0xff] }
  0x5b   :  { %1666 = vmatprep.subr.bf16.mxu0 %v2506_v59  ;;  %1772 = vmatprep.subr.bf16.mxu1 %v2508_v60  ;;  %v269_v59 = vld [vmem:[%s3670_s1 + $0x7a0] sm:$0xff]  ;;  %v266_v60 = vld [vmem:[%s3670_s1 + $0x788] sm:$0xff]  ;;  %v64_v52 = vld [vmem:[%s3670_s1 + $0x138] sm:$0xff] }
  0x5c   :  { %v2570_v0 = vcombine.high %v265_v58, %v269_v59  ;;  %v2569_v6 = vcombine.low %v265_v58, %v269_v59  ;;  %v2571_v7 = vcombine.low %v266_v60, %v270_v61  ;;  %v67_v58 = vld [vmem:[%s3670_s1 + $0x150] sm:$0xff] }
  0x5d   :  { %v71_v59 = vld [vmem:[%s3670_s1 + $0x170] sm:$0xff] }
  0x5e   :  { %1667 = vmatpush1.bf16.msra.mxu0 %v2505_v1  ;;  %1773 = vmatpush1.bf16.msra.mxu1 %v2507_v2  ;;  %v2572_v1 = vcombine.high %v266_v60, %v270_v61  ;;  %v273_v2 = vld [vmem:[%s3670_s1 + $0x7c0] sm:$0xff]  ;;  %v68_v60 = vld [vmem:[%s3670_s1 + $0x158] sm:$0xff] }
  0x5f   :  { %1668 = vmatprep.subr.bf16.mxu0 %v2514_v3  ;;  %1774 = vmatprep.subr.bf16.mxu1 %v2516_v4  ;;  %v277_v3 = vld [vmem:[%s3670_s1 + $0x7e0] sm:$0xff]  ;;  %v274_v4 = vld [vmem:[%s3670_s1 + $0x7c8] sm:$0xff]  ;;  %v72_v61 = vld [vmem:[%s3670_s1 + $0x178] sm:$0xff] }
  0x60   :  { %v2578_v8 = vcombine.high %v273_v2, %v277_v3  ;;  %v2577_v15 = vcombine.low %v273_v2, %v277_v3  ;;  %v2579_v16 = vcombine.low %v274_v4, %v278_v5  ;;  %v75_v2 = vld [vmem:[%s3670_s1 + $0x190] sm:$0xff] }
  0x61   :  { %v79_v3 = vld [vmem:[%s3670_s1 + $0x1b0] sm:$0xff] }
  0x62   :  { %1669 = vmatpush1.bf16.msra.mxu0 %v2513_v9  ;;  %1775 = vmatpush1.bf16.msra.mxu1 %v2515_v11  ;;  %v2580_v9 = vcombine.high %v274_v4, %v278_v5  ;;  %v27_v11 = vld [vmem:[%s3670_s1 + $0x10] sm:$0xff]  ;;  %v80_v4 = vld [vmem:[%s3670_s1 + $0x1b8] sm:$0xff]  ;;  %v2373_v5 = vcombine.low %v67_v58, %v71_v59 }
  0x63   :  { %1670 = vmatprep.subr.bf16.mxu0 %v2522_v12  ;;  %1776 = vmatprep.subr.bf16.mxu1 %v2524_v13  ;;  %v31_v12 = vld [vmem:[%s3670_s1 + $0x30] sm:$0xff]  ;;  %v28_v13 = vld [vmem:[%s3670_s1 + $0x18] sm:$0xff] }
  0x64   :  { %v2334_v17 = vcombine.high %v27_v11, %v31_v12  ;;  %v2333_v25 = vcombine.low %v27_v11, %v31_v12  ;;  %v2335_v26 = vcombine.low %v28_v13, %v32_v14  ;;  %v87_v11 = vld [vmem:[%s3670_s1 + $0x1f0] sm:$0xff]  ;;  %v84_v12 = vld [vmem:[%s3670_s1 + $0x1d8] sm:$0xff] }
  0x66   :  { %1671 = vmatpush1.bf16.msra.mxu0 %v2521_v18  ;;  %1777 = vmatpush1.bf16.msra.mxu1 %v2523_v20  ;;  %v2336_v18 = vcombine.high %v28_v13, %v32_v14  ;;  %v35_v20 = vld [vmem:[%s3670_s1 + $0x50] sm:$0xff]  ;;  %v88_v13 = vld [vmem:[%s3670_s1 + $0x1f8] sm:$0xff]  ;;  %v2381_v14 = vcombine.low %v75_v2, %v79_v3 }
  0x67   :  { %1672 = vmatprep.subr.bf16.mxu0 %v2530_v21  ;;  %1778 = vmatprep.subr.bf16.mxu1 %v2532_v22  ;;  %v39_v21 = vld [vmem:[%s3670_s1 + $0x70] sm:$0xff]  ;;  %v3126_v22 = vld [vmem:[%s3671_s0 + $0x8] ss:$16 sps:$4 sm:$0xff]  }
  0x68   :  { %v2341_v35 = vcombine.low %v35_v20, %v39_v21 }
  0x6a   :  { %1673 = vmatpush1.bf16.msra.mxu0 %v2529_v27  ;;  %1779 = vmatpush1.bf16.msra.mxu1 %v2531_v28  ;;  %v2342_v27 = vcombine.high %v35_v20, %v39_v21  ;;  %v2344_v28 = vcombine.high %v36_v23, %v40_v24  ;;  %v95_v20 = vld [vmem:[%s3670_s1 + $0x230] sm:$0xff]  ;;  %v92_v21 = vld [vmem:[%s3670_s1 + $0x218] sm:$0xff] }
  0x6b   :  { %1674 = vmatprep.subr.bf16.mxu0 %v2538_v29  ;;  %1780 = vmatprep.subr.bf16.mxu1 %v2540_v31  ;;  %v3137_v29 = vld [vmem:[%s3671_s0 + $0x2c] ss:$16 sps:$4 sm:$0xff]   ;;  %v43_v31 = vld [vmem:[%s3670_s1 + $0x90] sm:$0xff] }
  0x6e   :  { %1675 = vmatpush1.bf16.msra.mxu0 %v2537_v36  ;;  %1781 = vmatpush1.bf16.msra.mxu1 %v2539_v38  ;;  %v2343_v36 = vcombine.low %v36_v23, %v40_v24  ;;  %v2350_v38 = vcombine.high %v43_v31, %v47_v32  ;;  %v96_v23 = vld [vmem:[%s3670_s1 + $0x238] sm:$0xff] }
  0x6f   :  { %1676 = vmatprep.subr.bf16.mxu0 %v2546_v39  ;;  %1782 = vmatprep.subr.bf16.mxu1 %v2548_v40  ;;  %v2352_v39 = vcombine.high %v44_v33, %v48_v34  ;;  %v51_v40 = vld [vmem:[%s3670_s1 + $0xd0] sm:$0xff] }
  0x72   :  { %1677 = vmatpush1.bf16.msra.mxu0 %v2545_v45  ;;  %1783 = vmatpush1.bf16.msra.mxu1 %v2547_v46  ;;  %v2349_v45 = vcombine.low %v43_v31, %v47_v32  ;;  %v2351_v46 = vcombine.low %v44_v33, %v48_v34  ;;  %v103_v31 = vld [vmem:[%s3670_s1 + $0x270] sm:$0xff]  ;;  %v100_v32 = vld [vmem:[%s3670_s1 + $0x258] sm:$0xff] }
  0x73   :  { %1678 = vmatprep.subr.bf16.mxu0 %v2554_v47  ;;  %1784 = vmatprep.subr.bf16.mxu1 %v2556_v48  ;;  %v2358_v47 = vcombine.high %v51_v40, %v55_v41  ;;  %v2360_v48 = vcombine.high %v52_v43, %v56_v44  ;;  %v104_v33 = vld [vmem:[%s3670_s1 + $0x278] sm:$0xff] }
  0x76   :  { %1679 = vmatpush1.bf16.msra.mxu0 %v2553_v53  ;;  %1785 = vmatpush1.bf16.msra.mxu1 %v2555_v54  ;;  %v2357_v53 = vcombine.low %v51_v40, %v55_v41  ;;  %v2359_v54 = vcombine.low %v52_v43, %v56_v44  ;;  %v111_v40 = vld [vmem:[%s3670_s1 + $0x2b0] sm:$0xff]  ;;  %v108_v41 = vld [vmem:[%s3670_s1 + $0x298] sm:$0xff] }
  0x77   :  { %1680 = vmatprep.subr.bf16.mxu0 %v2562_v55  ;;  %1786 = vmatprep.subr.bf16.mxu1 %v2564_v57  ;;  %v2366_v55 = vcombine.high %v59_v49, %v63_v50  ;;  %v2368_v57 = vcombine.high %v60_v51, %v64_v52  ;;  %v112_v43 = vld [vmem:[%s3670_s1 + $0x2b8] sm:$0xff] }
  0x7a   :  { %1681 = vmatpush1.bf16.msra.mxu0 %v2561_v62  ;;  %1787 = vmatpush1.bf16.msra.mxu1 %v2563_v63  ;;  %v2365_v62 = vcombine.low %v59_v49, %v63_v50  ;;  %v2367_v63 = vcombine.low %v60_v51, %v64_v52  ;;  %v119_v49 = vld [vmem:[%s3670_s1 + $0x2f0] sm:$0xff]  ;;  %v116_v50 = vld [vmem:[%s3670_s1 + $0x2d8] sm:$0xff] }
  0x7b   :  { %1682 = vmatprep.subr.bf16.mxu0 %v2570_v0  ;;  %1788 = vmatprep.subr.bf16.mxu1 %v2572_v1  ;;  %v2374_v0 = vcombine.high %v67_v58, %v71_v59  ;;  %v2376_v1 = vcombine.high %v68_v60, %v72_v61  ;;  %v120_v51 = vld [vmem:[%s3670_s1 + $0x2f8] sm:$0xff]  ;;  %v127_v58 = vld [vmem:[%s3670_s1 + $0x330] sm:$0xff] }
  0x7c   :  { %v124_v59 = vld [vmem:[%s3670_s1 + $0x318] sm:$0xff] }
  0x7e   :  { %1683 = vmatpush1.bf16.msra.mxu0 %v2569_v6  ;;  %1789 = vmatpush1.bf16.msra.mxu1 %v2571_v7  ;;  %v2375_v6 = vcombine.low %v68_v60, %v72_v61  ;;  %v2382_v7 = vcombine.high %v75_v2, %v79_v3  ;;  %v128_v60 = vld [vmem:[%s3670_s1 + $0x338] sm:$0xff]  ;;  %v135_v2 = vld [vmem:[%s3670_s1 + $0x370] sm:$0xff] }
  0x7f   :  { %1684 = vmatprep.subr.bf16.mxu0 %v2578_v8  ;;  %1790 = vmatprep.subr.bf16.mxu1 %v2580_v9  ;;  %v83_v9 = vld [vmem:[%s3670_s1 + $0x1d0] sm:$0xff]  ;;  %v132_v3 = vld [vmem:[%s3670_s1 + $0x358] sm:$0xff] }
  0x80   :  { %v2389_v24 = vcombine.low %v83_v9, %v87_v11 }
  0x82   :  { %1685 = vmatpush1.bf16.msra.mxu0 %v2577_v15  ;;  %1791 = vmatpush1.bf16.msra.mxu1 %v2579_v16  ;;  %v2390_v16 = vcombine.high %v83_v9, %v87_v11  ;;  %v143_v9 = vld [vmem:[%s3670_s1 + $0x3b0] sm:$0xff]  ;;  %v140_v11 = vld [vmem:[%s3670_s1 + $0x398] sm:$0xff] }
  0x83   :  { %1813 = vmatprep.subr.bf16.mxu0 %v2334_v17  ;;  %1919 = vmatprep.subr.bf16.mxu1 %v2336_v18  ;;  %v2392_v17 = vcombine.high %v84_v12, %v88_v13  ;;  %v91_v18 = vld [vmem:[%s3670_s1 + $0x210] sm:$0xff] }
  0x84   :  { %v2397_v34 = vcombine.low %v91_v18, %v95_v20 }
  0x85   :  { %1687 = vmatmul.mubr.bf16.vlgmr.msra.gmra.mrb[0].mxu0 %v3126_v22  ;;  %1793 = vmatmul.mubr.bf16.vlgmr.msra.gmra.mrb[0].mxu1 %v3126_v22 }
  0x86   :  { %1814 = vmatpush1.bf16.msra.mxu0 %v2333_v25  ;;  %1920 = vmatpush1.bf16.msra.mxu1 %v2335_v26  ;;  %v2391_v25 = vcombine.low %v84_v12, %v88_v13  ;;  %v2398_v26 = vcombine.high %v91_v18, %v95_v20  ;;  %v144_v12 = vld [vmem:[%s3670_s1 + $0x3b8] sm:$0xff]  ;;  %v151_v18 = vld [vmem:[%s3670_s1 + $0x3f0] sm:$0xff] }
  0x87   :  { %1815 = vmatprep.subr.bf16.mxu0 %v2342_v27  ;;  %1921 = vmatprep.subr.bf16.mxu1 %v2344_v28  ;;  %v2400_v27 = vcombine.high %v92_v21, %v96_v23  ;;  %v99_v28 = vld [vmem:[%s3670_s1 + $0x250] sm:$0xff]  ;;  %v148_v20 = vld [vmem:[%s3670_s1 + $0x3d8] sm:$0xff] }
  0x88   :  { %1696 = vmatprep.mubr.bf16.mxu0 %v3137_v29  ;;  %1802 = vmatprep.mubr.bf16.mxu1 %v3137_v29  ;;  %v2405_v44 = vcombine.low %v99_v28, %v103_v31 }
  0x8a   :  { %1816 = vmatpush1.bf16.msra.mxu0 %v2341_v35  ;;  %1922 = vmatpush1.bf16.msra.mxu1 %v2343_v36  ;;  %v2399_v35 = vcombine.low %v92_v21, %v96_v23  ;;  %v2406_v36 = vcombine.high %v99_v28, %v103_v31  ;;  %v152_v21 = vld [vmem:[%s3670_s1 + $0x3f8] sm:$0xff]  ;;  %v159_v28 = vld [vmem:[%s3670_s1 + $0x430] sm:$0xff] }
  0x8b   :  { %1817 = vmatprep.subr.bf16.mxu0 %v2350_v38  ;;  %1923 = vmatprep.subr.bf16.mxu1 %v2352_v39  ;;  %v2408_v38 = vcombine.high %v100_v32, %v104_v33  ;;  %v107_v39 = vld [vmem:[%s3670_s1 + $0x290] sm:$0xff]  ;;  %v156_v31 = vld [vmem:[%s3670_s1 + $0x418] sm:$0xff] }
  0x8c   :  { %v2413_v52 = vcombine.low %v107_v39, %v111_v40 }
  0x8d   :  { %1697 = vmatmul.mubr.bf16.gmra.mrb[4].mxu0 %v3164_v42  ;;  %1803 = vmatmul.mubr.bf16.gmra.mrb[4].mxu1 %v3164_v42 }
  0x8e   :  { %1818 = vmatpush1.bf16.msra.mxu0 %v2349_v45  ;;  %1924 = vmatpush1.bf16.msra.mxu1 %v2351_v46  ;;  %v2407_v45 = vcombine.low %v100_v32, %v104_v33  ;;  %v2414_v46 = vcombine.high %v107_v39, %v111_v40  ;;  %v160_v32 = vld [vmem:[%s3670_s1 + $0x438] sm:$0xff]  ;;  %v167_v39 = vld [vmem:[%s3670_s1 + $0x470] sm:$0xff] }
  0x8f   :  { %1819 = vmatprep.subr.bf16.mxu0 %v2358_v47  ;;  %1925 = vmatprep.subr.bf16.mxu1 %v2360_v48  ;;  %v2416_v47 = vcombine.high %v108_v41, %v112_v43  ;;  %v115_v48 = vld [vmem:[%s3670_s1 + $0x2d0] sm:$0xff]  ;;  %v164_v40 = vld [vmem:[%s3670_s1 + $0x458] sm:$0xff] }
  0x90   :  { %1845 = vmatprep.mubr.bf16.mxu0 %v2779_v56  ;;  %1951 = vmatprep.mubr.bf16.mxu1 %v2779_v56  ;;  %v76_v56 = vld [vmem:[%s3670_s1 + $0x198] sm:$0xff]  ;;  %v2421_v61 = vcombine.low %v115_v48, %v119_v49 }
  0x91   :  { %v2384_v8 = vcombine.high %v76_v56, %v80_v4  ;;  %v2383_v15 = vcombine.low %v76_v56, %v80_v4  ;;  %v136_v56 = vld [vmem:[%s3670_s1 + $0x378] sm:$0xff] }
  0x92   :  { %1820 = vmatpush1.bf16.msra.mxu0 %v2357_v53  ;;  %1926 = vmatpush1.bf16.msra.mxu1 %v2359_v54  ;;  %v2415_v53 = vcombine.low %v108_v41, %v112_v43  ;;  %v2422_v54 = vcombine.high %v115_v48, %v119_v49  ;;  %v168_v41 = vld [vmem:[%s3670_s1 + $0x478] sm:$0xff]  ;;  %v175_v48 = vld [vmem:[%s3670_s1 + $0x4b0] sm:$0xff] }
  0x93   :  { %1821 = vmatprep.subr.bf16.mxu0 %v2366_v55  ;;  %1927 = vmatprep.subr.bf16.mxu1 %v2368_v57  ;;  %v2424_v55 = vcombine.high %v116_v50, %v120_v51  ;;  %v123_v57 = vld [vmem:[%s3670_s1 + $0x310] sm:$0xff]  ;;  %v172_v49 = vld [vmem:[%s3670_s1 + $0x498] sm:$0xff] }
  0x94   :  { %v2429_v4 = vcombine.low %v123_v57, %v127_v58 }
  0x96   :  { %1822 = vmatpush1.bf16.msra.mxu0 %v2365_v62  ;;  %1928 = vmatpush1.bf16.msra.mxu1 %v2367_v63  ;;  %v2423_v62 = vcombine.low %v116_v50, %v120_v51  ;;  %v2430_v63 = vcombine.high %v123_v57, %v127_v58  ;;  %v176_v50 = vld [vmem:[%s3670_s1 + $0x4b8] sm:$0xff]  ;;  %v183_v57 = vld [vmem:[%s3670_s1 + $0x4f0] sm:$0xff] }
  0x97   :  { %1823 = vmatprep.subr.bf16.mxu0 %v2374_v0  ;;  %1929 = vmatprep.subr.bf16.mxu1 %v2376_v1  ;;  %v2432_v0 = vcombine.high %v124_v59, %v128_v60  ;;  %v131_v1 = vld [vmem:[%s3670_s1 + $0x350] sm:$0xff]  ;;  %v184_v58 = vld [vmem:[%s3670_s1 + $0x4f8] sm:$0xff] }
  0x98   :  { %v2437_v13 = vcombine.low %v131_v1, %v135_v2 }
  0x9a   :  { %1824 = vmatpush1.bf16.msra.mxu0 %v2373_v5  ;;  %1930 = vmatpush1.bf16.msra.mxu1 %v2375_v6  ;;  %v2431_v5 = vcombine.low %v124_v59, %v128_v60  ;;  %v2438_v6 = vcombine.high %v131_v1, %v135_v2  ;;  %v2479_v60 = vcombine.low %v172_v49, %v176_v50  ;;  %v192_v1 = vld [vmem:[%s3670_s1 + $0x538] sm:$0xff] }
  0x9b   :  { %1825 = vmatprep.subr.bf16.mxu0 %v2382_v7  ;;  %1931 = vmatprep.subr.bf16.mxu1 %v2384_v8  ;;  %v2440_v7 = vcombine.high %v132_v3, %v136_v56  ;;  %v139_v8 = vld [vmem:[%s3670_s1 + $0x390] sm:$0xff] }
  0x9c   :  { %v2445_v23 = vcombine.low %v139_v8, %v143_v9 }
  0x9e   :  { %1826 = vmatpush1.bf16.msra.mxu0 %v2381_v14  ;;  %1932 = vmatpush1.bf16.msra.mxu1 %v2383_v15  ;;  %v2439_v14 = vcombine.low %v132_v3, %v136_v56  ;;  %v2446_v15 = vcombine.high %v139_v8, %v143_v9 }
  0x9f   :  { %1827 = vmatprep.subr.bf16.mxu0 %v2390_v16  ;;  %1933 = vmatprep.subr.bf16.mxu1 %v2392_v17  ;;  %v2448_v16 = vcombine.high %v140_v11, %v144_v12  ;;  %v147_v17 = vld [vmem:[%s3670_s1 + $0x3d0] sm:$0xff] }
  0xa0   :  { %v2453_v33 = vcombine.low %v147_v17, %v151_v18 }
  0xa2   :  { %1828 = vmatpush1.bf16.msra.mxu0 %v2389_v24  ;;  %1934 = vmatpush1.bf16.msra.mxu1 %v2391_v25  ;;  %v2447_v24 = vcombine.low %v140_v11, %v144_v12  ;;  %v2454_v25 = vcombine.high %v147_v17, %v151_v18 }
  0xa3   :  { %1829 = vmatprep.subr.bf16.mxu0 %v2398_v26  ;;  %1935 = vmatprep.subr.bf16.mxu1 %v2400_v27  ;;  %v2456_v26 = vcombine.high %v148_v20, %v152_v21  ;;  %v155_v27 = vld [vmem:[%s3670_s1 + $0x410] sm:$0xff] }
  0xa4   :  { %v2461_v43 = vcombine.low %v155_v27, %v159_v28 }
  0xa6   :  { %1830 = vmatpush1.bf16.msra.mxu0 %v2397_v34  ;;  %1936 = vmatpush1.bf16.msra.mxu1 %v2399_v35  ;;  %v2455_v34 = vcombine.low %v148_v20, %v152_v21  ;;  %v2462_v35 = vcombine.high %v155_v27, %v159_v28  ;;  %v211_v21 = vld [vmem:[%s3670_s1 + $0x5d0] sm:$0xff] }
  0xa7   :  { %1831 = vmatprep.subr.bf16.mxu0 %v2406_v36  ;;  %1937 = vmatprep.subr.bf16.mxu1 %v2408_v38  ;;  %v2464_v36 = vcombine.high %v156_v31, %v160_v32  ;;  %v163_v38 = vld [vmem:[%s3670_s1 + $0x450] sm:$0xff] }
  0xa8   :  { %v2469_v51 = vcombine.low %v163_v38, %v167_v39 }
  0xaa   :  { %1832 = vmatpush1.bf16.msra.mxu0 %v2405_v44  ;;  %1938 = vmatpush1.bf16.msra.mxu1 %v2407_v45  ;;  %v2463_v44 = vcombine.low %v156_v31, %v160_v32  ;;  %v2470_v45 = vcombine.high %v163_v38, %v167_v39  ;;  %v219_v32 = vld [vmem:[%s3670_s1 + $0x610] sm:$0xff] }
  0xab   :  { %1833 = vmatprep.subr.bf16.mxu0 %v2414_v46  ;;  %1939 = vmatprep.subr.bf16.mxu1 %v2416_v47  ;;  %v2472_v46 = vcombine.high %v164_v40, %v168_v41  ;;  %v171_v47 = vld [vmem:[%s3670_s1 + $0x490] sm:$0xff] }
  0xac   :  { %v2477_v59 = vcombine.low %v171_v47, %v175_v48 }
  0xae   :  { %1834 = vmatpush1.bf16.msra.mxu0 %v2413_v52  ;;  %1940 = vmatpush1.bf16.msra.mxu1 %v2415_v53  ;;  %v2471_v52 = vcombine.low %v164_v40, %v168_v41  ;;  %v2478_v53 = vcombine.high %v171_v47, %v175_v48  ;;  %v227_v41 = vld [vmem:[%s3670_s1 + $0x650] sm:$0xff] }
  0xaf   :  { %1835 = vmatprep.subr.bf16.mxu0 %v2422_v54  ;;  %1941 = vmatprep.subr.bf16.mxu1 %v2424_v55  ;;  %v2480_v54 = vcombine.high %v172_v49, %v176_v50  ;;  %v179_v55 = vld [vmem:[%s3670_s1 + $0x4d0] sm:$0xff] }
  0xb0   :  { %v2485_v2 = vcombine.low %v179_v55, %v183_v57  ;;  %v235_v50 = vld [vmem:[%s3670_s1 + $0x690] sm:$0xff] }
  0xb2   :  { %1836 = vmatpush1.bf16.msra.mxu0 %v2421_v61  ;;  %1942 = vmatpush1.bf16.msra.mxu1 %v2423_v62  ;;  %v2486_v61 = vcombine.high %v179_v55, %v183_v57 }
  0xb3   :  { %1837 = vmatprep.subr.bf16.mxu0 %v2430_v63  ;;  %1943 = vmatprep.subr.bf16.mxu1 %v2432_v0  ;;  %v187_v63 = vld [vmem:[%s3670_s1 + $0x510] sm:$0xff] }
  0xb4   :  { %v191_v0 = vld [vmem:[%s3670_s1 + $0x530] sm:$0xff] }
  0xb5   :  { %v2494_v56 = vcombine.high %v187_v63, %v191_v0  ;;  %v2493_v8 = vcombine.low %v187_v63, %v191_v0 }
  0xb6   :  { %1838 = vmatpush1.bf16.msra.mxu0 %v2429_v4  ;;  %1944 = vmatpush1.bf16.msra.mxu1 %v2431_v5  ;;  %v195_v5 = vld [vmem:[%s3670_s1 + $0x550] sm:$0xff] }
  0xb7   :  { %1839 = vmatprep.subr.bf16.mxu0 %v2438_v6  ;;  %1945 = vmatprep.subr.bf16.mxu1 %v2440_v7  ;;  %v199_v6 = vld [vmem:[%s3670_s1 + $0x570] sm:$0xff]  ;;  %v200_v7 = vld [vmem:[%s3670_s1 + $0x578] sm:$0xff] }
  0xb8   :  { %v2502_v11 = vcombine.high %v195_v5, %v199_v6 }
  0xba   :  { %1840 = vmatpush1.bf16.msra.mxu0 %v2437_v13  ;;  %1946 = vmatpush1.bf16.msra.mxu1 %v2439_v14  ;;  %v203_v13 = vld [vmem:[%s3670_s1 + $0x590] sm:$0xff] }
  0xbb   :  { %1841 = vmatprep.subr.bf16.mxu0 %v2446_v15  ;;  %1947 = vmatprep.subr.bf16.mxu1 %v2448_v16  ;;  %v207_v14 = vld [vmem:[%s3670_s1 + $0x5b0] sm:$0xff]  ;;  %v208_v15 = vld [vmem:[%s3670_s1 + $0x5b8] sm:$0xff]  ;;  %v2501_v16 = vcombine.low %v195_v5, %v199_v6 }
  0xbc   :  { %v2510_v18 = vcombine.high %v203_v13, %v207_v14 }
  0xbe   :  { %1842 = vmatpush1.bf16.msra.mxu0 %v2445_v23  ;;  %1948 = vmatpush1.bf16.msra.mxu1 %v2447_v24  ;;  %v215_v23 = vld [vmem:[%s3670_s1 + $0x5f0] sm:$0xff]  ;;  %v212_v24 = vld [vmem:[%s3670_s1 + $0x5d8] sm:$0xff] }
  0xbf   :  { %1843 = vmatprep.subr.bf16.mxu0 %v2454_v25  ;;  %1949 = vmatprep.subr.bf16.mxu1 %v2456_v26  ;;  %v216_v25 = vld [vmem:[%s3670_s1 + $0x5f8] sm:$0xff]  ;;  %v2509_v26 = vcombine.low %v203_v13, %v207_v14  ;;  %v2518_v28 = vcombine.high %v211_v21, %v215_v23 }
  0xc0   :  { %v2520_v31 = vcombine.high %v212_v24, %v216_v25  ;;  %v2519_v38 = vcombine.low %v212_v24, %v216_v25  ;;  %v275_v25 = vld [vmem:[%s3670_s1 + $0x7d0] sm:$0xff] }
  0xc2   :  { %1844 = vmatpush1.bf16.msra.mxu0 %v2453_v33  ;;  %1950 = vmatpush1.bf16.msra.mxu1 %v2455_v34  ;;  %v223_v33 = vld [vmem:[%s3670_s1 + $0x630] sm:$0xff]  ;;  %v220_v34 = vld [vmem:[%s3670_s1 + $0x618] sm:$0xff] }
  0xc3   :  { %1866 = vmatprep.subr.bf16.mxu0 %v2462_v35  ;;  %1972 = vmatprep.subr.bf16.mxu1 %v2464_v36  ;;  %v224_v35 = vld [vmem:[%s3670_s1 + $0x638] sm:$0xff]  ;;  %v2517_v36 = vcombine.low %v211_v21, %v215_v23  ;;  %v2526_v39 = vcombine.high %v219_v32, %v223_v33 }
  0xc4   :  { %v2528_v40 = vcombine.high %v220_v34, %v224_v35  ;;  %v2527_v47 = vcombine.low %v220_v34, %v224_v35 }
  0xc5   :  { %1846 = vmatmul.mubr.bf16.vlgmr.msra.gmra.mrb[8].mxu0 %v2906_v10  ;;  %1952 = vmatmul.mubr.bf16.vlgmr.msra.gmra.mrb[8].mxu1 %v2906_v10  ;;  %v180_v10 = vld [vmem:[%s3670_s1 + $0x4d8] sm:$0xff] }
  0xc6   :  { %1867 = vmatpush1.bf16.msra.mxu0 %v2461_v43  ;;  %1973 = vmatpush1.bf16.msra.mxu1 %v2463_v44  ;;  %v2488_v62 = vcombine.high %v180_v10, %v184_v58  ;;  %v2487_v3 = vcombine.low %v180_v10, %v184_v58  ;;  %v231_v43 = vld [vmem:[%s3670_s1 + $0x670] sm:$0xff]  ;;  %v228_v44 = vld [vmem:[%s3670_s1 + $0x658] sm:$0xff] }
  0xc7   :  { %1868 = vmatprep.subr.bf16.mxu0 %v2470_v45  ;;  %1974 = vmatprep.subr.bf16.mxu1 %v2472_v46  ;;  %v232_v45 = vld [vmem:[%s3670_s1 + $0x678] sm:$0xff]  ;;  %v2525_v46 = vcombine.low %v219_v32, %v223_v33  ;;  %v2534_v48 = vcombine.high %v227_v41, %v231_v43  ;;  %v243_v58 = vld [vmem:[%s3670_s1 + $0x6d0] sm:$0xff] }
  0xc8   :  { %1855 = vmatprep.mubr.bf16.mxu0 %v2923_v19  ;;  %1961 = vmatprep.mubr.bf16.mxu1 %v2923_v19  ;;  %v188_v19 = vld [vmem:[%s3670_s1 + $0x518] sm:$0xff]  ;;  %v2536_v49 = vcombine.high %v228_v44, %v232_v45  ;;  %v2535_v55 = vcombine.low %v228_v44, %v232_v45 }
  0xc9   :  { %v2496_v4 = vcombine.high %v188_v19, %v192_v1  ;;  %v2495_v9 = vcombine.low %v188_v19, %v192_v1  ;;  %v251_v1 = vld [vmem:[%s3670_s1 + $0x710] sm:$0xff] }
  0xca   :  { %1869 = vmatpush1.bf16.msra.mxu0 %v2469_v51  ;;  %1975 = vmatpush1.bf16.msra.mxu1 %v2471_v52  ;;  %v239_v51 = vld [vmem:[%s3670_s1 + $0x6b0] sm:$0xff]  ;;  %v236_v52 = vld [vmem:[%s3670_s1 + $0x698] sm:$0xff] }
  0xcb   :  { %1870 = vmatprep.subr.bf16.mxu0 %v2478_v53  ;;  %1976 = vmatprep.subr.bf16.mxu1 %v2480_v54  ;;  %v240_v53 = vld [vmem:[%s3670_s1 + $0x6b8] sm:$0xff]  ;;  %v2533_v54 = vcombine.low %v227_v41, %v231_v43  ;;  %v2542_v57 = vcombine.high %v235_v50, %v239_v51  ;;  %v3532_v41 = vld [vmem:[%s3672_s2] sm:$0xff] }
  0xcc   :  { %v2544_v10 = vcombine.high %v236_v52, %v240_v53  ;;  %v2543_v63 = vcombine.low %v236_v52, %v240_v53 }
  0xcd   :  { %1856 = vmatmul.mubr.bf16.gmra.mrb[12].mxu0 %v2950_v30  ;;  %1962 = vmatmul.mubr.bf16.gmra.mrb[12].mxu1 %v2950_v30  ;;  %v196_v30 = vld [vmem:[%s3670_s1 + $0x558] sm:$0xff] }
  0xce   :  { %1871 = vmatpush1.bf16.msra.mxu0 %v2477_v59  ;;  %1977 = vmatpush1.bf16.msra.mxu1 %v2479_v60  ;;  %v2504_v12 = vcombine.high %v196_v30, %v200_v7  ;;  %v2503_v17 = vcombine.low %v196_v30, %v200_v7  ;;  %v247_v59 = vld [vmem:[%s3670_s1 + $0x6f0] sm:$0xff]  ;;  %v244_v60 = vld [vmem:[%s3670_s1 + $0x6d8] sm:$0xff] }
  0xcf   :  { %1872 = vmatprep.subr.bf16.mxu0 %v2486_v61  ;;  %1978 = vmatprep.subr.bf16.mxu1 %v2488_v62  ;;  %v248_v61 = vld [vmem:[%s3670_s1 + $0x6f8] sm:$0xff]  ;;  %v2541_v62 = vcombine.low %v235_v50, %v239_v51  ;;  %v2550_v0 = vcombine.high %v243_v58, %v247_v59  ;;  %v259_v7 = vld [vmem:[%s3670_s1 + $0x750] sm:$0xff] }
  0xd0   :  { %1898 = vmatprep.mubr.bf16.mxu0 %v2961_v37  ;;  %2004 = vmatprep.mubr.bf16.mxu1 %v2961_v37  ;;  %v204_v37 = vld [vmem:[%s3670_s1 + $0x598] sm:$0xff]  ;;  %v2552_v19 = vcombine.high %v244_v60, %v248_v61  ;;  %v2551_v5 = vcombine.low %v244_v60, %v248_v61 }
  0xd1   :  { %v2512_v20 = vcombine.high %v204_v37, %v208_v15  ;;  %v2511_v27 = vcombine.low %v204_v37, %v208_v15  ;;  %v267_v15 = vld [vmem:[%s3670_s1 + $0x790] sm:$0xff] }
  0xd2   :  { %1873 = vmatpush1.bf16.msra.mxu0 %v2485_v2  ;;  %1979 = vmatpush1.bf16.msra.mxu1 %v2487_v3  ;;  %v255_v2 = vld [vmem:[%s3670_s1 + $0x730] sm:$0xff]  ;;  %v252_v3 = vld [vmem:[%s3670_s1 + $0x718] sm:$0xff] }
  0xd3   :  { %1874 = vmatprep.subr.bf16.mxu0 %v2494_v56  ;;  %1980 = vmatprep.subr.bf16.mxu1 %v2496_v4  ;;  %v256_v56 = vld [vmem:[%s3670_s1 + $0x738] sm:$0xff]  ;;  %v2549_v4 = vcombine.low %v243_v58, %v247_v59  ;;  %v2558_v6 = vcombine.high %v251_v1, %v255_v2 }
  0xd4   :  { %v2560_v30 = vcombine.high %v252_v3, %v256_v56  ;;  %v2559_v13 = vcombine.low %v252_v3, %v256_v56 }
  0xd6   :  { %1875 = vmatpush1.bf16.msra.mxu0 %v2493_v8  ;;  %1981 = vmatpush1.bf16.msra.mxu1 %v2495_v9  ;;  %v263_v8 = vld [vmem:[%s3670_s1 + $0x770] sm:$0xff]  ;;  %v260_v9 = vld [vmem:[%s3670_s1 + $0x758] sm:$0xff] }
  0xd7   :  { %1876 = vmatprep.subr.bf16.mxu0 %v2502_v11  ;;  %1982 = vmatprep.subr.bf16.mxu1 %v2504_v12  ;;  %v264_v11 = vld [vmem:[%s3670_s1 + $0x778] sm:$0xff]  ;;  %v2557_v12 = vcombine.low %v251_v1, %v255_v2  ;;  %v2566_v14 = vcombine.high %v259_v7, %v263_v8 }
  0xd8   :  { %v2568_v37 = vcombine.high %v260_v9, %v264_v11  ;;  %v2567_v21 = vcombine.low %v260_v9, %v264_v11 }
  0xda   :  { %1877 = vmatpush1.bf16.msra.mxu0 %v2501_v16  ;;  %1983 = vmatpush1.bf16.msra.mxu1 %v2503_v17  ;;  %v271_v16 = vld [vmem:[%s3670_s1 + $0x7b0] sm:$0xff]  ;;  %v268_v17 = vld [vmem:[%s3670_s1 + $0x798] sm:$0xff] }
  0xdb   :  { %1878 = vmatprep.subr.bf16.mxu0 %v2510_v18  ;;  %1984 = vmatprep.subr.bf16.mxu1 %v2512_v20  ;;  %v272_v18 = vld [vmem:[%s3670_s1 + $0x7b8] sm:$0xff]  ;;  %v2565_v20 = vcombine.low %v259_v7, %v263_v8  ;;  %v2574_v23 = vcombine.high %v267_v15, %v271_v16 }
  0xdc   :  { %v2576_v24 = vcombine.high %v268_v17, %v272_v18  ;;  %v2575_v32 = vcombine.low %v268_v17, %v272_v18 }
  0xde   :  { %1879 = vmatpush1.bf16.msra.mxu0 %v2509_v26  ;;  %1985 = vmatpush1.bf16.msra.mxu1 %v2511_v27  ;;  %v279_v26 = vld [vmem:[%s3670_s1 + $0x7f0] sm:$0xff]  ;;  %v276_v27 = vld [vmem:[%s3670_s1 + $0x7d8] sm:$0xff] }
  0xdf   :  { %1880 = vmatprep.subr.bf16.mxu0 %v2518_v28  ;;  %1986 = vmatprep.subr.bf16.mxu1 %v2520_v31  ;;  %v280_v28 = vld [vmem:[%s3670_s1 + $0x7f8] sm:$0xff]  ;;  %v2573_v31 = vcombine.low %v267_v15, %v271_v16  ;;  %v2582_v33 = vcombine.high %v275_v25, %v279_v26  ;;  %v2581_v35 = vcombine.low %v275_v25, %v279_v26 }
  0xe0   :  { %v2584_v34 = vcombine.high %v276_v27, %v280_v28 }
  0xe2   :  { %1881 = vmatpush1.bf16.msra.mxu0 %v2517_v36  ;;  %1987 = vmatpush1.bf16.msra.mxu1 %v2519_v38  ;;  %v2583_v36 = vcombine.low %v276_v27, %v280_v28  ;;  %v2027_v38 = vlaneseq }
  0xe3   :  { %1882 = vmatprep.subr.bf16.mxu0 %v2526_v39  ;;  %1988 = vmatprep.subr.bf16.mxu1 %v2528_v40 }
  0xe4   :  { %v3526_v39 = vshrl.u32 %v2027_v38, 7 }
  0xe6   :  { %1883 = vmatpush1.bf16.msra.mxu0 %v2525_v46  ;;  %1989 = vmatpush1.bf16.msra.mxu1 %v2527_v47  ;;  %v2029_v40 = vsub.s32 0, %v3526_v39  ;;  %v2033_v43 = vsub.s32 1, %v3526_v39 }
  0xe7   :  { %1884 = vmatprep.subr.bf16.mxu0 %v2534_v48  ;;  %1990 = vmatprep.subr.bf16.mxu1 %v2536_v49 }
  0xe8   :  { %v2030_v44 = vrot.slane %v3532_v41, %v2029_v40  ;;  %v2034_v46 = vrot.slane %v3532_v41, %v2033_v43 }
  0xea   :  { %1885 = vmatpush1.bf16.msra.mxu0 %v2533_v54  ;;  %1991 = vmatpush1.bf16.msra.mxu1 %v2535_v55 }
  0xeb   :  { %1886 = vmatprep.subr.bf16.mxu0 %v2542_v57  ;;  %1992 = vmatprep.subr.bf16.mxu1 %v2544_v10 }
  0xee   :  { %1887 = vmatpush1.bf16.msra.mxu0 %v2541_v62  ;;  %1993 = vmatpush1.bf16.msra.mxu1 %v2543_v63 }
  0xef   :  { %1888 = vmatprep.subr.bf16.mxu0 %v2550_v0  ;;  %1994 = vmatprep.subr.bf16.mxu1 %v2552_v19 }
  0xf2   :  { %1889 = vmatpush1.bf16.msra.mxu0 %v2549_v4  ;;  %1995 = vmatpush1.bf16.msra.mxu1 %v2551_v5 }
  0xf3   :  { %1890 = vmatprep.subr.bf16.mxu0 %v2558_v6  ;;  %1996 = vmatprep.subr.bf16.mxu1 %v2560_v30 }
  0xf6   :  { %1891 = vmatpush1.bf16.msra.mxu0 %v2557_v12  ;;  %1997 = vmatpush1.bf16.msra.mxu1 %v2559_v13 }
  0xf7   :  { %1892 = vmatprep.subr.bf16.mxu0 %v2566_v14  ;;  %1998 = vmatprep.subr.bf16.mxu1 %v2568_v37 }
  0xfa   :  { %1893 = vmatpush1.bf16.msra.mxu0 %v2565_v20  ;;  %1999 = vmatpush1.bf16.msra.mxu1 %v2567_v21 }
  0xfb   :  { %1894 = vmatprep.subr.bf16.mxu0 %v2574_v23  ;;  %2000 = vmatprep.subr.bf16.mxu1 %v2576_v24 }
  0xfe   :  { %1895 = vmatpush1.bf16.msra.mxu0 %v2573_v31  ;;  %2001 = vmatpush1.bf16.msra.mxu1 %v2575_v32 }
  0xff   :  { %1896 = vmatprep.subr.bf16.mxu0 %v2582_v33  ;;  %2002 = vmatprep.subr.bf16.mxu1 %v2584_v34 }
 0x102   :  { %1897 = vmatpush1.bf16.msra.mxu0 %v2581_v35  ;;  %2003 = vmatpush1.bf16.msra.mxu1 %v2583_v36 }
 0x105   :  { %1899 = vmatmul.mubr.bf16.vlgmr.msra.gmra.mrb[8].mxu0 %v3126_v22  ;;  %2005 = vmatmul.mubr.bf16.vlgmr.msra.gmra.mrb[8].mxu1 %v3126_v22  ;;  %v2037_v22 = vsub.s32 2, %v3526_v39 }
 0x106   :  { %1908 = vmatprep.mubr.bf16.mxu0 %v3137_v29  ;;  %2014 = vmatprep.mubr.bf16.mxu1 %v3137_v29  ;;  %v2041_v29 = vsub.s32 3, %v3526_v39 }
 0x107   :  { %v2038_v45 = vrot.slane %v3532_v41, %v2037_v22 }
 0x108   :  { %v3549_v48 = vrot.slane %v3532_v41, %v2041_v29 }
 0x10d   :  { %1909 = vmatmul.mubr.bf16.gmra.mrb[12].mxu0 %v3164_v42  ;;  %2015 = vmatmul.mubr.bf16.gmra.mrb[12].mxu1 %v3164_v42  ;;  %v3540_v42 = vld [vmem:[%s3673_s3] sm:$0xff] }
 0x10e   :  { %v3546_v47 = vrot.slane %v3540_v42, %v2029_v40  ;;  %v3552_v50 = vrot.slane %v3540_v42, %v2037_v22  ;;  %v3555_v51 = vrot.slane %v3540_v42, %v2033_v43  ;;  %v3558_v55 = vrot.slane %v3540_v42, %v2041_v29 }
 0x158   :  { %v1688_v49 = vpop.f32.mrb[0].mxu0  ;;  %v1794_v53 = vpop.f32.mrb[0].mxu1 }
 0x159   :  { %v2067_v52 = vmul.f32 %v2030_v44, %v1688_v49  ;;  %v1690_v54 = vpop.f32.mrb[1].mxu0  ;;  %v2069_v57 = vmul.f32 %v2038_v45, %v1794_v53  ;;  %v1796_v58 = vpop.f32.mrb[1].mxu1 }
 0x15a   :  { %v2068_v10 = vmul.f32 %v2034_v46, %v1690_v54  ;;  %v1692_v59 = vpop.f32.mrb[2].mxu0  ;;  %v2070_v61 = vmul.f32 %v3549_v48, %v1796_v58  ;;  %v1798_v63 = vpop.f32.mrb[2].mxu1 }
 0x15b   :  { %v2141_v60 = vadd.f32 %v3546_v47, %v2067_v52  ;;  %v2075_v62 = vmul.f32 %v2030_v44, %v1692_v59  ;;  %v1694_v0 = vpop.f32.mrb[3].mxu0  ;;  %v2143_v19 = vadd.f32 %v3552_v50, %v2069_v57  ;;  %v2077_v2 = vmul.f32 %v2038_v45, %v1798_v63  ;;  %v1800_v56 = vpop.f32.mrb[3].mxu1 }
 0x15c   :  { %v2142_v1 = vadd.f32 %v3555_v51, %v2068_v10  ;;  %v2076_v3 = vmul.f32 %v2034_v46, %v1694_v0  ;;  %v2144_v5 = vadd.f32 %v3558_v55, %v2070_v61  ;;  %v2078_v30 = vmul.f32 %v3549_v48, %v1800_v56 }
 0x15d   :  { %v2173_v4 = vmax.f32 %v2141_v60, 0.0  ;;  %v2149_v6 = vadd.f32 %v3546_v47, %v2075_v62  ;;  %v2175_v7 = vmax.f32 %v2143_v19, 0.0  ;;  %v2151_v9 = vadd.f32 %v3552_v50, %v2077_v2 }
 0x15e   :  { %v2174_v8 = vmax.f32 %v2142_v1, 0.0  ;;  %v2150_v11 = vadd.f32 %v3555_v51, %v2076_v3  ;;  %v2176_v12 = vmax.f32 %v2144_v5, 0.0  ;;  %v2152_v14 = vadd.f32 %v3558_v55, %v2078_v30 }
 0x15f   :  { %v2181_v13 = vmax.f32 %v2149_v6, 0.0  ;;  %v2183_v15 = vmax.f32 %v2151_v9, 0.0  ;;  %v2057_v1 = vsub.s32 7, %v3526_v39 }
 0x160   :  { %v2601_v37 = vpack.c.bf16 %v2174_v8, %v2173_v4  ;;  %v2182_v16 = vmax.f32 %v2150_v11, 0.0  ;;  %v1698_v17 = vpop.f32.mrb[4].mxu0  ;;  %v2602_v18 = vpack.c.bf16 %v2176_v12, %v2175_v7  ;;  %v2184_v20 = vmax.f32 %v2152_v14, 0.0  ;;  %v1804_v23 = vpop.f32.mrb[4].mxu1 }
 0x161   :  { %v2083_v21 = vmul.f32 %v2030_v44, %v1698_v17  ;;  %v1700_v24 = vpop.f32.mrb[5].mxu0  ;;  %v2085_v26 = vmul.f32 %v2038_v45, %v1804_v23  ;;  %v1806_v28 = vpop.f32.mrb[5].mxu1  ;;  %v3615_v5 = vrot.slane %v3532_v41, %v2057_v1  ;;  %v3624_v11 = vrot.slane %v3540_v42, %v2057_v1 }
 0x162   :  { %2301 = vst [vmem:[%s3674_s4] sm:$0xff] %v2601_v37  ;;  %v2605_v25 = vpack.c.bf16 %v2182_v16, %v2181_v13  ;;  %v2084_v27 = vmul.f32 %v2034_v46, %v1700_v24  ;;  %v1702_v31 = vpop.f32.mrb[6].mxu0  ;;  %2302 = vst [vmem:[%s3674_s4 + $0x8] sm:$0xff] %v2602_v18  ;;  %v2606_v32 = vpack.c.bf16 %v2184_v20, %v2183_v15  ;;  %v1808_v36 = vpop.f32.mrb[6].mxu1 }
 0x163   :  { %v2157_v33 = vadd.f32 %v3546_v47, %v2083_v21  ;;  %v2086_v34 = vmul.f32 %v3549_v48, %v1806_v28  ;;  %v2091_v35 = vmul.f32 %v2030_v44, %v1702_v31  ;;  %v1704_v38 = vpop.f32.mrb[7].mxu0  ;;  %v2159_v40 = vadd.f32 %v3552_v50, %v2085_v26  ;;  %v1810_v49 = vpop.f32.mrb[7].mxu1 }
 0x164   :  { %2305 = vst [vmem:[%s3674_s4 + $0x20] sm:$0xff] %v2605_v25  ;;  %v2158_v22 = vadd.f32 %v3555_v51, %v2084_v27  ;;  %v2093_v43 = vmul.f32 %v2038_v45, %v1808_v36  ;;  %v2092_v29 = vmul.f32 %v2034_v46, %v1704_v38  ;;  %2306 = vst [vmem:[%s3674_s4 + $0x28] sm:$0xff] %v2606_v32 }
 0x165   :  { %v2189_v52 = vmax.f32 %v2157_v33, 0.0  ;;  %v2160_v44 = vadd.f32 %v3558_v55, %v2086_v34  ;;  %v2165_v53 = vadd.f32 %v3546_v47, %v2091_v35  ;;  %v2094_v54 = vmul.f32 %v3549_v48, %v1810_v49 }
 0x166   :  { %v2191_v57 = vmax.f32 %v2159_v40, 0.0  ;;  %v2190_v10 = vmax.f32 %v2158_v22, 0.0  ;;  %v2167_v58 = vadd.f32 %v3552_v50, %v2093_v43  ;;  %v2166_v59 = vadd.f32 %v3555_v51, %v2092_v29 }
 0x167   :  { %v2192_v45 = vmax.f32 %v2160_v44, 0.0  ;;  %v2197_v46 = vmax.f32 %v2165_v53, 0.0  ;;  %v2168_v60 = vadd.f32 %v3558_v55, %v2094_v54  ;;  %v2045_v50 = vsub.s32 4, %v3526_v39 }
 0x168   :  { %v2609_v61 = vpack.c.bf16 %v2190_v10, %v2189_v52  ;;  %v2199_v62 = vmax.f32 %v2167_v58, 0.0  ;;  %v2198_v63 = vmax.f32 %v2166_v59, 0.0  ;;  %v2053_v51 = vsub.s32 6, %v3526_v39 }
 0x169   :  { %v2610_v0 = vpack.c.bf16 %v2192_v45, %v2191_v57  ;;  %v2200_v19 = vmax.f32 %v2168_v60, 0.0  ;;  %v2049_v55 = vsub.s32 5, %v3526_v39  ;;  %v2046_v2 = vrot.slane %v3532_v41, %v2045_v50 }
 0x16a   :  { %2309 = vst [vmem:[%s3674_s4 + $0x40] sm:$0xff] %v2609_v61  ;;  %v2613_v47 = vpack.c.bf16 %v2198_v63, %v2197_v46  ;;  %v2054_v3 = vrot.slane %v3532_v41, %v2053_v51  ;;  %v3612_v4 = vrot.slane %v3540_v42, %v2045_v50  ;;  %v3618_v30 = vrot.slane %v3540_v42, %v2053_v51 }
 0x16b   :  { %2310 = vst [vmem:[%s3674_s4 + $0x48] sm:$0xff] %v2610_v0  ;;  %v2614_v48 = vpack.c.bf16 %v2200_v19, %v2199_v62  ;;  %v2050_v56 = vrot.slane %v3532_v41, %v2049_v55  ;;  %v3621_v7 = vrot.slane %v3540_v42, %v2049_v55 }
 0x16c   :  { %2313 = vst [vmem:[%s3674_s4 + $0x60] sm:$0xff] %v2613_v47 }
 0x16d   :  { %2314 = vst [vmem:[%s3674_s4 + $0x68] sm:$0xff] %v2614_v48 }
 0x1d8   :  { %v1900_v6 = vpop.f32.mrb[8].mxu0  ;;  %v2006_v8 = vpop.f32.mrb[8].mxu1 }
 0x1d9   :  { %v2071_v39 = vmul.f32 %v2046_v2, %v1900_v6  ;;  %v1902_v9 = vpop.f32.mrb[9].mxu0  ;;  %v2073_v12 = vmul.f32 %v2054_v3, %v2006_v8  ;;  %v2008_v14 = vpop.f32.mrb[9].mxu1 }
 0x1da   :  { %v2072_v13 = vmul.f32 %v2050_v56, %v1902_v9  ;;  %v1904_v37 = vpop.f32.mrb[10].mxu0  ;;  %v2074_v15 = vmul.f32 %v3615_v5, %v2008_v14  ;;  %v2010_v17 = vpop.f32.mrb[10].mxu1 }
 0x1db   :  { %v2145_v41 = vadd.f32 %v3612_v4, %v2071_v39  ;;  %v2079_v16 = vmul.f32 %v2046_v2, %v1904_v37  ;;  %v1906_v18 = vpop.f32.mrb[11].mxu0  ;;  %v2147_v20 = vadd.f32 %v3618_v30, %v2073_v12  ;;  %v2081_v23 = vmul.f32 %v2054_v3, %v2010_v17  ;;  %v2012_v25 = vpop.f32.mrb[11].mxu1 }
 0x1dc   :  { %v2146_v21 = vadd.f32 %v3621_v7, %v2072_v13  ;;  %v2080_v24 = vmul.f32 %v2050_v56, %v1906_v18  ;;  %v2148_v26 = vadd.f32 %v3624_v11, %v2074_v15  ;;  %v2082_v28 = vmul.f32 %v3615_v5, %v2012_v25 }
 0x1dd   :  { %v2177_v42 = vmax.f32 %v2145_v41, 0.0  ;;  %v2153_v27 = vadd.f32 %v3612_v4, %v2079_v16  ;;  %v2179_v31 = vmax.f32 %v2147_v20, 0.0  ;;  %v2155_v33 = vadd.f32 %v3618_v30, %v2081_v23 }
 0x1de   :  { %v2178_v32 = vmax.f32 %v2146_v21, 0.0  ;;  %v2154_v34 = vadd.f32 %v3621_v7, %v2080_v24  ;;  %v2180_v35 = vmax.f32 %v2148_v26, 0.0  ;;  %v2156_v38 = vadd.f32 %v3624_v11, %v2082_v28 }
 0x1df   :  { %v2185_v36 = vmax.f32 %v2153_v27, 0.0  ;;  %v2187_v22 = vmax.f32 %v2155_v33, 0.0 }
 0x1e0   :  { %v2603_v40 = vpack.c.bf16 %v2178_v32, %v2177_v42  ;;  %v2186_v43 = vmax.f32 %v2154_v34, 0.0  ;;  %v1910_v29 = vpop.f32.mrb[12].mxu0  ;;  %v2604_v49 = vpack.c.bf16 %v2180_v35, %v2179_v31  ;;  %v2188_v52 = vmax.f32 %v2156_v38, 0.0  ;;  %v2016_v53 = vpop.f32.mrb[12].mxu1 }
 0x1e1   :  { %v2087_v44 = vmul.f32 %v2046_v2, %v1910_v29  ;;  %v1912_v54 = vpop.f32.mrb[13].mxu0  ;;  %v2089_v10 = vmul.f32 %v2054_v3, %v2016_v53  ;;  %v2018_v59 = vpop.f32.mrb[13].mxu1 }
 0x1e2   :  { %2303 = vst [vmem:[%s3674_s4 + $0x10] sm:$0xff] %v2603_v40  ;;  %v2607_v57 = vpack.c.bf16 %v2186_v43, %v2185_v36  ;;  %v2088_v58 = vmul.f32 %v2050_v56, %v1912_v54  ;;  %v1914_v45 = vpop.f32.mrb[14].mxu0  ;;  %2304 = vst [vmem:[%s3674_s4 + $0x18] sm:$0xff] %v2604_v49  ;;  %v2608_v46 = vpack.c.bf16 %v2188_v52, %v2187_v22  ;;  %v2020_v63 = vpop.f32.mrb[14].mxu1 }
 0x1e3   :  { %v2161_v60 = vadd.f32 %v3612_v4, %v2087_v44  ;;  %v2090_v61 = vmul.f32 %v3615_v5, %v2018_v59  ;;  %v2095_v62 = vmul.f32 %v2046_v2, %v1914_v45  ;;  %v1916_v0 = vpop.f32.mrb[15].mxu0  ;;  %v2163_v19 = vadd.f32 %v3618_v30, %v2089_v10  ;;  %v2022_v51 = vpop.f32.mrb[15].mxu1 }
 0x1e4   :  { %2307 = vst [vmem:[%s3674_s4 + $0x30] sm:$0xff] %v2607_v57  ;;  %v2162_v47 = vadd.f32 %v3621_v7, %v2088_v58  ;;  %v2097_v48 = vmul.f32 %v2054_v3, %v2020_v63  ;;  %v2096_v50 = vmul.f32 %v2050_v56, %v1916_v0  ;;  %2308 = vst [vmem:[%s3674_s4 + $0x38] sm:$0xff] %v2608_v46 }
 0x1e5   :  { %v2193_v55 = vmax.f32 %v2161_v60, 0.0  ;;  %v2164_v1 = vadd.f32 %v3624_v11, %v2090_v61  ;;  %v2169_v2 = vadd.f32 %v3612_v4, %v2095_v62  ;;  %v2098_v6 = vmul.f32 %v3615_v5, %v2022_v51 }
 0x1e6   :  { %v2195_v39 = vmax.f32 %v2163_v19, 0.0  ;;  %v2194_v8 = vmax.f32 %v2162_v47, 0.0  ;;  %v2171_v9 = vadd.f32 %v3618_v30, %v2097_v48  ;;  %v2170_v12 = vadd.f32 %v3621_v7, %v2096_v50 }
 0x1e7   :  { %v2196_v3 = vmax.f32 %v2164_v1, 0.0  ;;  %v2201_v56 = vmax.f32 %v2169_v2, 0.0  ;;  %v2172_v13 = vadd.f32 %v3624_v11, %v2098_v6 }
 0x1e8   :  { %v2611_v14 = vpack.c.bf16 %v2194_v8, %v2193_v55  ;;  %v2203_v37 = vmax.f32 %v2171_v9, 0.0  ;;  %v2202_v41 = vmax.f32 %v2170_v12, 0.0 }
 0x1e9   :  { %v2612_v15 = vpack.c.bf16 %v2196_v3, %v2195_v39  ;;  %v2204_v16 = vmax.f32 %v2172_v13, 0.0 }
 0x1ea   :  { %2311 = vst [vmem:[%s3674_s4 + $0x50] sm:$0xff] %v2611_v14  ;;  %v2615_v4 = vpack.c.bf16 %v2202_v41, %v2201_v56 }
 0x1eb   :  { %2312 = vst [vmem:[%s3674_s4 + $0x58] sm:$0xff] %v2612_v15  ;;  %v2616_v5 = vpack.c.bf16 %v2204_v16, %v2203_v37 }
 0x1ec   :  { %2315 = vst [vmem:[%s3674_s4 + $0x70] sm:$0xff] %v2615_v4 }
 0x1ed   :  { %2316 = vst [vmem:[%s3674_s4 + $0x78] sm:$0xff] %v2616_v5 }

// kernel: multi_scale_dense121_forward.12
= control target key start
LH: loop header
LB: loop body
LE: loop exit
PB: predicated region body
PF: predicated region fallthrough
CT: control target
= control target key end

     0   :  { %vm740_vm0 = vcmask 519168   ;;  %s1218_s1 = inlined_call_operand.vmem [shape: bf16[1024,64], index: 1, kind: input, shape index: {}]   ;;  %s1219_s0 = inlined_call_operand.vmem [shape: bf16[8,1024], index: 0, kind: input, shape index: {}]   ;;  %s1220_s2 = inlined_call_operand.vmem [shape: f32[1,64], index: 2, kind: input, shape index: {}]   ;;  %s1221_s3 = inlined_call_operand.vmem [shape: f32[1,64], index: 3, kind: input, shape index: {}]   ;;  %s1222_s4 = inlined_call_operand.vmem [shape: bf16[8,64], index: 4, kind: output, shape index: {}]  }
   0x1   :  { %v908_v0 = vld [vmem:[%s1218_s1 + $0x40] sm:$0xff]   ;;  %v912_v4 = vld [vmem:[%s1218_s1 + $0x48] sm:$0xff]   ;;  %v916_v8 = vld [vmem:[%s1218_s1 + $0x50] sm:$0xff]  }
   0x2   :  { %v909_v1 = vld [vmem:[%s1218_s1 + $0xc0] sm:$0xff]   ;;  %820 = vmatprep.subr.bf16.mxu0 %v908_v0  ;;  %v913_v5 = vld [vmem:[%s1218_s1 + $0xc8] sm:$0xff]   ;;  %v917_v9 = vld [vmem:[%s1218_s1 + $0xd0] sm:$0xff]  }
   0x3   :  { %v910_v2 = vld [vmem:[%s1218_s1] sm:$0xff]   ;;  %842 = vmatprep.subr.bf16.mxu1 %v909_v1  ;;  %v914_v6 = vld [vmem:[%s1218_s1 + $0x8] sm:$0xff]   ;;  %v918_v10 = vld [vmem:[%s1218_s1 + $0x10] sm:$0xff]  }
   0x4   :  { %v911_v3 = vld [vmem:[%s1218_s1 + $0x80] sm:$0xff]   ;;  %821 = vmatpush3.bf16.msra.mxu0 %v910_v2  ;;  %v915_v7 = vld [vmem:[%s1218_s1 + $0x88] sm:$0xff]   ;;  %v919_v11 = vld [vmem:[%s1218_s1 + $0x90] sm:$0xff]  }
   0x5   :  { %843 = vmatpush3.bf16.msra.mxu1 %v911_v3  ;;  %822 = vmatprep.subr.bf16.mxu0 %v912_v4  ;;  %v920_v12 = vld [vmem:[%s1218_s1 + $0x58] sm:$0xff]   ;;  %v924_v16 = vld [vmem:[%s1218_s1 + $0x60] sm:$0xff]   ;;  %v928_v20 = vld [vmem:[%s1218_s1 + $0x68] sm:$0xff]  }
   0x6   :  { %844 = vmatprep.subr.bf16.mxu1 %v913_v5  ;;  %v921_v13 = vld [vmem:[%s1218_s1 + $0xd8] sm:$0xff]   ;;  %v925_v17 = vld [vmem:[%s1218_s1 + $0xe0] sm:$0xff]   ;;  %v929_v21 = vld [vmem:[%s1218_s1 + $0xe8] sm:$0xff]  }
   0x7   :  { %v922_v14 = vld [vmem:[%s1218_s1 + $0x18] sm:$0xff]   ;;  %v926_v18 = vld [vmem:[%s1218_s1 + $0x20] sm:$0xff]   ;;  %v930_v22 = vld [vmem:[%s1218_s1 + $0x28] sm:$0xff]  }
   0x8   :  { %823 = vmatpush3.bf16.msra.mxu0 %v914_v6  ;;  %v923_v15 = vld [vmem:[%s1218_s1 + $0x98] sm:$0xff]   ;;  %v927_v19 = vld [vmem:[%s1218_s1 + $0xa0] sm:$0xff]   ;;  %v931_v23 = vld [vmem:[%s1218_s1 + $0xa8] sm:$0xff]  }
   0x9   :  { %845 = vmatpush3.bf16.msra.mxu1 %v915_v7  ;;  %824 = vmatprep.subr.bf16.mxu0 %v916_v8  ;;  %v932_v24 = vld [vmem:[%s1218_s1 + $0x70] sm:$0xff]   ;;  %v936_v28 = vld [vmem:[%s1218_s1 + $0x78] sm:$0xff]   ;;  %v18_v32 = vld [vmem:[%s1219_s0] sm:$0xff] }
   0xa   :  { %846 = vmatprep.subr.bf16.mxu1 %v917_v9  ;;  %v933_v25 = vld [vmem:[%s1218_s1 + $0xf0] sm:$0xff]   ;;  %v937_v29 = vld [vmem:[%s1218_s1 + $0xf8] sm:$0xff]   ;;  %v19_v33 = vld [vmem:[%s1219_s0 + $0x8] sm:$0xff]  ;;  %v746_v34 = vcombine.low %v18_v32, %v18_v32  ;;  %v747_v35 = vcombine.high %v18_v32, %v18_v32 }
   0xb   :  { %v934_v26 = vld [vmem:[%s1218_s1 + $0x30] sm:$0xff]   ;;  %v938_v30 = vld [vmem:[%s1218_s1 + $0x38] sm:$0xff]   ;;  %v748_v36 = vcombine.low %v19_v33, %v19_v33  ;;  %v749_v37 = vcombine.high %v19_v33, %v19_v33  ;;  %v944_v38 = vld [vmem:[%s1218_s1 + $0x140] sm:$0xff]  }
   0xc   :  { %825 = vmatpush3.bf16.msra.mxu0 %v918_v10  ;;  %v935_v27 = vld [vmem:[%s1218_s1 + $0xb0] sm:$0xff]   ;;  %v939_v31 = vld [vmem:[%s1218_s1 + $0xb8] sm:$0xff]   ;;  %v945_v39 = vld [vmem:[%s1218_s1 + $0x1c0] sm:$0xff]   ;;  %594 = vmatprep.mubr.bf16.mxu0 %v747_v35 }
   0xd   :  { %847 = vmatpush3.bf16.msra.mxu1 %v919_v11  ;;  %826 = vmatprep.subr.bf16.mxu0 %v920_v12  ;;  %v946_v40 = vld [vmem:[%s1218_s1 + $0x100] sm:$0xff]   ;;  %v948_v42 = vld [vmem:[%s1218_s1 + $0x148] sm:$0xff]   ;;  %v952_v46 = vld [vmem:[%s1218_s1 + $0x150] sm:$0xff]  }
   0xe   :  { %848 = vmatprep.subr.bf16.mxu1 %v921_v13  ;;  %634 = vmatprep.mubr.bf16.mxu1 %v749_v37  ;;  %v947_v41 = vld [vmem:[%s1218_s1 + $0x180] sm:$0xff]   ;;  %v949_v43 = vld [vmem:[%s1218_s1 + $0x1c8] sm:$0xff]   ;;  %v953_v47 = vld [vmem:[%s1218_s1 + $0x1d0] sm:$0xff]  }
   0xf   :  { %v950_v44 = vld [vmem:[%s1218_s1 + $0x108] sm:$0xff]   ;;  %v954_v48 = vld [vmem:[%s1218_s1 + $0x110] sm:$0xff]   ;;  %v956_v50 = vld [vmem:[%s1218_s1 + $0x158] sm:$0xff]  }
  0x10   :  { %827 = vmatpush3.bf16.msra.mxu0 %v922_v14  ;;  %v951_v45 = vld [vmem:[%s1218_s1 + $0x188] sm:$0xff]   ;;  %v955_v49 = vld [vmem:[%s1218_s1 + $0x190] sm:$0xff]   ;;  %v957_v51 = vld [vmem:[%s1218_s1 + $0x1d8] sm:$0xff]  }
  0x11   :  { %849 = vmatpush3.bf16.msra.mxu1 %v923_v15  ;;  %828 = vmatprep.subr.bf16.mxu0 %v924_v16  ;;  %v958_v52 = vld [vmem:[%s1218_s1 + $0x118] sm:$0xff]   ;;  %v960_v54 = vld [vmem:[%s1218_s1 + $0x160] sm:$0xff]   ;;  %v964_v58 = vld [vmem:[%s1218_s1 + $0x168] sm:$0xff]  }
  0x12   :  { %850 = vmatprep.subr.bf16.mxu1 %v925_v17  ;;  %v959_v53 = vld [vmem:[%s1218_s1 + $0x198] sm:$0xff]   ;;  %v961_v55 = vld [vmem:[%s1218_s1 + $0x1e0] sm:$0xff]   ;;  %v965_v59 = vld [vmem:[%s1218_s1 + $0x1e8] sm:$0xff]  }
  0x13   :  { %v962_v56 = vld [vmem:[%s1218_s1 + $0x120] sm:$0xff]   ;;  %v966_v60 = vld [vmem:[%s1218_s1 + $0x128] sm:$0xff]   ;;  %v968_v62 = vld [vmem:[%s1218_s1 + $0x170] sm:$0xff]  }
  0x14   :  { %829 = vmatpush3.bf16.msra.mxu0 %v926_v18  ;;  %v963_v57 = vld [vmem:[%s1218_s1 + $0x1a0] sm:$0xff]   ;;  %v967_v61 = vld [vmem:[%s1218_s1 + $0x1a8] sm:$0xff]   ;;  %v969_v63 = vld [vmem:[%s1218_s1 + $0x1f0] sm:$0xff]  }
  0x15   :  { %851 = vmatpush3.bf16.msra.mxu1 %v927_v19  ;;  %830 = vmatprep.subr.bf16.mxu0 %v928_v20  ;;  %v970_v0 = vld [vmem:[%s1218_s1 + $0x130] sm:$0xff]   ;;  %v972_v2 = vld [vmem:[%s1218_s1 + $0x178] sm:$0xff]  }
  0x16   :  { %852 = vmatprep.subr.bf16.mxu1 %v929_v21  ;;  %v971_v1 = vld [vmem:[%s1218_s1 + $0x1b0] sm:$0xff]   ;;  %v973_v3 = vld [vmem:[%s1218_s1 + $0x1f8] sm:$0xff]  }
  0x17   :  { %v974_v4 = vld [vmem:[%s1218_s1 + $0x138] sm:$0xff]   ;;  %v20_v6 = vld [vmem:[%s1219_s0 + $0x10] sm:$0xff] }
  0x18   :  { %831 = vmatpush3.bf16.msra.mxu0 %v930_v22  ;;  %v975_v5 = vld [vmem:[%s1218_s1 + $0x1b8] sm:$0xff]   ;;  %v750_v7 = vcombine.low %v20_v6, %v20_v6  ;;  %v751_v8 = vcombine.high %v20_v6, %v20_v6 }
  0x19   :  { %853 = vmatpush3.bf16.msra.mxu1 %v931_v23  ;;  %832 = vmatprep.subr.bf16.mxu0 %v932_v24  ;;  %v21_v9 = vld [vmem:[%s1219_s0 + $0x18] sm:$0xff] }
  0x1a   :  { %854 = vmatprep.subr.bf16.mxu1 %v933_v25  ;;  %v752_v10 = vcombine.low %v21_v9, %v21_v9  ;;  %v753_v11 = vcombine.high %v21_v9, %v21_v9 }
  0x1c   :  { %833 = vmatpush3.bf16.msra.mxu0 %v934_v26 }
  0x1d   :  { %855 = vmatpush3.bf16.msra.mxu1 %v935_v27  ;;  %834 = vmatprep.subr.bf16.mxu0 %v936_v28 }
  0x1e   :  { %856 = vmatprep.subr.bf16.mxu1 %v937_v29 }
  0x20   :  { %835 = vmatpush3.bf16.msra.mxu0 %v938_v30 }
  0x21   :  { %857 = vmatpush3.bf16.msra.mxu1 %v939_v31  ;;  %864 = vmatprep.subr.bf16.mxu0 %v944_v38 }
  0x22   :  { %886 = vmatprep.subr.bf16.mxu1 %v945_v39 }
  0x23   :  { %595 = vmatmul.mubr.bf16.vlgmr.msra.gmra.mrb[0].mxu0 %v746_v34  ;;  %v818_v34 = vld [vmem:[%s1220_s2] ss:$0 sm:$0xff] }
  0x24   :  { %635 = vmatmul.mubr.bf16.vlgmr.msra.gmra.mrb[0].mxu1 %v748_v36  ;;  %865 = vmatpush3.bf16.msra.mxu0 %v946_v40  ;;  %v819_v36 = vld [vmem:[%s1221_s3] ss:$0 sm:$0xff] }
  0x25   :  { %887 = vmatpush3.bf16.msra.mxu1 %v947_v41  ;;  %866 = vmatprep.subr.bf16.mxu0 %v948_v42 }
  0x26   :  { %888 = vmatprep.subr.bf16.mxu1 %v949_v43  ;;  %674 = vmatprep.mubr.bf16.mxu0 %v751_v8 }
  0x27   :  { %714 = vmatprep.mubr.bf16.mxu1 %v753_v11 }
  0x28   :  { %867 = vmatpush3.bf16.msra.mxu0 %v950_v44 }
  0x29   :  { %889 = vmatpush3.bf16.msra.mxu1 %v951_v45  ;;  %868 = vmatprep.subr.bf16.mxu0 %v952_v46 }
  0x2a   :  { %890 = vmatprep.subr.bf16.mxu1 %v953_v47 }
  0x2c   :  { %869 = vmatpush3.bf16.msra.mxu0 %v954_v48 }
  0x2d   :  { %891 = vmatpush3.bf16.msra.mxu1 %v955_v49  ;;  %870 = vmatprep.subr.bf16.mxu0 %v956_v50 }
  0x2e   :  { %892 = vmatprep.subr.bf16.mxu1 %v957_v51 }
  0x30   :  { %871 = vmatpush3.bf16.msra.mxu0 %v958_v52 }
  0x31   :  { %893 = vmatpush3.bf16.msra.mxu1 %v959_v53  ;;  %872 = vmatprep.subr.bf16.mxu0 %v960_v54 }
  0x32   :  { %894 = vmatprep.subr.bf16.mxu1 %v961_v55 }
  0x34   :  { %873 = vmatpush3.bf16.msra.mxu0 %v962_v56 }
  0x35   :  { %895 = vmatpush3.bf16.msra.mxu1 %v963_v57  ;;  %874 = vmatprep.subr.bf16.mxu0 %v964_v58 }
  0x36   :  { %896 = vmatprep.subr.bf16.mxu1 %v965_v59 }
  0x38   :  { %875 = vmatpush3.bf16.msra.mxu0 %v966_v60 }
  0x39   :  { %897 = vmatpush3.bf16.msra.mxu1 %v967_v61  ;;  %876 = vmatprep.subr.bf16.mxu0 %v968_v62 }
  0x3a   :  { %898 = vmatprep.subr.bf16.mxu1 %v969_v63 }
  0x3c   :  { %877 = vmatpush3.bf16.msra.mxu0 %v970_v0 }
  0x3d   :  { %899 = vmatpush3.bf16.msra.mxu1 %v971_v1  ;;  %878 = vmatprep.subr.bf16.mxu0 %v972_v2 }
  0x3e   :  { %900 = vmatprep.subr.bf16.mxu1 %v973_v3 }
  0x40   :  { %879 = vmatpush3.bf16.msra.mxu0 %v974_v4 }
  0x41   :  { %901 = vmatpush3.bf16.msra.mxu1 %v975_v5 }
  0x43   :  { %675 = vmatmul.mubr.bf16.vlgmr.msra.gmra.mrb[4].mxu0 %v750_v7 }
  0x44   :  { %715 = vmatmul.mubr.bf16.vlgmr.msra.gmra.mrb[4].mxu1 %v752_v10 }
  0xf6   :  { %v836_v12 = vpop.f32.mrb[0].mxu0 }
  0xf7   :  { %v858_v13 = vpop.f32.mrb[0].mxu1  ;;  %v837_v14 = vpop.f32.mrb[1].mxu0 }
  0xf8   :  { %v859_v15 = vpop.f32.mrb[1].mxu1  ;;  %v838_v16 = vadd.f32 %v837_v14, %v836_v12  ;;  %v839_v18 = vpop.f32.mrb[2].mxu0 }
  0xf9   :  { %v860_v17 = vadd.f32 %v859_v15, %v858_v13  ;;  %v861_v19 = vpop.f32.mrb[2].mxu1  ;;  %v840_v20 = vpop.f32.mrb[3].mxu0 }
  0xfa   :  { %v862_v21 = vpop.f32.mrb[3].mxu1 }
  0xfb   :  { %v637_v22 = vadd.f32 %v860_v17, %v838_v16 }
 0x116   :  { %v880_v23 = vpop.f32.mrb[4].mxu0 }
 0x117   :  { %v902_v24 = vpop.f32.mrb[4].mxu1  ;;  %v881_v25 = vpop.f32.mrb[5].mxu0 }
 0x118   :  { %v903_v26 = vpop.f32.mrb[5].mxu1  ;;  %v882_v27 = vadd.f32 %v881_v25, %v880_v23  ;;  %v883_v29 = vpop.f32.mrb[6].mxu0 }
 0x119   :  { %v904_v28 = vadd.f32 %v903_v26, %v902_v24  ;;  %v905_v30 = vpop.f32.mrb[6].mxu1  ;;  %v884_v31 = vpop.f32.mrb[7].mxu0 }
 0x11a   :  { %v906_v32 = vpop.f32.mrb[7].mxu1  ;;  %v677_v33 = vadd.f32 %v882_v27, %v637_v22 }
 0x11c   :  { %v717_v35 = vadd.f32 %v904_v28, %v677_v33 }
 0x11e   :  { %v729_v37 = vmul.f32 %v818_v34, %v717_v35 }
 0x120   :  { %v737_v38 = vadd.f32 %v819_v36, %v729_v37 }
 0x122   :  { %v738_v39 = vmax.f32 %v737_v38, 0.0 }
 0x124   :  { %v739_v40 = vpack.c.bf16 %v738_v39, %v738_v39 }
 0x126   :  { %741 = vst.msk [vmem:[%s1222_s4] sm:$0xf] %vm740_vm0, %v739_v40 }

// kernel: multi_scale_dense121_forward.13
= control target key start
LH: loop header
LB: loop body
LE: loop exit
PB: predicated region body
PF: predicated region fallthrough
CT: control target
= control target key end

     0   :  { %s2253_s30 = smov 0   ;;  %s2716_s0 = inlined_call_operand.vmem [shape: bf16[2,4,64], index: 0, kind: input, shape index: {}]   ;;  %s2717_s1 = inlined_call_operand.vmem [shape: bf16[16,4], index: 1, kind: input, shape index: {}]   ;;  %s2718_s2 = inlined_call_operand.vmem [shape: bf16[2,16,1024], index: 2, kind: input, shape index: {}]   ;;  %s2719_s3 = inlined_call_operand.vmem [shape: bf16[1024,64], index: 3, kind: input, shape index: {}]   ;;  %s2720_s4 = inlined_call_operand.vmem [shape: f32[1,64], index: 4, kind: input, shape index: {}]   ;;  %s2721_s5 = inlined_call_operand.vmem [shape: f32[1,64], index: 5, kind: input, shape index: {}]   ;;  %s2722_s6 = inlined_call_operand.vmem [shape: bf16[576,64], index: 6, kind: input, shape index: {}]   ;;  %s2723_s7 = inlined_call_operand.vmem [shape: f32[1,64], index: 7, kind: input, shape index: {}]   ;;  %s2724_s8 = inlined_call_operand.vmem [shape: f32[1,64], index: 8, kind: input, shape index: {}]   ;;  %s2725_s9 = inlined_call_operand.vmem [shape: bf16[2,16,64], index: 9, kind: output, shape index: {}]  }
   0x1 LB: > { %s1765_s10 = sadd.s32 4294967295, %s2197_s30   ;;  %p1769_p0 = scmp.ge.s32.totalorder %s2197_s30, 1  ;;  %s2197_s30 = sphi %s2253_s30, %s19_s30  }
   0x2   : > { %p296_p1 = scmp.lt.s32.totalorder %s2197_s30, 3 }
   0x4   : > { %p297_p2 = pnand %p1769_p0, %p296_p1 }
   0x5   : > { %v2090_v0 = vld [vmem:[%s2719_s3 + $0x40] sm:$0xff] (!%p297_p2)   ;;  %v2094_v4 = vld [vmem:[%s2719_s3 + $0x48] sm:$0xff] (!%p297_p2)   ;;  %v2098_v8 = vld [vmem:[%s2719_s3 + $0x50] sm:$0xff] (!%p297_p2)   ;;  %p336_p3 = scmp.lt.s32.totalorder (!%p297_p2), %s1765_s10, 1  ;;  %vm1107_vm0 = vcmask (!%p297_p2), 1041408   ;;  %vm1103_vm1 = vcmask (!%p297_p2), 31744  }
   0x6   : > { %300 = sbr.rel (%p297_p2) target bundleno = 784 (0x310), region = 56  ;;  %v2091_v1 = vld [vmem:[%s2719_s3 + $0xc0] sm:$0xff] (!%p297_p2)   ;;  %1906 = vmatprep.subr.bf16.mxu0 (!%p297_p2), %v2090_v0  ;;  %v2095_v5 = vld [vmem:[%s2719_s3 + $0xc8] sm:$0xff] (!%p297_p2)   ;;  %v2099_v9 = vld [vmem:[%s2719_s3 + $0xd0] sm:$0xff] (!%p297_p2)   ;;  %vm2200_vm2 = vmmov (!%p297_p2), 0   ;;  %s2201_s24 = smov (!%p297_p2), 64  }
   0x7   : > { %v2092_v2 = vld [vmem:[%s2719_s3] sm:$0xff] (!%p297_p2)   ;;  %1928 = vmatprep.subr.bf16.mxu1 (!%p297_p2), %v2091_v1  ;;  %v2096_v6 = vld [vmem:[%s2719_s3 + $0x8] sm:$0xff] (!%p297_p2)   ;;  %v2100_v10 = vld [vmem:[%s2719_s3 + $0x10] sm:$0xff] (!%p297_p2)   ;;  %vm1205_vm11 = vcmask (!%p297_p2), 523264   ;;  %vm2202_vm13 = vmmov (!%p297_p2), 1  }
   0x8   : > { %v2093_v3 = vld [vmem:[%s2719_s3 + $0x80] sm:$0xff] (!%p297_p2)   ;;  %1907 = vmatpush3.bf16.msra.mxu0 (!%p297_p2), %v2092_v2  ;;  %v2097_v7 = vld [vmem:[%s2719_s3 + $0x88] sm:$0xff] (!%p297_p2)   ;;  %v2101_v11 = vld [vmem:[%s2719_s3 + $0x90] sm:$0xff] (!%p297_p2)  }
   0x9   : > { %1929 = vmatpush3.bf16.msra.mxu1 (!%p297_p2), %v2093_v3  ;;  %1908 = vmatprep.subr.bf16.mxu0 (!%p297_p2), %v2094_v4  ;;  %v2102_v12 = vld [vmem:[%s2719_s3 + $0x58] sm:$0xff] (!%p297_p2)   ;;  %v2106_v16 = vld [vmem:[%s2719_s3 + $0x60] sm:$0xff] (!%p297_p2)   ;;  %v2110_v20 = vld [vmem:[%s2719_s3 + $0x68] sm:$0xff] (!%p297_p2)  }
   0xa   : > { %1930 = vmatprep.subr.bf16.mxu1 (!%p297_p2), %v2095_v5  ;;  %v2103_v13 = vld [vmem:[%s2719_s3 + $0xd8] sm:$0xff] (!%p297_p2)   ;;  %v2107_v17 = vld [vmem:[%s2719_s3 + $0xe0] sm:$0xff] (!%p297_p2)   ;;  %v2111_v21 = vld [vmem:[%s2719_s3 + $0xe8] sm:$0xff] (!%p297_p2)  }
   0xb   : > { %v2104_v14 = vld [vmem:[%s2719_s3 + $0x18] sm:$0xff] (!%p297_p2)   ;;  %v2108_v18 = vld [vmem:[%s2719_s3 + $0x20] sm:$0xff] (!%p297_p2)   ;;  %v2112_v22 = vld [vmem:[%s2719_s3 + $0x28] sm:$0xff] (!%p297_p2)  }
   0xc   : > { %1909 = vmatpush3.bf16.msra.mxu0 (!%p297_p2), %v2096_v6  ;;  %v2105_v15 = vld [vmem:[%s2719_s3 + $0x98] sm:$0xff] (!%p297_p2)   ;;  %v2109_v19 = vld [vmem:[%s2719_s3 + $0xa0] sm:$0xff] (!%p297_p2)   ;;  %v2113_v23 = vld [vmem:[%s2719_s3 + $0xa8] sm:$0xff] (!%p297_p2)  }
   0xd   : > { %1931 = vmatpush3.bf16.msra.mxu1 %v2097_v7  ;;  %1910 = vmatprep.subr.bf16.mxu0 %v2098_v8  ;;  %s2735_s10 = smov (!%p336_p3, %s1765_s10), 1  ;;  %v2114_v24 = vld [vmem:[%s2719_s3 + $0x70] sm:$0xff]   ;;  %v2118_v28 = vld [vmem:[%s2719_s3 + $0x78] sm:$0xff]   ;;  %v2122_v40 = vld [vmem:[%s2719_s3 + $0x140] sm:$0xff]  }
   0xe   : > { %1932 = vmatprep.subr.bf16.mxu1 %v2099_v9  ;;  %v2115_v25 = vld [vmem:[%s2719_s3 + $0xf0] sm:$0xff]   ;;  %s1902_s27 = sshll.u32 %s2735_s10, 6  ;;  %v2119_v29 = vld [vmem:[%s2719_s3 + $0xf8] sm:$0xff]   ;;  %v2123_v41 = vld [vmem:[%s2719_s3 + $0x1c0] sm:$0xff]   ;;  %s1770_s22 = sshll.u32 %s2735_s10, 1 }
   0xf   : > { %v2116_v26 = vld [vmem:[%s2719_s3 + $0x30] sm:$0xff]   ;;  %s2361_s17 = scalar_lea.vmem %s2718_s2, %s1902_s27  ;;  %v2120_v30 = vld [vmem:[%s2719_s3 + $0x38] sm:$0xff]   ;;  %v2124_v42 = vld [vmem:[%s2719_s3 + $0x100] sm:$0xff]   ;;  %s339_s12 = scalar_lea.vmem %s2716_s0, %s1770_s22 }
  0x10   : > { %1911 = vmatpush3.bf16.msra.mxu0 %v2100_v10  ;;  %v2117_v27 = vld [vmem:[%s2719_s3 + $0xb0] sm:$0xff]   ;;  %v2121_v31 = vld [vmem:[%s2719_s3 + $0xb8] sm:$0xff]   ;;  %v351_v32 = vld [vmem:[%s2361_s17] sm:$0xff]  ;;  %s1903_s26 = sshll.u32 %s2735_s10, 3 }
  0x11   : > { %1933 = vmatpush3.bf16.msra.mxu1 %v2101_v11  ;;  %1912 = vmatprep.subr.bf16.mxu0 %v2102_v12  ;;  %v355_v33 = vld [vmem:[%s2361_s17 + $0x20] sm:$0xff]  ;;  %v352_v34 = vld [vmem:[%s2361_s17 + $0x8] sm:$0xff]  ;;  %v2130_v48 = vld [vmem:[%s2719_s3 + $0x150] sm:$0xff]   ;;  %s349_s29 = scalar_lea.vmem %s2725_s9, %s1903_s26 }
  0x12   : > { %1934 = vmatprep.subr.bf16.mxu1 %v2103_v13  ;;  %v1775_v35 = vcombine.low %v351_v32, %v355_v33  ;;  %v1776_v36 = vcombine.high %v351_v32, %v355_v33  ;;  %v356_v37 = vld [vmem:[%s2361_s17 + $0x28] sm:$0xff]  ;;  %v2125_v43 = vld [vmem:[%s2719_s3 + $0x180] sm:$0xff]   ;;  %v2131_v49 = vld [vmem:[%s2719_s3 + $0x1d0] sm:$0xff]  }
  0x13   : > { %v1777_v38 = vcombine.low %v352_v34, %v356_v37  ;;  %v1778_v39 = vcombine.high %v352_v34, %v356_v37  ;;  %v2126_v44 = vld [vmem:[%s2719_s3 + $0x148] sm:$0xff]   ;;  %v2132_v50 = vld [vmem:[%s2719_s3 + $0x110] sm:$0xff]   ;;  %v2134_v52 = vld [vmem:[%s2719_s3 + $0x158] sm:$0xff]   ;;  %v1152_v37 = vlaneseq }
  0x14   : > { %1913 = vmatpush3.bf16.msra.mxu0 %v2104_v14  ;;  %943 = vmatprep.mubr.bf16.mxu0 %v1776_v36  ;;  %v2127_v45 = vld [vmem:[%s2719_s3 + $0x1c8] sm:$0xff]   ;;  %v2133_v51 = vld [vmem:[%s2719_s3 + $0x190] sm:$0xff]   ;;  %v2135_v53 = vld [vmem:[%s2719_s3 + $0x1d8] sm:$0xff]  }
  0x15   : > { %1935 = vmatpush3.bf16.msra.mxu1 %v2105_v15  ;;  %1914 = vmatprep.subr.bf16.mxu0 %v2106_v16  ;;  %v2128_v46 = vld [vmem:[%s2719_s3 + $0x108] sm:$0xff]   ;;  %v2136_v54 = vld [vmem:[%s2719_s3 + $0x118] sm:$0xff]   ;;  %v2138_v56 = vld [vmem:[%s2719_s3 + $0x160] sm:$0xff]  }
  0x16   : > { %1936 = vmatprep.subr.bf16.mxu1 %v2107_v17  ;;  %984 = vmatprep.mubr.bf16.mxu1 %v1778_v39  ;;  %v2129_v47 = vld [vmem:[%s2719_s3 + $0x188] sm:$0xff]   ;;  %v2137_v55 = vld [vmem:[%s2719_s3 + $0x198] sm:$0xff]   ;;  %v2139_v57 = vld [vmem:[%s2719_s3 + $0x1e0] sm:$0xff]   ;;  %v2199_v17 = vmov 0.0  }
  0x17   : > { %v2140_v58 = vld [vmem:[%s2719_s3 + $0x120] sm:$0xff]   ;;  %v2142_v60 = vld [vmem:[%s2719_s3 + $0x168] sm:$0xff]   ;;  %v2146_v0 = vld [vmem:[%s2719_s3 + $0x170] sm:$0xff]  }
  0x18   : > { %1915 = vmatpush3.bf16.msra.mxu0 %v2108_v18  ;;  %v2141_v59 = vld [vmem:[%s2719_s3 + $0x1a0] sm:$0xff]   ;;  %v2143_v61 = vld [vmem:[%s2719_s3 + $0x1e8] sm:$0xff]   ;;  %v2147_v1 = vld [vmem:[%s2719_s3 + $0x1f0] sm:$0xff]  }
  0x19   : > { %1937 = vmatpush3.bf16.msra.mxu1 %v2109_v19  ;;  %1916 = vmatprep.subr.bf16.mxu0 %v2110_v20  ;;  %v2144_v62 = vld [vmem:[%s2719_s3 + $0x128] sm:$0xff]   ;;  %v2148_v2 = vld [vmem:[%s2719_s3 + $0x130] sm:$0xff]   ;;  %v2150_v4 = vld [vmem:[%s2719_s3 + $0x178] sm:$0xff]  }
  0x1a   : > { %1938 = vmatprep.subr.bf16.mxu1 %v2111_v21  ;;  %v2145_v63 = vld [vmem:[%s2719_s3 + $0x1a8] sm:$0xff]   ;;  %v2149_v3 = vld [vmem:[%s2719_s3 + $0x1b0] sm:$0xff]   ;;  %v2151_v5 = vld [vmem:[%s2719_s3 + $0x1f8] sm:$0xff]  }
  0x1b   : > { %v2152_v6 = vld [vmem:[%s2719_s3 + $0x138] sm:$0xff]   ;;  %v353_v8 = vld [vmem:[%s2361_s17 + $0x10] sm:$0xff]  ;;  %v1097_v14 = vld [vmem:[%s339_s12] sm:$0x3] }
  0x1c   : > { %1917 = vmatpush3.bf16.msra.mxu0 %v2112_v22  ;;  %v2153_v7 = vld [vmem:[%s2719_s3 + $0x1b8] sm:$0xff]   ;;  %v357_v9 = vld [vmem:[%s2361_s17 + $0x30] sm:$0xff]  ;;  %v1109_v18 = vsel %vm1107_vm0, %v1097_v14, 0  ;;  %v2154_v19 = vld [vmem:[%s2717_s1] sm:$0xff]  }
  0x1d   : > { %1939 = vmatpush3.bf16.msra.mxu1 %v2113_v23  ;;  %1918 = vmatprep.subr.bf16.mxu0 %v2114_v24  ;;  %v1779_v10 = vcombine.low %v353_v8, %v357_v9  ;;  %v1780_v11 = vcombine.high %v353_v8, %v357_v9  ;;  %v354_v12 = vld [vmem:[%s2361_s17 + $0x18] sm:$0xff]  ;;  %v2157_v8 = vld [vmem:[%s2722_s6] sm:$0xff]  }
  0x1e   : > { %1940 = vmatprep.subr.bf16.mxu1 %v2115_v25  ;;  %v358_v13 = vld [vmem:[%s2361_s17 + $0x38] sm:$0xff]  ;;  %v2158_v9 = vld [vmem:[%s2722_s6 + $0x80] sm:$0xff]  }
  0x1f   : > { %v1781_v15 = vcombine.low %v354_v12, %v358_v13  ;;  %v1782_v16 = vcombine.high %v354_v12, %v358_v13 }
  0x20   : > { %1919 = vmatpush3.bf16.msra.mxu0 %v2116_v26 }
  0x21   : > { %1941 = vmatpush3.bf16.msra.mxu1 %v2117_v27  ;;  %1920 = vmatprep.subr.bf16.mxu0 %v2118_v28 }
  0x22   : > { %1942 = vmatprep.subr.bf16.mxu1 %v2119_v29 }
  0x24   : > { %1921 = vmatpush3.bf16.msra.mxu0 %v2120_v30 }
  0x25   : > { %1943 = vmatpush3.bf16.msra.mxu1 %v2121_v31  ;;  %1950 = vmatprep.subr.bf16.mxu0 %v2122_v40 }
  0x26   : > { %1972 = vmatprep.subr.bf16.mxu1 %v2123_v41 }
  0x27   : > { %944 = vmatmul.mubr.bf16.vlgmr.msra.gmra.mrb[0].mxu0 %v1775_v35 }
  0x28   : > { %985 = vmatmul.mubr.bf16.vlgmr.msra.gmra.mrb[0].mxu1 %v1777_v38  ;;  %1951 = vmatpush3.bf16.msra.mxu0 %v2124_v42 }
  0x29   : > { %1973 = vmatpush3.bf16.msra.mxu1 %v2125_v43  ;;  %1952 = vmatprep.subr.bf16.mxu0 %v2126_v44 }
  0x2a   : > { %1974 = vmatprep.subr.bf16.mxu1 %v2127_v45  ;;  %1025 = vmatprep.mubr.bf16.mxu0 %v1780_v11 }
  0x2b   : > { %1066 = vmatprep.mubr.bf16.mxu1 %v1782_v16 }
  0x2c   : > { %1953 = vmatpush3.bf16.msra.mxu0 %v2128_v46 }
  0x2d   : > { %1975 = vmatpush3.bf16.msra.mxu1 %v2129_v47  ;;  %1954 = vmatprep.subr.bf16.mxu0 %v2130_v48  ;;  %v1847_v47 = vld [vmem:[%s2720_s4] ss:$0 sm:$0xff] }
  0x2e   : > { %1976 = vmatprep.subr.bf16.mxu1 %v2131_v49  ;;  %v2487_v49 = vshrl.u32 %v1152_v37, 7  ;;  %v2166_v37 = vld [vmem:[%s2722_s6 + $0x90] sm:$0xff]  }
  0x30   : > { %1955 = vmatpush3.bf16.msra.mxu0 %v2132_v50  ;;  %vm1192_vm4 = vcmp.lt.s32.totalorder %v2487_v49, 7  ;;  %vm1183_vm5 = vcmp.lt.s32.totalorder %v2487_v49, 1  ;;  %vm1208_vm9 = vcmp.lt.s32.totalorder %v2487_v49, 4 }
  0x31   : > { %1977 = vmatpush3.bf16.msra.mxu1 %v2133_v51  ;;  %1956 = vmatprep.subr.bf16.mxu0 %v2134_v52  ;;  %v1848_v52 = vld [vmem:[%s2721_s5] ss:$0 sm:$0xff]  ;;  %vm1887_vm15 = vmneg %vm1208_vm9 }
  0x32   : > { %1978 = vmatprep.subr.bf16.mxu1 %v2135_v53  ;;  %vm1888_vm0 = vmpackc.low %vm2202_vm13, %vm1887_vm15 }
  0x34   : > { %1957 = vmatpush3.bf16.msra.mxu0 %v2136_v54 }
  0x35   : > { %1979 = vmatpush3.bf16.msra.mxu1 %v2137_v55  ;;  %1958 = vmatprep.subr.bf16.mxu0 %v2138_v56 }
  0x36   : > { %1980 = vmatprep.subr.bf16.mxu1 %v2139_v57  ;;  %v2493_v57 = vadd.s32 8, %v2487_v49 }
  0x38   : > { %1959 = vmatpush3.bf16.msra.mxu0 %v2140_v58  ;;  %vm1223_vm10 = vcmp.ge.s32.totalorder %v2493_v57, 12 }
  0x39   : > { %1981 = vmatpush3.bf16.msra.mxu1 %v2141_v59  ;;  %1960 = vmatprep.subr.bf16.mxu0 %v2142_v60  ;;  %vm1891_vm12 = vmneg %vm1223_vm10 }
  0x3a   : > { %1982 = vmatprep.subr.bf16.mxu1 %v2143_v61  ;;  %vm1892_vm14 = vmpackc.low %vm1891_vm12, %vm2202_vm13 }
  0x3c   : > { %1961 = vmatpush3.bf16.msra.mxu0 %v2144_v62 }
  0x3d   : > { %1983 = vmatpush3.bf16.msra.mxu1 %v2145_v63  ;;  %1962 = vmatprep.subr.bf16.mxu0 %v2146_v0  ;;  %v1159_v0 = vand.u32 3, %v2487_v49  ;;  %v2188_v49 = vld [vmem:[%s2722_s6 + $0x108] sm:$0xff]  }
  0x3e   : > { %1984 = vmatprep.subr.bf16.mxu1 %v2147_v1  ;;  %v1166_v1 = vand.u32 3, %v2493_v57 }
  0x3f   : > { %vm2503_vm3 = vcmp.eq.s32.totalorder %v1159_v0, 0  ;;  %vm2522_vm7 = vcmp.eq.s32.totalorder %v1159_v0, 3 }
  0x40   : > { %1963 = vmatpush3.bf16.msra.mxu0 %v2148_v2  ;;  %vm2518_vm6 = vcmp.eq.s32.totalorder %v1166_v1, 0  ;;  %vm2526_vm8 = vcmp.eq.s32.totalorder %v1166_v1, 3 }
  0x41   : > { %1985 = vmatpush3.bf16.msra.mxu1 %v2149_v3  ;;  %1964 = vmatprep.subr.bf16.mxu0 %v2150_v4  ;;  %v2155_v4 = vld [vmem:[%s2722_s6 + $0x40] sm:$0xff]  }
  0x42   : > { %1986 = vmatprep.subr.bf16.mxu1 %v2151_v5  ;;  %v2156_v5 = vld [vmem:[%s2722_s6 + $0xc0] sm:$0xff]  }
  0x44   : > { %1965 = vmatpush3.bf16.msra.mxu0 %v2152_v6 }
  0x45   : > { %1987 = vmatpush3.bf16.msra.mxu1 %v2153_v7  ;;  %2045 = vmatprep.subr.bf16.mxu0 %v2199_v17 }
  0x46   : > { %1996 = vmatprep.subr.bf16.mxu1 %v2155_v4 }
  0x47   : > { %1026 = vmatmul.mubr.bf16.vlgmr.msra.gmra.mrb[4].mxu0 %v1779_v10  ;;  %v2159_v10 = vld [vmem:[%s2722_s6 + $0x48] sm:$0xff]  }
  0x48   : > { %1067 = vmatmul.mubr.bf16.vlgmr.msra.gmra.mrb[4].mxu1 %v1781_v15  ;;  %2046 = vmatpush3.bf16.msra.mxu0 %v1109_v18  ;;  %v2160_v15 = vld [vmem:[%s2722_s6 + $0xc8] sm:$0xff]  }
  0x49   : > { %2047 = vmatprep.mubr.msk.bf16.mxu0 %vm2200_vm2, %v2199_v17  ;;  %2018 = vmatprep.subr.bf16.mxu0 %v2156_v5 }
  0x4a   : > { %1997 = vmatpush3.bf16.msra.mxu1 %v2157_v8 }
  0x4b   : > { %1998 = vmatprep.subr.bf16.mxu1 %v2159_v10 }
  0x4f   : > { %2048 = vmatmul.mubr.msk.bf16.vlgmr.msra.gmra.mrb[8].mxu0 %vm1103_vm1, %v2154_v19  ;;  %vm1695_vm1 = vcmask 519168  }
  0x50   : > { %2019 = vmatpush3.bf16.msra.mxu0 %v2158_v9 }
  0x51   : > { %2020 = vmatprep.subr.bf16.mxu0 %v2160_v15 }
  0xfa   : > { %v1922_v20 = vpop.f32.mrb[0].mxu0 }
  0xfb   : > { %v1944_v21 = vpop.f32.mrb[0].mxu1  ;;  %v1923_v22 = vpop.f32.mrb[1].mxu0 }
  0xfc   : > { %v1924_v23 = vadd.f32 %v1923_v22, %v1922_v20  ;;  %v1945_v24 = vpop.f32.mrb[1].mxu1  ;;  %v1925_v25 = vpop.f32.mrb[2].mxu0  ;;  %v2162_v22 = vld [vmem:[%s2722_s6 + $0x88] sm:$0xff]  }
  0xfd   : > { %v1946_v26 = vadd.f32 %v1945_v24, %v1944_v21  ;;  %v1947_v27 = vpop.f32.mrb[2].mxu1  ;;  %v1926_v28 = vpop.f32.mrb[3].mxu0  ;;  %v2161_v21 = vld [vmem:[%s2722_s6 + $0x8] sm:$0xff]   ;;  %v2164_v24 = vld [vmem:[%s2722_s6 + $0xd0] sm:$0xff]   ;;  %2021 = vmatpush3.bf16.msra.mxu0 %v2162_v22 }
  0xfe   : > { %v1927_v29 = vadd.f32 %v1926_v28, %v1925_v25  ;;  %v1948_v30 = vpop.f32.mrb[3].mxu1  ;;  %1999 = vmatpush3.bf16.msra.mxu1 %v2161_v21  ;;  %2022 = vmatprep.subr.bf16.mxu0 %v2164_v24 }
  0xff   : > { %v987_v31 = vadd.f32 %v1946_v26, %v1924_v23  ;;  %v1949_v32 = vadd.f32 %v1948_v30, %v1947_v27  ;;  %v2163_v23 = vld [vmem:[%s2722_s6 + $0x50] sm:$0xff]  }
 0x100   : > { %2000 = vmatprep.subr.bf16.mxu1 %v2163_v23 }
 0x101   : > { %v990_v33 = vadd.f32 %v1949_v32, %v1927_v29  ;;  %2023 = vmatpush3.bf16.msra.mxu0 %v2166_v37 }
 0x11a   : > { %v1966_v34 = vpop.f32.mrb[4].mxu0 }
 0x11b   : > { %v1988_v35 = vpop.f32.mrb[4].mxu1  ;;  %v1967_v36 = vpop.f32.mrb[5].mxu0 }
 0x11c   : > { %v1968_v38 = vadd.f32 %v1967_v36, %v1966_v34  ;;  %v1989_v39 = vpop.f32.mrb[5].mxu1  ;;  %v1969_v40 = vpop.f32.mrb[6].mxu0  ;;  %v2165_v36 = vld [vmem:[%s2722_s6 + $0x10] sm:$0xff]  }
 0x11d   : > { %v1990_v41 = vadd.f32 %v1989_v39, %v1988_v35  ;;  %v1991_v42 = vpop.f32.mrb[6].mxu1  ;;  %v1970_v43 = vpop.f32.mrb[7].mxu0  ;;  %v2168_v39 = vld [vmem:[%s2722_s6 + $0xd8] sm:$0xff]   ;;  %2001 = vmatpush3.bf16.msra.mxu1 %v2165_v36 }
 0x11e   : > { %v1028_v44 = vadd.f32 %v1968_v38, %v987_v31  ;;  %v1971_v45 = vadd.f32 %v1970_v43, %v1969_v40  ;;  %v1992_v46 = vpop.f32.mrb[7].mxu1  ;;  %v2167_v38 = vld [vmem:[%s2722_s6 + $0x58] sm:$0xff]   ;;  %2024 = vmatprep.subr.bf16.mxu0 %v2168_v39 }
 0x11f   : > { %v1993_v48 = vadd.f32 %v1992_v46, %v1991_v42  ;;  %v2169_v43 = vld [vmem:[%s2722_s6 + $0x18] sm:$0xff]   ;;  %2002 = vmatprep.subr.bf16.mxu1 %v2167_v38  ;;  %v2171_v46 = vld [vmem:[%s2722_s6 + $0x60] sm:$0xff]  }
 0x120   : > { %v1069_v50 = vadd.f32 %v1990_v41, %v1028_v44  ;;  %v1031_v51 = vadd.f32 %v1971_v45, %v990_v33  ;;  %v2170_v44 = vld [vmem:[%s2722_s6 + $0x98] sm:$0xff]  }
 0x121   : > { %2003 = vmatpush3.bf16.msra.mxu1 %v2169_v43  ;;  %2025 = vmatpush3.bf16.msra.mxu0 %v2170_v44 }
 0x122   : > { %v1082_v53 = vmul.f32 %v1847_v47, %v1069_v50  ;;  %v1072_v54 = vadd.f32 %v1993_v48, %v1031_v51  ;;  %v1145_v55 = vpop.f32.mrb[8].mxu0  ;;  %v2173_v48 = vld [vmem:[%s2722_s6 + $0x20] sm:$0xff]   ;;  %2004 = vmatprep.subr.bf16.mxu1 %v2171_v46  ;;  %v2175_v51 = vld [vmem:[%s2722_s6 + $0x68] sm:$0xff]  }
 0x123   : > { %v2049_v56 = vpop.f32.mrb[9].mxu0  ;;  %v2174_v50 = vld [vmem:[%s2722_s6 + $0xa0] sm:$0xff]  }
 0x124   : > { %v1083_v58 = vmul.f32 %v1847_v47, %v1072_v54  ;;  %v1091_v59 = vadd.f32 %v1848_v52, %v1082_v53  ;;  %v1148_v60 = vpop.f32.mrb[10].mxu0  ;;  %v2172_v47 = vld [vmem:[%s2722_s6 + $0xe0] sm:$0xff]   ;;  %v2177_v53 = vld [vmem:[%s2722_s6 + $0x28] sm:$0xff]   ;;  %v2180_v56 = vld [vmem:[%s2722_s6 + $0xf0] sm:$0xff]  }
 0x125   : > { %v2050_v61 = vpop.f32.mrb[11].mxu0  ;;  %2026 = vmatprep.subr.bf16.mxu0 %v2172_v47  ;;  %2005 = vmatpush3.bf16.msra.mxu1 %v2173_v48  ;;  %v2178_v54 = vld [vmem:[%s2722_s6 + $0xa8] sm:$0xff]  }
 0x126   : > { %v1093_v62 = vmax.f32 %v1091_v59, 0.0  ;;  %v1092_v63 = vadd.f32 %v1848_v52, %v1083_v58  ;;  %v2176_v52 = vld [vmem:[%s2722_s6 + $0xe8] sm:$0xff]   ;;  %2027 = vmatpush3.bf16.msra.mxu0 %v2174_v50  ;;  %2006 = vmatprep.subr.bf16.mxu1 %v2175_v51  ;;  %v2181_v58 = vld [vmem:[%s2722_s6 + $0x30] sm:$0xff]   ;;  %v2184_v61 = vld [vmem:[%s2722_s6 + $0xf8] sm:$0xff]  }
 0x127   : > { %2028 = vmatprep.subr.bf16.mxu0 %v2176_v52  ;;  %v2182_v59 = vld [vmem:[%s2722_s6 + $0xb0] sm:$0xff]  }
 0x128   : > { %v1146_v2 = vadd.f32 %v1145_v55, %v1093_v62  ;;  %v1094_v3 = vmax.f32 %v1092_v63, 0.0  ;;  %v2179_v55 = vld [vmem:[%s2722_s6 + $0x70] sm:$0xff]   ;;  %v2185_v62 = vld [vmem:[%s2722_s6 + $0x38] sm:$0xff]  }
 0x129   : > { %2007 = vmatpush3.bf16.msra.mxu1 %v2177_v53  ;;  %v2186_v63 = vld [vmem:[%s2722_s6 + $0xb8] sm:$0xff]  }
 0x12a   : > { %v1149_v6 = vadd.f32 %v1148_v60, %v1094_v3  ;;  %v1181_v11 = vrot.slane %v1146_v2, 7  ;;  %v1190_v16 = vrot.slane %v1146_v2, 1  ;;  %2029 = vmatpush3.bf16.msra.mxu0 %v2178_v54  ;;  %2008 = vmatprep.subr.bf16.mxu1 %v2179_v55  ;;  %v2183_v60 = vld [vmem:[%s2722_s6 + $0x78] sm:$0xff]  }
 0x12b   : > { %2030 = vmatprep.subr.bf16.mxu0 %v2180_v56 }
 0x12c   : > { %v1182_v18 = vrot.slane %v1149_v6, 7  ;;  %v1191_v19 = vrot.slane %v1149_v6, 1  ;;  %v2075_v20 = vpack.i.bf16 %v1149_v6, %v1146_v2 }
 0x12d   : > { %2009 = vmatpush3.bf16.msra.mxu1 %v2181_v58 }
 0x12e   : > { %2076 = vrot.lane.b32.xlu0 %v2075_v20, %s2201_s24  ;;  %v1193_v25 = vsel %vm1192_vm4, %v1190_v16, %v1191_v19  ;;  %v1194_v26 = vsel %vm1192_vm4, %v1191_v19, %v1190_v16  ;;  %v2553_v27 = vsel %vm1183_vm5, %v1181_v11, %v1182_v18  ;;  %v2557_v28 = vsel %vm1183_vm5, %v1182_v18, %v1181_v11 }
 0x12f   : > { %v1195_v29 = vsel %vm2522_vm7, 0.0, %v1193_v25  ;;  %v1196_v30 = vsel %vm2526_vm8, 0.0, %v1194_v26  ;;  %v1186_v31 = vsel %vm2503_vm3, 0.0, %v2557_v28  ;;  %v1187_v32 = vsel %vm2518_vm6, 0.0, %v2553_v27  ;;  %2031 = vmatpush3.bf16.msra.mxu0 %v2182_v59  ;;  %2010 = vmatprep.subr.bf16.mxu1 %v2183_v60  ;;  %v2187_v25 = vld [vmem:[%s2722_s6 + $0x100] sm:$0xff]   ;;  %v2189_v26 = vld [vmem:[%s2722_s6 + $0x110] sm:$0xff]  }
 0x130   : > { %v1213_v33 = vrot.slane %v1196_v30, 4  ;;  %v2085_v34 = vpack.i.bf16 %v1196_v30, %v1195_v29  ;;  %v1211_v35 = vrot.slane %v1195_v29, 4  ;;  %2032 = vmatprep.subr.bf16.mxu0 %v2184_v61  ;;  %v2190_v27 = vld [vmem:[%s2722_s6 + $0x118] sm:$0xff]  }
 0x131   : > { %2011 = vmatpush3.bf16.msra.mxu1 %v2185_v62 }
 0x132   : > { %2086 = vrot.lane.b32.xlu1 %v2085_v34, %s2201_s24  ;;  %v2585_v40 = vsel %vm1208_vm9, %v1213_v33, %v1211_v35  ;;  %v2589_v41 = vsel %vm1208_vm9, %v1211_v35, %v1213_v33  ;;  %2051 = vmatprep.subr.bf16.mxu1 %v2199_v17 }
 0x133   : > { %v2594_v42 = vsel %vm1223_vm10, 0.0, %v2585_v40  ;;  %2033 = vmatpush3.bf16.msra.mxu0 %v2186_v63  ;;  %v1219_v18 = vsel %vm1208_vm9, 0.0, %v2585_v40 }
 0x134   : > { %v1252_v45 = vpack.c.bf16 %v2594_v42, %v2589_v41 }
 0x1a0   : > { %v2077_v0 = vpop.permute.xlu0 %2076 }
 0x1a1   : > { %v2079_v1 = vunpack.i.h.bf16 %v2077_v0  ;;  %v2078_v2 = vunpack.i.l.bf16 %v2077_v0 }
 0x1a3   : > { %v1206_v3 = vsel %vm1205_vm11, %v1186_v31, %v2078_v2  ;;  %v1207_v4 = vsel %vm1205_vm11, %v1187_v32, %v2079_v1 }
 0x1a4   : > { %v1210_v5 = vrot.slane %v1206_v3, 4  ;;  %v2080_v6 = vpack.i.bf16 %v1207_v4, %v1206_v3  ;;  %v1212_v8 = vrot.slane %v1207_v4, 4  ;;  %v2087_v12 = vpop.permute.xlu1 %2086 }
 0x1a5   : > { %v2089_v13 = vunpack.i.h.bf16 %v2087_v12  ;;  %v2088_v14 = vunpack.i.l.bf16 %v2087_v12 }
 0x1a6   : > { %2081 = vrot.lane.b32.xlu0 %v2080_v6, %s2201_s24  ;;  %v1214_v7 = vsel %vm1208_vm9, %v1210_v5, %v1212_v8  ;;  %v1216_v9 = vsel %vm1208_vm9, %v1212_v8, %v1210_v5 }
 0x1a7   : > { %v1889_v10 = vpack.c.bf16 %v1214_v7, %v1216_v9  ;;  %v1893_v11 = vpack.c.bf16 %v1216_v9, %v1214_v7 }
 0x1a9   : > { %1894 = vmatprep.mubr.msk.bf16.mxu0 %vm1892_vm14, %v1893_v11 }
 0x218   : > { %v2082_v57 = vpop.permute.xlu0 %2081 }
 0x219   : > { %v2084_v15 = vunpack.i.h.bf16 %v2082_v57  ;;  %v2083_v16 = vunpack.i.l.bf16 %v2082_v57 }
 0x21b   : > { %v1241_v19 = vsel %vm1205_vm11, %v2084_v15, %v2089_v13  ;;  %v1240_v20 = vsel %vm1205_vm11, %v2083_v16, %v2088_v14  ;;  %v1246_v21 = vsel %vm1205_vm11, %v1219_v18, %v2083_v16  ;;  %v1247_v22 = vsel %vm1205_vm11, %v2589_v41, %v2084_v15  ;;  %v1896_v41 = vld [vmem:[%s2723_s7] ss:$0 sm:$0xff] }
 0x21c   : > { %v1250_v23 = vpack.c.bf16 %v1241_v19, %v1240_v20  ;;  %v1249_v24 = vpack.c.bf16 %v1247_v22, %v1246_v21 }
 0x21e   : > { %1576 = vmatprep.mubr.bf16.mxu1 %v1249_v24  ;;  %1618 = vmatmul.mubr.bf16.vlgmr.msra.gmra.mrb[12].mxu0 %v1250_v23 }
 0x21f   : > { %1890 = vmatmul.mubr.msk.bf16.vlgmr.msra.gmra.mrb[8].mxu1 %vm1888_vm0, %v1889_v10 }
 0x220   : > { %2052 = vmatpush3.bf16.msra.mxu1 %v2187_v25  ;;  %2059 = vmatprep.mubr.msk.bf16.mxu1 %vm2200_vm2, %v2199_v17 }
 0x221   : > { %2053 = vmatprep.subr.bf16.mxu1 %v2199_v17 }
 0x224   : > { %2054 = vmatpush3.bf16.msra.mxu1 %v2188_v49 }
 0x225   : > { %2055 = vmatprep.subr.bf16.mxu1 %v2199_v17 }
 0x228   : > { %2056 = vmatpush3.bf16.msra.mxu1 %v2189_v26 }
 0x229   : > { %2057 = vmatprep.subr.bf16.mxu1 %v2199_v17 }
 0x22c   : > { %2058 = vmatpush3.bf16.msra.mxu1 %v2190_v27 }
 0x22f   : > { %2060 = vmatmul.mubr.msk.bf16.vlgmr.msra.gmra.mrb[12].mxu1 %vm1205_vm11, %v1252_v45  ;;  %v1897_v45 = vld [vmem:[%s2724_s8] ss:$0 sm:$0xff] }
 0x2f1   : > { %v2034_v28 = vpop.f32.mrb[12].mxu0 }
 0x2f2   : > { %v2012_v29 = vpop.f32.mrb[8].mxu1  ;;  %v2035_v30 = vpop.f32.mrb[13].mxu0 }
 0x2f3   : > { %v2036_v31 = vadd.f32 %v2035_v30, %v2034_v28  ;;  %v2013_v32 = vpop.f32.mrb[9].mxu1  ;;  %v2037_v33 = vpop.f32.mrb[14].mxu0 }
 0x2f4   : > { %v2014_v34 = vadd.f32 %v2013_v32, %v2012_v29  ;;  %v2015_v35 = vpop.f32.mrb[10].mxu1  ;;  %v2038_v36 = vpop.f32.mrb[15].mxu0 }
 0x2f5   : > { %v2039_v37 = vadd.f32 %v2038_v36, %v2037_v33  ;;  %v2016_v38 = vpop.f32.mrb[11].mxu1 }
 0x2f6   : > { %v2017_v39 = vadd.f32 %v2016_v38, %v2015_v35  ;;  %v1620_v17 = vadd.f32 %v2036_v31, %v2014_v34 }
 0x2f8   : > { %v1623_v40 = vadd.f32 %v2039_v37, %v2017_v39 }
 0x302   : > { %v1660_v43 = vpop.f32.mrb[12].mxu1 }
 0x303   : > { %v1661_v42 = vadd.f32 %v1660_v43, %v1620_v17  ;;  %v2061_v44 = vpop.f32.mrb[13].mxu1 }
 0x304   : > { %v1663_v46 = vpop.f32.mrb[14].mxu1 }
 0x305   : > { %v1674_v47 = vmul.f32 %v1896_v41, %v1661_v42  ;;  %v1664_v48 = vadd.f32 %v1663_v46, %v1623_v40  ;;  %v2062_v50 = vpop.f32.mrb[15].mxu1 }
 0x307   : > { %v1683_v51 = vadd.f32 %v1897_v45, %v1674_v47  ;;  %v1675_v52 = vmul.f32 %v1896_v41, %v1664_v48 }
 0x309   : > { %v1685_v53 = vmax.f32 %v1683_v51, 0.0  ;;  %v1684_v54 = vadd.f32 %v1897_v45, %v1675_v52 }
 0x30b   : > { %v1904_v55 = vpack.c.bf16 %v1685_v53, %v1685_v53  ;;  %v1686_v56 = vmax.f32 %v1684_v54, 0.0 }
 0x30d   : > { %1696 = vst.msk [vmem:[%s349_s29] sm:$0xf] %vm1695_vm1, %v1904_v55  ;;  %v1905_v58 = vpack.c.bf16 %v1686_v56, %v1686_v56 }
 0x30f   : > { %1697 = vst.msk [vmem:[%s349_s29 + $0x4] sm:$0xf] %vm1695_vm1, %v1905_v58 }
 0x310 PF: > { %s19_s30 = sadd.s32 1, %s2197_s30  }
 0x311   : > { %p16_p4 = scmp.ge.s32.totalorder %s19_s30, 4  }
 0x313   :  { %18 = sbr.rel (!%p16_p4) target bundleno = 1 (0x1), region = 89 }

// kernel: multi_scale_dense121_forward.11
= control target key start
LH: loop header
LB: loop body
LE: loop exit
PB: predicated region body
PF: predicated region fallthrough
CT: control target
= control target key end

     0   :  { %s6202_s1 = inlined_call_operand.vmem [shape: bf16[1024,1024], index: 1, kind: input, shape index: {}]   ;;  %s6203_s0 = inlined_call_operand.vmem [shape: bf16[8,1024], index: 0, kind: input, shape index: {}]   ;;  %s6204_s2 = inlined_call_operand.vmem [shape: f32[1,1024], index: 2, kind: input, shape index: {}]   ;;  %s6205_s3 = inlined_call_operand.vmem [shape: f32[1,1024], index: 3, kind: input, shape index: {}]   ;;  %s6206_s4 = inlined_call_operand.vmem [shape: bf16[8,1024], index: 4, kind: output, shape index: {}]  }
   0x1   :  { %v21_v0 = vld [vmem:[%s6202_s1] sm:$0xff]  ;;  %v22_v2 = vld [vmem:[%s6202_s1 + $0x8] sm:$0xff] }
   0x2   :  { %v25_v1 = vld [vmem:[%s6202_s1 + $0x20] sm:$0xff]  ;;  %v26_v4 = vld [vmem:[%s6202_s1 + $0x28] sm:$0xff] }
   0x3   :  { %v3934_v3 = vcombine.high %v21_v0, %v25_v1  ;;  %v3933_v5 = vcombine.low %v21_v0, %v25_v1  ;;  %v29_v6 = vld [vmem:[%s6202_s1 + $0x40] sm:$0xff]  ;;  %v3936_v8 = vcombine.high %v22_v2, %v26_v4  ;;  %v3935_v9 = vcombine.low %v22_v2, %v26_v4  ;;  %v30_v11 = vld [vmem:[%s6202_s1 + $0x48] sm:$0xff] }
   0x4   :  { %v33_v7 = vld [vmem:[%s6202_s1 + $0x60] sm:$0xff]  ;;  %v34_v12 = vld [vmem:[%s6202_s1 + $0x68] sm:$0xff] }
   0x5   :  { %v3942_v10 = vcombine.high %v29_v6, %v33_v7  ;;  %v37_v13 = vld [vmem:[%s6202_s1 + $0x80] sm:$0xff]  ;;  %3121 = vmatprep.subr.bf16.mxu0 %v3934_v3  ;;  %v3944_v14 = vcombine.high %v30_v11, %v34_v12  ;;  %v38_v16 = vld [vmem:[%s6202_s1 + $0x88] sm:$0xff]  ;;  %3285 = vmatprep.subr.bf16.mxu1 %v3936_v8  ;;  %v3941_v18 = vcombine.low %v29_v6, %v33_v7 }
   0x6   :  { %v41_v15 = vld [vmem:[%s6202_s1 + $0xa0] sm:$0xff]  ;;  %v42_v17 = vld [vmem:[%s6202_s1 + $0xa8] sm:$0xff]  ;;  %3122 = vmatpush1.bf16.msra.mxu0 %v3933_v5  ;;  %3286 = vmatpush1.bf16.msra.mxu1 %v3935_v9  ;;  %v3943_v19 = vcombine.low %v30_v11, %v34_v12 }
   0x7   :  { %3123 = vmatprep.subr.bf16.mxu0 %v3942_v10  ;;  %v3950_v20 = vcombine.high %v37_v13, %v41_v15  ;;  %3287 = vmatprep.subr.bf16.mxu1 %v3944_v14  ;;  %v3952_v21 = vcombine.high %v38_v16, %v42_v17  ;;  %v45_v22 = vld [vmem:[%s6202_s1 + $0xc0] sm:$0xff]  ;;  %v46_v24 = vld [vmem:[%s6202_s1 + $0xc8] sm:$0xff]  ;;  %v3949_v26 = vcombine.low %v37_v13, %v41_v15 }
   0x8   :  { %v49_v23 = vld [vmem:[%s6202_s1 + $0xe0] sm:$0xff]  ;;  %v50_v25 = vld [vmem:[%s6202_s1 + $0xe8] sm:$0xff]  ;;  %v3951_v27 = vcombine.low %v38_v16, %v42_v17 }
   0x9   :  { %v3958_v28 = vcombine.high %v45_v22, %v49_v23  ;;  %v3960_v29 = vcombine.high %v46_v24, %v50_v25  ;;  %v53_v30 = vld [vmem:[%s6202_s1 + $0x100] sm:$0xff]  ;;  %v54_v32 = vld [vmem:[%s6202_s1 + $0x108] sm:$0xff]  ;;  %v3957_v34 = vcombine.low %v45_v22, %v49_v23  ;;  %v3959_v35 = vcombine.low %v46_v24, %v50_v25 }
   0xa   :  { %3124 = vmatpush1.bf16.msra.mxu0 %v3941_v18  ;;  %3288 = vmatpush1.bf16.msra.mxu1 %v3943_v19  ;;  %v57_v31 = vld [vmem:[%s6202_s1 + $0x120] sm:$0xff]  ;;  %v58_v33 = vld [vmem:[%s6202_s1 + $0x128] sm:$0xff] }
   0xb   :  { %3125 = vmatprep.subr.bf16.mxu0 %v3950_v20  ;;  %3289 = vmatprep.subr.bf16.mxu1 %v3952_v21  ;;  %v3966_v36 = vcombine.high %v53_v30, %v57_v31  ;;  %v3968_v37 = vcombine.high %v54_v32, %v58_v33  ;;  %v61_v38 = vld [vmem:[%s6202_s1 + $0x140] sm:$0xff]  ;;  %v62_v40 = vld [vmem:[%s6202_s1 + $0x148] sm:$0xff]  ;;  %v3965_v42 = vcombine.low %v53_v30, %v57_v31 }
   0xc   :  { %v65_v39 = vld [vmem:[%s6202_s1 + $0x160] sm:$0xff]  ;;  %v66_v41 = vld [vmem:[%s6202_s1 + $0x168] sm:$0xff]  ;;  %v3967_v43 = vcombine.low %v54_v32, %v58_v33 }
   0xd   :  { %v3974_v44 = vcombine.high %v61_v38, %v65_v39  ;;  %v3976_v45 = vcombine.high %v62_v40, %v66_v41  ;;  %v69_v46 = vld [vmem:[%s6202_s1 + $0x180] sm:$0xff]  ;;  %v70_v48 = vld [vmem:[%s6202_s1 + $0x188] sm:$0xff]  ;;  %v3973_v50 = vcombine.low %v61_v38, %v65_v39  ;;  %v3975_v51 = vcombine.low %v62_v40, %v66_v41 }
   0xe   :  { %3126 = vmatpush1.bf16.msra.mxu0 %v3949_v26  ;;  %3290 = vmatpush1.bf16.msra.mxu1 %v3951_v27  ;;  %v73_v47 = vld [vmem:[%s6202_s1 + $0x1a0] sm:$0xff]  ;;  %v74_v49 = vld [vmem:[%s6202_s1 + $0x1a8] sm:$0xff] }
   0xf   :  { %3127 = vmatprep.subr.bf16.mxu0 %v3958_v28  ;;  %3291 = vmatprep.subr.bf16.mxu1 %v3960_v29  ;;  %v3982_v52 = vcombine.high %v69_v46, %v73_v47  ;;  %v4621_v53 = vld [vmem:[%s6203_s0] sm:$0xff]  ;;  %v3984_v54 = vcombine.high %v70_v48, %v74_v49  ;;  %v78_v58 = vld [vmem:[%s6202_s1 + $0x1c8] sm:$0xff]  ;;  %v3981_v60 = vcombine.low %v69_v46, %v73_v47 }
  0x10   :  { %v77_v55 = vld [vmem:[%s6202_s1 + $0x1c0] sm:$0xff]  ;;  %v4631_v57 = vcombine.high %v4621_v53, %v4621_v53  ;;  %v82_v59 = vld [vmem:[%s6202_s1 + $0x1e8] sm:$0xff]  ;;  %v3983_v61 = vcombine.low %v70_v48, %v74_v49 }
  0x11   :  { %v81_v56 = vld [vmem:[%s6202_s1 + $0x1e0] sm:$0xff]  ;;  %v3992_v63 = vcombine.high %v78_v58, %v82_v59  ;;  %v86_v2 = vld [vmem:[%s6202_s1 + $0x208] sm:$0xff]  ;;  %v3991_v5 = vcombine.low %v78_v58, %v82_v59 }
  0x12   :  { %3128 = vmatpush1.bf16.msra.mxu0 %v3957_v34  ;;  %3292 = vmatpush1.bf16.msra.mxu1 %v3959_v35  ;;  %v3990_v62 = vcombine.high %v77_v55, %v81_v56  ;;  %v85_v0 = vld [vmem:[%s6202_s1 + $0x200] sm:$0xff]  ;;  %v90_v3 = vld [vmem:[%s6202_s1 + $0x228] sm:$0xff]  ;;  %v3989_v4 = vcombine.low %v77_v55, %v81_v56 }
  0x13   :  { %3129 = vmatprep.subr.bf16.mxu0 %v3966_v36  ;;  %3293 = vmatprep.subr.bf16.mxu1 %v3968_v37  ;;  %v89_v1 = vld [vmem:[%s6202_s1 + $0x220] sm:$0xff]  ;;  %v4000_v7 = vcombine.high %v86_v2, %v90_v3  ;;  %v94_v10 = vld [vmem:[%s6202_s1 + $0x248] sm:$0xff]  ;;  %v3999_v13 = vcombine.low %v86_v2, %v90_v3 }
  0x14   :  { %3153 = vmatprep.mubr.bf16.mxu0 %v4631_v57  ;;  %3317 = vmatprep.mubr.bf16.mxu1 %v4631_v57  ;;  %v3998_v6 = vcombine.high %v85_v0, %v89_v1  ;;  %v93_v8 = vld [vmem:[%s6202_s1 + $0x240] sm:$0xff]  ;;  %v98_v11 = vld [vmem:[%s6202_s1 + $0x268] sm:$0xff]  ;;  %v3997_v12 = vcombine.low %v85_v0, %v89_v1 }
  0x15   :  { %v97_v9 = vld [vmem:[%s6202_s1 + $0x260] sm:$0xff]  ;;  %v4008_v15 = vcombine.high %v94_v10, %v98_v11  ;;  %v102_v18 = vld [vmem:[%s6202_s1 + $0x288] sm:$0xff]  ;;  %v4007_v21 = vcombine.low %v94_v10, %v98_v11 }
  0x16   :  { %3130 = vmatpush1.bf16.msra.mxu0 %v3965_v42  ;;  %3294 = vmatpush1.bf16.msra.mxu1 %v3967_v43  ;;  %v4006_v14 = vcombine.high %v93_v8, %v97_v9  ;;  %v101_v16 = vld [vmem:[%s6202_s1 + $0x280] sm:$0xff]  ;;  %v106_v19 = vld [vmem:[%s6202_s1 + $0x2a8] sm:$0xff]  ;;  %v4005_v20 = vcombine.low %v93_v8, %v97_v9 }
  0x17   :  { %3131 = vmatprep.subr.bf16.mxu0 %v3974_v44  ;;  %3295 = vmatprep.subr.bf16.mxu1 %v3976_v45  ;;  %v105_v17 = vld [vmem:[%s6202_s1 + $0x2a0] sm:$0xff]  ;;  %v4016_v23 = vcombine.high %v102_v18, %v106_v19  ;;  %v110_v26 = vld [vmem:[%s6202_s1 + $0x2c8] sm:$0xff]  ;;  %v4015_v29 = vcombine.low %v102_v18, %v106_v19 }
  0x18   :  { %v4014_v22 = vcombine.high %v101_v16, %v105_v17  ;;  %v109_v24 = vld [vmem:[%s6202_s1 + $0x2c0] sm:$0xff]  ;;  %v114_v27 = vld [vmem:[%s6202_s1 + $0x2e8] sm:$0xff]  ;;  %v4013_v28 = vcombine.low %v101_v16, %v105_v17 }
  0x19   :  { %v113_v25 = vld [vmem:[%s6202_s1 + $0x2e0] sm:$0xff]  ;;  %v4024_v31 = vcombine.high %v110_v26, %v114_v27  ;;  %v118_v34 = vld [vmem:[%s6202_s1 + $0x308] sm:$0xff]  ;;  %v4023_v37 = vcombine.low %v110_v26, %v114_v27 }
  0x1a   :  { %3132 = vmatpush1.bf16.msra.mxu0 %v3973_v50  ;;  %3296 = vmatpush1.bf16.msra.mxu1 %v3975_v51  ;;  %v4022_v30 = vcombine.high %v109_v24, %v113_v25  ;;  %v117_v32 = vld [vmem:[%s6202_s1 + $0x300] sm:$0xff]  ;;  %v122_v35 = vld [vmem:[%s6202_s1 + $0x328] sm:$0xff]  ;;  %v4021_v36 = vcombine.low %v109_v24, %v113_v25 }
  0x1b   :  { %3133 = vmatprep.subr.bf16.mxu0 %v3982_v52  ;;  %3297 = vmatprep.subr.bf16.mxu1 %v3984_v54  ;;  %v121_v33 = vld [vmem:[%s6202_s1 + $0x320] sm:$0xff]  ;;  %v4032_v39 = vcombine.high %v118_v34, %v122_v35  ;;  %v126_v42 = vld [vmem:[%s6202_s1 + $0x348] sm:$0xff]  ;;  %v4031_v45 = vcombine.low %v118_v34, %v122_v35 }
  0x1c   :  { %v4030_v38 = vcombine.high %v117_v32, %v121_v33  ;;  %v125_v40 = vld [vmem:[%s6202_s1 + $0x340] sm:$0xff]  ;;  %v130_v43 = vld [vmem:[%s6202_s1 + $0x368] sm:$0xff]  ;;  %v4029_v44 = vcombine.low %v117_v32, %v121_v33 }
  0x1d   :  { %v129_v41 = vld [vmem:[%s6202_s1 + $0x360] sm:$0xff]  ;;  %v4040_v47 = vcombine.high %v126_v42, %v130_v43  ;;  %v134_v50 = vld [vmem:[%s6202_s1 + $0x388] sm:$0xff]  ;;  %v4039_v54 = vcombine.low %v126_v42, %v130_v43 }
  0x1e   :  { %3134 = vmatpush1.bf16.msra.mxu0 %v3981_v60  ;;  %3298 = vmatpush1.bf16.msra.mxu1 %v3983_v61  ;;  %v4038_v46 = vcombine.high %v125_v40, %v129_v41  ;;  %v133_v48 = vld [vmem:[%s6202_s1 + $0x380] sm:$0xff]  ;;  %v138_v51 = vld [vmem:[%s6202_s1 + $0x3a8] sm:$0xff]  ;;  %v4037_v52 = vcombine.low %v125_v40, %v129_v41 }
  0x1f   :  { %3135 = vmatprep.subr.bf16.mxu0 %v3990_v62  ;;  %3299 = vmatprep.subr.bf16.mxu1 %v3992_v63  ;;  %v137_v49 = vld [vmem:[%s6202_s1 + $0x3a0] sm:$0xff]  ;;  %v4048_v56 = vcombine.high %v134_v50, %v138_v51  ;;  %v142_v60 = vld [vmem:[%s6202_s1 + $0x3c8] sm:$0xff]  ;;  %v4047_v63 = vcombine.low %v134_v50, %v138_v51 }
  0x20   :  { %v4046_v55 = vcombine.high %v133_v48, %v137_v49  ;;  %v141_v58 = vld [vmem:[%s6202_s1 + $0x3c0] sm:$0xff]  ;;  %v146_v61 = vld [vmem:[%s6202_s1 + $0x3e8] sm:$0xff]  ;;  %v4045_v62 = vcombine.low %v133_v48, %v137_v49 }
  0x21   :  { %v145_v59 = vld [vmem:[%s6202_s1 + $0x3e0] sm:$0xff]  ;;  %v4056_v1 = vcombine.high %v142_v60, %v146_v61 }
  0x22   :  { %3136 = vmatpush1.bf16.msra.mxu0 %v3989_v4  ;;  %3300 = vmatpush1.bf16.msra.mxu1 %v3991_v5  ;;  %v4054_v0 = vcombine.high %v141_v58, %v145_v59  ;;  %v149_v2 = vld [vmem:[%s6202_s1 + $0x400] sm:$0xff]  ;;  %v150_v4 = vld [vmem:[%s6202_s1 + $0x408] sm:$0xff] }
  0x23   :  { %3137 = vmatprep.subr.bf16.mxu0 %v3998_v6  ;;  %3301 = vmatprep.subr.bf16.mxu1 %v4000_v7  ;;  %v153_v3 = vld [vmem:[%s6202_s1 + $0x420] sm:$0xff]  ;;  %v154_v5 = vld [vmem:[%s6202_s1 + $0x428] sm:$0xff]  ;;  %v4053_v6 = vcombine.low %v141_v58, %v145_v59  ;;  %v4055_v7 = vcombine.low %v142_v60, %v146_v61 }
  0x24   :  { %v4062_v8 = vcombine.high %v149_v2, %v153_v3  ;;  %v4064_v9 = vcombine.high %v150_v4, %v154_v5  ;;  %v157_v10 = vld [vmem:[%s6202_s1 + $0x440] sm:$0xff]  ;;  %v4061_v16 = vcombine.low %v149_v2, %v153_v3  ;;  %v4063_v17 = vcombine.low %v150_v4, %v154_v5 }
  0x25   :  { %v161_v11 = vld [vmem:[%s6202_s1 + $0x460] sm:$0xff] }
  0x26   :  { %3138 = vmatpush1.bf16.msra.mxu0 %v3997_v12  ;;  %3302 = vmatpush1.bf16.msra.mxu1 %v3999_v13  ;;  %v4757_v12 = vcombine.low %v4621_v53, %v4621_v53  ;;  %v158_v13 = vld [vmem:[%s6202_s1 + $0x448] sm:$0xff]  ;;  %v4070_v53 = vcombine.high %v157_v10, %v161_v11  ;;  %v165_v19 = vld [vmem:[%s6202_s1 + $0x480] sm:$0xff]  ;;  %v4069_v24 = vcombine.low %v157_v10, %v161_v11 }
  0x27   :  { %3139 = vmatprep.subr.bf16.mxu0 %v4006_v14  ;;  %3303 = vmatprep.subr.bf16.mxu1 %v4008_v15  ;;  %v162_v14 = vld [vmem:[%s6202_s1 + $0x468] sm:$0xff] }
  0x28   :  { %v4768_v15 = vld [vmem:[%s6203_s0 + $0x8] sm:$0xff]  ;;  %v4072_v18 = vcombine.high %v158_v13, %v162_v14  ;;  %v4071_v25 = vcombine.low %v158_v13, %v162_v14 }
  0x2a   :  { %3140 = vmatpush1.bf16.msra.mxu0 %v4005_v20  ;;  %3304 = vmatpush1.bf16.msra.mxu1 %v4007_v21  ;;  %v169_v20 = vld [vmem:[%s6202_s1 + $0x4a0] sm:$0xff]  ;;  %v4778_v21 = vcombine.high %v4768_v15, %v4768_v15 }
  0x2b   :  { %3141 = vmatprep.subr.bf16.mxu0 %v4014_v22  ;;  %3305 = vmatprep.subr.bf16.mxu1 %v4016_v23  ;;  %v166_v22 = vld [vmem:[%s6202_s1 + $0x488] sm:$0xff]  ;;  %v4078_v26 = vcombine.high %v165_v19, %v169_v20  ;;  %v4077_v32 = vcombine.low %v165_v19, %v169_v20 }
  0x2c   :  { %v170_v23 = vld [vmem:[%s6202_s1 + $0x4a8] sm:$0xff] }
  0x2d   :  { %v4080_v27 = vcombine.high %v166_v22, %v170_v23  ;;  %v4079_v33 = vcombine.low %v166_v22, %v170_v23 }
  0x2e   :  { %3142 = vmatpush1.bf16.msra.mxu0 %v4013_v28  ;;  %3306 = vmatpush1.bf16.msra.mxu1 %v4015_v29  ;;  %v173_v28 = vld [vmem:[%s6202_s1 + $0x4c0] sm:$0xff] }
  0x2f   :  { %3143 = vmatprep.subr.bf16.mxu0 %v4022_v30  ;;  %3307 = vmatprep.subr.bf16.mxu1 %v4024_v31  ;;  %v177_v29 = vld [vmem:[%s6202_s1 + $0x4e0] sm:$0xff]  ;;  %v174_v30 = vld [vmem:[%s6202_s1 + $0x4c8] sm:$0xff] }
  0x30   :  { %v178_v31 = vld [vmem:[%s6202_s1 + $0x4e8] sm:$0xff]  ;;  %v4086_v34 = vcombine.high %v173_v28, %v177_v29  ;;  %v4085_v40 = vcombine.low %v173_v28, %v177_v29 }
  0x31   :  { %v4088_v35 = vcombine.high %v174_v30, %v178_v31  ;;  %v4087_v41 = vcombine.low %v174_v30, %v178_v31 }
  0x32   :  { %3144 = vmatpush1.bf16.msra.mxu0 %v4021_v36  ;;  %3308 = vmatpush1.bf16.msra.mxu1 %v4023_v37  ;;  %v181_v36 = vld [vmem:[%s6202_s1 + $0x500] sm:$0xff] }
  0x33   :  { %3145 = vmatprep.subr.bf16.mxu0 %v4030_v38  ;;  %3309 = vmatprep.subr.bf16.mxu1 %v4032_v39  ;;  %v185_v37 = vld [vmem:[%s6202_s1 + $0x520] sm:$0xff]  ;;  %v182_v38 = vld [vmem:[%s6202_s1 + $0x508] sm:$0xff] }
  0x34   :  { %v186_v39 = vld [vmem:[%s6202_s1 + $0x528] sm:$0xff]  ;;  %v4094_v42 = vcombine.high %v181_v36, %v185_v37  ;;  %v4093_v48 = vcombine.low %v181_v36, %v185_v37 }
  0x35   :  { %v4096_v43 = vcombine.high %v182_v38, %v186_v39  ;;  %v4095_v49 = vcombine.low %v182_v38, %v186_v39 }
  0x36   :  { %3146 = vmatpush1.bf16.msra.mxu0 %v4029_v44  ;;  %3310 = vmatpush1.bf16.msra.mxu1 %v4031_v45  ;;  %v189_v44 = vld [vmem:[%s6202_s1 + $0x540] sm:$0xff] }
  0x37   :  { %3147 = vmatprep.subr.bf16.mxu0 %v4038_v46  ;;  %3311 = vmatprep.subr.bf16.mxu1 %v4040_v47  ;;  %v193_v45 = vld [vmem:[%s6202_s1 + $0x560] sm:$0xff]  ;;  %v190_v46 = vld [vmem:[%s6202_s1 + $0x548] sm:$0xff] }
  0x38   :  { %v194_v47 = vld [vmem:[%s6202_s1 + $0x568] sm:$0xff]  ;;  %v4102_v50 = vcombine.high %v189_v44, %v193_v45  ;;  %v4101_v58 = vcombine.low %v189_v44, %v193_v45 }
  0x39   :  { %v4104_v51 = vcombine.high %v190_v46, %v194_v47  ;;  %v4103_v59 = vcombine.low %v190_v46, %v194_v47 }
  0x3a   :  { %3148 = vmatpush1.bf16.msra.mxu0 %v4037_v52  ;;  %3312 = vmatpush1.bf16.msra.mxu1 %v4039_v54  ;;  %v197_v52 = vld [vmem:[%s6202_s1 + $0x580] sm:$0xff] }
  0x3b   :  { %3149 = vmatprep.subr.bf16.mxu0 %v4046_v55  ;;  %3313 = vmatprep.subr.bf16.mxu1 %v4048_v56  ;;  %v201_v54 = vld [vmem:[%s6202_s1 + $0x5a0] sm:$0xff]  ;;  %v198_v55 = vld [vmem:[%s6202_s1 + $0x588] sm:$0xff] }
  0x3c   :  { %v202_v56 = vld [vmem:[%s6202_s1 + $0x5a8] sm:$0xff]  ;;  %v4110_v60 = vcombine.high %v197_v52, %v201_v54  ;;  %v4109_v2 = vcombine.low %v197_v52, %v201_v54 }
  0x3d   :  { %v4112_v61 = vcombine.high %v198_v55, %v202_v56  ;;  %v4111_v3 = vcombine.low %v198_v55, %v202_v56 }
  0x3e   :  { %3150 = vmatpush1.bf16.msra.mxu0 %v4045_v62  ;;  %3314 = vmatpush1.bf16.msra.mxu1 %v4047_v63  ;;  %v205_v62 = vld [vmem:[%s6202_s1 + $0x5c0] sm:$0xff] }
  0x3f   :  { %3151 = vmatprep.subr.bf16.mxu0 %v4054_v0  ;;  %3315 = vmatprep.subr.bf16.mxu1 %v4056_v1  ;;  %v209_v63 = vld [vmem:[%s6202_s1 + $0x5e0] sm:$0xff]  ;;  %v206_v0 = vld [vmem:[%s6202_s1 + $0x5c8] sm:$0xff] }
  0x40   :  { %v210_v1 = vld [vmem:[%s6202_s1 + $0x5e8] sm:$0xff]  ;;  %v4118_v4 = vcombine.high %v205_v62, %v209_v63  ;;  %v4117_v10 = vcombine.low %v205_v62, %v209_v63 }
  0x41   :  { %v4120_v5 = vcombine.high %v206_v0, %v210_v1  ;;  %v4119_v11 = vcombine.low %v206_v0, %v210_v1 }
  0x42   :  { %3152 = vmatpush1.bf16.msra.mxu0 %v4053_v6  ;;  %3316 = vmatpush1.bf16.msra.mxu1 %v4055_v7  ;;  %v213_v6 = vld [vmem:[%s6202_s1 + $0x600] sm:$0xff] }
  0x43   :  { %3162 = vmatprep.subr.bf16.mxu0 %v4062_v8  ;;  %3326 = vmatprep.subr.bf16.mxu1 %v4064_v9  ;;  %v217_v7 = vld [vmem:[%s6202_s1 + $0x620] sm:$0xff]  ;;  %v214_v8 = vld [vmem:[%s6202_s1 + $0x608] sm:$0xff] }
  0x44   :  { %v218_v9 = vld [vmem:[%s6202_s1 + $0x628] sm:$0xff]  ;;  %v4126_v13 = vcombine.high %v213_v6, %v217_v7  ;;  %v4125_v19 = vcombine.low %v213_v6, %v217_v7 }
  0x45   :  { %3154 = vmatmul.mubr.bf16.vlgmr.msra.gmra.mrb[0].mxu0 %v4757_v12  ;;  %3318 = vmatmul.mubr.bf16.vlgmr.msra.gmra.mrb[0].mxu1 %v4757_v12  ;;  %v4128_v14 = vcombine.high %v214_v8, %v218_v9  ;;  %v4127_v20 = vcombine.low %v214_v8, %v218_v9 }
  0x46   :  { %3163 = vmatpush1.bf16.msra.mxu0 %v4061_v16  ;;  %3327 = vmatpush1.bf16.msra.mxu1 %v4063_v17  ;;  %v221_v16 = vld [vmem:[%s6202_s1 + $0x640] sm:$0xff] }
  0x47   :  { %3164 = vmatprep.subr.bf16.mxu0 %v4070_v53  ;;  %3328 = vmatprep.subr.bf16.mxu1 %v4072_v18  ;;  %v225_v17 = vld [vmem:[%s6202_s1 + $0x660] sm:$0xff]  ;;  %v222_v53 = vld [vmem:[%s6202_s1 + $0x648] sm:$0xff] }
  0x48   :  { %3194 = vmatprep.mubr.bf16.mxu0 %v4778_v21  ;;  %3358 = vmatprep.mubr.bf16.mxu1 %v4778_v21  ;;  %v226_v18 = vld [vmem:[%s6202_s1 + $0x668] sm:$0xff]  ;;  %v4134_v22 = vcombine.high %v221_v16, %v225_v17  ;;  %v4133_v28 = vcombine.low %v221_v16, %v225_v17 }
  0x49   :  { %v4136_v23 = vcombine.high %v222_v53, %v226_v18  ;;  %v4135_v29 = vcombine.low %v222_v53, %v226_v18 }
  0x4a   :  { %3165 = vmatpush1.bf16.msra.mxu0 %v4069_v24  ;;  %3329 = vmatpush1.bf16.msra.mxu1 %v4071_v25  ;;  %v229_v24 = vld [vmem:[%s6202_s1 + $0x680] sm:$0xff] }
  0x4b   :  { %3166 = vmatprep.subr.bf16.mxu0 %v4078_v26  ;;  %3330 = vmatprep.subr.bf16.mxu1 %v4080_v27  ;;  %v233_v25 = vld [vmem:[%s6202_s1 + $0x6a0] sm:$0xff]  ;;  %v230_v26 = vld [vmem:[%s6202_s1 + $0x688] sm:$0xff] }
  0x4c   :  { %v234_v27 = vld [vmem:[%s6202_s1 + $0x6a8] sm:$0xff]  ;;  %v4142_v30 = vcombine.high %v229_v24, %v233_v25  ;;  %v4141_v36 = vcombine.low %v229_v24, %v233_v25  ;;  %v4977_v25 = vld [vmem:[%s6203_s0 + $0x10] sm:$0xff] }
  0x4d   :  { %v4144_v31 = vcombine.high %v230_v26, %v234_v27  ;;  %v4143_v37 = vcombine.low %v230_v26, %v234_v27  ;;  %v290_v24 = vld [vmem:[%s6202_s1 + $0x868] sm:$0xff] }
  0x4e   :  { %3167 = vmatpush1.bf16.msra.mxu0 %v4077_v32  ;;  %3331 = vmatpush1.bf16.msra.mxu1 %v4079_v33  ;;  %v237_v32 = vld [vmem:[%s6202_s1 + $0x6c0] sm:$0xff] }
  0x4f   :  { %3168 = vmatprep.subr.bf16.mxu0 %v4086_v34  ;;  %3332 = vmatprep.subr.bf16.mxu1 %v4088_v35  ;;  %v241_v33 = vld [vmem:[%s6202_s1 + $0x6e0] sm:$0xff]  ;;  %v238_v34 = vld [vmem:[%s6202_s1 + $0x6c8] sm:$0xff] }
  0x50   :  { %v242_v35 = vld [vmem:[%s6202_s1 + $0x6e8] sm:$0xff]  ;;  %v4150_v38 = vcombine.high %v237_v32, %v241_v33  ;;  %v4149_v44 = vcombine.low %v237_v32, %v241_v33 }
  0x51   :  { %v4152_v39 = vcombine.high %v238_v34, %v242_v35  ;;  %v4151_v45 = vcombine.low %v238_v34, %v242_v35  ;;  %v294_v32 = vld [vmem:[%s6202_s1 + $0x888] sm:$0xff] }
  0x52   :  { %3169 = vmatpush1.bf16.msra.mxu0 %v4085_v40  ;;  %3333 = vmatpush1.bf16.msra.mxu1 %v4087_v41  ;;  %v245_v40 = vld [vmem:[%s6202_s1 + $0x700] sm:$0xff]  ;;  %v298_v33 = vld [vmem:[%s6202_s1 + $0x8a8] sm:$0xff] }
  0x53   :  { %3170 = vmatprep.subr.bf16.mxu0 %v4094_v42  ;;  %3334 = vmatprep.subr.bf16.mxu1 %v4096_v43  ;;  %v249_v41 = vld [vmem:[%s6202_s1 + $0x720] sm:$0xff]  ;;  %v246_v42 = vld [vmem:[%s6202_s1 + $0x708] sm:$0xff] }
  0x54   :  { %v250_v43 = vld [vmem:[%s6202_s1 + $0x728] sm:$0xff]  ;;  %v4158_v46 = vcombine.high %v245_v40, %v249_v41  ;;  %v4157_v52 = vcombine.low %v245_v40, %v249_v41 }
  0x55   :  { %v4160_v47 = vcombine.high %v246_v42, %v250_v43  ;;  %v4159_v54 = vcombine.low %v246_v42, %v250_v43  ;;  %v302_v40 = vld [vmem:[%s6202_s1 + $0x8c8] sm:$0xff]  ;;  %v4207_v43 = vcombine.low %v294_v32, %v298_v33 }
  0x56   :  { %3171 = vmatpush1.bf16.msra.mxu0 %v4093_v48  ;;  %3335 = vmatpush1.bf16.msra.mxu1 %v4095_v49  ;;  %v253_v48 = vld [vmem:[%s6202_s1 + $0x740] sm:$0xff]  ;;  %v306_v41 = vld [vmem:[%s6202_s1 + $0x8e8] sm:$0xff] }
  0x57   :  { %3172 = vmatprep.subr.bf16.mxu0 %v4102_v50  ;;  %3336 = vmatprep.subr.bf16.mxu1 %v4104_v51  ;;  %v257_v49 = vld [vmem:[%s6202_s1 + $0x760] sm:$0xff]  ;;  %v254_v50 = vld [vmem:[%s6202_s1 + $0x748] sm:$0xff] }
  0x58   :  { %v258_v51 = vld [vmem:[%s6202_s1 + $0x768] sm:$0xff]  ;;  %v4166_v55 = vcombine.high %v253_v48, %v257_v49  ;;  %v4165_v62 = vcombine.low %v253_v48, %v257_v49 }
  0x59   :  { %v4168_v56 = vcombine.high %v254_v50, %v258_v51  ;;  %v4167_v63 = vcombine.low %v254_v50, %v258_v51  ;;  %v310_v48 = vld [vmem:[%s6202_s1 + $0x908] sm:$0xff]  ;;  %v4215_v51 = vcombine.low %v302_v40, %v306_v41 }
  0x5a   :  { %3173 = vmatpush1.bf16.msra.mxu0 %v4101_v58  ;;  %3337 = vmatpush1.bf16.msra.mxu1 %v4103_v59  ;;  %v261_v58 = vld [vmem:[%s6202_s1 + $0x780] sm:$0xff]  ;;  %v314_v49 = vld [vmem:[%s6202_s1 + $0x928] sm:$0xff] }
  0x5b   :  { %3174 = vmatprep.subr.bf16.mxu0 %v4110_v60  ;;  %3338 = vmatprep.subr.bf16.mxu1 %v4112_v61  ;;  %v265_v59 = vld [vmem:[%s6202_s1 + $0x7a0] sm:$0xff]  ;;  %v262_v60 = vld [vmem:[%s6202_s1 + $0x788] sm:$0xff] }
  0x5c   :  { %v266_v61 = vld [vmem:[%s6202_s1 + $0x7a8] sm:$0xff]  ;;  %v4174_v0 = vcombine.high %v261_v58, %v265_v59  ;;  %v4173_v6 = vcombine.low %v261_v58, %v265_v59 }
  0x5d   :  { %v4176_v1 = vcombine.high %v262_v60, %v266_v61  ;;  %v4175_v7 = vcombine.low %v262_v60, %v266_v61  ;;  %v318_v58 = vld [vmem:[%s6202_s1 + $0x948] sm:$0xff]  ;;  %v4223_v61 = vcombine.low %v310_v48, %v314_v49 }
  0x5e   :  { %3175 = vmatpush1.bf16.msra.mxu0 %v4109_v2  ;;  %3339 = vmatpush1.bf16.msra.mxu1 %v4111_v3  ;;  %v269_v2 = vld [vmem:[%s6202_s1 + $0x7c0] sm:$0xff]  ;;  %v322_v59 = vld [vmem:[%s6202_s1 + $0x968] sm:$0xff] }
  0x5f   :  { %3176 = vmatprep.subr.bf16.mxu0 %v4118_v4  ;;  %3340 = vmatprep.subr.bf16.mxu1 %v4120_v5  ;;  %v273_v3 = vld [vmem:[%s6202_s1 + $0x7e0] sm:$0xff]  ;;  %v270_v4 = vld [vmem:[%s6202_s1 + $0x7c8] sm:$0xff] }
  0x60   :  { %v274_v5 = vld [vmem:[%s6202_s1 + $0x7e8] sm:$0xff]  ;;  %v4182_v8 = vcombine.high %v269_v2, %v273_v3  ;;  %v4181_v16 = vcombine.low %v269_v2, %v273_v3 }
  0x61   :  { %v4184_v9 = vcombine.high %v270_v4, %v274_v5  ;;  %v4183_v17 = vcombine.low %v270_v4, %v274_v5  ;;  %v326_v2 = vld [vmem:[%s6202_s1 + $0x988] sm:$0xff]  ;;  %v4231_v5 = vcombine.low %v318_v58, %v322_v59 }
  0x62   :  { %3177 = vmatpush1.bf16.msra.mxu0 %v4117_v10  ;;  %3341 = vmatpush1.bf16.msra.mxu1 %v4119_v11  ;;  %v277_v10 = vld [vmem:[%s6202_s1 + $0x800] sm:$0xff]  ;;  %v330_v3 = vld [vmem:[%s6202_s1 + $0x9a8] sm:$0xff] }
  0x63   :  { %3178 = vmatprep.subr.bf16.mxu0 %v4126_v13  ;;  %3342 = vmatprep.subr.bf16.mxu1 %v4128_v14  ;;  %v281_v11 = vld [vmem:[%s6202_s1 + $0x820] sm:$0xff]  ;;  %v278_v13 = vld [vmem:[%s6202_s1 + $0x808] sm:$0xff] }
  0x64   :  { %v282_v14 = vld [vmem:[%s6202_s1 + $0x828] sm:$0xff]  ;;  %v4190_v53 = vcombine.high %v277_v10, %v281_v11  ;;  %v4189_v26 = vcombine.low %v277_v10, %v281_v11 }
  0x65   :  { %v4192_v18 = vcombine.high %v278_v13, %v282_v14  ;;  %v4191_v27 = vcombine.low %v278_v13, %v282_v14  ;;  %v334_v10 = vld [vmem:[%s6202_s1 + $0x9c8] sm:$0xff]  ;;  %v4239_v14 = vcombine.low %v326_v2, %v330_v3 }
  0x66   :  { %3179 = vmatpush1.bf16.msra.mxu0 %v4125_v19  ;;  %3343 = vmatpush1.bf16.msra.mxu1 %v4127_v20  ;;  %v285_v19 = vld [vmem:[%s6202_s1 + $0x840] sm:$0xff]  ;;  %v338_v11 = vld [vmem:[%s6202_s1 + $0x9e8] sm:$0xff] }
  0x67   :  { %3180 = vmatprep.subr.bf16.mxu0 %v4134_v22  ;;  %3344 = vmatprep.subr.bf16.mxu1 %v4136_v23  ;;  %v289_v20 = vld [vmem:[%s6202_s1 + $0x860] sm:$0xff]  ;;  %v4966_v22 = vcombine.low %v4768_v15, %v4768_v15  ;;  %v286_v23 = vld [vmem:[%s6202_s1 + $0x848] sm:$0xff] }
  0x68   :  { %v4198_v15 = vcombine.high %v285_v19, %v289_v20  ;;  %v4197_v34 = vcombine.low %v285_v19, %v289_v20  ;;  %v4199_v35 = vcombine.low %v286_v23, %v290_v24  ;;  %v342_v19 = vld [vmem:[%s6202_s1 + $0xa08] sm:$0xff] }
  0x69   :  { %v346_v20 = vld [vmem:[%s6202_s1 + $0xa28] sm:$0xff] }
  0x6a   :  { %3181 = vmatpush1.bf16.msra.mxu0 %v4133_v28  ;;  %3345 = vmatpush1.bf16.msra.mxu1 %v4135_v29  ;;  %v4200_v28 = vcombine.high %v286_v23, %v290_v24  ;;  %v293_v29 = vld [vmem:[%s6202_s1 + $0x880] sm:$0xff]  ;;  %v4247_v24 = vcombine.low %v334_v10, %v338_v11 }
  0x6b   :  { %3182 = vmatprep.subr.bf16.mxu0 %v4142_v30  ;;  %3346 = vmatprep.subr.bf16.mxu1 %v4144_v31  ;;  %v297_v30 = vld [vmem:[%s6202_s1 + $0x8a0] sm:$0xff]  ;;  %v4987_v31 = vcombine.high %v4977_v25, %v4977_v25 }
  0x6c   :  { %v4205_v42 = vcombine.low %v293_v29, %v297_v30 }
  0x6e   :  { %3183 = vmatpush1.bf16.msra.mxu0 %v4141_v36  ;;  %3347 = vmatpush1.bf16.msra.mxu1 %v4143_v37  ;;  %v4206_v36 = vcombine.high %v293_v29, %v297_v30  ;;  %v4208_v37 = vcombine.high %v294_v32, %v298_v33  ;;  %v350_v29 = vld [vmem:[%s6202_s1 + $0xa48] sm:$0xff]  ;;  %v4255_v33 = vcombine.low %v342_v19, %v346_v20 }
  0x6f   :  { %3184 = vmatprep.subr.bf16.mxu0 %v4150_v38  ;;  %3348 = vmatprep.subr.bf16.mxu1 %v4152_v39  ;;  %v301_v38 = vld [vmem:[%s6202_s1 + $0x8c0] sm:$0xff]  ;;  %v354_v30 = vld [vmem:[%s6202_s1 + $0xa68] sm:$0xff] }
  0x70   :  { %v305_v39 = vld [vmem:[%s6202_s1 + $0x8e0] sm:$0xff] }
  0x71   :  { %v4213_v50 = vcombine.low %v301_v38, %v305_v39 }
  0x72   :  { %3185 = vmatpush1.bf16.msra.mxu0 %v4149_v44  ;;  %3349 = vmatpush1.bf16.msra.mxu1 %v4151_v45  ;;  %v4214_v44 = vcombine.high %v301_v38, %v305_v39  ;;  %v4216_v45 = vcombine.high %v302_v40, %v306_v41  ;;  %v358_v38 = vld [vmem:[%s6202_s1 + $0xa88] sm:$0xff]  ;;  %v4263_v41 = vcombine.low %v350_v29, %v354_v30 }
  0x73   :  { %3186 = vmatprep.subr.bf16.mxu0 %v4158_v46  ;;  %3350 = vmatprep.subr.bf16.mxu1 %v4160_v47  ;;  %v309_v46 = vld [vmem:[%s6202_s1 + $0x900] sm:$0xff]  ;;  %v362_v39 = vld [vmem:[%s6202_s1 + $0xaa8] sm:$0xff] }
  0x74   :  { %v313_v47 = vld [vmem:[%s6202_s1 + $0x920] sm:$0xff] }
  0x75   :  { %v4221_v60 = vcombine.low %v309_v46, %v313_v47 }
  0x76   :  { %3187 = vmatpush1.bf16.msra.mxu0 %v4157_v52  ;;  %3351 = vmatpush1.bf16.msra.mxu1 %v4159_v54  ;;  %v4222_v52 = vcombine.high %v309_v46, %v313_v47  ;;  %v4224_v54 = vcombine.high %v310_v48, %v314_v49  ;;  %v366_v46 = vld [vmem:[%s6202_s1 + $0xac8] sm:$0xff]  ;;  %v4271_v49 = vcombine.low %v358_v38, %v362_v39 }
  0x77   :  { %3188 = vmatprep.subr.bf16.mxu0 %v4166_v55  ;;  %3352 = vmatprep.subr.bf16.mxu1 %v4168_v56  ;;  %v317_v55 = vld [vmem:[%s6202_s1 + $0x940] sm:$0xff]  ;;  %v370_v47 = vld [vmem:[%s6202_s1 + $0xae8] sm:$0xff] }
  0x78   :  { %v321_v56 = vld [vmem:[%s6202_s1 + $0x960] sm:$0xff] }
  0x79   :  { %v4229_v4 = vcombine.low %v317_v55, %v321_v56 }
  0x7a   :  { %3189 = vmatpush1.bf16.msra.mxu0 %v4165_v62  ;;  %3353 = vmatpush1.bf16.msra.mxu1 %v4167_v63  ;;  %v4230_v62 = vcombine.high %v317_v55, %v321_v56  ;;  %v4232_v63 = vcombine.high %v318_v58, %v322_v59  ;;  %v374_v55 = vld [vmem:[%s6202_s1 + $0xb08] sm:$0xff]  ;;  %v4279_v59 = vcombine.low %v366_v46, %v370_v47 }
  0x7b   :  { %3190 = vmatprep.subr.bf16.mxu0 %v4174_v0  ;;  %3354 = vmatprep.subr.bf16.mxu1 %v4176_v1  ;;  %v325_v0 = vld [vmem:[%s6202_s1 + $0x980] sm:$0xff]  ;;  %v378_v56 = vld [vmem:[%s6202_s1 + $0xb28] sm:$0xff] }
  0x7c   :  { %v329_v1 = vld [vmem:[%s6202_s1 + $0x9a0] sm:$0xff] }
  0x7d   :  { %v4237_v13 = vcombine.low %v325_v0, %v329_v1 }
  0x7e   :  { %3191 = vmatpush1.bf16.msra.mxu0 %v4173_v6  ;;  %3355 = vmatpush1.bf16.msra.mxu1 %v4175_v7  ;;  %v4238_v6 = vcombine.high %v325_v0, %v329_v1  ;;  %v4240_v7 = vcombine.high %v326_v2, %v330_v3  ;;  %v382_v0 = vld [vmem:[%s6202_s1 + $0xb48] sm:$0xff]  ;;  %v4287_v3 = vcombine.low %v374_v55, %v378_v56 }
  0x7f   :  { %3192 = vmatprep.subr.bf16.mxu0 %v4182_v8  ;;  %3356 = vmatprep.subr.bf16.mxu1 %v4184_v9  ;;  %v333_v8 = vld [vmem:[%s6202_s1 + $0x9c0] sm:$0xff]  ;;  %v386_v1 = vld [vmem:[%s6202_s1 + $0xb68] sm:$0xff] }
  0x80   :  { %v337_v9 = vld [vmem:[%s6202_s1 + $0x9e0] sm:$0xff] }
  0x81   :  { %v4245_v23 = vcombine.low %v333_v8, %v337_v9 }
  0x82   :  { %3193 = vmatpush1.bf16.msra.mxu0 %v4181_v16  ;;  %3357 = vmatpush1.bf16.msra.mxu1 %v4183_v17  ;;  %v4246_v16 = vcombine.high %v333_v8, %v337_v9  ;;  %v4248_v17 = vcombine.high %v334_v10, %v338_v11  ;;  %v390_v8 = vld [vmem:[%s6202_s1 + $0xb88] sm:$0xff]  ;;  %v4295_v11 = vcombine.low %v382_v0, %v386_v1 }
  0x83   :  { %3203 = vmatprep.subr.bf16.mxu0 %v4190_v53  ;;  %3367 = vmatprep.subr.bf16.mxu1 %v4192_v18  ;;  %v341_v53 = vld [vmem:[%s6202_s1 + $0xa00] sm:$0xff]  ;;  %v394_v9 = vld [vmem:[%s6202_s1 + $0xba8] sm:$0xff] }
  0x84   :  { %v345_v18 = vld [vmem:[%s6202_s1 + $0xa20] sm:$0xff] }
  0x85   :  { %3195 = vmatmul.mubr.bf16.vlgmr.msra.gmra.mrb[0].mxu0 %v4966_v22  ;;  %3359 = vmatmul.mubr.bf16.vlgmr.msra.gmra.mrb[0].mxu1 %v4966_v22  ;;  %v4253_v32 = vcombine.low %v341_v53, %v345_v18 }
  0x86   :  { %3204 = vmatpush1.bf16.msra.mxu0 %v4189_v26  ;;  %3368 = vmatpush1.bf16.msra.mxu1 %v4191_v27  ;;  %v4254_v26 = vcombine.high %v341_v53, %v345_v18  ;;  %v4256_v27 = vcombine.high %v342_v19, %v346_v20  ;;  %v398_v53 = vld [vmem:[%s6202_s1 + $0xbc8] sm:$0xff]  ;;  %v4303_v20 = vcombine.low %v390_v8, %v394_v9 }
  0x87   :  { %3205 = vmatprep.subr.bf16.mxu0 %v4198_v15  ;;  %3369 = vmatprep.subr.bf16.mxu1 %v4200_v28  ;;  %v349_v15 = vld [vmem:[%s6202_s1 + $0xa40] sm:$0xff]  ;;  %v402_v18 = vld [vmem:[%s6202_s1 + $0xbe8] sm:$0xff] }
  0x88   :  { %3235 = vmatprep.mubr.bf16.mxu0 %v4987_v31  ;;  %3399 = vmatprep.mubr.bf16.mxu1 %v4987_v31  ;;  %v353_v28 = vld [vmem:[%s6202_s1 + $0xa60] sm:$0xff] }
  0x89   :  { %v4261_v40 = vcombine.low %v349_v15, %v353_v28 }
  0x8a   :  { %3206 = vmatpush1.bf16.msra.mxu0 %v4197_v34  ;;  %3370 = vmatpush1.bf16.msra.mxu1 %v4199_v35  ;;  %v4262_v34 = vcombine.high %v349_v15, %v353_v28  ;;  %v4264_v35 = vcombine.high %v350_v29, %v354_v30  ;;  %v406_v15 = vld [vmem:[%s6202_s1 + $0xc08] sm:$0xff]  ;;  %v4311_v30 = vcombine.low %v398_v53, %v402_v18 }
  0x8b   :  { %3207 = vmatprep.subr.bf16.mxu0 %v4206_v36  ;;  %3371 = vmatprep.subr.bf16.mxu1 %v4208_v37  ;;  %v357_v36 = vld [vmem:[%s6202_s1 + $0xa80] sm:$0xff]  ;;  %v410_v28 = vld [vmem:[%s6202_s1 + $0xc28] sm:$0xff] }
  0x8c   :  { %v361_v37 = vld [vmem:[%s6202_s1 + $0xaa0] sm:$0xff] }
  0x8d   :  { %v4269_v48 = vcombine.low %v357_v36, %v361_v37 }
  0x8e   :  { %3208 = vmatpush1.bf16.msra.mxu0 %v4205_v42  ;;  %3372 = vmatpush1.bf16.msra.mxu1 %v4207_v43  ;;  %v4270_v42 = vcombine.high %v357_v36, %v361_v37  ;;  %v4272_v43 = vcombine.high %v358_v38, %v362_v39  ;;  %v5175_v36 = vcombine.low %v4977_v25, %v4977_v25  ;;  %v414_v37 = vld [vmem:[%s6202_s1 + $0xc48] sm:$0xff]  ;;  %v5186_v39 = vld [vmem:[%s6203_s0 + $0x18] sm:$0xff] }
  0x8f   :  { %3209 = vmatprep.subr.bf16.mxu0 %v4214_v44  ;;  %3373 = vmatprep.subr.bf16.mxu1 %v4216_v45  ;;  %v365_v44 = vld [vmem:[%s6202_s1 + $0xac0] sm:$0xff]  ;;  %v418_v38 = vld [vmem:[%s6202_s1 + $0xc68] sm:$0xff] }
  0x90   :  { %v369_v45 = vld [vmem:[%s6202_s1 + $0xae0] sm:$0xff] }
  0x91   :  { %v4277_v58 = vcombine.low %v365_v44, %v369_v45 }
  0x92   :  { %3210 = vmatpush1.bf16.msra.mxu0 %v4213_v50  ;;  %3374 = vmatpush1.bf16.msra.mxu1 %v4215_v51  ;;  %v4278_v50 = vcombine.high %v365_v44, %v369_v45  ;;  %v4280_v51 = vcombine.high %v366_v46, %v370_v47  ;;  %v425_v44 = vld [vmem:[%s6202_s1 + $0xca0] sm:$0xff]  ;;  %v5196_v45 = vcombine.high %v5186_v39, %v5186_v39  ;;  %v422_v46 = vld [vmem:[%s6202_s1 + $0xc88] sm:$0xff] }
  0x93   :  { %3211 = vmatprep.subr.bf16.mxu0 %v4222_v52  ;;  %3375 = vmatprep.subr.bf16.mxu1 %v4224_v54  ;;  %v373_v52 = vld [vmem:[%s6202_s1 + $0xb00] sm:$0xff]  ;;  %v426_v47 = vld [vmem:[%s6202_s1 + $0xca8] sm:$0xff] }
  0x94   :  { %v377_v54 = vld [vmem:[%s6202_s1 + $0xb20] sm:$0xff] }
  0x95   :  { %v4285_v2 = vcombine.low %v373_v52, %v377_v54 }
  0x96   :  { %3212 = vmatpush1.bf16.msra.mxu0 %v4221_v60  ;;  %3376 = vmatpush1.bf16.msra.mxu1 %v4223_v61  ;;  %v4286_v60 = vcombine.high %v373_v52, %v377_v54  ;;  %v4288_v61 = vcombine.high %v374_v55, %v378_v56  ;;  %v429_v52 = vld [vmem:[%s6202_s1 + $0xcc0] sm:$0xff]  ;;  %v430_v55 = vld [vmem:[%s6202_s1 + $0xcc8] sm:$0xff] }
  0x97   :  { %3213 = vmatprep.subr.bf16.mxu0 %v4230_v62  ;;  %3377 = vmatprep.subr.bf16.mxu1 %v4232_v63  ;;  %v381_v62 = vld [vmem:[%s6202_s1 + $0xb40] sm:$0xff]  ;;  %v434_v56 = vld [vmem:[%s6202_s1 + $0xce8] sm:$0xff] }
  0x98   :  { %v385_v63 = vld [vmem:[%s6202_s1 + $0xb60] sm:$0xff] }
  0x99   :  { %v4293_v10 = vcombine.low %v381_v62, %v385_v63  ;;  %v433_v54 = vld [vmem:[%s6202_s1 + $0xce0] sm:$0xff] }
  0x9a   :  { %3214 = vmatpush1.bf16.msra.mxu0 %v4229_v4  ;;  %3378 = vmatpush1.bf16.msra.mxu1 %v4231_v5  ;;  %v4294_v4 = vcombine.high %v381_v62, %v385_v63  ;;  %v4296_v5 = vcombine.high %v382_v0, %v386_v1  ;;  %v437_v62 = vld [vmem:[%s6202_s1 + $0xd00] sm:$0xff]  ;;  %v438_v0 = vld [vmem:[%s6202_s1 + $0xd08] sm:$0xff] }
  0x9b   :  { %3215 = vmatprep.subr.bf16.mxu0 %v4238_v6  ;;  %3379 = vmatprep.subr.bf16.mxu1 %v4240_v7  ;;  %v389_v6 = vld [vmem:[%s6202_s1 + $0xb80] sm:$0xff]  ;;  %v442_v1 = vld [vmem:[%s6202_s1 + $0xd28] sm:$0xff] }
  0x9c   :  { %v393_v7 = vld [vmem:[%s6202_s1 + $0xba0] sm:$0xff] }
  0x9d   :  { %v4301_v19 = vcombine.low %v389_v6, %v393_v7  ;;  %v441_v63 = vld [vmem:[%s6202_s1 + $0xd20] sm:$0xff] }
  0x9e   :  { %3216 = vmatpush1.bf16.msra.mxu0 %v4237_v13  ;;  %3380 = vmatpush1.bf16.msra.mxu1 %v4239_v14  ;;  %v4302_v13 = vcombine.high %v389_v6, %v393_v7  ;;  %v4304_v14 = vcombine.high %v390_v8, %v394_v9  ;;  %v445_v6 = vld [vmem:[%s6202_s1 + $0xd40] sm:$0xff]  ;;  %v446_v8 = vld [vmem:[%s6202_s1 + $0xd48] sm:$0xff] }
  0x9f   :  { %3217 = vmatprep.subr.bf16.mxu0 %v4246_v16  ;;  %3381 = vmatprep.subr.bf16.mxu1 %v4248_v17  ;;  %v397_v16 = vld [vmem:[%s6202_s1 + $0xbc0] sm:$0xff]  ;;  %v450_v9 = vld [vmem:[%s6202_s1 + $0xd68] sm:$0xff] }
  0xa0   :  { %v401_v17 = vld [vmem:[%s6202_s1 + $0xbe0] sm:$0xff] }
  0xa1   :  { %v4309_v29 = vcombine.low %v397_v16, %v401_v17  ;;  %v449_v7 = vld [vmem:[%s6202_s1 + $0xd60] sm:$0xff] }
  0xa2   :  { %3218 = vmatpush1.bf16.msra.mxu0 %v4245_v23  ;;  %3382 = vmatpush1.bf16.msra.mxu1 %v4247_v24  ;;  %v4310_v23 = vcombine.high %v397_v16, %v401_v17  ;;  %v4312_v24 = vcombine.high %v398_v53, %v402_v18  ;;  %v453_v16 = vld [vmem:[%s6202_s1 + $0xd80] sm:$0xff]  ;;  %v454_v53 = vld [vmem:[%s6202_s1 + $0xd88] sm:$0xff] }
  0xa3   :  { %3219 = vmatprep.subr.bf16.mxu0 %v4254_v26  ;;  %3383 = vmatprep.subr.bf16.mxu1 %v4256_v27  ;;  %v405_v26 = vld [vmem:[%s6202_s1 + $0xc00] sm:$0xff]  ;;  %v458_v18 = vld [vmem:[%s6202_s1 + $0xda8] sm:$0xff] }
  0xa4   :  { %v409_v27 = vld [vmem:[%s6202_s1 + $0xc20] sm:$0xff] }
  0xa5   :  { %v457_v17 = vld [vmem:[%s6202_s1 + $0xda0] sm:$0xff] }
  0xa6   :  { %3220 = vmatpush1.bf16.msra.mxu0 %v4253_v32  ;;  %3384 = vmatpush1.bf16.msra.mxu1 %v4255_v33  ;;  %v4318_v32 = vcombine.high %v405_v26, %v409_v27  ;;  %v4320_v33 = vcombine.high %v406_v15, %v410_v28 }
  0xa7   :  { %3221 = vmatprep.subr.bf16.mxu0 %v4262_v34  ;;  %3385 = vmatprep.subr.bf16.mxu1 %v4264_v35  ;;  %v413_v34 = vld [vmem:[%s6202_s1 + $0xc40] sm:$0xff] }
  0xa8   :  { %v417_v35 = vld [vmem:[%s6202_s1 + $0xc60] sm:$0xff] }
  0xa9   :  { %v4326_v25 = vcombine.high %v413_v34, %v417_v35 }
  0xaa   :  { %3222 = vmatpush1.bf16.msra.mxu0 %v4261_v40  ;;  %3386 = vmatpush1.bf16.msra.mxu1 %v4263_v41  ;;  %v4317_v40 = vcombine.low %v405_v26, %v409_v27  ;;  %v4319_v41 = vcombine.low %v406_v15, %v410_v28  ;;  %v461_v26 = vld [vmem:[%s6202_s1 + $0xdc0] sm:$0xff]  ;;  %v462_v15 = vld [vmem:[%s6202_s1 + $0xdc8] sm:$0xff] }
  0xab   :  { %3223 = vmatprep.subr.bf16.mxu0 %v4270_v42  ;;  %3387 = vmatprep.subr.bf16.mxu1 %v4272_v43  ;;  %v4328_v42 = vcombine.high %v414_v37, %v418_v38  ;;  %v421_v43 = vld [vmem:[%s6202_s1 + $0xc80] sm:$0xff]  ;;  %v466_v28 = vld [vmem:[%s6202_s1 + $0xde8] sm:$0xff] }
  0xac   :  { %v465_v27 = vld [vmem:[%s6202_s1 + $0xde0] sm:$0xff] }
  0xae   :  { %3224 = vmatpush1.bf16.msra.mxu0 %v4269_v48  ;;  %3388 = vmatpush1.bf16.msra.mxu1 %v4271_v49  ;;  %v4325_v48 = vcombine.low %v413_v34, %v417_v35  ;;  %v4327_v49 = vcombine.low %v414_v37, %v418_v38  ;;  %v469_v34 = vld [vmem:[%s6202_s1 + $0xe00] sm:$0xff]  ;;  %v470_v37 = vld [vmem:[%s6202_s1 + $0xe08] sm:$0xff] }
  0xaf   :  { %3225 = vmatprep.subr.bf16.mxu0 %v4278_v50  ;;  %3389 = vmatprep.subr.bf16.mxu1 %v4280_v51  ;;  %v4334_v50 = vcombine.high %v421_v43, %v425_v44  ;;  %v4336_v51 = vcombine.high %v422_v46, %v426_v47  ;;  %v473_v35 = vld [vmem:[%s6202_s1 + $0xe20] sm:$0xff]  ;;  %v474_v38 = vld [vmem:[%s6202_s1 + $0xe28] sm:$0xff] }
  0xb2   :  { %3226 = vmatpush1.bf16.msra.mxu0 %v4277_v58  ;;  %3390 = vmatpush1.bf16.msra.mxu1 %v4279_v59  ;;  %v4333_v58 = vcombine.low %v421_v43, %v425_v44  ;;  %v4335_v59 = vcombine.low %v422_v46, %v426_v47  ;;  %v477_v43 = vld [vmem:[%s6202_s1 + $0xe40] sm:$0xff]  ;;  %v478_v46 = vld [vmem:[%s6202_s1 + $0xe48] sm:$0xff] }
  0xb3   :  { %3227 = vmatprep.subr.bf16.mxu0 %v4286_v60  ;;  %3391 = vmatprep.subr.bf16.mxu1 %v4288_v61  ;;  %v4342_v60 = vcombine.high %v429_v52, %v433_v54  ;;  %v4344_v61 = vcombine.high %v430_v55, %v434_v56  ;;  %v481_v44 = vld [vmem:[%s6202_s1 + $0xe60] sm:$0xff]  ;;  %v482_v47 = vld [vmem:[%s6202_s1 + $0xe68] sm:$0xff] }
  0xb6   :  { %3228 = vmatpush1.bf16.msra.mxu0 %v4285_v2  ;;  %3392 = vmatpush1.bf16.msra.mxu1 %v4287_v3  ;;  %v4341_v2 = vcombine.low %v429_v52, %v433_v54  ;;  %v4343_v3 = vcombine.low %v430_v55, %v434_v56  ;;  %v485_v52 = vld [vmem:[%s6202_s1 + $0xe80] sm:$0xff]  ;;  %v486_v55 = vld [vmem:[%s6202_s1 + $0xe88] sm:$0xff] }
  0xb7   :  { %3229 = vmatprep.subr.bf16.mxu0 %v4294_v4  ;;  %3393 = vmatprep.subr.bf16.mxu1 %v4296_v5  ;;  %v4350_v4 = vcombine.high %v437_v62, %v441_v63  ;;  %v4352_v5 = vcombine.high %v438_v0, %v442_v1  ;;  %v489_v54 = vld [vmem:[%s6202_s1 + $0xea0] sm:$0xff]  ;;  %v490_v56 = vld [vmem:[%s6202_s1 + $0xea8] sm:$0xff] }
  0xba   :  { %3230 = vmatpush1.bf16.msra.mxu0 %v4293_v10  ;;  %3394 = vmatpush1.bf16.msra.mxu1 %v4295_v11  ;;  %v4349_v10 = vcombine.low %v437_v62, %v441_v63  ;;  %v4351_v11 = vcombine.low %v438_v0, %v442_v1  ;;  %v493_v62 = vld [vmem:[%s6202_s1 + $0xec0] sm:$0xff]  ;;  %v494_v0 = vld [vmem:[%s6202_s1 + $0xec8] sm:$0xff] }
  0xbb   :  { %3231 = vmatprep.subr.bf16.mxu0 %v4302_v13  ;;  %3395 = vmatprep.subr.bf16.mxu1 %v4304_v14  ;;  %v4358_v13 = vcombine.high %v445_v6, %v449_v7  ;;  %v4360_v14 = vcombine.high %v446_v8, %v450_v9  ;;  %v497_v63 = vld [vmem:[%s6202_s1 + $0xee0] sm:$0xff]  ;;  %v498_v1 = vld [vmem:[%s6202_s1 + $0xee8] sm:$0xff] }
  0xbe   :  { %3232 = vmatpush1.bf16.msra.mxu0 %v4301_v19  ;;  %3396 = vmatpush1.bf16.msra.mxu1 %v4303_v20  ;;  %v4357_v19 = vcombine.low %v445_v6, %v449_v7  ;;  %v4359_v20 = vcombine.low %v446_v8, %v450_v9  ;;  %v501_v6 = vld [vmem:[%s6202_s1 + $0xf00] sm:$0xff]  ;;  %v502_v8 = vld [vmem:[%s6202_s1 + $0xf08] sm:$0xff] }
  0xbf   :  { %3233 = vmatprep.subr.bf16.mxu0 %v4310_v23  ;;  %3397 = vmatprep.subr.bf16.mxu1 %v4312_v24  ;;  %v4366_v23 = vcombine.high %v453_v16, %v457_v17  ;;  %v4368_v24 = vcombine.high %v454_v53, %v458_v18  ;;  %v505_v7 = vld [vmem:[%s6202_s1 + $0xf20] sm:$0xff]  ;;  %v506_v9 = vld [vmem:[%s6202_s1 + $0xf28] sm:$0xff] }
  0xc2   :  { %3234 = vmatpush1.bf16.msra.mxu0 %v4309_v29  ;;  %3398 = vmatpush1.bf16.msra.mxu1 %v4311_v30  ;;  %v4365_v29 = vcombine.low %v453_v16, %v457_v17  ;;  %v4367_v30 = vcombine.low %v454_v53, %v458_v18  ;;  %v509_v16 = vld [vmem:[%s6202_s1 + $0xf40] sm:$0xff]  ;;  %v510_v53 = vld [vmem:[%s6202_s1 + $0xf48] sm:$0xff] }
  0xc3   :  { %3244 = vmatprep.subr.bf16.mxu0 %v4318_v32  ;;  %3408 = vmatprep.subr.bf16.mxu1 %v4320_v33  ;;  %v4374_v32 = vcombine.high %v461_v26, %v465_v27  ;;  %v4376_v33 = vcombine.high %v462_v15, %v466_v28  ;;  %v513_v17 = vld [vmem:[%s6202_s1 + $0xf60] sm:$0xff]  ;;  %v514_v18 = vld [vmem:[%s6202_s1 + $0xf68] sm:$0xff] }
  0xc5   :  { %3236 = vmatmul.mubr.bf16.vlgmr.msra.gmra.mrb[0].mxu0 %v5175_v36  ;;  %3400 = vmatmul.mubr.bf16.vlgmr.msra.gmra.mrb[0].mxu1 %v5175_v36 }
  0xc6   :  { %3245 = vmatpush1.bf16.msra.mxu0 %v4317_v40  ;;  %3409 = vmatpush1.bf16.msra.mxu1 %v4319_v41  ;;  %v4373_v40 = vcombine.low %v461_v26, %v465_v27  ;;  %v4375_v41 = vcombine.low %v462_v15, %v466_v28  ;;  %v517_v26 = vld [vmem:[%s6202_s1 + $0xf80] sm:$0xff]  ;;  %v518_v15 = vld [vmem:[%s6202_s1 + $0xf88] sm:$0xff] }
  0xc7   :  { %3246 = vmatprep.subr.bf16.mxu0 %v4326_v25  ;;  %3410 = vmatprep.subr.bf16.mxu1 %v4328_v42  ;;  %v4382_v25 = vcombine.high %v469_v34, %v473_v35  ;;  %v4384_v42 = vcombine.high %v470_v37, %v474_v38  ;;  %v521_v27 = vld [vmem:[%s6202_s1 + $0xfa0] sm:$0xff]  ;;  %v522_v28 = vld [vmem:[%s6202_s1 + $0xfa8] sm:$0xff] }
  0xc8   :  { %3276 = vmatprep.mubr.bf16.mxu0 %v5196_v45  ;;  %3440 = vmatprep.mubr.bf16.mxu1 %v5196_v45 }
  0xca   :  { %3247 = vmatpush1.bf16.msra.mxu0 %v4325_v48  ;;  %3411 = vmatpush1.bf16.msra.mxu1 %v4327_v49  ;;  %v4381_v48 = vcombine.low %v469_v34, %v473_v35  ;;  %v4383_v49 = vcombine.low %v470_v37, %v474_v38  ;;  %v525_v34 = vld [vmem:[%s6202_s1 + $0xfc0] sm:$0xff]  ;;  %v526_v37 = vld [vmem:[%s6202_s1 + $0xfc8] sm:$0xff] }
  0xcb   :  { %3248 = vmatprep.subr.bf16.mxu0 %v4334_v50  ;;  %3412 = vmatprep.subr.bf16.mxu1 %v4336_v51  ;;  %v4390_v50 = vcombine.high %v477_v43, %v481_v44  ;;  %v4392_v51 = vcombine.high %v478_v46, %v482_v47  ;;  %v529_v35 = vld [vmem:[%s6202_s1 + $0xfe0] sm:$0xff]  ;;  %v530_v38 = vld [vmem:[%s6202_s1 + $0xfe8] sm:$0xff] }
  0xce   :  { %3249 = vmatpush1.bf16.msra.mxu0 %v4333_v58  ;;  %3413 = vmatpush1.bf16.msra.mxu1 %v4335_v59  ;;  %v4389_v58 = vcombine.low %v477_v43, %v481_v44  ;;  %v4391_v59 = vcombine.low %v478_v46, %v482_v47  ;;  %v23_v43 = vld [vmem:[%s6202_s1 + $0x10] sm:$0xff]  ;;  %v24_v46 = vld [vmem:[%s6202_s1 + $0x18] sm:$0xff] }
  0xcf   :  { %3250 = vmatprep.subr.bf16.mxu0 %v4342_v60  ;;  %3414 = vmatprep.subr.bf16.mxu1 %v4344_v61  ;;  %v4398_v60 = vcombine.high %v485_v52, %v489_v54  ;;  %v4400_v61 = vcombine.high %v486_v55, %v490_v56  ;;  %v27_v44 = vld [vmem:[%s6202_s1 + $0x30] sm:$0xff]  ;;  %v28_v47 = vld [vmem:[%s6202_s1 + $0x38] sm:$0xff] }
  0xd2   :  { %3251 = vmatpush1.bf16.msra.mxu0 %v4341_v2  ;;  %3415 = vmatpush1.bf16.msra.mxu1 %v4343_v3  ;;  %v4397_v2 = vcombine.low %v485_v52, %v489_v54  ;;  %v4399_v3 = vcombine.low %v486_v55, %v490_v56  ;;  %v31_v52 = vld [vmem:[%s6202_s1 + $0x50] sm:$0xff]  ;;  %v5384_v55 = vcombine.low %v5186_v39, %v5186_v39  ;;  %v32_v56 = vld [vmem:[%s6202_s1 + $0x58] sm:$0xff] }
  0xd3   :  { %3252 = vmatprep.subr.bf16.mxu0 %v4350_v4  ;;  %3416 = vmatprep.subr.bf16.mxu1 %v4352_v5  ;;  %v4406_v4 = vcombine.high %v493_v62, %v497_v63  ;;  %v4408_v5 = vcombine.high %v494_v0, %v498_v1  ;;  %v35_v54 = vld [vmem:[%s6202_s1 + $0x70] sm:$0xff] }
  0xd4   :  { %v39_v39 = vld [vmem:[%s6202_s1 + $0x90] sm:$0xff] }
  0xd6   :  { %3253 = vmatpush1.bf16.msra.mxu0 %v4349_v10  ;;  %3417 = vmatpush1.bf16.msra.mxu1 %v4351_v11  ;;  %v4405_v10 = vcombine.low %v493_v62, %v497_v63  ;;  %v4407_v11 = vcombine.low %v494_v0, %v498_v1  ;;  %v43_v63 = vld [vmem:[%s6202_s1 + $0xb0] sm:$0xff]  ;;  %v40_v0 = vld [vmem:[%s6202_s1 + $0x98] sm:$0xff] }
  0xd7   :  { %3254 = vmatprep.subr.bf16.mxu0 %v4358_v13  ;;  %3418 = vmatprep.subr.bf16.mxu1 %v4360_v14  ;;  %v4414_v13 = vcombine.high %v501_v6, %v505_v7  ;;  %v4416_v14 = vcombine.high %v502_v8, %v506_v9  ;;  %v44_v1 = vld [vmem:[%s6202_s1 + $0xb8] sm:$0xff] }
  0xda   :  { %3255 = vmatpush1.bf16.msra.mxu0 %v4357_v19  ;;  %3419 = vmatpush1.bf16.msra.mxu1 %v4359_v20  ;;  %v4413_v19 = vcombine.low %v501_v6, %v505_v7  ;;  %v4415_v20 = vcombine.low %v502_v8, %v506_v9  ;;  %v47_v6 = vld [vmem:[%s6202_s1 + $0xd0] sm:$0xff]  ;;  %v48_v8 = vld [vmem:[%s6202_s1 + $0xd8] sm:$0xff] }
  0xdb   :  { %3256 = vmatprep.subr.bf16.mxu0 %v4366_v23  ;;  %3420 = vmatprep.subr.bf16.mxu1 %v4368_v24  ;;  %v4422_v23 = vcombine.high %v509_v16, %v513_v17  ;;  %v4424_v24 = vcombine.high %v510_v53, %v514_v18  ;;  %v51_v7 = vld [vmem:[%s6202_s1 + $0xf0] sm:$0xff]  ;;  %v52_v9 = vld [vmem:[%s6202_s1 + $0xf8] sm:$0xff] }
  0xde   :  { %3257 = vmatpush1.bf16.msra.mxu0 %v4365_v29  ;;  %3421 = vmatpush1.bf16.msra.mxu1 %v4367_v30  ;;  %v4421_v29 = vcombine.low %v509_v16, %v513_v17  ;;  %v4423_v30 = vcombine.low %v510_v53, %v514_v18  ;;  %v55_v16 = vld [vmem:[%s6202_s1 + $0x110] sm:$0xff]  ;;  %v60_v53 = vld [vmem:[%s6202_s1 + $0x138] sm:$0xff]  ;;  %v3961_v18 = vcombine.low %v47_v6, %v51_v7 }
  0xdf   :  { %3258 = vmatprep.subr.bf16.mxu0 %v4374_v32  ;;  %3422 = vmatprep.subr.bf16.mxu1 %v4376_v33  ;;  %v4430_v32 = vcombine.high %v517_v26, %v521_v27  ;;  %v4432_v33 = vcombine.high %v518_v15, %v522_v28  ;;  %v59_v17 = vld [vmem:[%s6202_s1 + $0x130] sm:$0xff] }
  0xe2   :  { %3259 = vmatpush1.bf16.msra.mxu0 %v4373_v40  ;;  %3423 = vmatpush1.bf16.msra.mxu1 %v4375_v41  ;;  %v4429_v40 = vcombine.low %v517_v26, %v521_v27  ;;  %v4431_v41 = vcombine.low %v518_v15, %v522_v28  ;;  %v67_v26 = vld [vmem:[%s6202_s1 + $0x170] sm:$0xff]  ;;  %v64_v27 = vld [vmem:[%s6202_s1 + $0x158] sm:$0xff]  ;;  %v3969_v28 = vcombine.low %v55_v16, %v59_v17 }
  0xe3   :  { %3260 = vmatprep.subr.bf16.mxu0 %v4382_v25  ;;  %3424 = vmatprep.subr.bf16.mxu1 %v4384_v42  ;;  %v4438_v25 = vcombine.high %v525_v34, %v529_v35  ;;  %v4440_v42 = vcombine.high %v526_v37, %v530_v38  ;;  %v68_v15 = vld [vmem:[%s6202_s1 + $0x178] sm:$0xff] }
  0xe6   :  { %3261 = vmatpush1.bf16.msra.mxu0 %v4381_v48  ;;  %3425 = vmatpush1.bf16.msra.mxu1 %v4383_v49  ;;  %v4437_v48 = vcombine.low %v525_v34, %v529_v35  ;;  %v4439_v49 = vcombine.low %v526_v37, %v530_v38  ;;  %v75_v34 = vld [vmem:[%s6202_s1 + $0x1b0] sm:$0xff]  ;;  %v72_v35 = vld [vmem:[%s6202_s1 + $0x198] sm:$0xff] }
  0xe7   :  { %3262 = vmatprep.subr.bf16.mxu0 %v4390_v50  ;;  %3426 = vmatprep.subr.bf16.mxu1 %v4392_v51  ;;  %v3938_v50 = vcombine.high %v23_v43, %v27_v44  ;;  %v3940_v51 = vcombine.high %v24_v46, %v28_v47  ;;  %v76_v37 = vld [vmem:[%s6202_s1 + $0x1b8] sm:$0xff] }
  0xea   :  { %3263 = vmatpush1.bf16.msra.mxu0 %v4389_v58  ;;  %3427 = vmatpush1.bf16.msra.mxu1 %v4391_v59  ;;  %v36_v58 = vld [vmem:[%s6202_s1 + $0x78] sm:$0xff]  ;;  %v3937_v59 = vcombine.low %v23_v43, %v27_v44  ;;  %v83_v43 = vld [vmem:[%s6202_s1 + $0x1f0] sm:$0xff] }
  0xeb   :  { %3264 = vmatprep.subr.bf16.mxu0 %v4398_v60  ;;  %3428 = vmatprep.subr.bf16.mxu1 %v4400_v61  ;;  %v3939_v60 = vcombine.low %v24_v46, %v28_v47  ;;  %v3946_v61 = vcombine.high %v31_v52, %v35_v54  ;;  %v3948_v62 = vcombine.high %v32_v56, %v36_v58  ;;  %v80_v44 = vld [vmem:[%s6202_s1 + $0x1d8] sm:$0xff] }
  0xec   :  { %v84_v46 = vld [vmem:[%s6202_s1 + $0x1f8] sm:$0xff] }
  0xee   :  { %3265 = vmatpush1.bf16.msra.mxu0 %v4397_v2  ;;  %3429 = vmatpush1.bf16.msra.mxu1 %v4399_v3  ;;  %v3945_v2 = vcombine.low %v31_v52, %v35_v54  ;;  %v3947_v3 = vcombine.low %v32_v56, %v36_v58  ;;  %v91_v52 = vld [vmem:[%s6202_s1 + $0x230] sm:$0xff]  ;;  %v88_v54 = vld [vmem:[%s6202_s1 + $0x218] sm:$0xff] }
  0xef   :  { %3266 = vmatprep.subr.bf16.mxu0 %v4406_v4  ;;  %3430 = vmatprep.subr.bf16.mxu1 %v4408_v5  ;;  %v3954_v4 = vcombine.high %v39_v39, %v43_v63  ;;  %v3956_v5 = vcombine.high %v40_v0, %v44_v1  ;;  %v92_v56 = vld [vmem:[%s6202_s1 + $0x238] sm:$0xff] }
  0xf2   :  { %3267 = vmatpush1.bf16.msra.mxu0 %v4405_v10  ;;  %3431 = vmatpush1.bf16.msra.mxu1 %v4407_v11  ;;  %v3953_v10 = vcombine.low %v39_v39, %v43_v63  ;;  %v3955_v11 = vcombine.low %v40_v0, %v44_v1  ;;  %v99_v39 = vld [vmem:[%s6202_s1 + $0x270] sm:$0xff]  ;;  %v96_v63 = vld [vmem:[%s6202_s1 + $0x258] sm:$0xff] }
  0xf3   :  { %3268 = vmatprep.subr.bf16.mxu0 %v4414_v13  ;;  %3432 = vmatprep.subr.bf16.mxu1 %v4416_v14  ;;  %v3962_v13 = vcombine.high %v47_v6, %v51_v7  ;;  %v3964_v14 = vcombine.high %v48_v8, %v52_v9  ;;  %v100_v0 = vld [vmem:[%s6202_s1 + $0x278] sm:$0xff]  ;;  %v107_v6 = vld [vmem:[%s6202_s1 + $0x2b0] sm:$0xff] }
  0xf4   :  { %v104_v7 = vld [vmem:[%s6202_s1 + $0x298] sm:$0xff] }
  0xf6   :  { %3269 = vmatpush1.bf16.msra.mxu0 %v4413_v19  ;;  %3433 = vmatpush1.bf16.msra.mxu1 %v4415_v20  ;;  %v3963_v19 = vcombine.low %v48_v8, %v52_v9  ;;  %v3970_v20 = vcombine.high %v55_v16, %v59_v17  ;;  %v108_v8 = vld [vmem:[%s6202_s1 + $0x2b8] sm:$0xff]  ;;  %v115_v16 = vld [vmem:[%s6202_s1 + $0x2f0] sm:$0xff] }
  0xf7   :  { %3270 = vmatprep.subr.bf16.mxu0 %v4422_v23  ;;  %3434 = vmatprep.subr.bf16.mxu1 %v4424_v24  ;;  %v63_v24 = vld [vmem:[%s6202_s1 + $0x150] sm:$0xff]  ;;  %v112_v17 = vld [vmem:[%s6202_s1 + $0x2d8] sm:$0xff] }
  0xf8   :  { %v3977_v38 = vcombine.low %v63_v24, %v67_v26 }
  0xfa   :  { %3271 = vmatpush1.bf16.msra.mxu0 %v4421_v29  ;;  %3435 = vmatpush1.bf16.msra.mxu1 %v4423_v30  ;;  %v3978_v30 = vcombine.high %v63_v24, %v67_v26  ;;  %v123_v24 = vld [vmem:[%s6202_s1 + $0x330] sm:$0xff]  ;;  %v120_v26 = vld [vmem:[%s6202_s1 + $0x318] sm:$0xff] }
  0xfb   :  { %3272 = vmatprep.subr.bf16.mxu0 %v4430_v32  ;;  %3436 = vmatprep.subr.bf16.mxu1 %v4432_v33  ;;  %v3980_v32 = vcombine.high %v64_v27, %v68_v15  ;;  %v71_v33 = vld [vmem:[%s6202_s1 + $0x190] sm:$0xff] }
  0xfc   :  { %v3985_v47 = vcombine.low %v71_v33, %v75_v34 }
  0xfe   :  { %3273 = vmatpush1.bf16.msra.mxu0 %v4429_v40  ;;  %3437 = vmatpush1.bf16.msra.mxu1 %v4431_v41  ;;  %v3979_v40 = vcombine.low %v64_v27, %v68_v15  ;;  %v3986_v41 = vcombine.high %v71_v33, %v75_v34  ;;  %v124_v27 = vld [vmem:[%s6202_s1 + $0x338] sm:$0xff]  ;;  %v131_v33 = vld [vmem:[%s6202_s1 + $0x370] sm:$0xff] }
  0xff   :  { %3274 = vmatprep.subr.bf16.mxu0 %v4438_v25  ;;  %3438 = vmatprep.subr.bf16.mxu1 %v4440_v42  ;;  %v3988_v25 = vcombine.high %v72_v35, %v76_v37  ;;  %v79_v42 = vld [vmem:[%s6202_s1 + $0x1d0] sm:$0xff]  ;;  %v128_v34 = vld [vmem:[%s6202_s1 + $0x358] sm:$0xff] }
 0x100   :  { %v3993_v58 = vcombine.low %v79_v42, %v83_v43 }
 0x102   :  { %3275 = vmatpush1.bf16.msra.mxu0 %v4437_v48  ;;  %3439 = vmatpush1.bf16.msra.mxu1 %v4439_v49  ;;  %v3987_v48 = vcombine.low %v72_v35, %v76_v37  ;;  %v3994_v49 = vcombine.high %v79_v42, %v83_v43  ;;  %v132_v35 = vld [vmem:[%s6202_s1 + $0x378] sm:$0xff]  ;;  %v139_v42 = vld [vmem:[%s6202_s1 + $0x3b0] sm:$0xff] }
 0x103   :  { %3449 = vmatprep.subr.bf16.mxu0 %v3938_v50  ;;  %3613 = vmatprep.subr.bf16.mxu1 %v3940_v51  ;;  %v3996_v50 = vcombine.high %v80_v44, %v84_v46  ;;  %v87_v51 = vld [vmem:[%s6202_s1 + $0x210] sm:$0xff]  ;;  %v136_v43 = vld [vmem:[%s6202_s1 + $0x398] sm:$0xff] }
 0x104   :  { %v4001_v1 = vcombine.low %v87_v51, %v91_v52 }
 0x105   :  { %3277 = vmatmul.mubr.bf16.vlgmr.msra.gmra.mrb[0].mxu0 %v5384_v55  ;;  %3441 = vmatmul.mubr.bf16.vlgmr.msra.gmra.mrb[0].mxu1 %v5384_v55 }
 0x106   :  { %3450 = vmatpush1.bf16.msra.mxu0 %v3937_v59  ;;  %3614 = vmatpush1.bf16.msra.mxu1 %v3939_v60  ;;  %v3995_v59 = vcombine.low %v80_v44, %v84_v46  ;;  %v4002_v60 = vcombine.high %v87_v51, %v91_v52  ;;  %v140_v44 = vld [vmem:[%s6202_s1 + $0x3b8] sm:$0xff]  ;;  %v147_v51 = vld [vmem:[%s6202_s1 + $0x3f0] sm:$0xff] }
 0x107   :  { %3451 = vmatprep.subr.bf16.mxu0 %v3946_v61  ;;  %3615 = vmatprep.subr.bf16.mxu1 %v3948_v62  ;;  %v4004_v61 = vcombine.high %v88_v54, %v92_v56  ;;  %v95_v62 = vld [vmem:[%s6202_s1 + $0x250] sm:$0xff]  ;;  %v144_v52 = vld [vmem:[%s6202_s1 + $0x3d8] sm:$0xff] }
 0x108   :  { %3481 = vmatprep.mubr.bf16.mxu0 %v4631_v57  ;;  %3645 = vmatprep.mubr.bf16.mxu1 %v4631_v57  ;;  %v56_v57 = vld [vmem:[%s6202_s1 + $0x118] sm:$0xff]  ;;  %v4009_v9 = vcombine.low %v95_v62, %v99_v39 }
 0x109   :  { %v3972_v23 = vcombine.high %v56_v57, %v60_v53  ;;  %v3971_v29 = vcombine.low %v56_v57, %v60_v53  ;;  %v116_v57 = vld [vmem:[%s6202_s1 + $0x2f8] sm:$0xff] }
 0x10a   :  { %3452 = vmatpush1.bf16.msra.mxu0 %v3945_v2  ;;  %3616 = vmatpush1.bf16.msra.mxu1 %v3947_v3  ;;  %v4003_v2 = vcombine.low %v88_v54, %v92_v56  ;;  %v4010_v3 = vcombine.high %v95_v62, %v99_v39  ;;  %v148_v54 = vld [vmem:[%s6202_s1 + $0x3f8] sm:$0xff]  ;;  %v155_v62 = vld [vmem:[%s6202_s1 + $0x430] sm:$0xff] }
 0x10b   :  { %3453 = vmatprep.subr.bf16.mxu0 %v3954_v4  ;;  %3617 = vmatprep.subr.bf16.mxu1 %v3956_v5  ;;  %v4012_v4 = vcombine.high %v96_v63, %v100_v0  ;;  %v103_v5 = vld [vmem:[%s6202_s1 + $0x290] sm:$0xff]  ;;  %v152_v39 = vld [vmem:[%s6202_s1 + $0x418] sm:$0xff] }
 0x10c   :  { %v4017_v53 = vcombine.low %v103_v5, %v107_v6 }
 0x10e   :  { %3454 = vmatpush1.bf16.msra.mxu0 %v3953_v10  ;;  %3618 = vmatpush1.bf16.msra.mxu1 %v3955_v11  ;;  %v4011_v10 = vcombine.low %v96_v63, %v100_v0  ;;  %v4018_v11 = vcombine.high %v103_v5, %v107_v6  ;;  %v156_v63 = vld [vmem:[%s6202_s1 + $0x438] sm:$0xff]  ;;  %v163_v5 = vld [vmem:[%s6202_s1 + $0x470] sm:$0xff] }
 0x10f   :  { %3455 = vmatprep.subr.bf16.mxu0 %v3962_v13  ;;  %3619 = vmatprep.subr.bf16.mxu1 %v3964_v14  ;;  %v4020_v13 = vcombine.high %v104_v7, %v108_v8  ;;  %v111_v14 = vld [vmem:[%s6202_s1 + $0x2d0] sm:$0xff]  ;;  %v160_v6 = vld [vmem:[%s6202_s1 + $0x458] sm:$0xff] }
 0x110   :  { %v4025_v15 = vcombine.low %v111_v14, %v115_v16 }
 0x112   :  { %3456 = vmatpush1.bf16.msra.mxu0 %v3961_v18  ;;  %3620 = vmatpush1.bf16.msra.mxu1 %v3963_v19  ;;  %v4019_v18 = vcombine.low %v104_v7, %v108_v8  ;;  %v4026_v19 = vcombine.high %v111_v14, %v115_v16  ;;  %v164_v7 = vld [vmem:[%s6202_s1 + $0x478] sm:$0xff]  ;;  %v171_v14 = vld [vmem:[%s6202_s1 + $0x4b0] sm:$0xff] }
 0x113   :  { %3457 = vmatprep.subr.bf16.mxu0 %v3970_v20  ;;  %3621 = vmatprep.subr.bf16.mxu1 %v3972_v23  ;;  %v4028_v20 = vcombine.high %v112_v17, %v116_v57  ;;  %v119_v23 = vld [vmem:[%s6202_s1 + $0x310] sm:$0xff]  ;;  %v168_v16 = vld [vmem:[%s6202_s1 + $0x498] sm:$0xff] }
 0x114   :  { %v4033_v37 = vcombine.low %v119_v23, %v123_v24 }
 0x116   :  { %3458 = vmatpush1.bf16.msra.mxu0 %v3969_v28  ;;  %3622 = vmatpush1.bf16.msra.mxu1 %v3971_v29  ;;  %v4027_v28 = vcombine.low %v112_v17, %v116_v57  ;;  %v4034_v29 = vcombine.high %v119_v23, %v123_v24  ;;  %v172_v17 = vld [vmem:[%s6202_s1 + $0x4b8] sm:$0xff]  ;;  %v179_v23 = vld [vmem:[%s6202_s1 + $0x4f0] sm:$0xff] }
 0x117   :  { %3459 = vmatprep.subr.bf16.mxu0 %v3978_v30  ;;  %3623 = vmatprep.subr.bf16.mxu1 %v3980_v32  ;;  %v4036_v30 = vcombine.high %v120_v26, %v124_v27  ;;  %v127_v32 = vld [vmem:[%s6202_s1 + $0x350] sm:$0xff]  ;;  %v180_v24 = vld [vmem:[%s6202_s1 + $0x4f8] sm:$0xff] }
 0x118   :  { %v4041_v46 = vcombine.low %v127_v32, %v131_v33 }
 0x11a   :  { %3460 = vmatpush1.bf16.msra.mxu0 %v3977_v38  ;;  %3624 = vmatpush1.bf16.msra.mxu1 %v3979_v40  ;;  %v4035_v38 = vcombine.low %v120_v26, %v124_v27  ;;  %v4042_v40 = vcombine.high %v127_v32, %v131_v33  ;;  %v4083_v27 = vcombine.low %v168_v16, %v172_v17  ;;  %v188_v32 = vld [vmem:[%s6202_s1 + $0x538] sm:$0xff] }
 0x11b   :  { %3461 = vmatprep.subr.bf16.mxu0 %v3986_v41  ;;  %3625 = vmatprep.subr.bf16.mxu1 %v3988_v25  ;;  %v4044_v41 = vcombine.high %v128_v34, %v132_v35  ;;  %v135_v25 = vld [vmem:[%s6202_s1 + $0x390] sm:$0xff] }
 0x11c   :  { %v4049_v56 = vcombine.low %v135_v25, %v139_v42 }
 0x11e   :  { %3462 = vmatpush1.bf16.msra.mxu0 %v3985_v47  ;;  %3626 = vmatpush1.bf16.msra.mxu1 %v3987_v48  ;;  %v4043_v47 = vcombine.low %v128_v34, %v132_v35  ;;  %v4050_v48 = vcombine.high %v135_v25, %v139_v42  ;;  %v196_v25 = vld [vmem:[%s6202_s1 + $0x578] sm:$0xff] }
 0x11f   :  { %3463 = vmatprep.subr.bf16.mxu0 %v3994_v49  ;;  %3627 = vmatprep.subr.bf16.mxu1 %v3996_v50  ;;  %v4052_v49 = vcombine.high %v136_v43, %v140_v44  ;;  %v143_v50 = vld [vmem:[%s6202_s1 + $0x3d0] sm:$0xff] }
 0x120   :  { %v4057_v0 = vcombine.low %v143_v50, %v147_v51 }
 0x122   :  { %3464 = vmatpush1.bf16.msra.mxu0 %v3993_v58  ;;  %3628 = vmatpush1.bf16.msra.mxu1 %v3995_v59  ;;  %v4051_v58 = vcombine.low %v136_v43, %v140_v44  ;;  %v4058_v59 = vcombine.high %v143_v50, %v147_v51  ;;  %v204_v50 = vld [vmem:[%s6202_s1 + $0x5b8] sm:$0xff] }
 0x123   :  { %3465 = vmatprep.subr.bf16.mxu0 %v4002_v60  ;;  %3629 = vmatprep.subr.bf16.mxu1 %v4004_v61  ;;  %v4060_v60 = vcombine.high %v144_v52, %v148_v54  ;;  %v151_v61 = vld [vmem:[%s6202_s1 + $0x410] sm:$0xff] }
 0x124   :  { %v4065_v8 = vcombine.low %v151_v61, %v155_v62 }
 0x126   :  { %3466 = vmatpush1.bf16.msra.mxu0 %v4001_v1  ;;  %3630 = vmatpush1.bf16.msra.mxu1 %v4003_v2  ;;  %v4059_v1 = vcombine.low %v144_v52, %v148_v54  ;;  %v4066_v2 = vcombine.high %v151_v61, %v155_v62  ;;  %v212_v61 = vld [vmem:[%s6202_s1 + $0x5f8] sm:$0xff] }
 0x127   :  { %3467 = vmatprep.subr.bf16.mxu0 %v4010_v3  ;;  %3631 = vmatprep.subr.bf16.mxu1 %v4012_v4  ;;  %v4068_v3 = vcombine.high %v152_v39, %v156_v63  ;;  %v159_v4 = vld [vmem:[%s6202_s1 + $0x450] sm:$0xff] }
 0x128   :  { %v4073_v57 = vcombine.low %v159_v4, %v163_v5 }
 0x12a   :  { %3468 = vmatpush1.bf16.msra.mxu0 %v4009_v9  ;;  %3632 = vmatpush1.bf16.msra.mxu1 %v4011_v10  ;;  %v4067_v9 = vcombine.low %v152_v39, %v156_v63  ;;  %v4074_v10 = vcombine.high %v159_v4, %v163_v5  ;;  %v220_v4 = vld [vmem:[%s6202_s1 + $0x638] sm:$0xff] }
 0x12b   :  { %3469 = vmatprep.subr.bf16.mxu0 %v4018_v11  ;;  %3633 = vmatprep.subr.bf16.mxu1 %v4020_v13  ;;  %v4076_v11 = vcombine.high %v160_v6, %v164_v7  ;;  %v167_v13 = vld [vmem:[%s6202_s1 + $0x490] sm:$0xff] }
 0x12c   :  { %v4081_v26 = vcombine.low %v167_v13, %v171_v14 }
 0x12e   :  { %3470 = vmatpush1.bf16.msra.mxu0 %v4017_v53  ;;  %3634 = vmatpush1.bf16.msra.mxu1 %v4019_v18  ;;  %v4075_v53 = vcombine.low %v160_v6, %v164_v7  ;;  %v4082_v18 = vcombine.high %v167_v13, %v171_v14  ;;  %v228_v13 = vld [vmem:[%s6202_s1 + $0x678] sm:$0xff] }
 0x12f   :  { %3471 = vmatprep.subr.bf16.mxu0 %v4026_v19  ;;  %3635 = vmatprep.subr.bf16.mxu1 %v4028_v20  ;;  %v4084_v19 = vcombine.high %v168_v16, %v172_v17  ;;  %v175_v20 = vld [vmem:[%s6202_s1 + $0x4d0] sm:$0xff] }
 0x130   :  { %v4089_v33 = vcombine.low %v175_v20, %v179_v23 }
 0x132   :  { %3472 = vmatpush1.bf16.msra.mxu0 %v4025_v15  ;;  %3636 = vmatpush1.bf16.msra.mxu1 %v4027_v28  ;;  %v4090_v15 = vcombine.high %v175_v20, %v179_v23  ;;  %v236_v20 = vld [vmem:[%s6202_s1 + $0x6b8] sm:$0xff] }
 0x133   :  { %3473 = vmatprep.subr.bf16.mxu0 %v4034_v29  ;;  %3637 = vmatprep.subr.bf16.mxu1 %v4036_v30  ;;  %v183_v29 = vld [vmem:[%s6202_s1 + $0x510] sm:$0xff] }
 0x134   :  { %v187_v30 = vld [vmem:[%s6202_s1 + $0x530] sm:$0xff] }
 0x135   :  { %v4098_v35 = vcombine.high %v183_v29, %v187_v30  ;;  %v4097_v42 = vcombine.low %v183_v29, %v187_v30  ;;  %v244_v29 = vld [vmem:[%s6202_s1 + $0x6f8] sm:$0xff] }
 0x136   :  { %3474 = vmatpush1.bf16.msra.mxu0 %v4033_v37  ;;  %3638 = vmatpush1.bf16.msra.mxu1 %v4035_v38  ;;  %v191_v38 = vld [vmem:[%s6202_s1 + $0x550] sm:$0xff] }
 0x137   :  { %3475 = vmatprep.subr.bf16.mxu0 %v4042_v40  ;;  %3639 = vmatprep.subr.bf16.mxu1 %v4044_v41  ;;  %v195_v40 = vld [vmem:[%s6202_s1 + $0x570] sm:$0xff]  ;;  %v192_v41 = vld [vmem:[%s6202_s1 + $0x558] sm:$0xff] }
 0x138   :  { %v4106_v44 = vcombine.high %v191_v38, %v195_v40  ;;  %v4105_v51 = vcombine.low %v191_v38, %v195_v40  ;;  %v4107_v52 = vcombine.low %v192_v41, %v196_v25  ;;  %v252_v38 = vld [vmem:[%s6202_s1 + $0x738] sm:$0xff] }
 0x13a   :  { %3476 = vmatpush1.bf16.msra.mxu0 %v4041_v46  ;;  %3640 = vmatpush1.bf16.msra.mxu1 %v4043_v47  ;;  %v4108_v46 = vcombine.high %v192_v41, %v196_v25  ;;  %v199_v47 = vld [vmem:[%s6202_s1 + $0x590] sm:$0xff] }
 0x13b   :  { %3477 = vmatprep.subr.bf16.mxu0 %v4050_v48  ;;  %3641 = vmatprep.subr.bf16.mxu1 %v4052_v49  ;;  %v203_v48 = vld [vmem:[%s6202_s1 + $0x5b0] sm:$0xff]  ;;  %v200_v49 = vld [vmem:[%s6202_s1 + $0x598] sm:$0xff] }
 0x13c   :  { %v4114_v54 = vcombine.high %v199_v47, %v203_v48  ;;  %v4113_v62 = vcombine.low %v199_v47, %v203_v48  ;;  %v4115_v39 = vcombine.low %v200_v49, %v204_v50  ;;  %v260_v47 = vld [vmem:[%s6202_s1 + $0x778] sm:$0xff] }
 0x13e   :  { %3478 = vmatpush1.bf16.msra.mxu0 %v4049_v56  ;;  %3642 = vmatpush1.bf16.msra.mxu1 %v4051_v58  ;;  %v4116_v56 = vcombine.high %v200_v49, %v204_v50  ;;  %v207_v58 = vld [vmem:[%s6202_s1 + $0x5d0] sm:$0xff] }
 0x13f   :  { %3479 = vmatprep.subr.bf16.mxu0 %v4058_v59  ;;  %3643 = vmatprep.subr.bf16.mxu1 %v4060_v60  ;;  %v211_v59 = vld [vmem:[%s6202_s1 + $0x5f0] sm:$0xff]  ;;  %v208_v60 = vld [vmem:[%s6202_s1 + $0x5d8] sm:$0xff] }
 0x140   :  { %v4122_v63 = vcombine.high %v207_v58, %v211_v59  ;;  %v4121_v5 = vcombine.low %v207_v58, %v211_v59  ;;  %v4123_v6 = vcombine.low %v208_v60, %v212_v61  ;;  %v268_v58 = vld [vmem:[%s6202_s1 + $0x7b8] sm:$0xff] }
 0x142   :  { %3480 = vmatpush1.bf16.msra.mxu0 %v4057_v0  ;;  %3644 = vmatpush1.bf16.msra.mxu1 %v4059_v1  ;;  %v4124_v0 = vcombine.high %v208_v60, %v212_v61  ;;  %v215_v1 = vld [vmem:[%s6202_s1 + $0x610] sm:$0xff] }
 0x143   :  { %3490 = vmatprep.subr.bf16.mxu0 %v4066_v2  ;;  %3654 = vmatprep.subr.bf16.mxu1 %v4068_v3  ;;  %v219_v2 = vld [vmem:[%s6202_s1 + $0x630] sm:$0xff]  ;;  %v216_v3 = vld [vmem:[%s6202_s1 + $0x618] sm:$0xff] }
 0x144   :  { %v4130_v7 = vcombine.high %v215_v1, %v219_v2  ;;  %v4129_v14 = vcombine.low %v215_v1, %v219_v2  ;;  %v4131_v16 = vcombine.low %v216_v3, %v220_v4  ;;  %v276_v1 = vld [vmem:[%s6202_s1 + $0x7f8] sm:$0xff] }
 0x145   :  { %3482 = vmatmul.mubr.bf16.vlgmr.msra.gmra.mrb[4].mxu0 %v4757_v12  ;;  %3646 = vmatmul.mubr.bf16.vlgmr.msra.gmra.mrb[4].mxu1 %v4757_v12  ;;  %v176_v12 = vld [vmem:[%s6202_s1 + $0x4d8] sm:$0xff] }
 0x146   :  { %3491 = vmatpush1.bf16.msra.mxu0 %v4065_v8  ;;  %3655 = vmatpush1.bf16.msra.mxu1 %v4067_v9  ;;  %v4092_v28 = vcombine.high %v176_v12, %v180_v24  ;;  %v4091_v34 = vcombine.low %v176_v12, %v180_v24  ;;  %v4132_v8 = vcombine.high %v216_v3, %v220_v4  ;;  %v223_v9 = vld [vmem:[%s6202_s1 + $0x650] sm:$0xff] }
 0x147   :  { %3492 = vmatprep.subr.bf16.mxu0 %v4074_v10  ;;  %3656 = vmatprep.subr.bf16.mxu1 %v4076_v11  ;;  %v227_v10 = vld [vmem:[%s6202_s1 + $0x670] sm:$0xff]  ;;  %v224_v11 = vld [vmem:[%s6202_s1 + $0x658] sm:$0xff] }
 0x148   :  { %3522 = vmatprep.mubr.bf16.mxu0 %v4778_v21  ;;  %3686 = vmatprep.mubr.bf16.mxu1 %v4778_v21  ;;  %v184_v21 = vld [vmem:[%s6202_s1 + $0x518] sm:$0xff]  ;;  %v4138_v17 = vcombine.high %v223_v9, %v227_v10  ;;  %v4137_v23 = vcombine.low %v223_v9, %v227_v10  ;;  %v4139_v12 = vcombine.low %v224_v11, %v228_v13 }
 0x149   :  { %v4100_v37 = vcombine.high %v184_v21, %v188_v32  ;;  %v4099_v43 = vcombine.low %v184_v21, %v188_v32  ;;  %v284_v9 = vld [vmem:[%s6202_s1 + $0x838] sm:$0xff] }
 0x14a   :  { %3493 = vmatpush1.bf16.msra.mxu0 %v4073_v57  ;;  %3657 = vmatpush1.bf16.msra.mxu1 %v4075_v53  ;;  %v4140_v57 = vcombine.high %v224_v11, %v228_v13  ;;  %v231_v53 = vld [vmem:[%s6202_s1 + $0x690] sm:$0xff] }
 0x14b   :  { %3494 = vmatprep.subr.bf16.mxu0 %v4082_v18  ;;  %3658 = vmatprep.subr.bf16.mxu1 %v4084_v19  ;;  %v235_v18 = vld [vmem:[%s6202_s1 + $0x6b0] sm:$0xff]  ;;  %v232_v19 = vld [vmem:[%s6202_s1 + $0x698] sm:$0xff] }
 0x14c   :  { %v4146_v24 = vcombine.high %v231_v53, %v235_v18  ;;  %v4145_v30 = vcombine.low %v231_v53, %v235_v18  ;;  %v4147_v21 = vcombine.low %v232_v19, %v236_v20  ;;  %v292_v53 = vld [vmem:[%s6202_s1 + $0x878] sm:$0xff] }
 0x14e   :  { %3495 = vmatpush1.bf16.msra.mxu0 %v4081_v26  ;;  %3659 = vmatpush1.bf16.msra.mxu1 %v4083_v27  ;;  %v4148_v26 = vcombine.high %v232_v19, %v236_v20  ;;  %v239_v27 = vld [vmem:[%s6202_s1 + $0x6d0] sm:$0xff] }
 0x14f   :  { %3496 = vmatprep.subr.bf16.mxu0 %v4090_v15  ;;  %3660 = vmatprep.subr.bf16.mxu1 %v4092_v28  ;;  %v243_v15 = vld [vmem:[%s6202_s1 + $0x6f0] sm:$0xff]  ;;  %v240_v28 = vld [vmem:[%s6202_s1 + $0x6d8] sm:$0xff] }
 0x150   :  { %v4154_v32 = vcombine.high %v239_v27, %v243_v15  ;;  %v4153_v40 = vcombine.low %v239_v27, %v243_v15  ;;  %v4155_v41 = vcombine.low %v240_v28, %v244_v29  ;;  %v300_v27 = vld [vmem:[%s6202_s1 + $0x8b8] sm:$0xff] }
 0x152   :  { %3497 = vmatpush1.bf16.msra.mxu0 %v4089_v33  ;;  %3661 = vmatpush1.bf16.msra.mxu1 %v4091_v34  ;;  %v4156_v33 = vcombine.high %v240_v28, %v244_v29  ;;  %v247_v34 = vld [vmem:[%s6202_s1 + $0x710] sm:$0xff] }
 0x153   :  { %3498 = vmatprep.subr.bf16.mxu0 %v4098_v35  ;;  %3662 = vmatprep.subr.bf16.mxu1 %v4100_v37  ;;  %v251_v35 = vld [vmem:[%s6202_s1 + $0x730] sm:$0xff]  ;;  %v248_v37 = vld [vmem:[%s6202_s1 + $0x718] sm:$0xff] }
 0x154   :  { %v4162_v25 = vcombine.high %v247_v34, %v251_v35  ;;  %v4161_v48 = vcombine.low %v247_v34, %v251_v35  ;;  %v4163_v49 = vcombine.low %v248_v37, %v252_v38 }
 0x156   :  { %3499 = vmatpush1.bf16.msra.mxu0 %v4097_v42  ;;  %3663 = vmatpush1.bf16.msra.mxu1 %v4099_v43  ;;  %v4164_v42 = vcombine.high %v248_v37, %v252_v38  ;;  %v255_v43 = vld [vmem:[%s6202_s1 + $0x750] sm:$0xff] }
 0x157   :  { %3500 = vmatprep.subr.bf16.mxu0 %v4106_v44  ;;  %3664 = vmatprep.subr.bf16.mxu1 %v4108_v46  ;;  %v259_v44 = vld [vmem:[%s6202_s1 + $0x770] sm:$0xff]  ;;  %v256_v46 = vld [vmem:[%s6202_s1 + $0x758] sm:$0xff] }
 0x158   :  { %v4170_v50 = vcombine.high %v255_v43, %v259_v44  ;;  %v4169_v59 = vcombine.low %v255_v43, %v259_v44  ;;  %v4171_v60 = vcombine.low %v256_v46, %v260_v47 }
 0x15a   :  { %3501 = vmatpush1.bf16.msra.mxu0 %v4105_v51  ;;  %3665 = vmatpush1.bf16.msra.mxu1 %v4107_v52  ;;  %v4172_v51 = vcombine.high %v256_v46, %v260_v47  ;;  %v263_v52 = vld [vmem:[%s6202_s1 + $0x790] sm:$0xff] }
 0x15b   :  { %3502 = vmatprep.subr.bf16.mxu0 %v4114_v54  ;;  %3666 = vmatprep.subr.bf16.mxu1 %v4116_v56  ;;  %v267_v54 = vld [vmem:[%s6202_s1 + $0x7b0] sm:$0xff]  ;;  %v264_v56 = vld [vmem:[%s6202_s1 + $0x798] sm:$0xff] }
 0x15c   :  { %v4178_v61 = vcombine.high %v263_v52, %v267_v54  ;;  %v4177_v2 = vcombine.low %v263_v52, %v267_v54  ;;  %v4179_v3 = vcombine.low %v264_v56, %v268_v58  ;;  %v319_v47 = vld [vmem:[%s6202_s1 + $0x950] sm:$0xff] }
 0x15e   :  { %3503 = vmatpush1.bf16.msra.mxu0 %v4113_v62  ;;  %3667 = vmatpush1.bf16.msra.mxu1 %v4115_v39  ;;  %v4180_v62 = vcombine.high %v264_v56, %v268_v58  ;;  %v271_v39 = vld [vmem:[%s6202_s1 + $0x7d0] sm:$0xff] }
 0x15f   :  { %3504 = vmatprep.subr.bf16.mxu0 %v4122_v63  ;;  %3668 = vmatprep.subr.bf16.mxu1 %v4124_v0  ;;  %v275_v63 = vld [vmem:[%s6202_s1 + $0x7f0] sm:$0xff]  ;;  %v272_v0 = vld [vmem:[%s6202_s1 + $0x7d8] sm:$0xff] }
 0x160   :  { %v4186_v4 = vcombine.high %v271_v39, %v275_v63  ;;  %v4185_v10 = vcombine.low %v271_v39, %v275_v63  ;;  %v4187_v11 = vcombine.low %v272_v0, %v276_v1  ;;  %v327_v58 = vld [vmem:[%s6202_s1 + $0x990] sm:$0xff] }
 0x162   :  { %3505 = vmatpush1.bf16.msra.mxu0 %v4121_v5  ;;  %3669 = vmatpush1.bf16.msra.mxu1 %v4123_v6  ;;  %v4188_v5 = vcombine.high %v272_v0, %v276_v1  ;;  %v279_v6 = vld [vmem:[%s6202_s1 + $0x810] sm:$0xff] }
 0x163   :  { %3506 = vmatprep.subr.bf16.mxu0 %v4130_v7  ;;  %3670 = vmatprep.subr.bf16.mxu1 %v4132_v8  ;;  %v283_v7 = vld [vmem:[%s6202_s1 + $0x830] sm:$0xff]  ;;  %v280_v8 = vld [vmem:[%s6202_s1 + $0x818] sm:$0xff] }
 0x164   :  { %v4194_v13 = vcombine.high %v279_v6, %v283_v7  ;;  %v4193_v18 = vcombine.low %v279_v6, %v283_v7  ;;  %v4195_v19 = vcombine.low %v280_v8, %v284_v9  ;;  %v335_v1 = vld [vmem:[%s6202_s1 + $0x9d0] sm:$0xff] }
 0x166   :  { %3507 = vmatpush1.bf16.msra.mxu0 %v4129_v14  ;;  %3671 = vmatpush1.bf16.msra.mxu1 %v4131_v16  ;;  %v4196_v14 = vcombine.high %v280_v8, %v284_v9  ;;  %v287_v16 = vld [vmem:[%s6202_s1 + $0x850] sm:$0xff] }
 0x167   :  { %3508 = vmatprep.subr.bf16.mxu0 %v4138_v17  ;;  %3672 = vmatprep.subr.bf16.mxu1 %v4140_v57  ;;  %v291_v17 = vld [vmem:[%s6202_s1 + $0x870] sm:$0xff]  ;;  %v288_v57 = vld [vmem:[%s6202_s1 + $0x858] sm:$0xff] }
 0x168   :  { %v4202_v20 = vcombine.high %v287_v16, %v291_v17  ;;  %v4201_v15 = vcombine.low %v287_v16, %v291_v17  ;;  %v4203_v28 = vcombine.low %v288_v57, %v292_v53  ;;  %v343_v9 = vld [vmem:[%s6202_s1 + $0xa10] sm:$0xff] }
 0x16a   :  { %3509 = vmatpush1.bf16.msra.mxu0 %v4137_v23  ;;  %3673 = vmatpush1.bf16.msra.mxu1 %v4139_v12  ;;  %v4204_v23 = vcombine.high %v288_v57, %v292_v53  ;;  %v295_v12 = vld [vmem:[%s6202_s1 + $0x890] sm:$0xff] }
 0x16b   :  { %3510 = vmatprep.subr.bf16.mxu0 %v4146_v24  ;;  %3674 = vmatprep.subr.bf16.mxu1 %v4148_v26  ;;  %v299_v24 = vld [vmem:[%s6202_s1 + $0x8b0] sm:$0xff]  ;;  %v296_v26 = vld [vmem:[%s6202_s1 + $0x898] sm:$0xff] }
 0x16c   :  { %v4210_v29 = vcombine.high %v295_v12, %v299_v24  ;;  %v4209_v34 = vcombine.low %v295_v12, %v299_v24  ;;  %v4211_v35 = vcombine.low %v296_v26, %v300_v27  ;;  %v351_v53 = vld [vmem:[%s6202_s1 + $0xa50] sm:$0xff] }
 0x16e   :  { %3511 = vmatpush1.bf16.msra.mxu0 %v4145_v30  ;;  %3675 = vmatpush1.bf16.msra.mxu1 %v4147_v21  ;;  %v4212_v30 = vcombine.high %v296_v26, %v300_v27  ;;  %v303_v21 = vld [vmem:[%s6202_s1 + $0x8d0] sm:$0xff] }
 0x16f   :  { %3512 = vmatprep.subr.bf16.mxu0 %v4154_v32  ;;  %3676 = vmatprep.subr.bf16.mxu1 %v4156_v33  ;;  %v307_v32 = vld [vmem:[%s6202_s1 + $0x8f0] sm:$0xff]  ;;  %v308_v33 = vld [vmem:[%s6202_s1 + $0x8f8] sm:$0xff] }
 0x170   :  { %v4218_v37 = vcombine.high %v303_v21, %v307_v32  ;;  %v359_v27 = vld [vmem:[%s6202_s1 + $0xa90] sm:$0xff] }
 0x172   :  { %3513 = vmatpush1.bf16.msra.mxu0 %v4153_v40  ;;  %3677 = vmatpush1.bf16.msra.mxu1 %v4155_v41  ;;  %v311_v40 = vld [vmem:[%s6202_s1 + $0x910] sm:$0xff] }
 0x173   :  { %3514 = vmatprep.subr.bf16.mxu0 %v4162_v25  ;;  %3678 = vmatprep.subr.bf16.mxu1 %v4164_v42  ;;  %v315_v41 = vld [vmem:[%s6202_s1 + $0x930] sm:$0xff]  ;;  %v316_v25 = vld [vmem:[%s6202_s1 + $0x938] sm:$0xff]  ;;  %v4217_v42 = vcombine.low %v303_v21, %v307_v32 }
 0x174   :  { %v4226_v44 = vcombine.high %v311_v40, %v315_v41 }
 0x176   :  { %3515 = vmatpush1.bf16.msra.mxu0 %v4161_v48  ;;  %3679 = vmatpush1.bf16.msra.mxu1 %v4163_v49  ;;  %v323_v48 = vld [vmem:[%s6202_s1 + $0x970] sm:$0xff]  ;;  %v320_v49 = vld [vmem:[%s6202_s1 + $0x958] sm:$0xff] }
 0x177   :  { %3516 = vmatprep.subr.bf16.mxu0 %v4170_v50  ;;  %3680 = vmatprep.subr.bf16.mxu1 %v4172_v51  ;;  %v324_v50 = vld [vmem:[%s6202_s1 + $0x978] sm:$0xff]  ;;  %v4225_v51 = vcombine.low %v311_v40, %v315_v41  ;;  %v4234_v54 = vcombine.high %v319_v47, %v323_v48 }
 0x178   :  { %v4236_v56 = vcombine.high %v320_v49, %v324_v50  ;;  %v4235_v39 = vcombine.low %v320_v49, %v324_v50  ;;  %v383_v50 = vld [vmem:[%s6202_s1 + $0xb50] sm:$0xff] }
 0x17a   :  { %3517 = vmatpush1.bf16.msra.mxu0 %v4169_v59  ;;  %3681 = vmatpush1.bf16.msra.mxu1 %v4171_v60  ;;  %v331_v59 = vld [vmem:[%s6202_s1 + $0x9b0] sm:$0xff]  ;;  %v328_v60 = vld [vmem:[%s6202_s1 + $0x998] sm:$0xff] }
 0x17b   :  { %3518 = vmatprep.subr.bf16.mxu0 %v4178_v61  ;;  %3682 = vmatprep.subr.bf16.mxu1 %v4180_v62  ;;  %v332_v61 = vld [vmem:[%s6202_s1 + $0x9b8] sm:$0xff]  ;;  %v4233_v62 = vcombine.low %v319_v47, %v323_v48  ;;  %v4242_v63 = vcombine.high %v327_v58, %v331_v59 }
 0x17c   :  { %v4244_v0 = vcombine.high %v328_v60, %v332_v61  ;;  %v4243_v6 = vcombine.low %v328_v60, %v332_v61  ;;  %v391_v61 = vld [vmem:[%s6202_s1 + $0xb90] sm:$0xff] }
 0x17e   :  { %3519 = vmatpush1.bf16.msra.mxu0 %v4177_v2  ;;  %3683 = vmatpush1.bf16.msra.mxu1 %v4179_v3  ;;  %v339_v2 = vld [vmem:[%s6202_s1 + $0x9f0] sm:$0xff]  ;;  %v336_v3 = vld [vmem:[%s6202_s1 + $0x9d8] sm:$0xff] }
 0x17f   :  { %3520 = vmatprep.subr.bf16.mxu0 %v4186_v4  ;;  %3684 = vmatprep.subr.bf16.mxu1 %v4188_v5  ;;  %v340_v4 = vld [vmem:[%s6202_s1 + $0x9f8] sm:$0xff]  ;;  %v4241_v5 = vcombine.low %v327_v58, %v331_v59  ;;  %v4250_v7 = vcombine.high %v335_v1, %v339_v2 }
 0x180   :  { %v4252_v8 = vcombine.high %v336_v3, %v340_v4  ;;  %v4251_v16 = vcombine.low %v336_v3, %v340_v4  ;;  %v399_v4 = vld [vmem:[%s6202_s1 + $0xbd0] sm:$0xff] }
 0x182   :  { %3521 = vmatpush1.bf16.msra.mxu0 %v4185_v10  ;;  %3685 = vmatpush1.bf16.msra.mxu1 %v4187_v11  ;;  %v347_v10 = vld [vmem:[%s6202_s1 + $0xa30] sm:$0xff]  ;;  %v344_v11 = vld [vmem:[%s6202_s1 + $0xa18] sm:$0xff] }
 0x183   :  { %3531 = vmatprep.subr.bf16.mxu0 %v4194_v13  ;;  %3695 = vmatprep.subr.bf16.mxu1 %v4196_v14  ;;  %v348_v13 = vld [vmem:[%s6202_s1 + $0xa38] sm:$0xff]  ;;  %v4249_v14 = vcombine.low %v335_v1, %v339_v2  ;;  %v4258_v17 = vcombine.high %v343_v9, %v347_v10 }
 0x184   :  { %v4260_v57 = vcombine.high %v344_v11, %v348_v13  ;;  %v4259_v12 = vcombine.low %v344_v11, %v348_v13  ;;  %v407_v13 = vld [vmem:[%s6202_s1 + $0xc10] sm:$0xff] }
 0x185   :  { %3523 = vmatmul.mubr.bf16.vlgmr.msra.gmra.mrb[4].mxu0 %v4966_v22  ;;  %3687 = vmatmul.mubr.bf16.vlgmr.msra.gmra.mrb[4].mxu1 %v4966_v22  ;;  %v304_v22 = vld [vmem:[%s6202_s1 + $0x8d8] sm:$0xff] }
 0x186   :  { %3532 = vmatpush1.bf16.msra.mxu0 %v4193_v18  ;;  %3696 = vmatpush1.bf16.msra.mxu1 %v4195_v19  ;;  %v4220_v38 = vcombine.high %v304_v22, %v308_v33  ;;  %v4219_v43 = vcombine.low %v304_v22, %v308_v33  ;;  %v355_v18 = vld [vmem:[%s6202_s1 + $0xa70] sm:$0xff]  ;;  %v352_v19 = vld [vmem:[%s6202_s1 + $0xa58] sm:$0xff] }
 0x187   :  { %3533 = vmatprep.subr.bf16.mxu0 %v4202_v20  ;;  %3697 = vmatprep.subr.bf16.mxu1 %v4204_v23  ;;  %v356_v20 = vld [vmem:[%s6202_s1 + $0xa78] sm:$0xff]  ;;  %v4257_v23 = vcombine.low %v343_v9, %v347_v10  ;;  %v4266_v24 = vcombine.high %v351_v53, %v355_v18  ;;  %v367_v33 = vld [vmem:[%s6202_s1 + $0xad0] sm:$0xff] }
 0x188   :  { %3563 = vmatprep.mubr.bf16.mxu0 %v4987_v31  ;;  %3727 = vmatprep.mubr.bf16.mxu1 %v4987_v31  ;;  %v312_v31 = vld [vmem:[%s6202_s1 + $0x918] sm:$0xff]  ;;  %v4268_v26 = vcombine.high %v352_v19, %v356_v20  ;;  %v4267_v21 = vcombine.low %v352_v19, %v356_v20  ;;  %v415_v20 = vld [vmem:[%s6202_s1 + $0xc50] sm:$0xff] }
 0x189   :  { %v4228_v46 = vcombine.high %v312_v31, %v316_v25  ;;  %v4227_v52 = vcombine.low %v312_v31, %v316_v25  ;;  %v375_v25 = vld [vmem:[%s6202_s1 + $0xb10] sm:$0xff] }
 0x18a   :  { %3534 = vmatpush1.bf16.msra.mxu0 %v4201_v15  ;;  %3698 = vmatpush1.bf16.msra.mxu1 %v4203_v28  ;;  %v363_v15 = vld [vmem:[%s6202_s1 + $0xab0] sm:$0xff]  ;;  %v360_v28 = vld [vmem:[%s6202_s1 + $0xa98] sm:$0xff] }
 0x18b   :  { %3535 = vmatprep.subr.bf16.mxu0 %v4210_v29  ;;  %3699 = vmatprep.subr.bf16.mxu1 %v4212_v30  ;;  %v364_v29 = vld [vmem:[%s6202_s1 + $0xab8] sm:$0xff]  ;;  %v4265_v30 = vcombine.low %v351_v53, %v355_v18  ;;  %v4274_v32 = vcombine.high %v359_v27, %v363_v15 }
 0x18c   :  { %v4276_v22 = vcombine.high %v360_v28, %v364_v29  ;;  %v4275_v40 = vcombine.low %v360_v28, %v364_v29  ;;  %v423_v29 = vld [vmem:[%s6202_s1 + $0xc90] sm:$0xff] }
 0x18e   :  { %3536 = vmatpush1.bf16.msra.mxu0 %v4209_v34  ;;  %3700 = vmatpush1.bf16.msra.mxu1 %v4211_v35  ;;  %v371_v34 = vld [vmem:[%s6202_s1 + $0xaf0] sm:$0xff]  ;;  %v368_v35 = vld [vmem:[%s6202_s1 + $0xad8] sm:$0xff] }
 0x18f   :  { %3537 = vmatprep.subr.bf16.mxu0 %v4218_v37  ;;  %3701 = vmatprep.subr.bf16.mxu1 %v4220_v38  ;;  %v372_v37 = vld [vmem:[%s6202_s1 + $0xaf8] sm:$0xff]  ;;  %v4273_v38 = vcombine.low %v359_v27, %v363_v15  ;;  %v4282_v41 = vcombine.high %v367_v33, %v371_v34 }
 0x190   :  { %v4284_v31 = vcombine.high %v368_v35, %v372_v37  ;;  %v4283_v47 = vcombine.low %v368_v35, %v372_v37  ;;  %v431_v37 = vld [vmem:[%s6202_s1 + $0xcd0] sm:$0xff] }
 0x192   :  { %3538 = vmatpush1.bf16.msra.mxu0 %v4217_v42  ;;  %3702 = vmatpush1.bf16.msra.mxu1 %v4219_v43  ;;  %v379_v42 = vld [vmem:[%s6202_s1 + $0xb30] sm:$0xff]  ;;  %v376_v43 = vld [vmem:[%s6202_s1 + $0xb18] sm:$0xff] }
 0x193   :  { %3539 = vmatprep.subr.bf16.mxu0 %v4226_v44  ;;  %3703 = vmatprep.subr.bf16.mxu1 %v4228_v46  ;;  %v380_v44 = vld [vmem:[%s6202_s1 + $0xb38] sm:$0xff]  ;;  %v4281_v46 = vcombine.low %v367_v33, %v371_v34  ;;  %v4290_v48 = vcombine.high %v375_v25, %v379_v42 }
 0x194   :  { %v4292_v49 = vcombine.high %v376_v43, %v380_v44  ;;  %v4291_v58 = vcombine.low %v376_v43, %v380_v44  ;;  %v439_v44 = vld [vmem:[%s6202_s1 + $0xd10] sm:$0xff] }
 0x196   :  { %3540 = vmatpush1.bf16.msra.mxu0 %v4225_v51  ;;  %3704 = vmatpush1.bf16.msra.mxu1 %v4227_v52  ;;  %v387_v51 = vld [vmem:[%s6202_s1 + $0xb70] sm:$0xff]  ;;  %v384_v52 = vld [vmem:[%s6202_s1 + $0xb58] sm:$0xff] }
 0x197   :  { %3541 = vmatprep.subr.bf16.mxu0 %v4234_v54  ;;  %3705 = vmatprep.subr.bf16.mxu1 %v4236_v56  ;;  %v388_v54 = vld [vmem:[%s6202_s1 + $0xb78] sm:$0xff]  ;;  %v4289_v56 = vcombine.low %v375_v25, %v379_v42  ;;  %v4298_v59 = vcombine.high %v383_v50, %v387_v51 }
 0x198   :  { %v4300_v60 = vcombine.high %v384_v52, %v388_v54  ;;  %v4299_v1 = vcombine.low %v384_v52, %v388_v54  ;;  %v447_v54 = vld [vmem:[%s6202_s1 + $0xd50] sm:$0xff] }
 0x19a   :  { %3542 = vmatpush1.bf16.msra.mxu0 %v4233_v62  ;;  %3706 = vmatpush1.bf16.msra.mxu1 %v4235_v39  ;;  %v395_v62 = vld [vmem:[%s6202_s1 + $0xbb0] sm:$0xff]  ;;  %v392_v39 = vld [vmem:[%s6202_s1 + $0xb98] sm:$0xff] }
 0x19b   :  { %3543 = vmatprep.subr.bf16.mxu0 %v4242_v63  ;;  %3707 = vmatprep.subr.bf16.mxu1 %v4244_v0  ;;  %v396_v63 = vld [vmem:[%s6202_s1 + $0xbb8] sm:$0xff]  ;;  %v4297_v0 = vcombine.low %v383_v50, %v387_v51  ;;  %v4306_v2 = vcombine.high %v391_v61, %v395_v62 }
 0x19c   :  { %v4308_v3 = vcombine.high %v392_v39, %v396_v63  ;;  %v4307_v9 = vcombine.low %v392_v39, %v396_v63 }
 0x19e   :  { %3544 = vmatpush1.bf16.msra.mxu0 %v4241_v5  ;;  %3708 = vmatpush1.bf16.msra.mxu1 %v4243_v6  ;;  %v403_v5 = vld [vmem:[%s6202_s1 + $0xbf0] sm:$0xff]  ;;  %v400_v6 = vld [vmem:[%s6202_s1 + $0xbd8] sm:$0xff] }
 0x19f   :  { %3545 = vmatprep.subr.bf16.mxu0 %v4250_v7  ;;  %3709 = vmatprep.subr.bf16.mxu1 %v4252_v8  ;;  %v404_v7 = vld [vmem:[%s6202_s1 + $0xbf8] sm:$0xff]  ;;  %v4305_v8 = vcombine.low %v391_v61, %v395_v62  ;;  %v4314_v10 = vcombine.high %v399_v4, %v403_v5  ;;  %v6038_v62 = vld [vmem:[%s6204_s2] sm:$0xff] }
 0x1a0   :  { %v4316_v11 = vcombine.high %v400_v6, %v404_v7  ;;  %v4315_v53 = vcombine.low %v400_v6, %v404_v7  ;;  %v459_v6 = vld [vmem:[%s6202_s1 + $0xdb0] sm:$0xff] }
 0x1a2   :  { %3546 = vmatpush1.bf16.msra.mxu0 %v4249_v14  ;;  %3710 = vmatpush1.bf16.msra.mxu1 %v4251_v16  ;;  %v411_v14 = vld [vmem:[%s6202_s1 + $0xc30] sm:$0xff]  ;;  %v408_v16 = vld [vmem:[%s6202_s1 + $0xc18] sm:$0xff] }
 0x1a3   :  { %3547 = vmatprep.subr.bf16.mxu0 %v4258_v17  ;;  %3711 = vmatprep.subr.bf16.mxu1 %v4260_v57  ;;  %v412_v17 = vld [vmem:[%s6202_s1 + $0xc38] sm:$0xff]  ;;  %v4313_v57 = vcombine.low %v399_v4, %v403_v5  ;;  %v4322_v18 = vcombine.high %v407_v13, %v411_v14  ;;  %v455_v5 = vld [vmem:[%s6202_s1 + $0xd90] sm:$0xff] }
 0x1a4   :  { %v4324_v19 = vcombine.high %v408_v16, %v412_v17  ;;  %v4323_v27 = vcombine.low %v408_v16, %v412_v17 }
 0x1a6   :  { %3548 = vmatpush1.bf16.msra.mxu0 %v4257_v23  ;;  %3712 = vmatpush1.bf16.msra.mxu1 %v4259_v12  ;;  %v419_v23 = vld [vmem:[%s6202_s1 + $0xc70] sm:$0xff]  ;;  %v416_v12 = vld [vmem:[%s6202_s1 + $0xc58] sm:$0xff] }
 0x1a7   :  { %3549 = vmatprep.subr.bf16.mxu0 %v4266_v24  ;;  %3713 = vmatprep.subr.bf16.mxu1 %v4268_v26  ;;  %v420_v24 = vld [vmem:[%s6202_s1 + $0xc78] sm:$0xff]  ;;  %v4321_v26 = vcombine.low %v407_v13, %v411_v14  ;;  %v4330_v15 = vcombine.high %v415_v20, %v419_v23 }
 0x1a8   :  { %v4332_v28 = vcombine.high %v416_v12, %v420_v24  ;;  %v4331_v33 = vcombine.low %v416_v12, %v420_v24  ;;  %v467_v12 = vld [vmem:[%s6202_s1 + $0xdf0] sm:$0xff] }
 0x1aa   :  { %3550 = vmatpush1.bf16.msra.mxu0 %v4265_v30  ;;  %3714 = vmatpush1.bf16.msra.mxu1 %v4267_v21  ;;  %v427_v30 = vld [vmem:[%s6202_s1 + $0xcb0] sm:$0xff]  ;;  %v424_v21 = vld [vmem:[%s6202_s1 + $0xc98] sm:$0xff] }
 0x1ab   :  { %3551 = vmatprep.subr.bf16.mxu0 %v4274_v32  ;;  %3715 = vmatprep.subr.bf16.mxu1 %v4276_v22  ;;  %v428_v32 = vld [vmem:[%s6202_s1 + $0xcb8] sm:$0xff]  ;;  %v4329_v22 = vcombine.low %v415_v20, %v419_v23  ;;  %v4338_v34 = vcombine.high %v423_v29, %v427_v30  ;;  %v463_v23 = vld [vmem:[%s6202_s1 + $0xdd0] sm:$0xff] }
 0x1ac   :  { %v4340_v35 = vcombine.high %v424_v21, %v428_v32  ;;  %v4339_v25 = vcombine.low %v424_v21, %v428_v32 }
 0x1ae   :  { %3552 = vmatpush1.bf16.msra.mxu0 %v4273_v38  ;;  %3716 = vmatpush1.bf16.msra.mxu1 %v4275_v40  ;;  %v435_v38 = vld [vmem:[%s6202_s1 + $0xcf0] sm:$0xff]  ;;  %v436_v40 = vld [vmem:[%s6202_s1 + $0xcf8] sm:$0xff] }
 0x1af   :  { %3553 = vmatprep.subr.bf16.mxu0 %v4282_v41  ;;  %3717 = vmatprep.subr.bf16.mxu1 %v4284_v31  ;;  %v3779_v41 = vlaneseq  ;;  %v4337_v31 = vcombine.low %v423_v29, %v427_v30  ;;  %v4346_v42 = vcombine.high %v431_v37, %v435_v38  ;;  %v468_v29 = vld [vmem:[%s6202_s1 + $0xdf8] sm:$0xff] }
 0x1b2   :  { %3554 = vmatpush1.bf16.msra.mxu0 %v4281_v46  ;;  %3718 = vmatpush1.bf16.msra.mxu1 %v4283_v47  ;;  %v443_v46 = vld [vmem:[%s6202_s1 + $0xd30] sm:$0xff]  ;;  %v444_v47 = vld [vmem:[%s6202_s1 + $0xd38] sm:$0xff] }
 0x1b3   :  { %3555 = vmatprep.subr.bf16.mxu0 %v4290_v48  ;;  %3719 = vmatprep.subr.bf16.mxu1 %v4292_v49  ;;  %v6020_v48 = vshrl.u32 %v3779_v41, 7  ;;  %v4345_v49 = vcombine.low %v431_v37, %v435_v38  ;;  %v4354_v51 = vcombine.high %v439_v44, %v443_v46  ;;  %v4353_v61 = vcombine.low %v439_v44, %v443_v46  ;;  %v475_v44 = vld [vmem:[%s6202_s1 + $0xe30] sm:$0xff] }
 0x1b5   :  { %v3789_v39 = vsub.s32 2, %v6020_v48  ;;  %v3785_v63 = vsub.s32 1, %v6020_v48 }
 0x1b6   :  { %3556 = vmatpush1.bf16.msra.mxu0 %v4289_v56  ;;  %3720 = vmatpush1.bf16.msra.mxu1 %v4291_v58  ;;  %v451_v56 = vld [vmem:[%s6202_s1 + $0xd70] sm:$0xff]  ;;  %v3781_v58 = vsub.s32 0, %v6020_v48 }
 0x1b7   :  { %3557 = vmatprep.subr.bf16.mxu0 %v4298_v59  ;;  %3721 = vmatprep.subr.bf16.mxu1 %v4300_v60  ;;  %v448_v59 = vld [vmem:[%s6202_s1 + $0xd58] sm:$0xff]  ;;  %v4361_v14 = vcombine.low %v447_v54, %v451_v56 }
 0x1b8   :  { %v452_v60 = vld [vmem:[%s6202_s1 + $0xd78] sm:$0xff]  ;;  %v3782_v7 = vrot.slane %v6038_v62, %v3781_v58 }
 0x1b9   :  { %v4364_v4 = vcombine.high %v448_v59, %v452_v60  ;;  %v4363_v17 = vcombine.low %v448_v59, %v452_v60 }
 0x1ba   :  { %3558 = vmatpush1.bf16.msra.mxu0 %v4297_v0  ;;  %3722 = vmatpush1.bf16.msra.mxu1 %v4299_v1  ;;  %v3793_v0 = vsub.s32 3, %v6020_v48 }
 0x1bb   :  { %3559 = vmatprep.subr.bf16.mxu0 %v4306_v2  ;;  %3723 = vmatprep.subr.bf16.mxu1 %v4308_v3  ;;  %v4362_v2 = vcombine.high %v447_v54, %v451_v56  ;;  %v6046_v3 = vld [vmem:[%s6205_s3] sm:$0xff] }
 0x1bc   :  { %v3794_v13 = vrot.slane %v6038_v62, %v3793_v0  ;;  %v3832_v16 = vrot.slane %v6046_v3, %v3781_v58 }
 0x1be   :  { %3560 = vmatpush1.bf16.msra.mxu0 %v4305_v8  ;;  %3724 = vmatpush1.bf16.msra.mxu1 %v4307_v9  ;;  %v456_v8 = vld [vmem:[%s6202_s1 + $0xd98] sm:$0xff] }
 0x1bf   :  { %3561 = vmatprep.subr.bf16.mxu0 %v4314_v10  ;;  %3725 = vmatprep.subr.bf16.mxu1 %v4316_v11  ;;  %v460_v9 = vld [vmem:[%s6202_s1 + $0xdb8] sm:$0xff]  ;;  %v3790_v10 = vrot.slane %v6038_v62, %v3789_v39  ;;  %v3786_v11 = vrot.slane %v6038_v62, %v3785_v63 }
 0x1c0   :  { %v4372_v20 = vcombine.high %v456_v8, %v460_v9 }
 0x1c2   :  { %3562 = vmatpush1.bf16.msra.mxu0 %v4313_v57  ;;  %3726 = vmatpush1.bf16.msra.mxu1 %v4315_v53  ;;  %v4370_v57 = vcombine.high %v455_v5, %v459_v6 }
 0x1c3   :  { %3572 = vmatprep.subr.bf16.mxu0 %v4322_v18  ;;  %3736 = vmatprep.subr.bf16.mxu1 %v4324_v19  ;;  %v3840_v18 = vrot.slane %v6046_v3, %v3789_v39  ;;  %v3836_v19 = vrot.slane %v6046_v3, %v3785_v63  ;;  %v483_v39 = vld [vmem:[%s6202_s1 + $0xe70] sm:$0xff] }
 0x1c5   :  { %3564 = vmatmul.mubr.bf16.vlgmr.msra.gmra.mrb[4].mxu0 %v5175_v36  ;;  %3728 = vmatmul.mubr.bf16.vlgmr.msra.gmra.mrb[4].mxu1 %v5175_v36  ;;  %v432_v36 = vld [vmem:[%s6202_s1 + $0xcd8] sm:$0xff] }
 0x1c6   :  { %3573 = vmatpush1.bf16.msra.mxu0 %v4321_v26  ;;  %3737 = vmatpush1.bf16.msra.mxu1 %v4323_v27  ;;  %v4348_v43 = vcombine.high %v432_v36, %v436_v40  ;;  %v4347_v50 = vcombine.low %v432_v36, %v436_v40  ;;  %v4378_v40 = vcombine.high %v463_v23, %v467_v12 }
 0x1c7   :  { %3574 = vmatprep.subr.bf16.mxu0 %v4330_v15  ;;  %3738 = vmatprep.subr.bf16.mxu1 %v4332_v28  ;;  %v3844_v15 = vrot.slane %v6046_v3, %v3793_v0  ;;  %v464_v28 = vld [vmem:[%s6202_s1 + $0xdd8] sm:$0xff] }
 0x1c8   :  { %3604 = vmatprep.mubr.bf16.mxu0 %v5196_v45  ;;  %3768 = vmatprep.mubr.bf16.mxu1 %v5196_v45  ;;  %v440_v45 = vld [vmem:[%s6202_s1 + $0xd18] sm:$0xff]  ;;  %v4379_v56 = vcombine.low %v464_v28, %v468_v29 }
 0x1c9   :  { %v4356_v52 = vcombine.high %v440_v45, %v444_v47  ;;  %v4355_v1 = vcombine.low %v440_v45, %v444_v47  ;;  %v472_v47 = vld [vmem:[%s6202_s1 + $0xe18] sm:$0xff] }
 0x1ca   :  { %3575 = vmatpush1.bf16.msra.mxu0 %v4329_v22  ;;  %3739 = vmatpush1.bf16.msra.mxu1 %v4331_v33  ;;  %v4369_v33 = vcombine.low %v455_v5, %v459_v6  ;;  %v480_v0 = vld [vmem:[%s6202_s1 + $0xe58] sm:$0xff] }
 0x1cb   :  { %3576 = vmatprep.subr.bf16.mxu0 %v4338_v34  ;;  %3740 = vmatprep.subr.bf16.mxu1 %v4340_v35  ;;  %v4371_v34 = vcombine.low %v456_v8, %v460_v9  ;;  %v491_v8 = vld [vmem:[%s6202_s1 + $0xeb0] sm:$0xff]  ;;  %v488_v9 = vld [vmem:[%s6202_s1 + $0xe98] sm:$0xff] }
 0x1ce   :  { %3577 = vmatpush1.bf16.msra.mxu0 %v4337_v31  ;;  %3741 = vmatpush1.bf16.msra.mxu1 %v4339_v25 }
 0x1cf   :  { %3578 = vmatprep.subr.bf16.mxu0 %v4346_v42  ;;  %3742 = vmatprep.subr.bf16.mxu1 %v4348_v43  ;;  %v4380_v42 = vcombine.high %v464_v28, %v468_v29  ;;  %v471_v43 = vld [vmem:[%s6202_s1 + $0xe10] sm:$0xff] }
 0x1d0   :  { %v4386_v58 = vcombine.high %v471_v43, %v475_v44 }
 0x1d2   :  { %3579 = vmatpush1.bf16.msra.mxu0 %v4345_v49  ;;  %3743 = vmatpush1.bf16.msra.mxu1 %v4347_v50  ;;  %v476_v49 = vld [vmem:[%s6202_s1 + $0xe38] sm:$0xff] }
 0x1d3   :  { %3580 = vmatprep.subr.bf16.mxu0 %v4354_v51  ;;  %3744 = vmatprep.subr.bf16.mxu1 %v4356_v52  ;;  %v4377_v52 = vcombine.low %v463_v23, %v467_v12  ;;  %v4388_v60 = vcombine.high %v472_v47, %v476_v49 }
 0x1d6   :  { %3581 = vmatpush1.bf16.msra.mxu0 %v4353_v61  ;;  %3745 = vmatpush1.bf16.msra.mxu1 %v4355_v1  ;;  %v479_v61 = vld [vmem:[%s6202_s1 + $0xe50] sm:$0xff]  ;;  %v484_v1 = vld [vmem:[%s6202_s1 + $0xe78] sm:$0xff] }
 0x1d7   :  { %3582 = vmatprep.subr.bf16.mxu0 %v4362_v2  ;;  %3746 = vmatprep.subr.bf16.mxu1 %v4364_v4  ;;  %v4385_v2 = vcombine.low %v471_v43, %v475_v44  ;;  %v4387_v4 = vcombine.low %v472_v47, %v476_v49  ;;  %v4394_v5 = vcombine.high %v479_v61, %v483_v39  ;;  %v531_v47 = vld [vmem:[%s6202_s1 + $0xff0] sm:$0xff]  ;;  %v528_v49 = vld [vmem:[%s6202_s1 + $0xfd8] sm:$0xff] }
 0x1d8   :  { %v3278_v53 = vpop.f32.mrb[0].mxu0  ;;  %v3442_v26 = vpop.f32.mrb[0].mxu1  ;;  %v4396_v6 = vcombine.high %v480_v0, %v484_v1 }
 0x1d9   :  { %v3819_v24 = vmul.f32 %v3782_v7, %v3278_v53  ;;  %v3280_v27 = vpop.f32.mrb[1].mxu0  ;;  %v3821_v30 = vmul.f32 %v3790_v10, %v3442_v26  ;;  %v3444_v32 = vpop.f32.mrb[1].mxu1  ;;  %v487_v7 = vld [vmem:[%s6202_s1 + $0xe90] sm:$0xff]  ;;  %v492_v10 = vld [vmem:[%s6202_s1 + $0xeb8] sm:$0xff] }
 0x1da   :  { %v3820_v21 = vmul.f32 %v3786_v11, %v3280_v27  ;;  %v3282_v22 = vpop.f32.mrb[2].mxu0  ;;  %3583 = vmatpush1.bf16.msra.mxu0 %v4361_v14  ;;  %v3822_v37 = vmul.f32 %v3794_v13, %v3444_v32  ;;  %v3446_v38 = vpop.f32.mrb[2].mxu1  ;;  %3747 = vmatpush1.bf16.msra.mxu1 %v4363_v17  ;;  %v4393_v11 = vcombine.low %v479_v61, %v483_v39  ;;  %v495_v17 = vld [vmem:[%s6202_s1 + $0xed0] sm:$0xff]  ;;  %v496_v53 = vld [vmem:[%s6202_s1 + $0xed8] sm:$0xff]  ;;  %v3805_v61 = vsub.s32 6, %v6020_v48 }
 0x1db   :  { %v3869_v35 = vadd.f32 %v3832_v16, %v3819_v24  ;;  %v3283_v36 = vpop.f32.mrb[3].mxu0  ;;  %3584 = vmatprep.subr.bf16.mxu0 %v4370_v57  ;;  %v3871_v41 = vadd.f32 %v3840_v18, %v3821_v30  ;;  %v3447_v25 = vpop.f32.mrb[3].mxu1  ;;  %3748 = vmatprep.subr.bf16.mxu1 %v4372_v20  ;;  %v4395_v13 = vcombine.low %v480_v0, %v484_v1  ;;  %v499_v57 = vld [vmem:[%s6202_s1 + $0xef0] sm:$0xff]  ;;  %v500_v18 = vld [vmem:[%s6202_s1 + $0xef8] sm:$0xff]  ;;  %v3801_v39 = vsub.s32 5, %v6020_v48 }
 0x1dc   :  { %v3870_v31 = vadd.f32 %v3836_v19, %v3820_v21  ;;  %v3872_v45 = vadd.f32 %v3844_v15, %v3822_v37  ;;  %v4402_v14 = vcombine.high %v487_v7, %v491_v8  ;;  %v4404_v16 = vcombine.high %v488_v9, %v492_v10  ;;  %v503_v24 = vld [vmem:[%s6202_s1 + $0xf10] sm:$0xff]  ;;  %v504_v27 = vld [vmem:[%s6202_s1 + $0xf18] sm:$0xff] }
 0x1dd   :  { %v3877_v46 = vmax.f32 %v3869_v35, 0.0  ;;  %v3879_v50 = vmax.f32 %v3871_v41, 0.0  ;;  %v4401_v19 = vcombine.low %v487_v7, %v491_v8  ;;  %v4403_v20 = vcombine.low %v488_v9, %v492_v10  ;;  %v507_v26 = vld [vmem:[%s6202_s1 + $0xf30] sm:$0xff]  ;;  %v508_v15 = vld [vmem:[%s6202_s1 + $0xf38] sm:$0xff] }
 0x1de   :  { %v3878_v51 = vmax.f32 %v3870_v31, 0.0  ;;  %3585 = vmatpush1.bf16.msra.mxu0 %v4369_v33  ;;  %v3880_v54 = vmax.f32 %v3872_v45, 0.0  ;;  %3749 = vmatpush1.bf16.msra.mxu1 %v4371_v34  ;;  %v4410_v23 = vcombine.high %v495_v17, %v499_v57  ;;  %v4412_v12 = vcombine.high %v496_v53, %v500_v18  ;;  %v511_v32 = vld [vmem:[%s6202_s1 + $0xf50] sm:$0xff]  ;;  %v512_v33 = vld [vmem:[%s6202_s1 + $0xf58] sm:$0xff] }
 0x1df   :  { %3586 = vmatprep.subr.bf16.mxu0 %v4378_v40  ;;  %3750 = vmatprep.subr.bf16.mxu1 %v4380_v42  ;;  %v4409_v28 = vcombine.low %v495_v17, %v499_v57  ;;  %v4411_v29 = vcombine.low %v496_v53, %v500_v18  ;;  %v4418_v30 = vcombine.high %v503_v24, %v507_v26  ;;  %v515_v22 = vld [vmem:[%s6202_s1 + $0xf70] sm:$0xff]  ;;  %v516_v34 = vld [vmem:[%s6202_s1 + $0xf78] sm:$0xff] }
 0x1e0   :  { %v4449_v59 = vpack.c.bf16 %v3878_v51, %v3877_v46  ;;  %v4450_v63 = vpack.c.bf16 %v3880_v54, %v3879_v50  ;;  %v4420_v21 = vcombine.high %v504_v27, %v508_v15  ;;  %v4417_v35 = vcombine.low %v503_v24, %v507_v26  ;;  %v519_v40 = vld [vmem:[%s6202_s1 + $0xf90] sm:$0xff]  ;;  %v520_v31 = vld [vmem:[%s6202_s1 + $0xf98] sm:$0xff] }
 0x1e1   :  { %v4419_v37 = vcombine.low %v504_v27, %v508_v15  ;;  %v4426_v38 = vcombine.high %v511_v32, %v515_v22  ;;  %v4428_v36 = vcombine.high %v512_v33, %v516_v34  ;;  %v523_v41 = vld [vmem:[%s6202_s1 + $0xfb0] sm:$0xff]  ;;  %v524_v25 = vld [vmem:[%s6202_s1 + $0xfb8] sm:$0xff]  ;;  %v4425_v42 = vcombine.low %v511_v32, %v515_v22 }
 0x1e2   :  { %3917 = vst [vmem:[%s6206_s4] sm:$0xff] %v4449_v59  ;;  %3587 = vmatpush1.bf16.msra.mxu0 %v4377_v52  ;;  %3918 = vst [vmem:[%s6206_s4 + $0x8] sm:$0xff] %v4450_v63  ;;  %3751 = vmatpush1.bf16.msra.mxu1 %v4379_v56  ;;  %v4427_v43 = vcombine.low %v512_v33, %v516_v34  ;;  %v4434_v44 = vcombine.high %v519_v40, %v523_v41  ;;  %v527_v45 = vld [vmem:[%s6202_s1 + $0xfd0] sm:$0xff]  ;;  %v532_v50 = vld [vmem:[%s6202_s1 + $0xff8] sm:$0xff]  ;;  %v3809_v63 = vsub.s32 7, %v6020_v48 }
 0x1e3   :  { %3588 = vmatprep.subr.bf16.mxu0 %v4386_v58  ;;  %3752 = vmatprep.subr.bf16.mxu1 %v4388_v60  ;;  %v4436_v46 = vcombine.high %v520_v31, %v524_v25  ;;  %v4433_v51 = vcombine.low %v519_v40, %v523_v41  ;;  %v4435_v52 = vcombine.low %v520_v31, %v524_v25  ;;  %v3797_v60 = vsub.s32 4, %v6020_v48 }
 0x1e4   :  { %v4442_v54 = vcombine.high %v527_v45, %v531_v47  ;;  %v4444_v56 = vcombine.high %v528_v49, %v532_v50  ;;  %v4441_v58 = vcombine.low %v527_v45, %v531_v47  ;;  %v4443_v59 = vcombine.low %v528_v49, %v532_v50 }
 0x1e5   :  { %v3798_v0 = vrot.slane %v6038_v62, %v3797_v60  ;;  %v3806_v1 = vrot.slane %v6038_v62, %v3805_v61  ;;  %v3852_v7 = vrot.slane %v6046_v3, %v3801_v39  ;;  %v3860_v48 = vrot.slane %v6046_v3, %v3809_v63 }
 0x1e6   :  { %3589 = vmatpush1.bf16.msra.mxu0 %v4385_v2  ;;  %3753 = vmatpush1.bf16.msra.mxu1 %v4387_v4  ;;  %v3802_v2 = vrot.slane %v6038_v62, %v3801_v39  ;;  %v3848_v4 = vrot.slane %v6046_v3, %v3797_v60 }
 0x1e7   :  { %3590 = vmatprep.subr.bf16.mxu0 %v4394_v5  ;;  %3754 = vmatprep.subr.bf16.mxu1 %v4396_v6  ;;  %v3810_v5 = vrot.slane %v6038_v62, %v3809_v63 }
 0x1ea   :  { %3591 = vmatpush1.bf16.msra.mxu0 %v4393_v11  ;;  %3755 = vmatpush1.bf16.msra.mxu1 %v4395_v13 }
 0x1eb   :  { %3592 = vmatprep.subr.bf16.mxu0 %v4402_v14  ;;  %3756 = vmatprep.subr.bf16.mxu1 %v4404_v16 }
 0x1ee   :  { %3593 = vmatpush1.bf16.msra.mxu0 %v4401_v19  ;;  %3757 = vmatpush1.bf16.msra.mxu1 %v4403_v20 }
 0x1ef   :  { %3594 = vmatprep.subr.bf16.mxu0 %v4410_v23  ;;  %3758 = vmatprep.subr.bf16.mxu1 %v4412_v12 }
 0x1f2   :  { %3595 = vmatpush1.bf16.msra.mxu0 %v4409_v28  ;;  %3759 = vmatpush1.bf16.msra.mxu1 %v4411_v29 }
 0x1f3   :  { %3596 = vmatprep.subr.bf16.mxu0 %v4418_v30  ;;  %3760 = vmatprep.subr.bf16.mxu1 %v4420_v21 }
 0x1f6   :  { %3597 = vmatpush1.bf16.msra.mxu0 %v4417_v35  ;;  %3761 = vmatpush1.bf16.msra.mxu1 %v4419_v37 }
 0x1f7   :  { %3598 = vmatprep.subr.bf16.mxu0 %v4426_v38  ;;  %3762 = vmatprep.subr.bf16.mxu1 %v4428_v36 }
 0x1fa   :  { %3599 = vmatpush1.bf16.msra.mxu0 %v4425_v42  ;;  %3763 = vmatpush1.bf16.msra.mxu1 %v4427_v43 }
 0x1fb   :  { %3600 = vmatprep.subr.bf16.mxu0 %v4434_v44  ;;  %3764 = vmatprep.subr.bf16.mxu1 %v4436_v46 }
 0x1fe   :  { %3601 = vmatpush1.bf16.msra.mxu0 %v4433_v51  ;;  %3765 = vmatpush1.bf16.msra.mxu1 %v4435_v52 }
 0x1ff   :  { %3602 = vmatprep.subr.bf16.mxu0 %v4442_v54  ;;  %3766 = vmatprep.subr.bf16.mxu1 %v4444_v56 }
 0x202   :  { %3603 = vmatpush1.bf16.msra.mxu0 %v4441_v58  ;;  %3767 = vmatpush1.bf16.msra.mxu1 %v4443_v59 }
 0x205   :  { %3605 = vmatmul.mubr.bf16.vlgmr.msra.gmra.mrb[4].mxu0 %v5384_v55  ;;  %3769 = vmatmul.mubr.bf16.vlgmr.msra.gmra.mrb[4].mxu1 %v5384_v55  ;;  %v3856_v55 = vrot.slane %v6046_v3, %v3805_v61 }
 0x2d8   :  { %v3606_v6 = vpop.f32.mrb[4].mxu0  ;;  %v3770_v9 = vpop.f32.mrb[4].mxu1 }
 0x2d9   :  { %v3823_v8 = vmul.f32 %v3798_v0, %v3606_v6  ;;  %v3608_v10 = vpop.f32.mrb[5].mxu0  ;;  %v3825_v11 = vmul.f32 %v3806_v1, %v3770_v9  ;;  %v3772_v14 = vpop.f32.mrb[5].mxu1 }
 0x2da   :  { %v3824_v13 = vmul.f32 %v3802_v2, %v3608_v10  ;;  %v3610_v16 = vpop.f32.mrb[6].mxu0  ;;  %v3826_v57 = vmul.f32 %v3810_v5, %v3772_v14  ;;  %v3774_v53 = vpop.f32.mrb[6].mxu1 }
 0x2db   :  { %v3873_v17 = vadd.f32 %v3848_v4, %v3823_v8  ;;  %v3611_v18 = vpop.f32.mrb[7].mxu0  ;;  %v3875_v19 = vadd.f32 %v3856_v55, %v3825_v11  ;;  %v3775_v20 = vpop.f32.mrb[7].mxu1 }
 0x2dc   :  { %v3874_v62 = vadd.f32 %v3852_v7, %v3824_v13  ;;  %v3876_v12 = vadd.f32 %v3860_v48, %v3826_v57 }
 0x2dd   :  { %v3881_v23 = vmax.f32 %v3873_v17, 0.0  ;;  %v3883_v24 = vmax.f32 %v3875_v19, 0.0 }
 0x2de   :  { %v3882_v26 = vmax.f32 %v3874_v62, 0.0  ;;  %v3884_v27 = vmax.f32 %v3876_v12, 0.0 }
 0x2e0   :  { %v4451_v15 = vpack.c.bf16 %v3882_v26, %v3881_v23  ;;  %v4452_v28 = vpack.c.bf16 %v3884_v27, %v3883_v24 }
 0x2e2   :  { %3919 = vst [vmem:[%s6206_s4 + $0x10] sm:$0xff] %v4451_v15  ;;  %3920 = vst [vmem:[%s6206_s4 + $0x18] sm:$0xff] %v4452_v28 }

// kernel: multi_scale_dense121_forward.14
= control target key start
LH: loop header
LB: loop body
LE: loop exit
PB: predicated region body
PF: predicated region fallthrough
CT: control target
= control target key end

     0   :  { %s2554_s30 = smov 0   ;;  %s3106_s0 = inlined_call_operand.vmem [shape: bf16[2,16,64], index: 0, kind: input, shape index: {}]   ;;  %s3107_s1 = inlined_call_operand.vmem [shape: bf16[64,16], index: 1, kind: input, shape index: {}]   ;;  %s3108_s2 = inlined_call_operand.vmem [shape: bf16[2,64,512], index: 2, kind: input, shape index: {}]   ;;  %s3109_s3 = inlined_call_operand.vmem [shape: bf16[512,64], index: 3, kind: input, shape index: {}]   ;;  %s3110_s4 = inlined_call_operand.vmem [shape: f32[1,64], index: 4, kind: input, shape index: {}]   ;;  %s3111_s5 = inlined_call_operand.vmem [shape: f32[1,64], index: 5, kind: input, shape index: {}]   ;;  %s3112_s6 = inlined_call_operand.vmem [shape: bf16[576,64], index: 6, kind: input, shape index: {}]   ;;  %s3113_s7 = inlined_call_operand.vmem [shape: f32[1,64], index: 7, kind: input, shape index: {}]   ;;  %s3114_s8 = inlined_call_operand.vmem [shape: f32[1,64], index: 8, kind: input, shape index: {}]   ;;  %s3115_s9 = inlined_call_operand.vmem [shape: bf16[2,64,64], index: 9, kind: output, shape index: {}]  }
   0x1 LB: > { %s1989_s10 = sadd.s32 4294967295, %s2499_s30   ;;  %p1993_p0 = scmp.ge.s32.totalorder %s2499_s30, 1  ;;  %s2499_s30 = sphi %s2554_s30, %s19_s30  }
   0x2   : > { %p297_p1 = scmp.lt.s32.totalorder %s2499_s30, 3 }
   0x4   : > { %p298_p2 = pnand %p1993_p0, %p297_p1 }
   0x5   : > { %v2396_v0 = vld [vmem:[%s3109_s3 + $0x40] sm:$0xff] (!%p298_p2)   ;;  %v2400_v4 = vld [vmem:[%s3109_s3 + $0x48] sm:$0xff] (!%p298_p2)   ;;  %v2404_v8 = vld [vmem:[%s3109_s3 + $0x50] sm:$0xff] (!%p298_p2)   ;;  %p338_p3 = scmp.lt.s32.totalorder (!%p298_p2), %s1989_s10, 1  ;;  %vm910_vm0 = vcmask (!%p298_p2), 130048   ;;  %s2501_s19 = smov (!%p298_p2), 64  }
   0x6   : > { %301 = sbr.rel (%p298_p2) target bundleno = 797 (0x31d), region = 56  ;;  %v2397_v1 = vld [vmem:[%s3109_s3 + $0xc0] sm:$0xff] (!%p298_p2)   ;;  %2126 = vmatprep.subr.bf16.mxu0 (!%p298_p2), %v2396_v0  ;;  %v2401_v5 = vld [vmem:[%s3109_s3 + $0xc8] sm:$0xff] (!%p298_p2)   ;;  %v2405_v9 = vld [vmem:[%s3109_s3 + $0xd0] sm:$0xff] (!%p298_p2)   ;;  %vm1191_vm5 = vcmask (!%p298_p2), 523264  }
   0x7   : > { %v2398_v2 = vld [vmem:[%s3109_s3] sm:$0xff] (!%p298_p2)   ;;  %2166 = vmatprep.subr.bf16.mxu1 (!%p298_p2), %v2397_v1  ;;  %v2402_v6 = vld [vmem:[%s3109_s3 + $0x8] sm:$0xff] (!%p298_p2)   ;;  %v2406_v10 = vld [vmem:[%s3109_s3 + $0x10] sm:$0xff] (!%p298_p2)  }
   0x8   : > { %v2399_v3 = vld [vmem:[%s3109_s3 + $0x80] sm:$0xff] (!%p298_p2)   ;;  %2127 = vmatpush3.bf16.msra.mxu0 (!%p298_p2), %v2398_v2  ;;  %v2403_v7 = vld [vmem:[%s3109_s3 + $0x88] sm:$0xff] (!%p298_p2)   ;;  %v2407_v11 = vld [vmem:[%s3109_s3 + $0x90] sm:$0xff] (!%p298_p2)  }
   0x9   : > { %2167 = vmatpush3.bf16.msra.mxu1 (!%p298_p2), %v2399_v3  ;;  %2128 = vmatprep.subr.bf16.mxu0 (!%p298_p2), %v2400_v4  ;;  %v2408_v12 = vld [vmem:[%s3109_s3 + $0x58] sm:$0xff] (!%p298_p2)   ;;  %v2412_v16 = vld [vmem:[%s3109_s3 + $0x60] sm:$0xff] (!%p298_p2)   ;;  %v2416_v20 = vld [vmem:[%s3109_s3 + $0x68] sm:$0xff] (!%p298_p2)  }
   0xa   : > { %2168 = vmatprep.subr.bf16.mxu1 (!%p298_p2), %v2401_v5  ;;  %v2409_v13 = vld [vmem:[%s3109_s3 + $0xd8] sm:$0xff] (!%p298_p2)   ;;  %v2413_v17 = vld [vmem:[%s3109_s3 + $0xe0] sm:$0xff] (!%p298_p2)   ;;  %v2417_v21 = vld [vmem:[%s3109_s3 + $0xe8] sm:$0xff] (!%p298_p2)  }
   0xb   : > { %v2410_v14 = vld [vmem:[%s3109_s3 + $0x18] sm:$0xff] (!%p298_p2)   ;;  %v2414_v18 = vld [vmem:[%s3109_s3 + $0x20] sm:$0xff] (!%p298_p2)   ;;  %v2418_v22 = vld [vmem:[%s3109_s3 + $0x28] sm:$0xff] (!%p298_p2)  }
   0xc   : > { %2129 = vmatpush3.bf16.msra.mxu0 (!%p298_p2), %v2402_v6  ;;  %v2411_v15 = vld [vmem:[%s3109_s3 + $0x98] sm:$0xff] (!%p298_p2)   ;;  %v2415_v19 = vld [vmem:[%s3109_s3 + $0xa0] sm:$0xff] (!%p298_p2)   ;;  %v2419_v23 = vld [vmem:[%s3109_s3 + $0xa8] sm:$0xff] (!%p298_p2)  }
   0xd   : > { %2169 = vmatpush3.bf16.msra.mxu1 %v2403_v7  ;;  %2130 = vmatprep.subr.bf16.mxu0 %v2404_v8  ;;  %s3135_s10 = smov (!%p338_p3, %s1989_s10), 1  ;;  %v2420_v24 = vld [vmem:[%s3109_s3 + $0x70] sm:$0xff]   ;;  %v2424_v28 = vld [vmem:[%s3109_s3 + $0x78] sm:$0xff]   ;;  %v2453_v49 = vld [vmem:[%s3107_s1] sm:$0xff]  }
   0xe   : > { %2170 = vmatprep.subr.bf16.mxu1 %v2405_v9  ;;  %v2421_v25 = vld [vmem:[%s3109_s3 + $0xf0] sm:$0xff]   ;;  %s2116_s27 = sshll.u32 %s3135_s10, 7  ;;  %v2425_v29 = vld [vmem:[%s3109_s3 + $0xf8] sm:$0xff]   ;;  %s2115_s18 = sshll.u32 %s3135_s10, 3  ;;  %v2454_v50 = vld [vmem:[%s3107_s1 + $0x8] sm:$0xff]  }
   0xf   : > { %v2422_v26 = vld [vmem:[%s3109_s3 + $0x30] sm:$0xff]   ;;  %s2662_s17 = scalar_lea.vmem %s3108_s2, %s2116_s27  ;;  %v2426_v30 = vld [vmem:[%s3109_s3 + $0x38] sm:$0xff]   ;;  %s342_s25 = scalar_lea.vmem %s3106_s0, %s2115_s18 }
  0x10   : > { %2131 = vmatpush3.bf16.msra.mxu0 %v2406_v10  ;;  %v2423_v27 = vld [vmem:[%s3109_s3 + $0xb0] sm:$0xff]   ;;  %v2427_v31 = vld [vmem:[%s3109_s3 + $0xb8] sm:$0xff]   ;;  %v2434_v36 = vld [vmem:[%s342_s25] sm:$0xff]   ;;  %s2117_s23 = sshll.u32 %s3135_s10, 5 }
  0x11   : > { %2171 = vmatpush3.bf16.msra.mxu1 %v2407_v11  ;;  %2132 = vmatprep.subr.bf16.mxu0 %v2408_v12  ;;  %v2428_v32 = vld [vmem:[%s2662_s17] ss:$16 sps:$4 sm:$0xff]   ;;  %v2430_v33 = vld [vmem:[%s2662_s17 + $0x4] ss:$16 sps:$4 sm:$0xff]   ;;  %v2431_v34 = vld [vmem:[%s2662_s17 + $0x8] ss:$16 sps:$4 sm:$0xff]   ;;  %s3085_s26 = scalar_lea.vmem %s3115_s9, %s2117_s23 }
  0x12   : > { %2172 = vmatprep.subr.bf16.mxu1 %v2409_v13  ;;  %v2433_v35 = vld [vmem:[%s2662_s17 + $0xc] ss:$16 sps:$4 sm:$0xff]   ;;  %738 = vmatprep.mubr.bf16.mxu0 %v2430_v33  ;;  %v2435_v37 = vld [vmem:[%s2662_s17 + $0x24] ss:$16 sps:$4 sm:$0xff]   ;;  %v2439_v39 = vld [vmem:[%s2662_s17 + $0x20] ss:$16 sps:$4 sm:$0xff]  }
  0x13   : > { %803 = vmatprep.mubr.bf16.mxu1 %v2433_v35  ;;  %v2437_v38 = vld [vmem:[%s2662_s17 + $0x2c] ss:$16 sps:$4 sm:$0xff]   ;;  %v2440_v40 = vld [vmem:[%s2662_s17 + $0x28] ss:$16 sps:$4 sm:$0xff]   ;;  %v2441_v41 = vld [vmem:[%s2662_s17 + $0x44] ss:$16 sps:$4 sm:$0xff]  }
  0x14   : > { %2133 = vmatpush3.bf16.msra.mxu0 %v2410_v14  ;;  %v2443_v42 = vld [vmem:[%s2662_s17 + $0x4c] ss:$16 sps:$4 sm:$0xff]   ;;  %v2445_v43 = vld [vmem:[%s2662_s17 + $0x40] ss:$16 sps:$4 sm:$0xff]   ;;  %v2446_v44 = vld [vmem:[%s2662_s17 + $0x48] ss:$16 sps:$4 sm:$0xff]  }
  0x15   : > { %2173 = vmatpush3.bf16.msra.mxu1 %v2411_v15  ;;  %2134 = vmatprep.subr.bf16.mxu0 %v2412_v16  ;;  %v2447_v45 = vld [vmem:[%s2662_s17 + $0x64] ss:$16 sps:$4 sm:$0xff]   ;;  %v2449_v46 = vld [vmem:[%s2662_s17 + $0x6c] ss:$16 sps:$4 sm:$0xff]   ;;  %v2451_v47 = vld [vmem:[%s2662_s17 + $0x60] ss:$16 sps:$4 sm:$0xff]  }
  0x16   : > { %2174 = vmatprep.subr.bf16.mxu1 %v2413_v17  ;;  %v2452_v48 = vld [vmem:[%s2662_s17 + $0x68] ss:$16 sps:$4 sm:$0xff]   ;;  %v2455_v51 = vld [vmem:[%s3107_s1 + $0x10] sm:$0xff]  }
  0x17   : > { %v2456_v52 = vld [vmem:[%s3107_s1 + $0x18] sm:$0xff]  }
  0x18   : > { %2135 = vmatpush3.bf16.msra.mxu0 %v2414_v18 }
  0x19   : > { %2175 = vmatpush3.bf16.msra.mxu1 %v2415_v19  ;;  %2136 = vmatprep.subr.bf16.mxu0 %v2416_v20 }
  0x1a   : > { %2176 = vmatprep.subr.bf16.mxu1 %v2417_v21 }
  0x1c   : > { %2137 = vmatpush3.bf16.msra.mxu0 %v2418_v22 }
  0x1d   : > { %2177 = vmatpush3.bf16.msra.mxu1 %v2419_v23  ;;  %2138 = vmatprep.subr.bf16.mxu0 %v2420_v24 }
  0x1e   : > { %2178 = vmatprep.subr.bf16.mxu1 %v2421_v25 }
  0x20   : > { %2139 = vmatpush3.bf16.msra.mxu0 %v2422_v26 }
  0x21   : > { %2179 = vmatpush3.bf16.msra.mxu1 %v2423_v27  ;;  %2140 = vmatprep.subr.bf16.mxu0 %v2424_v28  ;;  %v2048_v28 = vld [vmem:[%s3110_s4] ss:$0 sm:$0xff] }
  0x22   : > { %2180 = vmatprep.subr.bf16.mxu1 %v2425_v29 }
  0x24   : > { %2141 = vmatpush3.bf16.msra.mxu0 %v2426_v30 }
  0x25   : > { %2181 = vmatpush3.bf16.msra.mxu1 %v2427_v31  ;;  %2299 = vmatprep.subr.bf16.mxu0 %v2434_v36 }
  0x27   : > { %739 = vmatmul.mubr.bf16.vlgmr.msra.gmra.mrb[0].mxu0 %v2428_v32 }
  0x28   : > { %804 = vmatmul.mubr.bf16.vlgmr.msra.gmra.mrb[0].mxu1 %v2431_v34  ;;  %2300 = vmatpush3.bf16.msra.mxu0 %v2434_v36 }
  0x29   : > { %746 = vmatprep.mubr.bf16.mxu0 %v2435_v37  ;;  %811 = vmatprep.mubr.bf16.mxu1 %v2437_v38  ;;  %v2049_v38 = vld [vmem:[%s3111_s5] ss:$0 sm:$0xff] }
  0x2f   : > { %747 = vmatmul.mubr.bf16.gmra.mrb[4].mxu0 %v2439_v39 }
  0x30   : > { %812 = vmatmul.mubr.bf16.gmra.mrb[4].mxu1 %v2440_v40  ;;  %754 = vmatprep.mubr.bf16.mxu0 %v2441_v41 }
  0x31   : > { %819 = vmatprep.mubr.bf16.mxu1 %v2443_v42 }
  0x37   : > { %755 = vmatmul.mubr.bf16.gmra.mrb[8].mxu0 %v2445_v43 }
  0x38   : > { %820 = vmatmul.mubr.bf16.gmra.mrb[8].mxu1 %v2446_v44  ;;  %762 = vmatprep.mubr.bf16.mxu0 %v2447_v45 }
  0x39   : > { %827 = vmatprep.mubr.bf16.mxu1 %v2449_v46 }
  0x3f   : > { %763 = vmatmul.mubr.bf16.gmra.mrb[12].mxu0 %v2451_v47 }
  0x40   : > { %828 = vmatmul.mubr.bf16.gmra.mrb[12].mxu1 %v2452_v48  ;;  %2301 = vmatprep.mubr.msk.bf16.mxu0 %vm910_vm0, %v2453_v49 }
  0x47   : > { %2302 = vmatmul.mubr.msk.bf16.vlgmr.msra.gmra.mrb[16].mxu0 %vm910_vm0, %v2454_v50  ;;  %v988_v50 = vlaneseq }
  0x48   : > { %2305 = vmatprep.mubr.msk.bf16.mxu0 %vm910_vm0, %v2455_v51 }
  0x4f   : > { %2306 = vmatmul.mubr.msk.bf16.gmra.mrb[20].mxu0 %vm910_vm0, %v2456_v52 }
  0xfa   : > { %v2142_v53 = vpop.f32.mrb[0].mxu0 }
  0xfb   : > { %v2182_v54 = vpop.f32.mrb[0].mxu1  ;;  %v2143_v55 = vpop.f32.mrb[1].mxu0 }
  0xfc   : > { %v2144_v56 = vadd.f32 %v2143_v55, %v2142_v53  ;;  %v2183_v57 = vpop.f32.mrb[1].mxu1  ;;  %v2145_v58 = vpop.f32.mrb[2].mxu0 }
  0xfd   : > { %v2184_v59 = vadd.f32 %v2183_v57, %v2182_v54  ;;  %v2185_v60 = vpop.f32.mrb[2].mxu1  ;;  %v2146_v61 = vpop.f32.mrb[3].mxu0 }
  0xfe   : > { %v2147_v62 = vadd.f32 %v2146_v61, %v2145_v58  ;;  %v2186_v63 = vpop.f32.mrb[3].mxu1 }
  0xff   : > { %v806_v0 = vadd.f32 %v2184_v59, %v2144_v56  ;;  %v2187_v1 = vadd.f32 %v2186_v63, %v2185_v60 }
 0x101   : > { %v809_v2 = vadd.f32 %v2187_v1, %v2147_v62  ;;  %v843_v33 = vmul.f32 %v2048_v28, %v806_v0  ;;  %v2712_v62 = vshrl.u32 %v988_v50, 7 }
 0x102   : > { %v2148_v3 = vpop.f32.mrb[4].mxu0 }
 0x103   : > { %v2188_v4 = vpop.f32.mrb[4].mxu1  ;;  %v2149_v5 = vpop.f32.mrb[5].mxu0  ;;  %v844_v39 = vmul.f32 %v2048_v28, %v809_v2  ;;  %v858_v49 = vadd.f32 %v2049_v38, %v843_v33  ;;  %vm1109_vm1 = vcmp.lt.s32.totalorder %v2712_v62, 1  ;;  %vm1142_vm2 = vcmp.lt.s32.totalorder %v2712_v62, 7 }
 0x104   : > { %v2150_v6 = vadd.f32 %v2149_v5, %v2148_v3  ;;  %v2189_v7 = vpop.f32.mrb[5].mxu1  ;;  %v2151_v8 = vpop.f32.mrb[6].mxu0 }
 0x105   : > { %v2190_v9 = vadd.f32 %v2189_v7, %v2188_v4  ;;  %v2191_v10 = vpop.f32.mrb[6].mxu1  ;;  %v2152_v11 = vpop.f32.mrb[7].mxu0  ;;  %v859_v54 = vadd.f32 %v2049_v38, %v844_v39  ;;  %v866_v61 = vmax.f32 %v858_v49, 0.0 }
 0x106   : > { %v2153_v12 = vadd.f32 %v2152_v11, %v2151_v8  ;;  %v2192_v13 = vpop.f32.mrb[7].mxu1 }
 0x107   : > { %v814_v14 = vadd.f32 %v2190_v9, %v2150_v6  ;;  %v2193_v15 = vadd.f32 %v2192_v13, %v2191_v10  ;;  %v867_v5 = vmax.f32 %v859_v54, 0.0 }
 0x109   : > { %v817_v16 = vadd.f32 %v2193_v15, %v2153_v12  ;;  %v845_v31 = vmul.f32 %v2048_v28, %v814_v14 }
 0x10a   : > { %v2154_v17 = vpop.f32.mrb[8].mxu0 }
 0x10b   : > { %v2194_v18 = vpop.f32.mrb[8].mxu1  ;;  %v2155_v19 = vpop.f32.mrb[9].mxu0  ;;  %v846_v35 = vmul.f32 %v2048_v28, %v817_v16  ;;  %v860_v46 = vadd.f32 %v2049_v38, %v845_v31 }
 0x10c   : > { %v2156_v20 = vadd.f32 %v2155_v19, %v2154_v17  ;;  %v2195_v21 = vpop.f32.mrb[9].mxu1  ;;  %v2157_v22 = vpop.f32.mrb[10].mxu0 }
 0x10d   : > { %v2196_v23 = vadd.f32 %v2195_v21, %v2194_v18  ;;  %v2197_v24 = vpop.f32.mrb[10].mxu1  ;;  %v2158_v25 = vpop.f32.mrb[11].mxu0  ;;  %v861_v53 = vadd.f32 %v2049_v38, %v846_v35  ;;  %v868_v58 = vmax.f32 %v860_v46, 0.0 }
 0x10e   : > { %v2159_v26 = vadd.f32 %v2158_v25, %v2157_v22  ;;  %v2198_v27 = vpop.f32.mrb[11].mxu1 }
 0x10f   : > { %v822_v29 = vadd.f32 %v2196_v23, %v2156_v20  ;;  %v2199_v30 = vadd.f32 %v2198_v27, %v2197_v24  ;;  %v869_v2 = vmax.f32 %v861_v53, 0.0 }
 0x111   : > { %v825_v32 = vadd.f32 %v2199_v30, %v2159_v26  ;;  %v847_v55 = vmul.f32 %v2048_v28, %v822_v29 }
 0x112   : > { %v2160_v34 = vpop.f32.mrb[12].mxu0 }
 0x113   : > { %v2200_v36 = vpop.f32.mrb[12].mxu1  ;;  %v2161_v37 = vpop.f32.mrb[13].mxu0  ;;  %v848_v59 = vmul.f32 %v2048_v28, %v825_v32  ;;  %v862_v9 = vadd.f32 %v2049_v38, %v847_v55 }
 0x114   : > { %v2162_v40 = vadd.f32 %v2161_v37, %v2160_v34  ;;  %v2201_v41 = vpop.f32.mrb[13].mxu1  ;;  %v2163_v42 = vpop.f32.mrb[14].mxu0 }
 0x115   : > { %v2202_v43 = vadd.f32 %v2201_v41, %v2200_v36  ;;  %v2203_v44 = vpop.f32.mrb[14].mxu1  ;;  %v2164_v45 = vpop.f32.mrb[15].mxu0  ;;  %v863_v13 = vadd.f32 %v2049_v38, %v848_v59  ;;  %v870_v27 = vmax.f32 %v862_v9, 0.0  ;;  %v2459_v59 = vld [vmem:[%s3112_s6 + $0xc0] sm:$0xff]   ;;  %v2468_v9 = vld [vmem:[%s3112_s6 + $0x58] sm:$0xff]  }
 0x116   : > { %v2165_v47 = vadd.f32 %v2164_v45, %v2163_v42  ;;  %v2204_v48 = vpop.f32.mrb[15].mxu1  ;;  %2251 = vmatprep.subr.bf16.mxu0 %v2459_v59 }
 0x117   : > { %v830_v51 = vadd.f32 %v2202_v43, %v2162_v40  ;;  %v2205_v52 = vadd.f32 %v2204_v48, %v2203_v44  ;;  %v871_v37 = vmax.f32 %v863_v13, 0.0  ;;  %v2472_v13 = vld [vmem:[%s3112_s6 + $0x60] sm:$0xff]  }
 0x119   : > { %v849_v56 = vmul.f32 %v2048_v28, %v830_v51  ;;  %v833_v57 = vadd.f32 %v2205_v52, %v2165_v47 }
 0x11a   : > { %v2303_v60 = vpop.f32.mrb[16].mxu0 }
 0x11b   : > { %v850_v63 = vmul.f32 %v2048_v28, %v833_v57  ;;  %v966_v0 = vadd.f32 %v2303_v60, %v868_v58  ;;  %v957_v1 = vpop.f32.mrb[17].mxu0  ;;  %v864_v8 = vadd.f32 %v2049_v38, %v849_v56  ;;  %v2457_v57 = vld [vmem:[%s3112_s6 + $0x40] sm:$0xff]   ;;  %v2460_v60 = vld [vmem:[%s3112_s6 + $0x48] sm:$0xff]  }
 0x11c   : > { %v2714_v3 = vadd.f32 %v957_v1, %v866_v61  ;;  %v2304_v4 = vpop.f32.mrb[18].mxu0  ;;  %v2458_v58 = vld [vmem:[%s3112_s6] sm:$0xff]   ;;  %2211 = vmatprep.subr.bf16.mxu1 %v2457_v57 }
 0x11d   : > { %v969_v6 = vadd.f32 %v2304_v4, %v869_v2  ;;  %v960_v7 = vpop.f32.mrb[19].mxu0  ;;  %v1103_v10 = vrot.slane %v966_v0, 7  ;;  %v1136_v11 = vrot.slane %v966_v0, 1  ;;  %v865_v16 = vadd.f32 %v2049_v38, %v850_v63  ;;  %v2461_v61 = vld [vmem:[%s3112_s6 + $0x80] sm:$0xff]   ;;  %2212 = vmatpush3.bf16.msra.mxu1 %v2458_v58  ;;  %v2462_v4 = vld [vmem:[%s3112_s6 + $0x8] sm:$0xff]  }
 0x11e   : > { %v961_v12 = vadd.f32 %v960_v7, %v867_v5  ;;  %v1101_v18 = vrot.slane %v2714_v3, 7  ;;  %v1134_v22 = vrot.slane %v2714_v3, 1  ;;  %v872_v23 = vmax.f32 %v864_v8, 0.0  ;;  %v2464_v5 = vld [vmem:[%s3112_s6 + $0x50] sm:$0xff]   ;;  %2213 = vmatprep.subr.bf16.mxu1 %v2460_v60  ;;  %2252 = vmatpush3.bf16.msra.mxu0 %v2461_v61 }
 0x11f   : > { %v1104_v14 = vrot.slane %v969_v6, 7  ;;  %v1137_v15 = vrot.slane %v969_v6, 1  ;;  %v2341_v17 = vpack.i.bf16 %v969_v6, %v966_v0  ;;  %v873_v33 = vmax.f32 %v865_v16, 0.0  ;;  %v2465_v6 = vld [vmem:[%s3112_s6 + $0x88] sm:$0xff]   ;;  %v2467_v7 = vld [vmem:[%s3112_s6 + $0xd0] sm:$0xff]   ;;  %v2474_v16 = vld [vmem:[%s3112_s6 + $0x20] sm:$0xff]  }
 0x120   : > { %v1102_v19 = vrot.slane %v961_v12, 7  ;;  %v1135_v20 = vrot.slane %v961_v12, 1  ;;  %v2336_v21 = vpack.i.bf16 %v2714_v3, %v961_v12  ;;  %v2463_v3 = vld [vmem:[%s3112_s6 + $0xc8] sm:$0xff]   ;;  %v2466_v8 = vld [vmem:[%s3112_s6 + $0x10] sm:$0xff]   ;;  %v2470_v12 = vld [vmem:[%s3112_s6 + $0x18] sm:$0xff]  }
 0x121   : > { %v2723_v24 = vsel %vm1109_vm1, %v1103_v10, %v1104_v14  ;;  %v2727_v25 = vsel %vm1142_vm2, %v1136_v11, %v1137_v15  ;;  %2253 = vmatprep.subr.bf16.mxu0 %v2463_v3  ;;  %2214 = vmatpush3.bf16.msra.mxu1 %v2462_v4  ;;  %v995_v4 = vadd.s32 48, %v2712_v62 }
 0x122   : > { %v2307_v26 = vpop.f32.mrb[20].mxu0  ;;  %2337 = vrot.lane.b32.xlu0 %v2336_v21, %s2501_s19  ;;  %v2732_v28 = vsel %vm1109_vm1, %v1101_v18, %v1102_v19  ;;  %v2736_v29 = vsel %vm1109_vm1, %v1102_v19, %v1103_v10  ;;  %v2740_v30 = vsel %vm1142_vm2, %v1135_v20, %v1136_v11  ;;  %v2744_v34 = vsel %vm1142_vm2, %v1134_v22, %v1135_v20  ;;  %v2469_v10 = vld [vmem:[%s3112_s6 + $0x90] sm:$0xff]   ;;  %v2471_v11 = vld [vmem:[%s3112_s6 + $0xd8] sm:$0xff]   ;;  %v2479_v19 = vld [vmem:[%s3112_s6 + $0xe8] sm:$0xff]  }
 0x123   : > { %v982_v31 = vadd.f32 %v2307_v26, %v872_v23  ;;  %v973_v32 = vpop.f32.mrb[21].mxu0  ;;  %2215 = vmatprep.subr.bf16.mxu1 %v2464_v5  ;;  %2254 = vmatpush3.bf16.msra.mxu0 %v2465_v6  ;;  %v2478_v20 = vld [vmem:[%s3112_s6 + $0x28] sm:$0xff]   ;;  %v2480_v21 = vld [vmem:[%s3112_s6 + $0x70] sm:$0xff]   ;;  %v990_v26 = vadd.s32 8, %v2712_v62 }
 0x124   : > { %v974_v35 = vadd.f32 %v973_v32, %v870_v27  ;;  %v2308_v36 = vpop.f32.mrb[22].mxu0  ;;  %2255 = vmatprep.subr.bf16.mxu0 %v2467_v7  ;;  %v2482_v23 = vld [vmem:[%s3112_s6 + $0x30] sm:$0xff]   ;;  %v992_v27 = vadd.s32 24, %v2712_v62 }
 0x125   : > { %v985_v38 = vadd.f32 %v2308_v36, %v873_v33  ;;  %v976_v39 = vpop.f32.mrb[23].mxu0  ;;  %v1107_v43 = vrot.slane %v982_v31, 7  ;;  %v1140_v54 = vrot.slane %v982_v31, 1  ;;  %2216 = vmatpush3.bf16.msra.mxu1 %v2466_v8  ;;  %v1008_v32 = vand.u32 7, %v990_v26  ;;  %v2483_v33 = vld [vmem:[%s3112_s6 + $0xf0] sm:$0xff]   ;;  %v2484_v36 = vld [vmem:[%s3112_s6 + $0x78] sm:$0xff]  }
 0x126   : > { %v1105_v40 = vrot.slane %v974_v35, 7  ;;  %v1138_v41 = vrot.slane %v974_v35, 1  ;;  %v977_v42 = vadd.f32 %v976_v39, %v871_v37  ;;  %2342 = vrot.lane.b32.xlu0 %v2341_v17, %s2501_s19  ;;  %2217 = vmatprep.subr.bf16.mxu1 %v2468_v9  ;;  %v2476_v17 = vld [vmem:[%s3112_s6 + $0x68] sm:$0xff]   ;;  %v2485_v37 = vld [vmem:[%s3112_s6 + $0xb0] sm:$0xff]   ;;  %v1001_v39 = vand.u32 7, %v2712_v62 }
 0x127   : > { %v1108_v44 = vrot.slane %v985_v38, 7  ;;  %v1141_v45 = vrot.slane %v985_v38, 1  ;;  %v2351_v46 = vpack.i.bf16 %v985_v38, %v982_v31  ;;  %2256 = vmatpush3.bf16.msra.mxu0 %v2469_v10  ;;  %v991_v31 = vadd.s32 16, %v2712_v62  ;;  %v2486_v38 = vld [vmem:[%s3112_s6 + $0x38] sm:$0xff]  }
 0x128   : > { %v1106_v47 = vrot.slane %v977_v42, 7  ;;  %v1139_v48 = vrot.slane %v977_v42, 1  ;;  %v2346_v49 = vpack.i.bf16 %v977_v42, %v974_v35  ;;  %v2749_v50 = vsel %vm1109_vm1, %v1104_v14, %v1105_v40  ;;  %v2473_v14 = vld [vmem:[%s3112_s6 + $0x98] sm:$0xff]   ;;  %2257 = vmatprep.subr.bf16.mxu0 %v2471_v11 }
 0x129   : > { %v2753_v51 = vsel %vm1109_vm1, %v1108_v44, %v1101_v18  ;;  %v2757_v52 = vsel %vm1142_vm2, %v1137_v15, %v1138_v41  ;;  %v2761_v53 = vsel %vm1109_vm1, %v1107_v43, %v1108_v44  ;;  %v2797_v1 = vsel %vm1142_vm2, %v1140_v54, %v1141_v45  ;;  %v2475_v15 = vld [vmem:[%s3112_s6 + $0xe0] sm:$0xff]   ;;  %2218 = vmatpush3.bf16.msra.mxu1 %v2470_v12 }
 0x12a   : > { %2347 = vrot.lane.b32.xlu1 %v2346_v49, %s2501_s19  ;;  %v2766_v55 = vsel %vm1109_vm1, %v1105_v40, %v1106_v47  ;;  %v2770_v56 = vsel %vm1109_vm1, %v1106_v47, %v1107_v43  ;;  %v2789_v63 = vsel %vm1142_vm2, %v1139_v48, %v1140_v54  ;;  %v2793_v0 = vsel %vm1142_vm2, %v1138_v41, %v1139_v48  ;;  %v2477_v18 = vld [vmem:[%s3112_s6 + $0xa0] sm:$0xff]   ;;  %v2488_v49 = vld [vmem:[%s3112_s6 + $0xb8] sm:$0xff]  }
 0x12b   : > { %v2801_v2 = vsel %vm1142_vm2, %v1141_v45, %v1134_v22  ;;  %2219 = vmatprep.subr.bf16.mxu1 %v2472_v13  ;;  %2258 = vmatpush3.bf16.msra.mxu0 %v2473_v14  ;;  %v2481_v22 = vld [vmem:[%s3112_s6 + $0xa8] sm:$0xff]   ;;  %v1022_v35 = vand.u32 7, %v992_v27  ;;  %v1015_v40 = vand.u32 7, %v991_v31  ;;  %vm2883_vm3 = vcmp.eq.s32.totalorder %v1001_v39, 0  ;;  %v2487_v45 = vld [vmem:[%s3112_s6 + $0xf8] sm:$0xff]   ;;  %v2909_v54 = vld [vmem:[%s3112_s6 + $0x100] sm:$0xff]  }
 0x12c   : > { %2259 = vmatprep.subr.bf16.mxu0 %v2475_v15  ;;  %vm2887_vm4 = vcmp.eq.s32.totalorder %v1008_v32, 0  ;;  %v993_v43 = vadd.s32 32, %v2712_v62  ;;  %v994_v44 = vadd.s32 40, %v2712_v62  ;;  %v2901_v48 = vadd.s32 56, %v2712_v62 }
 0x12d   : > { %2220 = vmatpush3.bf16.msra.mxu1 %v2474_v16  ;;  %vm2896_vm6 = vcmp.eq.s32.totalorder %v1022_v35, 0  ;;  %vm2911_vm7 = vcmp.eq.s32.totalorder %v1015_v40, 0  ;;  %vm2915_vm8 = vcmp.eq.s32.totalorder %v1001_v39, 7  ;;  %v1118_v61 = vsel %vm2883_vm3, 0.0, %v2753_v51 }
 0x12e   : > { %2352 = vrot.lane.b32.xlu1 %v2351_v46, %s2501_s19  ;;  %2221 = vmatprep.subr.bf16.mxu1 %v2476_v17  ;;  %v1119_v3 = vsel %vm2887_vm4, 0.0, %v2732_v28  ;;  %vm1127_vm9 = vcmp.eq.s32.totalorder %v1008_v32, 7  ;;  %v1029_v7 = vand.u32 7, %v993_v43  ;;  %v1036_v8 = vand.u32 7, %v994_v44  ;;  %vm2095_vm4 = vmneg %vm1191_vm5 }
 0x12f   : > { %2260 = vmatpush3.bf16.msra.mxu0 %v2477_v18  ;;  %v1050_v10 = vand.u32 7, %v2901_v48  ;;  %v1151_v62 = vsel %vm2915_vm8, 0.0, %v2744_v34  ;;  %v2937_v12 = vsel %vm1127_vm9, 0.0, %v2740_v30  ;;  %v1120_v13 = vsel %vm2911_vm7, 0.0, %v2736_v29 }
 0x130   : > { %2261 = vmatprep.subr.bf16.mxu0 %v2479_v19  ;;  %v1121_v14 = vsel %vm2896_vm6, 0.0, %v2723_v24  ;;  %vm1129_vm10 = vcmp.eq.s32.totalorder %v1022_v35, 7  ;;  %v1043_v15 = vand.u32 7, %v995_v4  ;;  %vm2948_vm11 = vcmp.eq.s32.totalorder %v1029_v7, 0 }
 0x131   : > { %2222 = vmatpush3.bf16.msra.mxu1 %v2478_v20  ;;  %vm2952_vm12 = vcmp.eq.s32.totalorder %v1036_v8, 0  ;;  %v2366_v19 = vpack.i.bf16 %v2937_v12, %v1151_v62  ;;  %vm1128_vm13 = vcmp.eq.s32.totalorder %v1015_v40, 7  ;;  %vm2962_vm14 = vcmp.eq.s32.totalorder %v1050_v10, 0 }
 0x132   : > { %2223 = vmatprep.subr.bf16.mxu1 %v2480_v21  ;;  %v1122_v26 = vsel %vm2948_vm11, 0.0, %v2749_v50  ;;  %v1123_v27 = vsel %vm2952_vm12, 0.0, %v2766_v55  ;;  %vm1130_vm15 = vcmp.eq.s32.totalorder %v1029_v7, 7  ;;  %vm1131_vm0 = vcmp.eq.s32.totalorder %v1036_v8, 7 }
 0x133   : > { %2262 = vmatpush3.bf16.msra.mxu0 %v2481_v22  ;;  %v2960_v22 = vsel %vm1129_vm10, 0.0, %v2757_v52  ;;  %v2978_v32 = vsel %vm1128_vm13, 0.0, %v2727_v25  ;;  %vm2980_vm1 = vcmp.eq.s32.totalorder %v1043_v15, 0  ;;  %v2989_v39 = vsel %vm1130_vm15, 0.0, %v2793_v0 }
 0x134   : > { %2263 = vmatprep.subr.bf16.mxu0 %v2483_v33  ;;  %v2376_v55 = vpack.i.bf16 %v2960_v22, %v2978_v32  ;;  %v2992_v40 = vsel %vm1131_vm0, 0.0, %v2789_v63  ;;  %v1124_v25 = vsel %vm2980_vm1, 0.0, %v2770_v56  ;;  %v1125_v41 = vsel %vm2962_vm14, 0.0, %v2761_v53 }
 0x135   : > { %2224 = vmatpush3.bf16.msra.mxu1 %v2482_v23  ;;  %vm1132_vm2 = vcmp.eq.s32.totalorder %v1043_v15, 7  ;;  %vm1133_vm3 = vcmp.eq.s32.totalorder %v1050_v10, 7  ;;  %v2386_v43 = vpack.i.bf16 %v2992_v40, %v2989_v39  ;;  %vm2502_vm6 = vmmov 1  }
 0x136   : > { %2225 = vmatprep.subr.bf16.mxu1 %v2484_v36  ;;  %v3012_v56 = vsel %vm1132_vm2, 0.0, %v2797_v1  ;;  %vm2096_vm7 = vmpackc.low %vm2502_vm6, %vm2095_vm4 }
 0x137   : > { %2264 = vmatpush3.bf16.msra.mxu0 %v2485_v37 }
 0x138   : > { %2265 = vmatprep.subr.bf16.mxu0 %v2487_v45  ;;  %v3015_v45 = vsel %vm1133_vm3, 0.0, %v2801_v2  ;;  %v2503_v2 = vmov 0.0  }
 0x139   : > { %2226 = vmatpush3.bf16.msra.mxu1 %v2486_v38  ;;  %v2391_v53 = vpack.i.bf16 %v3015_v45, %v3012_v56 }
 0x13a   : > { %2309 = vmatprep.subr.bf16.mxu1 %v2909_v54 }
 0x13b   : > { %2266 = vmatpush3.bf16.msra.mxu0 %v2488_v49 }
 0x194   : > { %v2338_v46 = vpop.permute.xlu0 %2337 }
 0x195   : > { %v2340_v57 = vunpack.i.h.bf16 %v2338_v46  ;;  %v2339_v58 = vunpack.i.l.bf16 %v2338_v46 }
 0x197   : > { %v2928_v5 = vsel %vm1191_vm5, %v1118_v61, %v2340_v57  ;;  %v1193_v6 = vsel %vm1191_vm5, %v1119_v3, %v2339_v58 }
 0x198   : > { %v2343_v9 = vpop.permute.xlu0 %2342  ;;  %v2356_v51 = vpack.i.bf16 %v2928_v5, %v1193_v6  ;;  %v1328_v49 = vpack.c.bf16 %v2928_v5, %v2503_v2 }
 0x199   : > { %v2345_v11 = vunpack.i.h.bf16 %v2343_v9  ;;  %v2344_v28 = vunpack.i.l.bf16 %v2343_v9 }
 0x19a   : > { %2357 = vrot.lane.b32.xlu0 %v2356_v51, %s2501_s19 }
 0x19b   : > { %v1194_v16 = vsel %vm1191_vm5, %v1120_v13, %v2344_v28  ;;  %v1195_v17 = vsel %vm1191_vm5, %v1121_v14, %v2345_v11 }
 0x19c   : > { %v2348_v18 = vpop.permute.xlu1 %2347  ;;  %v2361_v29 = vpack.i.bf16 %v1195_v17, %v1194_v16  ;;  %v2957_v20 = vpack.c.bf16 %v1194_v16, %v1193_v6  ;;  %v2490_v6 = vld [vmem:[%s3112_s6 + $0x108] sm:$0xff]   ;;  %v2491_v16 = vld [vmem:[%s3112_s6 + $0x110] sm:$0xff]  }
 0x19d   : > { %v2350_v24 = vunpack.i.h.bf16 %v2348_v18  ;;  %v2349_v21 = vunpack.i.l.bf16 %v2348_v18 }
 0x19e   : > { %2362 = vrot.lane.b32.xlu1 %v2361_v29, %s2501_s19  ;;  %2367 = vrot.lane.b32.xlu0 %v2366_v19, %s2501_s19  ;;  %v2492_v29 = vld [vmem:[%s3112_s6 + $0x118] sm:$0xff]  }
 0x19f   : > { %1745 = vmatprep.mubr.bf16.mxu0 %v2957_v20  ;;  %v1196_v52 = vsel %vm1191_vm5, %v1122_v26, %v2349_v21  ;;  %v1197_v31 = vsel %vm1191_vm5, %v1123_v27, %v2350_v24 }
 0x1a0   : > { %v2353_v50 = vpop.permute.xlu1 %2352  ;;  %v2371_v35 = vpack.i.bf16 %v1197_v31, %v1196_v52  ;;  %v2986_v36 = vpack.c.bf16 %v1196_v52, %v1195_v17 }
 0x1a1   : > { %v2355_v37 = vunpack.i.h.bf16 %v2353_v50  ;;  %v2354_v38 = vunpack.i.l.bf16 %v2353_v50 }
 0x1a2   : > { %2372 = vrot.lane.b32.xlu1 %v2371_v35, %s2501_s19  ;;  %2377 = vrot.lane.b32.xlu0 %v2376_v55, %s2501_s19 }
 0x1a3   : > { %v1198_v0 = vsel %vm1191_vm5, %v1124_v25, %v2354_v38  ;;  %v3004_v42 = vsel %vm1191_vm5, %v1125_v41, %v2355_v37 }
 0x1a4   : > { %v2381_v63 = vpack.i.bf16 %v3004_v42, %v1198_v0  ;;  %v3009_v44 = vpack.c.bf16 %v1198_v0, %v1197_v31  ;;  %v1346_v41 = vpack.c.bf16 %v2503_v2, %v3004_v42  ;;  %v1342_v42 = vpack.c.bf16 %v3012_v56, %v2992_v40 }
 0x1a6   : > { %2382 = vrot.lane.b32.xlu1 %v2381_v63, %s2501_s19  ;;  %2387 = vrot.lane.b32.xlu0 %v2386_v43, %s2501_s19  ;;  %v1332_v43 = vpack.c.bf16 %v2978_v32, %v2937_v12 }
 0x1aa   : > { %2392 = vrot.lane.b32.xlu1 %v2391_v53, %s2501_s19  ;;  %v1337_v53 = vpack.c.bf16 %v2989_v39, %v2960_v22 }
 0x20c   : > { %v2358_v46 = vpop.permute.xlu0 %2357 }
 0x20d   : > { %v2360_v47 = vunpack.i.h.bf16 %v2358_v46  ;;  %v2359_v48 = vunpack.i.l.bf16 %v2358_v46  ;;  %v1347_v46 = vpack.c.bf16 %v2503_v2, %v3015_v45 }
 0x20f   : > { %v1321_v1 = vsel %vm1191_vm5, %v1151_v62, %v2359_v48 }
 0x210   : > { %v2097_v57 = vpack.c.bf16 %v1321_v1, %v2360_v47  ;;  %v2363_v58 = vpop.permute.xlu1 %2362  ;;  %v2368_v59 = vpop.permute.xlu0 %2367 }
 0x211   : > { %v2365_v60 = vunpack.i.h.bf16 %v2363_v58  ;;  %v2364_v61 = vunpack.i.l.bf16 %v2363_v58  ;;  %v2370_v3 = vunpack.i.h.bf16 %v2368_v59  ;;  %v2369_v4 = vunpack.i.l.bf16 %v2368_v59 }
 0x212   : > { %2098 = vmatprep.mubr.msk.bf16.mxu1 %vm2096_vm7, %v2097_v57 }
 0x213   : > { %v1296_v7 = vsel %vm1191_vm5, %v2360_v47, %v2369_v4  ;;  %v1297_v8 = vsel %vm1191_vm5, %v2359_v48, %v2370_v3  ;;  %1681 = vmatmul.mubr.bf16.vlgmr.msra.gmra.mrb[16].mxu1 %v1328_v49  ;;  %v1322_v5 = vsel %vm1191_vm5, %v2937_v12, %v2364_v61  ;;  %v1323_v9 = vsel %vm1191_vm5, %v2978_v32, %v2365_v60 }
 0x214   : > { %v1330_v51 = vpack.c.bf16 %v1297_v8, %v1296_v7  ;;  %v2373_v10 = vpop.permute.xlu1 %2372  ;;  %v2378_v11 = vpop.permute.xlu0 %2377  ;;  %2310 = vmatpush3.bf16.msra.mxu1 %v2909_v54  ;;  %v1334_v28 = vpack.c.bf16 %v1323_v9, %v1322_v5 }
 0x215   : > { %v2375_v62 = vunpack.i.h.bf16 %v2373_v10  ;;  %v2374_v13 = vunpack.i.l.bf16 %v2373_v10  ;;  %v2380_v14 = vunpack.i.h.bf16 %v2378_v11  ;;  %v2379_v15 = vunpack.i.l.bf16 %v2378_v11  ;;  %2311 = vmatprep.subr.bf16.mxu1 %v2490_v6 }
 0x216   : > { %1688 = vmatprep.mubr.bf16.mxu1 %v1334_v28  ;;  %1746 = vmatmul.mubr.bf16.vlgmr.msra.gmra.mrb[24].mxu0 %v1330_v51 }
 0x217   : > { %1753 = vmatprep.mubr.bf16.mxu0 %v2986_v36  ;;  %v1324_v17 = vsel %vm1191_vm5, %v2960_v22, %v2374_v13  ;;  %v1325_v54 = vsel %vm1191_vm5, %v2989_v39, %v2375_v62  ;;  %v1298_v30 = vsel %vm1191_vm5, %v2364_v61, %v2379_v15  ;;  %v1299_v18 = vsel %vm1191_vm5, %v2365_v60, %v2380_v14 }
 0x218   : > { %v2383_v34 = vpop.permute.xlu1 %2382  ;;  %2312 = vmatpush3.bf16.msra.mxu1 %v2490_v6  ;;  %v2388_v19 = vpop.permute.xlu0 %2387  ;;  %v1339_v24 = vpack.c.bf16 %v1325_v54, %v1324_v17  ;;  %v1335_v26 = vpack.c.bf16 %v1299_v18, %v1298_v30 }
 0x219   : > { %2313 = vmatprep.subr.bf16.mxu1 %v2491_v16  ;;  %v2385_v21 = vunpack.i.h.bf16 %v2383_v34  ;;  %v2384_v23 = vunpack.i.l.bf16 %v2383_v34  ;;  %v2390_v27 = vunpack.i.h.bf16 %v2388_v19  ;;  %v2389_v52 = vunpack.i.l.bf16 %v2388_v19 }
 0x21b   : > { %1689 = vmatmul.mubr.bf16.gmra.mrb[20].mxu1 %v2957_v20  ;;  %v1326_v31 = vsel %vm1191_vm5, %v2992_v40, %v2384_v23  ;;  %v1327_v33 = vsel %vm1191_vm5, %v3012_v56, %v2385_v21  ;;  %v1300_v50 = vsel %vm1191_vm5, %v2374_v13, %v2389_v52  ;;  %v1301_v20 = vsel %vm1191_vm5, %v2375_v62, %v2390_v27 }
 0x21c   : > { %1696 = vmatprep.mubr.bf16.mxu1 %v1339_v24  ;;  %2314 = vmatpush3.bf16.msra.mxu1 %v2491_v16  ;;  %v2393_v35 = vpop.permute.xlu1 %2392  ;;  %v1344_v55 = vpack.c.bf16 %v1327_v33, %v1326_v31  ;;  %v1340_v37 = vpack.c.bf16 %v1301_v20, %v1300_v50 }
 0x21d   : > { %2315 = vmatprep.subr.bf16.mxu1 %v2492_v29  ;;  %v2395_v38 = vunpack.i.h.bf16 %v2393_v35  ;;  %v2394_v25 = vunpack.i.l.bf16 %v2393_v35 }
 0x21e   : > { %1754 = vmatmul.mubr.bf16.gmra.mrb[28].mxu0 %v1335_v26 }
 0x21f   : > { %1761 = vmatprep.mubr.bf16.mxu0 %v3009_v44  ;;  %v1302_v0 = vsel %vm1191_vm5, %v2384_v23, %v2394_v25  ;;  %v1303_v63 = vsel %vm1191_vm5, %v2385_v21, %v2395_v38 }
 0x220   : > { %2316 = vmatpush3.bf16.msra.mxu1 %v2492_v29 }
 0x223   : > { %1697 = vmatmul.mubr.bf16.gmra.mrb[24].mxu1 %v2986_v36  ;;  %v1345_v36 = vpack.c.bf16 %v1303_v63, %v1302_v0 }
 0x224   : > { %1704 = vmatprep.mubr.bf16.mxu1 %v1344_v55 }
 0x226   : > { %1762 = vmatmul.mubr.bf16.gmra.mrb[32].mxu0 %v1340_v37 }
 0x227   : > { %1769 = vmatprep.mubr.bf16.mxu0 %v1346_v41  ;;  %v2103_v41 = vld [vmem:[%s3113_s7] ss:$0 sm:$0xff] }
 0x22b   : > { %1705 = vmatmul.mubr.bf16.gmra.mrb[28].mxu1 %v3009_v44 }
 0x22c   : > { %2317 = vmatprep.mubr.msk.bf16.mxu1 %vm1191_vm5, %v1332_v43 }
 0x22e   : > { %1770 = vmatmul.mubr.bf16.gmra.mrb[36].mxu0 %v1345_v36  ;;  %v2104_v36 = vld [vmem:[%s3114_s8] ss:$0 sm:$0xff] }
 0x233   : > { %2318 = vmatmul.mubr.msk.bf16.vlgmr.msra.gmra.mrb[32].mxu1 %vm1191_vm5, %v1337_v53 }
 0x234   : > { %2321 = vmatprep.mubr.msk.bf16.mxu1 %vm1191_vm5, %v1342_v42 }
 0x23b   : > { %2322 = vmatmul.mubr.msk.bf16.gmra.mrb[36].mxu1 %vm1191_vm5, %v1347_v46  ;;  %vm1913_vm5 = vcmask 519168  }
 0x2e6   : > { %v2227_v12 = vpop.f32.mrb[16].mxu1 }
 0x2e7   : > { %v2228_v32 = vpop.f32.mrb[17].mxu1 }
 0x2e8   : > { %v2229_v44 = vadd.f32 %v2228_v32, %v2227_v12  ;;  %v2230_v47 = vpop.f32.mrb[18].mxu1 }
 0x2e9   : > { %v2231_v48 = vpop.f32.mrb[19].mxu1  ;;  %v2267_v1 = vpop.f32.mrb[24].mxu0 }
 0x2ea   : > { %v2232_v49 = vadd.f32 %v2231_v48, %v2230_v47  ;;  %v2268_v22 = vpop.f32.mrb[25].mxu0 }
 0x2eb   : > { %v2269_v39 = vadd.f32 %v2268_v22, %v2267_v1  ;;  %v2270_v57 = vpop.f32.mrb[26].mxu0 }
 0x2ec   : > { %v2271_v40 = vpop.f32.mrb[27].mxu0 }
 0x2ed   : > { %v2272_v56 = vadd.f32 %v2271_v40, %v2270_v57  ;;  %v1748_v58 = vadd.f32 %v2269_v39, %v2229_v44 }
 0x2ee   : > { %v2233_v59 = vpop.f32.mrb[20].mxu1 }
 0x2ef   : > { %v2234_v60 = vpop.f32.mrb[21].mxu1  ;;  %v1751_v61 = vadd.f32 %v2272_v56, %v2232_v49 }
 0x2f0   : > { %v2235_v3 = vadd.f32 %v2234_v60, %v2233_v59  ;;  %v2236_v45 = vpop.f32.mrb[22].mxu1 }
 0x2f1   : > { %v2237_v2 = vpop.f32.mrb[23].mxu1  ;;  %v2273_v4 = vpop.f32.mrb[28].mxu0 }
 0x2f2   : > { %v2238_v6 = vadd.f32 %v2237_v2, %v2236_v45  ;;  %v2274_v7 = vpop.f32.mrb[29].mxu0 }
 0x2f3   : > { %v2275_v8 = vadd.f32 %v2274_v7, %v2273_v4  ;;  %v2276_v5 = vpop.f32.mrb[30].mxu0 }
 0x2f4   : > { %v2277_v9 = vpop.f32.mrb[31].mxu0 }
 0x2f5   : > { %v2278_v51 = vadd.f32 %v2277_v9, %v2276_v5  ;;  %v1756_v10 = vadd.f32 %v2275_v8, %v2235_v3 }
 0x2f6   : > { %v2239_v11 = vpop.f32.mrb[24].mxu1 }
 0x2f7   : > { %v2240_v28 = vpop.f32.mrb[25].mxu1  ;;  %v1759_v62 = vadd.f32 %v2278_v51, %v2238_v6 }
 0x2f8   : > { %v2241_v13 = vadd.f32 %v2240_v28, %v2239_v11  ;;  %v2242_v14 = vpop.f32.mrb[26].mxu1 }
 0x2f9   : > { %v2243_v15 = vpop.f32.mrb[27].mxu1  ;;  %v2279_v16 = vpop.f32.mrb[32].mxu0 }
 0x2fa   : > { %v2244_v17 = vadd.f32 %v2243_v15, %v2242_v14  ;;  %v2280_v54 = vpop.f32.mrb[33].mxu0 }
 0x2fb   : > { %v2281_v34 = vadd.f32 %v2280_v54, %v2279_v16  ;;  %v2282_v30 = vpop.f32.mrb[34].mxu0 }
 0x2fc   : > { %v2283_v18 = vpop.f32.mrb[35].mxu0 }
 0x2fd   : > { %v2284_v29 = vadd.f32 %v2283_v18, %v2282_v30  ;;  %v1764_v19 = vadd.f32 %v2281_v34, %v2241_v13 }
 0x2fe   : > { %v2245_v24 = vpop.f32.mrb[28].mxu1 }
 0x2ff   : > { %v2246_v21 = vpop.f32.mrb[29].mxu1  ;;  %v1767_v23 = vadd.f32 %v2284_v29, %v2244_v17 }
 0x300   : > { %v2247_v26 = vadd.f32 %v2246_v21, %v2245_v24  ;;  %v2248_v27 = vpop.f32.mrb[30].mxu1 }
 0x301   : > { %v2249_v52 = vpop.f32.mrb[31].mxu1  ;;  %v2285_v31 = vpop.f32.mrb[36].mxu0 }
 0x302   : > { %v2250_v33 = vadd.f32 %v2249_v52, %v2248_v27  ;;  %v2286_v50 = vpop.f32.mrb[37].mxu0 }
 0x303   : > { %v2287_v20 = vadd.f32 %v2286_v50, %v2285_v31  ;;  %v2288_v35 = vpop.f32.mrb[38].mxu0 }
 0x304   : > { %v2289_v55 = vpop.f32.mrb[39].mxu0 }
 0x305   : > { %v2290_v37 = vadd.f32 %v2289_v55, %v2288_v35  ;;  %v1772_v38 = vadd.f32 %v2287_v20, %v2247_v26 }
 0x306   : > { %v2319_v25 = vpop.f32.mrb[32].mxu1 }
 0x307   : > { %v1821_v0 = vadd.f32 %v2319_v25, %v1756_v10  ;;  %v1812_v63 = vpop.f32.mrb[33].mxu1  ;;  %v1775_v43 = vadd.f32 %v2290_v37, %v2250_v33 }
 0x308   : > { %v1813_v53 = vadd.f32 %v1812_v63, %v1748_v58  ;;  %v2320_v42 = vpop.f32.mrb[34].mxu1 }
 0x309   : > { %v1852_v46 = vmul.f32 %v2103_v41, %v1821_v0  ;;  %v1824_v12 = vadd.f32 %v2320_v42, %v1759_v62  ;;  %v1815_v32 = vpop.f32.mrb[35].mxu1 }
 0x30a   : > { %v1850_v44 = vmul.f32 %v2103_v41, %v1813_v53  ;;  %v1816_v47 = vadd.f32 %v1815_v32, %v1751_v61 }
 0x30b   : > { %v1867_v48 = vadd.f32 %v2104_v36, %v1852_v46  ;;  %v1853_v1 = vmul.f32 %v2103_v41, %v1824_v12 }
 0x30c   : > { %v1865_v49 = vadd.f32 %v2104_v36, %v1850_v44  ;;  %v1851_v22 = vmul.f32 %v2103_v41, %v1816_v47 }
 0x30d   : > { %v1875_v39 = vmax.f32 %v1867_v48, 0.0  ;;  %v1868_v57 = vadd.f32 %v2104_v36, %v1853_v1 }
 0x30e   : > { %v1873_v40 = vmax.f32 %v1865_v49, 0.0  ;;  %v1866_v56 = vadd.f32 %v2104_v36, %v1851_v22  ;;  %v2323_v58 = vpop.f32.mrb[36].mxu1 }
 0x30f   : > { %v2120_v59 = vpack.c.bf16 %v1875_v39, %v1875_v39  ;;  %v1876_v60 = vmax.f32 %v1868_v57, 0.0  ;;  %v1837_v61 = vadd.f32 %v2323_v58, %v1772_v38  ;;  %v1828_v3 = vpop.f32.mrb[37].mxu1 }
 0x310   : > { %v2118_v45 = vpack.c.bf16 %v1873_v40, %v1873_v40  ;;  %v1874_v2 = vmax.f32 %v1866_v56, 0.0  ;;  %v1829_v4 = vadd.f32 %v1828_v3, %v1764_v19  ;;  %v2324_v6 = vpop.f32.mrb[38].mxu1 }
 0x311   : > { %1916 = vst.msk [vmem:[%s3085_s26 + $0x8] sm:$0xf] %vm1913_vm5, %v2120_v59  ;;  %v2121_v7 = vpack.c.bf16 %v1876_v60, %v1876_v60  ;;  %v1856_v8 = vmul.f32 %v2103_v41, %v1837_v61  ;;  %v1840_v5 = vadd.f32 %v2324_v6, %v1775_v43  ;;  %v1831_v9 = vpop.f32.mrb[39].mxu1 }
 0x312   : > { %1914 = vst.msk [vmem:[%s3085_s26] sm:$0xf] %vm1913_vm5, %v2118_v45  ;;  %v2119_v51 = vpack.c.bf16 %v1874_v2, %v1874_v2  ;;  %v1854_v10 = vmul.f32 %v2103_v41, %v1829_v4  ;;  %v1832_v11 = vadd.f32 %v1831_v9, %v1767_v23 }
 0x313   : > { %1917 = vst.msk [vmem:[%s3085_s26 + $0xc] sm:$0xf] %vm1913_vm5, %v2121_v7  ;;  %v1871_v28 = vadd.f32 %v2104_v36, %v1856_v8  ;;  %v1857_v62 = vmul.f32 %v2103_v41, %v1840_v5 }
 0x314   : > { %1915 = vst.msk [vmem:[%s3085_s26 + $0x4] sm:$0xf] %vm1913_vm5, %v2119_v51  ;;  %v1869_v13 = vadd.f32 %v2104_v36, %v1854_v10  ;;  %v1855_v14 = vmul.f32 %v2103_v41, %v1832_v11 }
 0x315   : > { %v1879_v15 = vmax.f32 %v1871_v28, 0.0  ;;  %v1872_v16 = vadd.f32 %v2104_v36, %v1857_v62 }
 0x316   : > { %v1877_v17 = vmax.f32 %v1869_v13, 0.0  ;;  %v1870_v54 = vadd.f32 %v2104_v36, %v1855_v14 }
 0x317   : > { %v2124_v34 = vpack.c.bf16 %v1879_v15, %v1879_v15  ;;  %v1880_v30 = vmax.f32 %v1872_v16, 0.0 }
 0x318   : > { %v2122_v18 = vpack.c.bf16 %v1877_v17, %v1877_v17  ;;  %v1878_v29 = vmax.f32 %v1870_v54, 0.0 }
 0x319   : > { %1920 = vst.msk [vmem:[%s3085_s26 + $0x18] sm:$0xf] %vm1913_vm5, %v2124_v34  ;;  %v2125_v19 = vpack.c.bf16 %v1880_v30, %v1880_v30 }
 0x31a   : > { %1918 = vst.msk [vmem:[%s3085_s26 + $0x10] sm:$0xf] %vm1913_vm5, %v2122_v18  ;;  %v2123_v24 = vpack.c.bf16 %v1878_v29, %v1878_v29 }
 0x31b   : > { %1921 = vst.msk [vmem:[%s3085_s26 + $0x1c] sm:$0xf] %vm1913_vm5, %v2125_v19 }
 0x31c   : > { %1919 = vst.msk [vmem:[%s3085_s26 + $0x14] sm:$0xf] %vm1913_vm5, %v2123_v24 }
 0x31d PF: > { %s19_s30 = sadd.s32 1, %s2499_s30  }
 0x31e   : > { %p16_p4 = scmp.ge.s32.totalorder %s19_s30, 4  }
 0x320   :  { %18 = sbr.rel (!%p16_p4) target bundleno = 1 (0x1), region = 89 }

// kernel: multi_scale_dense121_forward.15
= control target key start
LH: loop header
LB: loop body
LE: loop exit
PB: predicated region body
PF: predicated region fallthrough
CT: control target
= control target key end

     0   :  { %s1834_s0 = inlined_call_operand.vmem [shape: bf16[2,64,64], index: 0, kind: input, shape index: {}]   ;;  %s1835_s1 = inlined_call_operand.vmem [shape: bf16[2,16,64], index: 1, kind: input, shape index: {}]   ;;  %s1836_s2 = inlined_call_operand.vmem [shape: bf16[2,4,64], index: 2, kind: input, shape index: {}]   ;;  %s1837_s3 = inlined_call_operand.vmem [shape: bf16[64,16], index: 3, kind: input, shape index: {}]   ;;  %s1838_s4 = inlined_call_operand.vmem [shape: bf16[64,4], index: 4, kind: input, shape index: {}]   ;;  %s1839_s5 = inlined_call_operand.vmem [shape: bf16[192,128], index: 5, kind: input, shape index: {}]   ;;  %s1840_s6 = inlined_call_operand.vmem [shape: f32[1,128], index: 6, kind: input, shape index: {}]   ;;  %s1841_s7 = inlined_call_operand.vmem [shape: f32[1,128], index: 7, kind: input, shape index: {}]   ;;  %s1842_s8 = inlined_call_operand.vmem [shape: f32[1,128], index: 8, kind: input, shape index: {}]   ;;  %s1843_s9 = inlined_call_operand.<no memory space> [shape: f32[1,1], index: 9, kind: input, shape index: {}]   ;;  %s1844_s10 = inlined_call_operand.hbm [shape: f32[2,1,64], index: 10, kind: output, shape index: {0}]   ;;  %s1845_s11 = inlined_call_operand.vmem [shape: f32[2,1,64], index: 11, kind: output, shape index: {1}]  }
   0x1   :  { %v17_v0 = vstv %s1843_s9 }
   0x2   :  { %18 = vst [vmem:[#allocation2] sm:$0x1] %v17_v0 }
   0x3   :  { %19 = vsyncpa [#allocation4], 0 }
   0x4   :  { %21 = vsyncpa [#allocation4 + $0x1], 0  ;;  %s1606_s19 = smov 0   ;;  %s1608_s20 = smov 0  }
   0x5   :  { %s1610_s21 = smov 0   ;;  %s1612_s22 = smov 0  }
   0x6 LB: > { %1849 = sst [smem:[#allocation6_spill]] %s1531_s21  ;;  %s1627_s9 = sadd.s32 4294967295, %s1535_s22   ;;  %s1535_s22 = sphi %s1612_s22, %s1854_s22   ;;  %s1531_s21 = sphi %s1610_s21, %s1856_s21   ;;  %s1527_s20 = sphi %s1608_s20, %s1858_s20   ;;  %s1523_s19 = sphi %s1606_s19, %s1857_s19  }
   0x7   : > { %s1232_s23 = sadd.s32 4294967294, %s1535_s22   ;;  %s1631_s24 = sadd.s32 1, %s1535_s22  }
   0x8   : > { %1850 = sst [smem:[#allocation7_spill]] %s1631_s24  ;;  %s259_s25 = sadd.s32 1, %s1531_s21 }
   0x9   : > { %s256_s26 = ssub.s32 %s1535_s22, %s1631_s24  ;;  %p269_p0 = scmp.ne.s32.totalorder %s1531_s21, %s1527_s20 }
   0xa   : > { %p257_p1 = scmp.eq.s32.totalorder %s256_s26, 0  ;;  %p270_p2 = scmp.eq.s32.totalorder %s1627_s9, 1 }
   0xb   : > { %p275_p3 = scmp.ne.s32.totalorder %s1527_s20, %s1523_s19  ;;  %p276_p4 = scmp.eq.s32.totalorder %s1232_s23, 1 }
   0xc   : > { %s1642_s27 = scalar_select %p257_p1, %s1531_s21, %s259_s25  }
   0xd   : > { %p1644_p5 = por %p270_p2, %p269_p0  ;;  %p1648_p6 = por %p276_p4, %p275_p3 }
   0xe   : > { %1851 = sst [smem:[#allocation8_spill]] %s1642_s27  ;;  %p1235_p7 = scmp.ge.s32.totalorder %s1535_s22, 1 }
   0xf   : > { %p364_p8 = scmp.lt.s32.totalorder %s1535_s22, 3 }
  0x11   : > { %p365_p9 = pnand %p1235_p7, %p364_p8 }
  0x12   : > { %p415_p10 = scmp.lt.s32.totalorder (!%p365_p9), %s1627_s9, 1  ;;  %v1443_v1 = vld [vmem:[%s1837_s3] sm:$0xff] (!%p365_p9)   ;;  %vm469_vm0 = vcmask (!%p365_p9), 130048   ;;  %vm593_vm1 = vcmask (!%p365_p9), 1041408   ;;  %v1444_v3 = vld [vmem:[%s1837_s3 + $0x8] sm:$0xff] (!%p365_p9)   ;;  %v1445_v4 = vld [vmem:[%s1837_s3 + $0x10] sm:$0xff] (!%p365_p9)  }
  0x13   : > { %368 = sbr.rel (%p365_p9) target bundleno = 1250 (0x4e2), region = 60  ;;  %1316 = vmatprep.mubr.msk.bf16.mxu1 (!%p365_p9), %vm469_vm0, %v1443_v1  ;;  %vm580_vm2 = vcmask (!%p365_p9), 31744   ;;  %v1446_v7 = vld [vmem:[%s1837_s3 + $0x18] sm:$0xff] (!%p365_p9)   ;;  %v1447_v8 = vld [vmem:[%s1838_s4] sm:$0xff] (!%p365_p9)   ;;  %v1448_v9 = vld [vmem:[%s1838_s4 + $0x8] sm:$0xff] (!%p365_p9)   ;;  %v1537_v13 = vmov (!%p365_p9), 0   ;;  %v926_v1 = vlaneseq (!%p365_p9) }
  0x14   : > { %v1449_v10 = vld [vmem:[%s1838_s4 + $0x10] sm:$0xff] (!%p365_p9)   ;;  %v1450_v11 = vld [vmem:[%s1838_s4 + $0x18] sm:$0xff] (!%p365_p9)   ;;  %v1451_v12 = vld [vmem:[%s1839_s5] sm:$0xff] (!%p365_p9)   ;;  %831 = vmatprep.subr.bf16.mxu0 (!%p365_p9), %v1537_v13  ;;  %1441 = vset.pattern.permute.xlu0 (!%p365_p9), %v1537_v13  ;;  %vm706_vm3 = vcmask (!%p365_p9), 523264   ;;  %v1539_v61 = vmov (!%p365_p9), 0.0|0.0   ;;  %vm1540_vm4 = vmmov (!%p365_p9), 0  }
  0x15   : > { %832 = vmatpush1.bf16.msra.mxu0 (!%p365_p9), %v1451_v12  ;;  %v1452_v14 = vld [vmem:[%s1839_s5 + $0x8] sm:$0xff] (!%p365_p9)   ;;  %v1453_v15 = vld [vmem:[%s1839_s5 + $0x10] sm:$0xff] (!%p365_p9)   ;;  %v1454_v16 = vld [vmem:[%s1839_s5 + $0x18] sm:$0xff] (!%p365_p9)   ;;  %v1541_v62 = vmov (!%p365_p9), 0.0   ;;  %vm1106_vm6 = vcmask (!%p365_p9), 516096   ;;  %s408_s30 = sand.u32 (!%p365_p9), 1, %s1527_s20  }
  0x16   : > { %833 = vmatprep.subr.bf16.mxu0 (!%p365_p9), %v1537_v13  ;;  %v1455_v17 = vld [vmem:[%s1839_s5 + $0x20] sm:$0xff] (!%p365_p9)   ;;  %v1456_v18 = vld [vmem:[%s1839_s5 + $0x28] sm:$0xff] (!%p365_p9)   ;;  %v1457_v19 = vld [vmem:[%s1839_s5 + $0x30] sm:$0xff] (!%p365_p9)  }
  0x17   : > { %v1458_v20 = vld [vmem:[%s1839_s5 + $0x38] sm:$0xff] (!%p365_p9)   ;;  %v1459_v21 = vld [vmem:[%s1839_s5 + $0x40] sm:$0xff] (!%p365_p9)   ;;  %v1460_v22 = vld [vmem:[%s1839_s5 + $0x48] sm:$0xff] (!%p365_p9)  }
  0x18   : > { %v1461_v23 = vld [vmem:[%s1839_s5 + $0x50] sm:$0xff] (!%p365_p9)   ;;  %v1462_v24 = vld [vmem:[%s1839_s5 + $0x58] sm:$0xff] (!%p365_p9)   ;;  %v946_v63 = vld [vmem:[#allocation2] sm:$0x1] (!%p365_p9) }
  0x19   : > { %834 = vmatpush1.bf16.msra.mxu0 (!%p365_p9), %v1452_v14  ;;  %v1278_v0 = vld [vmem:[%s1840_s6] ss:$0 sm:$0xff] (!%p365_p9) }
  0x1a   : > { %s1659_s13 = scalar_select %p415_p10, %s1627_s9, 1  ;;  %835 = vmatprep.subr.bf16.mxu0 %v1537_v13 }
  0x1c   : > { %s1285_s14 = sshll.u32 %s1659_s13, 3  ;;  %s1240_s18 = sshll.u32 %s1659_s13, 1 }
  0x1d   : > { %s424_s17 = scalar_lea.vmem %s1835_s1, %s1285_s14  ;;  %s428_s12 = scalar_lea.vmem %s1836_s2, %s1240_s18  ;;  %836 = vmatpush1.bf16.msra.mxu0 %v1453_v15 }
  0x1e   : > { %v1442_v2 = vld [vmem:[%s424_s17] sm:$0xff]   ;;  %s1284_s24 = sshll.u32 %s1659_s13, 5  ;;  %837 = vmatprep.subr.bf16.mxu0 %v1537_v13  ;;  %s431_s26 = scalar_lea.vmem %s1845_s11, %s1659_s13 }
  0x1f   : > { %1314 = vmatprep.subr.bf16.mxu1 %v1442_v2  ;;  %v559_v5 = vld [vmem:[%s428_s12] sm:$0x3]  ;;  %s1688_s18 = scalar_lea.vmem %s1834_s0, %s1284_s24  ;;  %s1538_s24 = smov 64  }
  0x20   : > { %1315 = vmatpush3.bf16.msra.mxu1 %v1442_v2  ;;  %v595_v6 = vsel %vm593_vm1, %v559_v5, 0  ;;  %v1463_v49 = vld [vmem:[%s1688_s18] sm:$0xff]   ;;  %v1464_v52 = vld [vmem:[%s1688_s18 + $0x8] sm:$0xff]   ;;  %v1465_v55 = vld [vmem:[%s1688_s18 + $0x10] sm:$0xff]   ;;  %s1281_s12 = sshll.u32 %s1627_s9, 4  ;;  %s409_s14 = scalar_lea.vmem [#allocation3], %s408_s30 }
  0x21   : > { %1396 = vmatprep.subr.msk.bf16.mxu1 %vm593_vm1, %v559_v5  ;;  %838 = vmatpush1.bf16.msra.mxu0 %v1454_v16  ;;  %v1466_v58 = vld [vmem:[%s1688_s18 + $0x18] sm:$0xff]   ;;  %s1131_s13 = sshll.u32 %s409_s14, 4  ;;  %s1791_s16 = scalar_lea.hbm %s1844_s10, %s1281_s12  ;;  %s1793_s13 = int_to_ptr.vmem [resolvable:$true] %s1131_s13 }
  0x22   : > { %839 = vmatprep.subr.bf16.mxu0 %v1537_v13  ;;  %s1116_s18 = scalar_lea.sflag [#allocation4], %s408_s30  ;;  %s1473_s17 = scalar_lea.vmem %s1793_s13, 16 }
  0x23   : > { %1317 = vmatmul.mubr.msk.bf16.vlgmr.msra.gmra.mrb[0].mxu1 %vm469_vm0, %v1444_v3  ;;  %v1279_v3 = vld [vmem:[%s1841_s7] ss:$0 sm:$0xff]  ;;  %p1474_p11 = scmp.ne.s32.totalorder %s1793_s13, %s1473_s17  ;;  %s1542_s9 = smov [#allocation3]  }
  0x24   : > { %1320 = vmatprep.mubr.msk.bf16.mxu1 %vm469_vm0, %v1445_v4  ;;  %1325 = vmatpush3.bf16.msra.mxu1 %v595_v6  ;;  %v927_v6 = vand.u32 127, %v926_v1  ;;  %s1477_s21 = sshll.u32 %s1542_s9, 4  ;;  %s1478_s21 = int_to_ptr.vmem [resolvable:$false] %s1477_s21 }
  0x25   : > { %840 = vmatpush1.bf16.msra.mxu0 %v1455_v17  ;;  %1372 = vmatprep.subr.bf16.mxu1 %v1539_v61  ;;  %p1475_p12 = pnand %p1474_p11, %p1644_p5  ;;  %s1479_s27 = scalar_lea.vmem %s1478_s21, 32 }
  0x26   : > { %841 = vmatprep.subr.bf16.mxu0 %v1537_v13  ;;  %vm928_vm5 = vcmp.ge.s32.totalorder %v927_v6, 64  ;;  %p1480_p0 = scmp.lt.s32.totalorder %s1793_s13, %s1478_s21  ;;  %p1481_p1 = scmp.lt.s32.totalorder %s1479_s27, %s1473_s17 }
  0x27   : > { %p1476_p13 = pneg %p1475_p12 }
  0x28   : > { %p1482_p2 = por %p1481_p1, %p1480_p0 }
  0x29   : > { %842 = vmatpush1.bf16.msra.mxu0 %v1456_v18 }
  0x2a   : > { %843 = vmatprep.subr.bf16.mxu0 %v1537_v13  ;;  %p1483_p3 = pnand %p1482_p2, %p1476_p13 }
  0x2b   : > { %1321 = vmatmul.mubr.msk.bf16.gmra.mrb[4].mxu1 %vm469_vm0, %v1446_v7 }
  0x2c   : > { %1326 = vmatprep.mubr.msk.bf16.mxu1 %vm580_vm2, %v1447_v8 }
  0x2d   : > { %844 = vmatpush1.bf16.msra.mxu0 %v1457_v19 }
  0x2e   : > { %845 = vmatprep.subr.bf16.mxu0 %v1537_v13 }
  0x31   : > { %846 = vmatpush1.bf16.msra.mxu0 %v1458_v20 }
  0x32   : > { %847 = vmatprep.subr.bf16.mxu0 %v1537_v13 }
  0x33   : > { %1327 = vmatmul.mubr.msk.bf16.vlgmr.msra.gmra.mrb[8].mxu1 %vm580_vm2, %v1448_v9 }
  0x34   : > { %1330 = vmatprep.mubr.msk.bf16.mxu1 %vm580_vm2, %v1449_v10 }
  0x35   : > { %848 = vmatpush1.bf16.msra.mxu0 %v1459_v21 }
  0x36   : > { %849 = vmatprep.subr.bf16.mxu0 %v1537_v13 }
  0x39   : > { %850 = vmatpush1.bf16.msra.mxu0 %v1460_v22 }
  0x3a   : > { %851 = vmatprep.subr.bf16.mxu0 %v1537_v13 }
  0x3b   : > { %1331 = vmatmul.mubr.msk.bf16.gmra.mrb[12].mxu1 %vm580_vm2, %v1450_v11 }
  0x3c   : > { %1350 = vmatprep.mubr.msk.f32.mxu1 %vm1540_vm4, %v1541_v62 }
  0x3d   : > { %852 = vmatpush1.bf16.msra.mxu0 %v1461_v23 }
  0x3e   : > { %853 = vmatprep.subr.bf16.mxu0 %v1537_v13 }
  0x41   : > { %854 = vmatpush1.bf16.msra.mxu0 %v1462_v24 }
  0xf6   : > { %v1318_v25 = vpop.f32.mrb[0].mxu1 }
  0xf7   : > { %v516_v26 = vpop.f32.mrb[1].mxu1 }
  0xf8   : > { %v1319_v27 = vpop.f32.mrb[2].mxu1 }
  0xf9   : > { %v548_v28 = vpack.c.bf16 %v1319_v27, %v1318_v25  ;;  %v519_v29 = vpop.f32.mrb[3].mxu1 }
  0xfa   : > { %v547_v30 = vpack.c.bf16 %v519_v29, %v516_v26 }
  0xfc   : > { %698 = vrot.lane.b32.xlu0 %v547_v30, %s1538_s24 }
  0xfe   : > { %v1322_v31 = vpop.f32.mrb[4].mxu1 }
  0xff   : > { %v532_v32 = vpop.f32.mrb[5].mxu1 }
 0x100   : > { %700 = vrot.lane.b32.xlu0 %v548_v28, %s1538_s24  ;;  %v1323_v33 = vpop.f32.mrb[6].mxu1 }
 0x101   : > { %v550_v34 = vpack.c.bf16 %v1323_v33, %v1322_v31  ;;  %v535_v35 = vpop.f32.mrb[7].mxu1 }
 0x102   : > { %v549_v36 = vpack.c.bf16 %v535_v35, %v532_v32 }
 0x104   : > { %702 = vrot.lane.b32.xlu1 %v549_v36, %s1538_s24  ;;  %949 = vperm.xlu0 %1441, %v946_v63  }
 0x106   : > { %v1328_v37 = vpop.f32.mrb[8].mxu1 }
 0x107   : > { %v631_v38 = vpop.f32.mrb[9].mxu1 }
 0x108   : > { %704 = vrot.lane.b32.xlu1 %v550_v34, %s1538_s24  ;;  %v1329_v39 = vpop.f32.mrb[10].mxu1 }
 0x109   : > { %v663_v40 = vpack.c.bf16 %v1329_v39, %v1328_v37  ;;  %v634_v41 = vpop.f32.mrb[11].mxu1 }
 0x10a   : > { %v662_v42 = vpack.c.bf16 %v634_v41, %v631_v38 }
 0x10c   : > { %1274 = vmatprep.mubr.msk.bf16.mxu0 %vm706_vm3, %v662_v42 }
 0x10e   : > { %v1332_v43 = vpop.f32.mrb[12].mxu1 }
 0x10f   : > { %v647_v44 = vpop.f32.mrb[13].mxu1 }
 0x110   : > { %v1333_v45 = vpop.f32.mrb[14].mxu1 }
 0x111   : > { %v665_v46 = vpack.c.bf16 %v1333_v45, %v1332_v43  ;;  %v650_v47 = vpop.f32.mrb[15].mxu1 }
 0x112   : > { %v664_v48 = vpack.c.bf16 %v650_v47, %v647_v44 }
 0x16e   : > { %v699_v50 = vpop.permute.xlu0 %698 }
 0x16f   : > { %v709_v51 = vsel %vm706_vm3, %v1463_v49, %v699_v50 }
 0x170   : > { %864 = vmatmul.mubr.bf16.vlgmr.msra.gmra.mrb[0].mxu0 %v709_v51 }
 0x171   : > { %1275 = vmatprep.mubr.msk.bf16.mxu0 %vm706_vm3, %v663_v40 }
 0x172   : > { %v701_v53 = vpop.permute.xlu0 %700 }
 0x173   : > { %v713_v54 = vsel %vm706_vm3, %v1464_v52, %v701_v53 }
 0x176   : > { %v703_v56 = vpop.permute.xlu1 %702 }
 0x177   : > { %v717_v57 = vsel %vm706_vm3, %v1465_v55, %v703_v56  ;;  %v945_v56 = vld [vmem:[%s1842_s8] sm:$0x1] }
 0x178   : > { %872 = vmatmul.mubr.bf16.gmra.mrb[4].mxu0 %v713_v54 }
 0x179   : > { %1276 = vmatprep.mubr.msk.bf16.mxu0 %vm706_vm3, %v664_v48 }
 0x17a   : > { %v705_v59 = vpop.permute.xlu1 %704 }
 0x17b   : > { %v721_v60 = vsel %vm706_vm3, %v1466_v58, %v705_v59 }
 0x180   : > { %880 = vmatmul.mubr.bf16.gmra.mrb[8].mxu0 %v717_v57  ;;  %v953_v57 = vshrl.u32 %v926_v1, 7 }
 0x181   : > { %1277 = vmatprep.mubr.msk.bf16.mxu0 %vm706_vm3, %v665_v46 }
 0x182   : > { %v954_v58 = vsub.s32 0, %v953_v57 }
 0x183   : > { %v950_v59 = vpop.permute.xlu0 %949 }
 0x188   : > { %888 = vmatmul.mubr.bf16.gmra.mrb[12].mxu0 %v721_v60  ;;  %v955_v60 = vrot.slane %v950_v59, %v954_v58 }
 0x243   : > { %v865_v2 = vpop.f32.mrb[0].mxu0 }
 0x244   : > { %v903_v4 = vmul.f32 %v1278_v0, %v865_v2  ;;  %v867_v5 = vpop.f32.mrb[1].mxu0 }
 0x245   : > { %v868_v7 = vpop.f32.mrb[2].mxu0 }
 0x246   : > { %v918_v8 = vadd.f32 %v1279_v3, %v903_v4  ;;  %v904_v9 = vmul.f32 %v1278_v0, %v868_v7  ;;  %v870_v10 = vpop.f32.mrb[3].mxu0 }
 0x248   : > { %v929_v11 = vmax.f32 %v918_v8, 0.0  ;;  %v919_v12 = vadd.f32 %v1279_v3, %v904_v9 }
 0x24a   : > { %v930_v13 = vmax.f32 %v919_v12, 0.0  ;;  %v937_v15 = vsel %vm928_vm5, %v929_v11, %v918_v8 }
 0x24b   : > { %v873_v14 = vpop.f32.mrb[4].mxu0 }
 0x24c   : > { %v938_v16 = vsel %vm928_vm5, %v930_v13, %v919_v12  ;;  %v905_v17 = vmul.f32 %v1278_v0, %v873_v14  ;;  %v875_v18 = vpop.f32.mrb[5].mxu0 }
 0x24d   : > { %v876_v19 = vpop.f32.mrb[6].mxu0  ;;  %v1373_v20 = vpack.c.bf16 %v938_v16, %v937_v15 }
 0x24e   : > { %v920_v21 = vadd.f32 %v1279_v3, %v905_v17  ;;  %v906_v22 = vmul.f32 %v1278_v0, %v876_v19  ;;  %v878_v23 = vpop.f32.mrb[7].mxu0 }
 0x24f   : > { %1374 = vmatpush3.bf16.xpose.msra.mxu1 %v1373_v20 }
 0x250   : > { %v931_v24 = vmax.f32 %v920_v21, 0.0  ;;  %v921_v25 = vadd.f32 %v1279_v3, %v906_v22  ;;  %1375 = vmatprep.subr.bf16.mxu1 %v1539_v61 }
 0x252   : > { %v932_v26 = vmax.f32 %v921_v25, 0.0  ;;  %v939_v28 = vsel %vm928_vm5, %v931_v24, %v920_v21 }
 0x253   : > { %v881_v27 = vpop.f32.mrb[8].mxu0 }
 0x254   : > { %v940_v29 = vsel %vm928_vm5, %v932_v26, %v921_v25  ;;  %v907_v30 = vmul.f32 %v1278_v0, %v881_v27  ;;  %v883_v31 = vpop.f32.mrb[9].mxu0 }
 0x255   : > { %v884_v32 = vpop.f32.mrb[10].mxu0  ;;  %v1376_v33 = vpack.c.bf16 %v940_v29, %v939_v28 }
 0x256   : > { %v922_v34 = vadd.f32 %v1279_v3, %v907_v30  ;;  %v908_v35 = vmul.f32 %v1278_v0, %v884_v32  ;;  %v886_v36 = vpop.f32.mrb[11].mxu0 }
 0x257   : > { %1377 = vmatpush3.bf16.xpose.msra.mxu1 %v1376_v33 }
 0x258   : > { %v933_v37 = vmax.f32 %v922_v34, 0.0  ;;  %v923_v38 = vadd.f32 %v1279_v3, %v908_v35  ;;  %1378 = vmatprep.subr.bf16.mxu1 %v1539_v61 }
 0x25a   : > { %v934_v39 = vmax.f32 %v923_v38, 0.0  ;;  %v941_v41 = vsel %vm928_vm5, %v933_v37, %v922_v34 }
 0x25b   : > { %v889_v40 = vpop.f32.mrb[12].mxu0 }
 0x25c   : > { %v942_v42 = vsel %vm928_vm5, %v934_v39, %v923_v38  ;;  %v909_v43 = vmul.f32 %v1278_v0, %v889_v40  ;;  %v891_v44 = vpop.f32.mrb[13].mxu0 }
 0x25d   : > { %v892_v45 = vpop.f32.mrb[14].mxu0  ;;  %v1379_v46 = vpack.c.bf16 %v942_v42, %v941_v41 }
 0x25e   : > { %v924_v47 = vadd.f32 %v1279_v3, %v909_v43  ;;  %v910_v48 = vmul.f32 %v1278_v0, %v892_v45  ;;  %v894_v49 = vpop.f32.mrb[15].mxu0 }
 0x25f   : > { %1380 = vmatpush3.bf16.xpose.msra.mxu1 %v1379_v46 }
 0x260   : > { %v935_v50 = vmax.f32 %v924_v47, 0.0  ;;  %v925_v51 = vadd.f32 %v1279_v3, %v910_v48  ;;  %1381 = vmatprep.subr.bf16.mxu1 %v1539_v61 }
 0x262   : > { %v936_v52 = vmax.f32 %v925_v51, 0.0  ;;  %v943_v53 = vsel %vm928_vm5, %v935_v50, %v924_v47 }
 0x264   : > { %v944_v54 = vsel %vm928_vm5, %v936_v52, %v925_v51 }
 0x265   : > { %v1382_v55 = vpack.c.bf16 %v944_v54, %v943_v53 }
 0x267   : > { %1383 = vmatpush3.bf16.xpose.msra.mxu1 %v1382_v55 }
 0x268   : > { %1384 = vmatprep.subr.bf16.mxu1 %v1539_v61 }
 0x26e   : > { %1351 = vmatmul.mubr.f32.vlgmr.msra.gmra.mrb[16].mxu1 %v945_v56 }
 0x26f   : > { %1386 = vmatpush3.bf16.msra.mxu1 %v1373_v20  ;;  %1369 = vmatprep.mubr.msk.f32.mxu1 %vm1540_vm4, %v1541_v62 }
 0x270   : > { %1387 = vmatprep.subr.bf16.mxu1 %v1539_v61 }
 0x273   : > { %1389 = vmatpush3.bf16.msra.mxu1 %v1376_v33 }
 0x274   : > { %1390 = vmatprep.subr.bf16.mxu1 %v1539_v61 }
 0x277   : > { %1392 = vmatpush3.bf16.msra.mxu1 %v1379_v46 }
 0x278   : > { %1393 = vmatprep.subr.bf16.mxu1 %v1539_v61 }
 0x27b   : > { %1395 = vmatpush3.bf16.msra.mxu1 %v1382_v55 }
 0x341   : > { %v1022_v63 = vpop.f32.mrb[16].mxu1 }
 0x342   : > { %v1023_v0 = vadd.f32 %v1022_v63, %v955_v60  ;;  %v1352_v2 = vpop.f32.mrb[17].mxu1 }
 0x344   : > { %v1026_v3 = vsub.f32 0.0, %v1023_v0 }
 0x346   : > { %v1027_v62 = vmul.f32 1.442695, %v1026_v3 }
 0x348   : > { %1467 = vpow2.f32 %v1027_v62 }
 0x352   : > { %v1468_v4 = vpop.eup %1467 }
 0x353   : > { %v1029_v5 = vadd.f32 1.0, %v1468_v4 }
 0x355   : > { %1469 = vrcp.f32 %v1029_v5 }
 0x35f   : > { %v1470_v61 = vpop.eup %1469 }
 0x360   : > { %1370 = vmatmul.mubr.msk.f32.vlgmr.msra.gmra.mrb[18].mxu1 %vm706_vm3, %v1470_v61  ;;  %1114 = vst.msk [vmem:[%s431_s26] sm:$0x1] %vm1106_vm6, %v1470_v61 }
 0x433   : > { %v1101_v1 = vpop.f32.mrb[18].mxu1 }
 0x434   : > { %v1105_v6 = vmul.f32 %v1101_v1, %v1101_v1  ;;  %v1371_v7 = vpop.f32.mrb[19].mxu1 }
 0x436   : > { %v1107_v8 = vsel %vm1106_vm6, %v1105_v6, 0.0 }
 0x437   : > { %1108 = vadd.xlane.f32.xlu1 %v1107_v8 }
 0x4c4   : > { %v1109_v9 = vpop.xlane.xlu1 %1108 }
 0x4c5   : > { %v1110_v10 = vadd.f32 1e-10, %v1109_v9 }
 0x4c7   : > { %1471 = vrsqrt.f32 %v1110_v10 }
 0x4d1   : > { %v1472_v11 = vpop.eup %1471 }
 0x4d2   : > { %v1112_v12 = vmul.f32 %v1472_v11, %v1101_v1 }
 0x4d4   : > { %1113 = vst.msk [vmem:[%s409_s14] sm:$0x1] %vm1106_vm6, %v1112_v12 }
 0x4d5   : > { %1486 = shalt.err (!%p1483_p3)
}
 0x4d6   : > { %s1487_s23 = scalar_lea.hbm %s1791_s16, 16  ;;  %s1491_s30 = scalar_lea.hbm %s1844_s10, 32 }
 0x4d7   : > { %p1488_p4 = scmp.ne.s32.totalorder %s1791_s16, %s1487_s23  ;;  %p1492_p9 = scmp.lt.u32.totalorder %s1791_s16, %s1844_s10 }
 0x4d8   : > { %p1493_p10 = scmp.lt.u32.totalorder %s1491_s30, %s1487_s23  ;;  %p1495_p12 = scmp.lt.u32.totalorder %s1487_s23, %s1791_s16 }
 0x4d9   : > { %p1489_p7 = pnand %p1488_p4, %p1644_p5 }
 0x4da   : > { %p1494_p11 = por %p1493_p10, %p1492_p9 }
 0x4db   : > { %p1490_p8 = pneg %p1489_p7 }
 0x4dc   : > { %p1496_p13 = por %p1495_p12, %p1494_p11 }
 0x4de   : > { %p1497_p0 = pnand %p1496_p13, %p1490_p8 }
 0x4e0   : > { %1500 = shalt.err (!%p1497_p0)
}
 0x4e1   : > { %1397 = dma.vmem_to_hbm [thread:$0]  (%p1644_p5), %s1793_s13, 16, %s1791_s16, %s1116_s18  }
 0x4e2 PF: > { %p1403_p1 = scmp.ge.s32.totalorder %s1535_s22, 2  ;;  %s1146_s24 = sand.u32 1, %s1523_s19  }
 0x4e3   : > { %s1147_s15 = scalar_lea.sflag [#allocation4], %s1146_s24 }
 0x4e4   : > { %p1400_p2 = pnand %p1403_p1, %p1648_p6 }
 0x4e6   : > { %1518 = dma.done.wait (!%p1400_p2), %s1147_s15, 16  }
 0x4e7   : > { %1520 = vsyncadd (!%p1400_p2), %s1147_s15, 4294967280  ;;  %s1854_s22 = sld [smem:[#allocation7_spill]]  ;;  %s1855_s17 = sld [smem:[#allocation6_spill]] }
 0x4e8   : > { %s1856_s21 = sld [smem:[#allocation8_spill]]  ;;  %s1857_s19 = smov %s1527_s20 }
 0x4ed   : > { %p24_p3 = scmp.ge.s32.totalorder %s1854_s22, 4   ;;  %s1858_s20 = smov %s1855_s17 }
 0x4ef   :  { %26 = sbr.rel (!%p24_p3) target bundleno = 6 (0x6), region = 113 }
 0x4f6   :  { %1157 = vsyncpa [#allocation4], 1 }
 0x4f7   :  { %1159 = vsyncpa [#allocation4 + $0x1], 1 }

</bundles_post_ra>
